<compile_context>
chip_gen: v7x
topology: tpu7x:2x2x1
jax: 0.10.0
libtpu: 0.0.40
codegen_flags: <defaults>
</compile_context>

<pallas_src>
import jax
import jax.numpy as jnp
from jax import lax
from jax.experimental import pallas as pl
from jax.experimental.pallas import tpu as pltpu

# ---- small sizes consistent with the module's structure (CLIP: 77 / 512 / 8 heads / 12 layers) ----
BATCH    = 64
SEQ_LEN  = 16          # CLIP context length is 77 (pad to 80 at real size)
WIDTH    = 128         # CLIP text width is 512; lane-aligned
HEADS    = 2
HEAD_DIM = WIDTH // HEADS
LAYERS   = 2           # CLIP uses 12
MLP_DIM  = 4 * WIDTH
PROJ_DIM = 128         # CLIP embed dim is 512
TB       = 16          # batch tile per grid step: TB*SEQ_LEN = 256 rows per matmul
VOCAB    = 1000

BF16_WEIGHTS = ('w_in', 'w_out', 'w_fc', 'w_pr', 'tproj')   # big matrices -> bf16


def _layer_norm(x, g, b, eps=1e-5):
    mu = jnp.mean(x, axis=-1, keepdims=True)
    xc = x - mu
    var = jnp.mean(xc * xc, axis=-1, keepdims=True)
    return xc * lax.rsqrt(var + eps) * g + b


def _text_encoder_kernel(
        prompts_ref, eot_ref, pos_ref,
        ln1_g_ref, ln1_b_ref, w_in_ref, b_in_ref, w_out_ref, b_out_ref,
        ln2_g_ref, ln2_b_ref, w_fc_ref, b_fc_ref, w_pr_ref, b_pr_ref,
        lnf_g_ref, lnf_b_ref, tproj_ref,
        out_ref):
    tb, s, d = prompts_ref.shape

    # x = prompts + positional_embedding (residual stream kept in f32)
    x0 = prompts_ref[...] + pos_ref[...][None, :, :]

    # causal attention bias (S, S) — CLIP's text transformer uses a causal mask.
    qi = lax.broadcasted_iota(jnp.int32, (s, s), 0)
    ki = lax.broadcasted_iota(jnp.int32, (s, s), 1)
    causal = jnp.where(ki <= qi, 0.0, -1e30).astype(jnp.float32)

    scale = jnp.float32(1.0 / (HEAD_DIM ** 0.5))

    def layer_body(l, x):
        # ---- multi-head self-attention block: x = x + out_proj(MHA(LN1(x))) ----
        h = _layer_norm(x, ln1_g_ref[pl.ds(l, 1), :][None],
                           ln1_b_ref[pl.ds(l, 1), :][None]).astype(jnp.bfloat16)
        qkv = jnp.dot(h.reshape(tb * s, d), w_in_ref[l],
                      preferred_element_type=jnp.float32)          # (TB*S, 3D) f32
        qkv = qkv.reshape(tb, s, 3 * d) + b_in_ref[pl.ds(l, 1), :][None]
        q = qkv[:, :, 0:d]
        k = qkv[:, :, d:2 * d]
        v = qkv[:, :, 2 * d:3 * d]

        ctx_parts = []
        for hh in range(HEADS):
            lo, hi = hh * HEAD_DIM, (hh + 1) * HEAD_DIM
            qh = q[:, :, lo:hi].astype(jnp.bfloat16)
            kh = k[:, :, lo:hi].astype(jnp.bfloat16)
            vh = v[:, :, lo:hi].astype(jnp.bfloat16)
            sc = jnp.einsum('bqd,bkd->bqk', qh, kh,
                            preferred_element_type=jnp.float32) * scale
            sc = sc + causal[None, :, :]
            sc = sc - jnp.max(sc, axis=-1, keepdims=True)          # stable softmax in f32
            p = jnp.exp(sc)
            p = p / jnp.sum(p, axis=-1, keepdims=True)
            oh = jnp.einsum('bqk,bkd->bqd', p.astype(jnp.bfloat16), vh,
                            preferred_element_type=jnp.float32)    # (TB, S, Hd)
            ctx_parts.append(oh.astype(jnp.bfloat16))
        # concat heads -> lane-dense (TB*S, D) slab, ONE K=WIDTH matmul against Wo
        ctx = jnp.concatenate(ctx_parts, axis=-1)                   # (TB, S, D) bf16
        attn = jnp.dot(ctx.reshape(tb * s, d), w_out_ref[l],
                       preferred_element_type=jnp.float32).reshape(tb, s, d)
        x = x + attn + b_out_ref[pl.ds(l, 1), :][None]

        # ---- MLP block: x = x + c_proj(QuickGELU(c_fc(LN2(x)))) ----
        h2 = _layer_norm(x, ln2_g_ref[pl.ds(l, 1), :][None],
                            ln2_b_ref[pl.ds(l, 1), :][None]).astype(jnp.bfloat16)
        f = jnp.dot(h2.reshape(tb * s, d), w_fc_ref[l],
                    preferred_element_type=jnp.float32)             # (TB*S, 4D) f32
        f = f.reshape(tb, s, MLP_DIM) + b_fc_ref[pl.ds(l, 1), :][None]
        f = f * jax.nn.sigmoid(1.702 * f)                            # QuickGELU, f32
        y = jnp.dot(f.astype(jnp.bfloat16).reshape(tb * s, MLP_DIM), w_pr_ref[l],
                    preferred_element_type=jnp.float32).reshape(tb, s, d)
        x = x + y + b_pr_ref[pl.ds(l, 1), :][None]
        return x

    x = lax.fori_loop(0, LAYERS, layer_body, x0)

    # ---- ln_final, EOT-token select (argmax one-hot), text projection ----
    xf = _layer_norm(x, lnf_g_ref[...][None], lnf_b_ref[...][None])
    eot = jnp.sum(xf * eot_ref[...], axis=1)                         # (TB, D) f32
    out_ref[...] = jnp.dot(eot.astype(jnp.bfloat16), tproj_ref[...],
                           preferred_element_type=jnp.float32).astype(out_ref.dtype)


def text_encoder_forward(prompts, tokenized_prompts, params, *, tb=TB):
    """prompts: (B, S, D) f32; tokenized_prompts: (B, S) int32.
       Returns projected EOT embeddings (B, PROJ_DIM) f32."""
    b, s, d = prompts.shape
    p_dim = params['tproj'].shape[-1]
    assert b % tb == 0, "batch must be a multiple of the batch tile"
    assert s % 8 == 0, "pad SEQ_LEN to a multiple of 8 sublanes"

    # EOT position (argmax over token ids) -> one-hot selector; pure index glue.
    eot_sel = jax.nn.one_hot(jnp.argmax(tokenized_prompts, axis=-1), s,
                             dtype=jnp.float32)[:, :, None]          # (B, S, 1)

    order = ('pos', 'ln1_g', 'ln1_b', 'w_in', 'b_in', 'w_out', 'b_out',
             'ln2_g', 'ln2_b', 'w_fc', 'b_fc', 'w_pr', 'b_pr',
             'lnf_g', 'lnf_b', 'tproj')
    weight_args = [params[k].astype(jnp.bfloat16) if k in BF16_WEIGHTS
                   else params[k].astype(jnp.float32) for k in order]

    def full(arr):
        nd = arr.ndim
        return pl.BlockSpec(arr.shape, lambda i, _n=nd: (0,) * _n)   # VMEM-resident

    grid_spec = pltpu.PrefetchScalarGridSpec(
        num_scalar_prefetch=0,
        grid=(b // tb,),
        in_specs=[
            pl.BlockSpec((tb, s, d), lambda i: (i, 0, 0)),   # prompts batch tile
            pl.BlockSpec((tb, s, 1), lambda i: (i, 0, 0)),   # EOT one-hot tile
        ] + [full(a) for a in weight_args],
        out_specs=pl.BlockSpec((tb, p_dim), lambda i: (i, 0)),
    )

    return pl.pallas_call(
        _text_encoder_kernel,
        grid_spec=grid_spec,
        out_shape=jax.ShapeDtypeStruct((b, p_dim), jnp.float32),
        compiler_params=pltpu.CompilerParams(
            dimension_semantics=("parallel",),          # batch tiles are independent
            vmem_limit_bytes=48 * 1024 * 1024,          # above v5e/v6e scoped defaults
        ),
    )(prompts.astype(jnp.float32), eot_sel, *weight_args)


# ----------------------------- pure-JAX reference -----------------------------
def text_encoder_reference(prompts, tokenized_prompts, params):
    # Reference uses the same bf16-rounded weight values (f32 HIGHEST compute),
    # so the comparison isolates in-kernel activation-precision drift.
    pr = {k: (v.astype(jnp.bfloat16).astype(jnp.float32) if k in BF16_WEIGHTS else v)
          for k, v in params.items()}
    hp = lax.Precision.HIGHEST
    x = prompts + pr['pos'][None]
    b, s, d = x.shape
    causal = jnp.where(jnp.arange(s)[None, :] <= jnp.arange(s)[:, None],
                       0.0, -1e30).astype(jnp.float32)
    for l in range(LAYERS):
        h = _layer_norm(x, pr['ln1_g'][l], pr['ln1_b'][l])
        qkv = jnp.einsum('bsd,de->bse', h, pr['w_in'][l],
                         precision=hp) + pr['b_in'][l]
        q, k, v = jnp.split(qkv, 3, axis=-1)
        qh = q.reshape(b, s, HEADS, HEAD_DIM).transpose(0, 2, 1, 3)
        kh = k.reshape(b, s, HEADS, HEAD_DIM).transpose(0, 2, 1, 3)
        vh = v.reshape(b, s, HEADS, HEAD_DIM).transpose(0, 2, 1, 3)
        sc = jnp.einsum('bhqd,bhkd->bhqk', qh, kh,
                        precision=hp) / (HEAD_DIM ** 0.5)
        p = jax.nn.softmax(sc + causal, axis=-1)
        o = jnp.einsum('bhqk,bhkd->bhqd', p, vh, precision=hp)
        o = o.transpose(0, 2, 1, 3).reshape(b, s, d)
        x = x + jnp.einsum('bsd,de->bse', o, pr['w_out'][l],
                           precision=hp) + pr['b_out'][l]
        h2 = _layer_norm(x, pr['ln2_g'][l], pr['ln2_b'][l])
        f = jnp.einsum('bsd,de->bse', h2, pr['w_fc'][l],
                       precision=hp) + pr['b_fc'][l]
        f = f * jax.nn.sigmoid(1.702 * f)
        x = x + jnp.einsum('bsd,de->bse', f, pr['w_pr'][l],
                           precision=hp) + pr['b_pr'][l]
    x = _layer_norm(x, pr['lnf_g'][0], pr['lnf_b'][0])
    eot = x[jnp.arange(b), jnp.argmax(tokenized_prompts, axis=-1)]
    return jnp.einsum('bd,de->be', eot, pr['tproj'], precision=hp)


if __name__ == "__main__":
    key = jax.random.PRNGKey(0)
    ks = jax.random.split(key, 18)

    def nrm(k, shape, scale=0.02):
        return scale * jax.random.normal(k, shape, jnp.float32)

    params = {
        'pos':   nrm(ks[0], (SEQ_LEN, WIDTH), 0.01),
        'ln1_g': 1.0 + nrm(ks[1], (LAYERS, WIDTH), 0.05),
        'ln1_b': nrm(ks[2], (LAYERS, WIDTH)),
        'w_in':  nrm(ks[3], (LAYERS, WIDTH, 3 * WIDTH)),
        'b_in':  nrm(ks[4], (LAYERS, 3 * WIDTH)),
        'w_out': nrm(ks[5], (LAYERS, WIDTH, WIDTH)),
        'b_out': nrm(ks[6], (LAYERS, WIDTH)),
        'ln2_g': 1.0 + nrm(ks[7], (LAYERS, WIDTH), 0.05),
        'ln2_b': nrm(ks[8], (LAYERS, WIDTH)),
        'w_fc':  nrm(ks[9], (LAYERS, WIDTH, MLP_DIM)),
        'b_fc':  nrm(ks[10], (LAYERS, MLP_DIM)),
        'w_pr':  nrm(ks[11], (LAYERS, MLP_DIM, WIDTH)),
        'b_pr':  nrm(ks[12], (LAYERS, WIDTH)),
        'lnf_g': 1.0 + nrm(ks[13], (1, WIDTH), 0.05),
        'lnf_b': nrm(ks[14], (1, WIDTH)),
        'tproj': nrm(ks[15], (WIDTH, PROJ_DIM)),
    }

    prompts = jax.random.normal(ks[16], (BATCH, SEQ_LEN, WIDTH), jnp.float32)
    tokenized = jax.random.randint(ks[17], (BATCH, SEQ_LEN), 0, VOCAB, jnp.int32)

    out = text_encoder_forward(prompts, tokenized, params)
    out = jax.block_until_ready(out)

    ref = text_encoder_reference(prompts, tokenized, params)
    assert out.shape == (BATCH, PROJ_DIM)
    assert jnp.allclose(out, ref, atol=2e-2, rtol=2e-2), \
        float(jnp.max(jnp.abs(out - ref)))

    print("KERNEL_OK")
</pallas_src>

<mosaic_0001>
module attributes {stable_mosaic.version = 11 : i64} {
  func.func @_text_encoder_kernel(%arg0: i32, %arg1: memref<16x16x128xf32, #tpu.memory_space<vmem>>, %arg2: memref<16x16x1xf32, #tpu.memory_space<vmem>>, %arg3: memref<16x128xf32, #tpu.memory_space<vmem>>, %arg4: memref<2x128xf32, #tpu.memory_space<vmem>>, %arg5: memref<2x128xf32, #tpu.memory_space<vmem>>, %arg6: memref<2x128x384xbf16, #tpu.memory_space<vmem>>, %arg7: memref<2x384xf32, #tpu.memory_space<vmem>>, %arg8: memref<2x128x128xbf16, #tpu.memory_space<vmem>>, %arg9: memref<2x128xf32, #tpu.memory_space<vmem>>, %arg10: memref<2x128xf32, #tpu.memory_space<vmem>>, %arg11: memref<2x128xf32, #tpu.memory_space<vmem>>, %arg12: memref<2x128x512xbf16, #tpu.memory_space<vmem>>, %arg13: memref<2x512xf32, #tpu.memory_space<vmem>>, %arg14: memref<2x512x128xbf16, #tpu.memory_space<vmem>>, %arg15: memref<2x128xf32, #tpu.memory_space<vmem>>, %arg16: memref<1x128xf32, #tpu.memory_space<vmem>>, %arg17: memref<1x128xf32, #tpu.memory_space<vmem>>, %arg18: memref<128x128xbf16, #tpu.memory_space<vmem>>, %arg19: memref<16x128xf32, #tpu.memory_space<vmem>>) attributes {dimension_semantics = [#tpu.dimension_semantics<parallel>], iteration_bounds = array<i64: 4>, scalar_prefetch = 0 : i64, scratch_operands = 0 : i64, tpu.core_type = #tpu.core_type<tc>, window_params = [{transform_indices = @transform_0, window_bounds = array<i64: 16, 16, 128>}, {transform_indices = @transform_1, window_bounds = array<i64: 16, 16, 1>}, {pipeline_mode = #tpu.pipeline_mode<synchronous>, transform_indices = @transform_2, window_bounds = array<i64: 16, 128>}, {pipeline_mode = #tpu.pipeline_mode<synchronous>, transform_indices = @transform_3, window_bounds = array<i64: 2, 128>}, {pipeline_mode = #tpu.pipeline_mode<synchronous>, transform_indices = @transform_4, window_bounds = array<i64: 2, 128>}, {pipeline_mode = #tpu.pipeline_mode<synchronous>, transform_indices = @transform_5, window_bounds = array<i64: 2, 128, 384>}, {pipeline_mode = #tpu.pipeline_mode<synchronous>, transform_indices = @transform_6, window_bounds = array<i64: 2, 384>}, {pipeline_mode = #tpu.pipeline_mode<synchronous>, transform_indices = @transform_7, window_bounds = array<i64: 2, 128, 128>}, {pipeline_mode = #tpu.pipeline_mode<synchronous>, transform_indices = @transform_8, window_bounds = array<i64: 2, 128>}, {pipeline_mode = #tpu.pipeline_mode<synchronous>, transform_indices = @transform_9, window_bounds = array<i64: 2, 128>}, {pipeline_mode = #tpu.pipeline_mode<synchronous>, transform_indices = @transform_10, window_bounds = array<i64: 2, 128>}, {pipeline_mode = #tpu.pipeline_mode<synchronous>, transform_indices = @transform_11, window_bounds = array<i64: 2, 128, 512>}, {pipeline_mode = #tpu.pipeline_mode<synchronous>, transform_indices = @transform_12, window_bounds = array<i64: 2, 512>}, {pipeline_mode = #tpu.pipeline_mode<synchronous>, transform_indices = @transform_13, window_bounds = array<i64: 2, 512, 128>}, {pipeline_mode = #tpu.pipeline_mode<synchronous>, transform_indices = @transform_14, window_bounds = array<i64: 2, 128>}, {pipeline_mode = #tpu.pipeline_mode<synchronous>, transform_indices = @transform_15, window_bounds = array<i64: 1, 128>}, {pipeline_mode = #tpu.pipeline_mode<synchronous>, transform_indices = @transform_16, window_bounds = array<i64: 1, 128>}, {pipeline_mode = #tpu.pipeline_mode<synchronous>, transform_indices = @transform_17, window_bounds = array<i64: 128, 128>}, {transform_indices = @transform_18, window_bounds = array<i64: 16, 128>}]} {
    %c0 = arith.constant 0 : index
    %c0_0 = arith.constant 0 : index
    %c0_1 = arith.constant 0 : index
    %0 = vector.load %arg1[%c0, %c0_0, %c0_1] : memref<16x16x128xf32, #tpu.memory_space<vmem>>, vector<16x16x128xf32>
    %c0_2 = arith.constant 0 : index
    %c0_3 = arith.constant 0 : index
    %1 = vector.load %arg3[%c0_2, %c0_3] : memref<16x128xf32, #tpu.memory_space<vmem>>, vector<16x128xf32>
    %2 = vector.shape_cast %1 : vector<16x128xf32> to vector<1x16x128xf32>
    %3 = vector.broadcast %2 : vector<1x16x128xf32> to vector<16x16x128xf32>
    %4 = arith.addf %0, %3 : vector<16x16x128xf32>
    %5 = tpu.iota {dimensions = array<i32: 0>} : vector<16x16xi32>
    %6 = tpu.iota {dimensions = array<i32: 1>} : vector<16x16xi32>
    %7 = arith.cmpi sle, %6, %5 : vector<16x16xi32>
    %cst = arith.constant 0.000000e+00 : f32
    %cst_4 = arith.constant -1.000000e+30 : f32
    %8 = vector.broadcast %cst : f32 to vector<16x16xf32>
    %9 = vector.broadcast %cst_4 : f32 to vector<16x16xf32>
    %10 = arith.select %7, %8, %9 : vector<16x16xi1>, vector<16x16xf32>
    %cst_5 = arith.constant 1.250000e-01 : f32
    %c0_i32 = arith.constant 0 : i32
    %c2_i32 = arith.constant 2 : i32
    %11 = arith.addi %c0_i32, %c2_i32 : i32
    %c1_i32 = arith.constant 1 : i32
    %12 = scf.for %arg20 = %c0_i32 to %11 step %c1_i32 iter_args(%arg21 = %4) -> (vector<16x16x128xf32>)  : i32 {
      %45 = arith.index_cast %arg20 : i32 to index
      %c0_25 = arith.constant 0 : index
      %46 = vector.load %arg4[%45, %c0_25] : memref<2x128xf32, #tpu.memory_space<vmem>>, vector<1x128xf32>
      %47 = vector.shape_cast %46 : vector<1x128xf32> to vector<1x1x128xf32>
      %48 = arith.index_cast %arg20 : i32 to index
      %c0_26 = arith.constant 0 : index
      %49 = vector.load %arg5[%48, %c0_26] : memref<2x128xf32, #tpu.memory_space<vmem>>, vector<1x128xf32>
      %50 = vector.shape_cast %49 : vector<1x128xf32> to vector<1x1x128xf32>
      %cst_27 = arith.constant dense<0.000000e+00> : vector<16x16xf32>
      %51 = vector.multi_reduction <add>, %arg21, %cst_27 [2] : vector<16x16x128xf32> to vector<16x16xf32>
      %52 = vector.shape_cast %51 : vector<16x16xf32> to vector<16x16x1xf32>
      %cst_28 = arith.constant 1.280000e+02 : f32
      %53 = vector.broadcast %cst_28 : f32 to vector<16x16x1xf32>
      %54 = arith.divf %52, %53 : vector<16x16x1xf32>
      %55 = vector.broadcast %54 : vector<16x16x1xf32> to vector<16x16x128xf32>
      %56 = arith.subf %arg21, %55 : vector<16x16x128xf32>
      %57 = arith.mulf %56, %56 : vector<16x16x128xf32>
      %cst_29 = arith.constant dense<0.000000e+00> : vector<16x16xf32>
      %58 = vector.multi_reduction <add>, %57, %cst_29 [2] : vector<16x16x128xf32> to vector<16x16xf32>
      %59 = vector.shape_cast %58 : vector<16x16xf32> to vector<16x16x1xf32>
      %cst_30 = arith.constant 1.280000e+02 : f32
      %60 = vector.broadcast %cst_30 : f32 to vector<16x16x1xf32>
      %61 = arith.divf %59, %60 : vector<16x16x1xf32>
      %cst_31 = arith.constant 9.99999974E-6 : f32
      %62 = vector.broadcast %cst_31 : f32 to vector<16x16x1xf32>
      %63 = arith.addf %61, %62 : vector<16x16x1xf32>
      %64 = math.rsqrt %63 : vector<16x16x1xf32>
      %65 = vector.broadcast %64 : vector<16x16x1xf32> to vector<16x16x128xf32>
      %66 = arith.mulf %56, %65 : vector<16x16x128xf32>
      %67 = vector.broadcast %47 : vector<1x1x128xf32> to vector<16x16x128xf32>
      %68 = arith.mulf %66, %67 : vector<16x16x128xf32>
      %69 = vector.broadcast %50 : vector<1x1x128xf32> to vector<16x16x128xf32>
      %70 = arith.addf %68, %69 : vector<16x16x128xf32>
      %71 = arith.truncf %70 : vector<16x16x128xf32> to vector<16x16x128xbf16>
      %72 = vector.shape_cast %71 : vector<16x16x128xbf16> to vector<256x128xbf16>
      %73 = arith.index_cast %arg20 : i32 to index
      %c0_32 = arith.constant 0 : index
      %c0_33 = arith.constant 0 : index
      %74 = vector.load %arg6[%73, %c0_32, %c0_33] : memref<2x128x384xbf16, #tpu.memory_space<vmem>>, vector<1x128x384xbf16>
      %75 = vector.shape_cast %74 : vector<1x128x384xbf16> to vector<128x384xbf16>
      %cst_34 = arith.constant dense<0.000000e+00> : vector<256x384xf32>
      %76 = tpu.matmul %72, %75, %cst_34 {dimension_numbers = #tpu.dot_dimension_numbers<[1], [0], [0], [1], [0, 0, 1, 1], [], []>} : vector<256x128xbf16>, vector<128x384xbf16>, vector<256x384xf32> -> vector<256x384xf32>
      %77 = vector.shape_cast %76 : vector<256x384xf32> to vector<16x16x384xf32>
      %78 = arith.index_cast %arg20 : i32 to index
      %c0_35 = arith.constant 0 : index
      %79 = vector.load %arg7[%78, %c0_35] : memref<2x384xf32, #tpu.memory_space<vmem>>, vector<1x384xf32>
      %80 = vector.shape_cast %79 : vector<1x384xf32> to vector<1x1x384xf32>
      %81 = vector.broadcast %80 : vector<1x1x384xf32> to vector<16x16x384xf32>
      %82 = arith.addf %77, %81 : vector<16x16x384xf32>
      %83 = vector.extract_strided_slice %82 {offsets = [0, 0, 0], sizes = [16, 16, 128], strides = [1, 1, 1]} : vector<16x16x384xf32> to vector<16x16x128xf32>
      %84 = vector.extract_strided_slice %82 {offsets = [0, 0, 128], sizes = [16, 16, 128], strides = [1, 1, 1]} : vector<16x16x384xf32> to vector<16x16x128xf32>
      %85 = vector.extract_strided_slice %82 {offsets = [0, 0, 256], sizes = [16, 16, 128], strides = [1, 1, 1]} : vector<16x16x384xf32> to vector<16x16x128xf32>
      %86 = vector.extract_strided_slice %83 {offsets = [0, 0, 0], sizes = [16, 16, 64], strides = [1, 1, 1]} : vector<16x16x128xf32> to vector<16x16x64xf32>
      %87 = arith.truncf %86 : vector<16x16x64xf32> to vector<16x16x64xbf16>
      %88 = vector.extract_strided_slice %84 {offsets = [0, 0, 0], sizes = [16, 16, 64], strides = [1, 1, 1]} : vector<16x16x128xf32> to vector<16x16x64xf32>
      %89 = arith.truncf %88 : vector<16x16x64xf32> to vector<16x16x64xbf16>
      %90 = vector.extract_strided_slice %85 {offsets = [0, 0, 0], sizes = [16, 16, 64], strides = [1, 1, 1]} : vector<16x16x128xf32> to vector<16x16x64xf32>
      %91 = arith.truncf %90 : vector<16x16x64xf32> to vector<16x16x64xbf16>
      "tpu.trace_start"() <{level = 10 : i32, message = "bqd,bkd->bqk"}> : () -> ()
      %cst_36 = arith.constant dense<0.000000e+00> : vector<16x16x16xf32>
      %92 = tpu.matmul %87, %89, %cst_36 {dimension_numbers = #tpu.dot_dimension_numbers<[2], [2], [1], [1], [0, 0, 0, 1, 1, 1], [0], [0]>} : vector<16x16x64xbf16>, vector<16x16x64xbf16>, vector<16x16x16xf32> -> vector<16x16x16xf32>
      "tpu.trace_stop"() : () -> ()
      %93 = vector.broadcast %cst_5 : f32 to vector<16x16x16xf32>
      %94 = arith.mulf %92, %93 : vector<16x16x16xf32>
      %95 = vector.shape_cast %10 : vector<16x16xf32> to vector<1x16x16xf32>
      %96 = vector.broadcast %95 : vector<1x16x16xf32> to vector<16x16x16xf32>
      %97 = arith.addf %94, %96 : vector<16x16x16xf32>
      %cst_37 = arith.constant dense<0xFF800000> : vector<16x16xf32>
      %98 = vector.multi_reduction <maximumf>, %97, %cst_37 [2] : vector<16x16x16xf32> to vector<16x16xf32>
      %99 = vector.shape_cast %98 : vector<16x16xf32> to vector<16x16x1xf32>
      %100 = vector.broadcast %99 : vector<16x16x1xf32> to vector<16x16x16xf32>
      %101 = arith.subf %97, %100 : vector<16x16x16xf32>
      %102 = math.exp %101 : vector<16x16x16xf32>
      %cst_38 = arith.constant dense<0.000000e+00> : vector<16x16xf32>
      %103 = vector.multi_reduction <add>, %102, %cst_38 [2] : vector<16x16x16xf32> to vector<16x16xf32>
      %104 = vector.shape_cast %103 : vector<16x16xf32> to vector<16x16x1xf32>
      %105 = vector.broadcast %104 : vector<16x16x1xf32> to vector<16x16x16xf32>
      %106 = arith.divf %102, %105 : vector<16x16x16xf32>
      %107 = arith.truncf %106 : vector<16x16x16xf32> to vector<16x16x16xbf16>
      "tpu.trace_start"() <{level = 10 : i32, message = "bqk,bkd->bqd"}> : () -> ()
      %cst_39 = arith.constant dense<0.000000e+00> : vector<16x16x64xf32>
      %108 = tpu.matmul %107, %91, %cst_39 {dimension_numbers = #tpu.dot_dimension_numbers<[2], [1], [1], [2], [0, 0, 0, 1, 1, 2], [0], [0]>} : vector<16x16x16xbf16>, vector<16x16x64xbf16>, vector<16x16x64xf32> -> vector<16x16x64xf32>
      "tpu.trace_stop"() : () -> ()
      %109 = arith.truncf %108 : vector<16x16x64xf32> to vector<16x16x64xbf16>
      %110 = vector.extract_strided_slice %83 {offsets = [0, 0, 64], sizes = [16, 16, 64], strides = [1, 1, 1]} : vector<16x16x128xf32> to vector<16x16x64xf32>
      %111 = arith.truncf %110 : vector<16x16x64xf32> to vector<16x16x64xbf16>
      %112 = vector.extract_strided_slice %84 {offsets = [0, 0, 64], sizes = [16, 16, 64], strides = [1, 1, 1]} : vector<16x16x128xf32> to vector<16x16x64xf32>
      %113 = arith.truncf %112 : vector<16x16x64xf32> to vector<16x16x64xbf16>
      %114 = vector.extract_strided_slice %85 {offsets = [0, 0, 64], sizes = [16, 16, 64], strides = [1, 1, 1]} : vector<16x16x128xf32> to vector<16x16x64xf32>
      %115 = arith.truncf %114 : vector<16x16x64xf32> to vector<16x16x64xbf16>
      "tpu.trace_start"() <{level = 10 : i32, message = "bqd,bkd->bqk"}> : () -> ()
      %cst_40 = arith.constant dense<0.000000e+00> : vector<16x16x16xf32>
      %116 = tpu.matmul %111, %113, %cst_40 {dimension_numbers = #tpu.dot_dimension_numbers<[2], [2], [1], [1], [0, 0, 0, 1, 1, 1], [0], [0]>} : vector<16x16x64xbf16>, vector<16x16x64xbf16>, vector<16x16x16xf32> -> vector<16x16x16xf32>
      "tpu.trace_stop"() : () -> ()
      %117 = vector.broadcast %cst_5 : f32 to vector<16x16x16xf32>
      %118 = arith.mulf %116, %117 : vector<16x16x16xf32>
      %119 = vector.shape_cast %10 : vector<16x16xf32> to vector<1x16x16xf32>
      %120 = vector.broadcast %119 : vector<1x16x16xf32> to vector<16x16x16xf32>
      %121 = arith.addf %118, %120 : vector<16x16x16xf32>
      %cst_41 = arith.constant dense<0xFF800000> : vector<16x16xf32>
      %122 = vector.multi_reduction <maximumf>, %121, %cst_41 [2] : vector<16x16x16xf32> to vector<16x16xf32>
      %123 = vector.shape_cast %122 : vector<16x16xf32> to vector<16x16x1xf32>
      %124 = vector.broadcast %123 : vector<16x16x1xf32> to vector<16x16x16xf32>
      %125 = arith.subf %121, %124 : vector<16x16x16xf32>
      %126 = math.exp %125 : vector<16x16x16xf32>
      %cst_42 = arith.constant dense<0.000000e+00> : vector<16x16xf32>
      %127 = vector.multi_reduction <add>, %126, %cst_42 [2] : vector<16x16x16xf32> to vector<16x16xf32>
      %128 = vector.shape_cast %127 : vector<16x16xf32> to vector<16x16x1xf32>
      %129 = vector.broadcast %128 : vector<16x16x1xf32> to vector<16x16x16xf32>
      %130 = arith.divf %126, %129 : vector<16x16x16xf32>
      %131 = arith.truncf %130 : vector<16x16x16xf32> to vector<16x16x16xbf16>
      "tpu.trace_start"() <{level = 10 : i32, message = "bqk,bkd->bqd"}> : () -> ()
      %cst_43 = arith.constant dense<0.000000e+00> : vector<16x16x64xf32>
      %132 = tpu.matmul %131, %115, %cst_43 {dimension_numbers = #tpu.dot_dimension_numbers<[2], [1], [1], [2], [0, 0, 0, 1, 1, 2], [0], [0]>} : vector<16x16x16xbf16>, vector<16x16x64xbf16>, vector<16x16x64xf32> -> vector<16x16x64xf32>
      "tpu.trace_stop"() : () -> ()
      %133 = arith.truncf %132 : vector<16x16x64xf32> to vector<16x16x64xbf16>
      %134 = tpu.concatenate %109, %133 in 2 : vector<16x16x64xbf16>, vector<16x16x64xbf16> -> vector<16x16x128xbf16>
      %135 = vector.shape_cast %134 : vector<16x16x128xbf16> to vector<256x128xbf16>
      %136 = arith.index_cast %arg20 : i32 to index
      %c0_44 = arith.constant 0 : index
      %c0_45 = arith.constant 0 : index
      %137 = vector.load %arg8[%136, %c0_44, %c0_45] : memref<2x128x128xbf16, #tpu.memory_space<vmem>>, vector<1x128x128xbf16>
      %138 = vector.shape_cast %137 : vector<1x128x128xbf16> to vector<128x128xbf16>
      %cst_46 = arith.constant dense<0.000000e+00> : vector<256x128xf32>
      %139 = tpu.matmul %135, %138, %cst_46 {dimension_numbers = #tpu.dot_dimension_numbers<[1], [0], [0], [1], [0, 0, 1, 1], [], []>} : vector<256x128xbf16>, vector<128x128xbf16>, vector<256x128xf32> -> vector<256x128xf32>
      %140 = vector.shape_cast %139 : vector<256x128xf32> to vector<16x16x128xf32>
      %141 = arith.addf %arg21, %140 : vector<16x16x128xf32>
      %142 = arith.index_cast %arg20 : i32 to index
      %c0_47 = arith.constant 0 : index
      %143 = vector.load %arg9[%142, %c0_47] : memref<2x128xf32, #tpu.memory_space<vmem>>, vector<1x128xf32>
      %144 = vector.shape_cast %143 : vector<1x128xf32> to vector<1x1x128xf32>
      %145 = vector.broadcast %144 : vector<1x1x128xf32> to vector<16x16x128xf32>
      %146 = arith.addf %141, %145 : vector<16x16x128xf32>
      %147 = arith.index_cast %arg20 : i32 to index
      %c0_48 = arith.constant 0 : index
      %148 = vector.load %arg10[%147, %c0_48] : memref<2x128xf32, #tpu.memory_space<vmem>>, vector<1x128xf32>
      %149 = vector.shape_cast %148 : vector<1x128xf32> to vector<1x1x128xf32>
      %150 = arith.index_cast %arg20 : i32 to index
      %c0_49 = arith.constant 0 : index
      %151 = vector.load %arg11[%150, %c0_49] : memref<2x128xf32, #tpu.memory_space<vmem>>, vector<1x128xf32>
      %152 = vector.shape_cast %151 : vector<1x128xf32> to vector<1x1x128xf32>
      %cst_50 = arith.constant dense<0.000000e+00> : vector<16x16xf32>
      %153 = vector.multi_reduction <add>, %146, %cst_50 [2] : vector<16x16x128xf32> to vector<16x16xf32>
      %154 = vector.shape_cast %153 : vector<16x16xf32> to vector<16x16x1xf32>
      %cst_51 = arith.constant 1.280000e+02 : f32
      %155 = vector.broadcast %cst_51 : f32 to vector<16x16x1xf32>
      %156 = arith.divf %154, %155 : vector<16x16x1xf32>
      %157 = vector.broadcast %156 : vector<16x16x1xf32> to vector<16x16x128xf32>
      %158 = arith.subf %146, %157 : vector<16x16x128xf32>
      %159 = arith.mulf %158, %158 : vector<16x16x128xf32>
      %cst_52 = arith.constant dense<0.000000e+00> : vector<16x16xf32>
      %160 = vector.multi_reduction <add>, %159, %cst_52 [2] : vector<16x16x128xf32> to vector<16x16xf32>
      %161 = vector.shape_cast %160 : vector<16x16xf32> to vector<16x16x1xf32>
      %cst_53 = arith.constant 1.280000e+02 : f32
      %162 = vector.broadcast %cst_53 : f32 to vector<16x16x1xf32>
      %163 = arith.divf %161, %162 : vector<16x16x1xf32>
      %cst_54 = arith.constant 9.99999974E-6 : f32
      %164 = vector.broadcast %cst_54 : f32 to vector<16x16x1xf32>
      %165 = arith.addf %163, %164 : vector<16x16x1xf32>
      %166 = math.rsqrt %165 : vector<16x16x1xf32>
      %167 = vector.broadcast %166 : vector<16x16x1xf32> to vector<16x16x128xf32>
      %168 = arith.mulf %158, %167 : vector<16x16x128xf32>
      %169 = vector.broadcast %149 : vector<1x1x128xf32> to vector<16x16x128xf32>
      %170 = arith.mulf %168, %169 : vector<16x16x128xf32>
      %171 = vector.broadcast %152 : vector<1x1x128xf32> to vector<16x16x128xf32>
      %172 = arith.addf %170, %171 : vector<16x16x128xf32>
      %173 = arith.truncf %172 : vector<16x16x128xf32> to vector<16x16x128xbf16>
      %174 = vector.shape_cast %173 : vector<16x16x128xbf16> to vector<256x128xbf16>
      %175 = arith.index_cast %arg20 : i32 to index
      %c0_55 = arith.constant 0 : index
      %c0_56 = arith.constant 0 : index
      %176 = vector.load %arg12[%175, %c0_55, %c0_56] : memref<2x128x512xbf16, #tpu.memory_space<vmem>>, vector<1x128x512xbf16>
      %177 = vector.shape_cast %176 : vector<1x128x512xbf16> to vector<128x512xbf16>
      %cst_57 = arith.constant dense<0.000000e+00> : vector<256x512xf32>
      %178 = tpu.matmul %174, %177, %cst_57 {dimension_numbers = #tpu.dot_dimension_numbers<[1], [0], [0], [1], [0, 0, 1, 1], [], []>} : vector<256x128xbf16>, vector<128x512xbf16>, vector<256x512xf32> -> vector<256x512xf32>
      %179 = vector.shape_cast %178 : vector<256x512xf32> to vector<16x16x512xf32>
      %180 = arith.index_cast %arg20 : i32 to index
      %c0_58 = arith.constant 0 : index
      %181 = vector.load %arg13[%180, %c0_58] : memref<2x512xf32, #tpu.memory_space<vmem>>, vector<1x512xf32>
      %182 = vector.shape_cast %181 : vector<1x512xf32> to vector<1x1x512xf32>
      %183 = vector.broadcast %182 : vector<1x1x512xf32> to vector<16x16x512xf32>
      %184 = arith.addf %179, %183 : vector<16x16x512xf32>
      %cst_59 = arith.constant 1.702000e+00 : f32
      %185 = vector.broadcast %cst_59 : f32 to vector<16x16x512xf32>
      %186 = arith.mulf %185, %184 : vector<16x16x512xf32>
      %187 = arith.negf %186 : vector<16x16x512xf32>
      %188 = math.exp %187 : vector<16x16x512xf32>
      %cst_60 = arith.constant 1.000000e+00 : f32
      %189 = vector.broadcast %cst_60 : f32 to vector<16x16x512xf32>
      %190 = arith.addf %189, %188 : vector<16x16x512xf32>
      %191 = arith.divf %189, %190 : vector<16x16x512xf32>
      %192 = arith.mulf %184, %191 : vector<16x16x512xf32>
      %193 = arith.truncf %192 : vector<16x16x512xf32> to vector<16x16x512xbf16>
      %194 = vector.shape_cast %193 : vector<16x16x512xbf16> to vector<256x512xbf16>
      %195 = arith.index_cast %arg20 : i32 to index
      %c0_61 = arith.constant 0 : index
      %c0_62 = arith.constant 0 : index
      %196 = vector.load %arg14[%195, %c0_61, %c0_62] : memref<2x512x128xbf16, #tpu.memory_space<vmem>>, vector<1x512x128xbf16>
      %197 = vector.shape_cast %196 : vector<1x512x128xbf16> to vector<512x128xbf16>
      %cst_63 = arith.constant dense<0.000000e+00> : vector<256x128xf32>
      %198 = tpu.matmul %194, %197, %cst_63 {dimension_numbers = #tpu.dot_dimension_numbers<[1], [0], [0], [1], [0, 0, 1, 1], [], []>} : vector<256x512xbf16>, vector<512x128xbf16>, vector<256x128xf32> -> vector<256x128xf32>
      %199 = vector.shape_cast %198 : vector<256x128xf32> to vector<16x16x128xf32>
      %200 = arith.addf %146, %199 : vector<16x16x128xf32>
      %201 = arith.index_cast %arg20 : i32 to index
      %c0_64 = arith.constant 0 : index
      %202 = vector.load %arg15[%201, %c0_64] : memref<2x128xf32, #tpu.memory_space<vmem>>, vector<1x128xf32>
      %203 = vector.shape_cast %202 : vector<1x128xf32> to vector<1x1x128xf32>
      %204 = vector.broadcast %203 : vector<1x1x128xf32> to vector<16x16x128xf32>
      %205 = arith.addf %200, %204 : vector<16x16x128xf32>
      scf.yield %205 : vector<16x16x128xf32>
    }
    %c2_i32_6 = arith.constant 2 : i32
    %c0_7 = arith.constant 0 : index
    %c0_8 = arith.constant 0 : index
    %13 = vector.load %arg16[%c0_7, %c0_8] : memref<1x128xf32, #tpu.memory_space<vmem>>, vector<1x128xf32>
    %14 = vector.shape_cast %13 : vector<1x128xf32> to vector<1x1x128xf32>
    %c0_9 = arith.constant 0 : index
    %c0_10 = arith.constant 0 : index
    %15 = vector.load %arg17[%c0_9, %c0_10] : memref<1x128xf32, #tpu.memory_space<vmem>>, vector<1x128xf32>
    %16 = vector.shape_cast %15 : vector<1x128xf32> to vector<1x1x128xf32>
    %cst_11 = arith.constant dense<0.000000e+00> : vector<16x16xf32>
    %17 = vector.multi_reduction <add>, %12, %cst_11 [2] : vector<16x16x128xf32> to vector<16x16xf32>
    %18 = vector.shape_cast %17 : vector<16x16xf32> to vector<16x16x1xf32>
    %cst_12 = arith.constant 1.280000e+02 : f32
    %19 = vector.broadcast %cst_12 : f32 to vector<16x16x1xf32>
    %20 = arith.divf %18, %19 : vector<16x16x1xf32>
    %21 = vector.broadcast %20 : vector<16x16x1xf32> to vector<16x16x128xf32>
    %22 = arith.subf %12, %21 : vector<16x16x128xf32>
    %23 = arith.mulf %22, %22 : vector<16x16x128xf32>
    %cst_13 = arith.constant dense<0.000000e+00> : vector<16x16xf32>
    %24 = vector.multi_reduction <add>, %23, %cst_13 [2] : vector<16x16x128xf32> to vector<16x16xf32>
    %25 = vector.shape_cast %24 : vector<16x16xf32> to vector<16x16x1xf32>
    %cst_14 = arith.constant 1.280000e+02 : f32
    %26 = vector.broadcast %cst_14 : f32 to vector<16x16x1xf32>
    %27 = arith.divf %25, %26 : vector<16x16x1xf32>
    %cst_15 = arith.constant 9.99999974E-6 : f32
    %28 = vector.broadcast %cst_15 : f32 to vector<16x16x1xf32>
    %29 = arith.addf %27, %28 : vector<16x16x1xf32>
    %30 = math.rsqrt %29 : vector<16x16x1xf32>
    %31 = vector.broadcast %30 : vector<16x16x1xf32> to vector<16x16x128xf32>
    %32 = arith.mulf %22, %31 : vector<16x16x128xf32>
    %33 = vector.broadcast %14 : vector<1x1x128xf32> to vector<16x16x128xf32>
    %34 = arith.mulf %32, %33 : vector<16x16x128xf32>
    %35 = vector.broadcast %16 : vector<1x1x128xf32> to vector<16x16x128xf32>
    %36 = arith.addf %34, %35 : vector<16x16x128xf32>
    %c0_16 = arith.constant 0 : index
    %c0_17 = arith.constant 0 : index
    %c0_18 = arith.constant 0 : index
    %37 = vector.load %arg2[%c0_16, %c0_17, %c0_18] : memref<16x16x1xf32, #tpu.memory_space<vmem>>, vector<16x16x1xf32>
    %38 = vector.broadcast %37 : vector<16x16x1xf32> to vector<16x16x128xf32>
    %39 = arith.mulf %36, %38 : vector<16x16x128xf32>
    %cst_19 = arith.constant dense<0.000000e+00> : vector<16x128xf32>
    %40 = vector.multi_reduction <add>, %39, %cst_19 [1] : vector<16x16x128xf32> to vector<16x128xf32>
    %41 = arith.truncf %40 : vector<16x128xf32> to vector<16x128xbf16>
    %c0_20 = arith.constant 0 : index
    %c0_21 = arith.constant 0 : index
    %42 = vector.load %arg18[%c0_20, %c0_21] : memref<128x128xbf16, #tpu.memory_space<vmem>>, vector<128x128xbf16>
    %cst_22 = arith.constant dense<0.000000e+00> : vector<16x128xf32>
    %43 = tpu.matmul %41, %42, %cst_22 {dimension_numbers = #tpu.dot_dimension_numbers<[1], [0], [0], [1], [0, 0, 1, 1], [], []>} : vector<16x128xbf16>, vector<128x128xbf16>, vector<16x128xf32> -> vector<16x128xf32>
    %c0_23 = arith.constant 0 : index
    %c0_24 = arith.constant 0 : index
    %44 = vector.load %arg19[%c0_23, %c0_24] : memref<16x128xf32, #tpu.memory_space<vmem>>, vector<16x128xf32>
    tpu.vector_store %arg19[%c0_23, %c0_24], %43 {strides = array<i32>} : memref<16x128xf32, #tpu.memory_space<vmem>>, vector<16x128xf32>,
    return
  }
  func.func @transform_0(%arg0: i32) -> (i32, i32, i32) {
    %c0_i32 = arith.constant 0 : i32
    %c0_i32_0 = arith.constant 0 : i32
    %c0_i32_1 = arith.constant 0 : i32
    return %arg0, %c0_i32, %c0_i32_0 : i32, i32, i32
  }
  func.func @transform_1(%arg0: i32) -> (i32, i32, i32) {
    %c0_i32 = arith.constant 0 : i32
    %c0_i32_0 = arith.constant 0 : i32
    %c0_i32_1 = arith.constant 0 : i32
    return %arg0, %c0_i32, %c0_i32_0 : i32, i32, i32
  }
  func.func @transform_2(%arg0: i32) -> (i32, i32) {
    %c0_i32 = arith.constant 0 : i32
    %c0_i32_0 = arith.constant 0 : i32
    %c0_i32_1 = arith.constant 0 : i32
    return %c0_i32, %c0_i32_0 : i32, i32
  }
  func.func @transform_3(%arg0: i32) -> (i32, i32) {
    %c0_i32 = arith.constant 0 : i32
    %c0_i32_0 = arith.constant 0 : i32
    %c0_i32_1 = arith.constant 0 : i32
    return %c0_i32, %c0_i32_0 : i32, i32
  }
  func.func @transform_4(%arg0: i32) -> (i32, i32) {
    %c0_i32 = arith.constant 0 : i32
    %c0_i32_0 = arith.constant 0 : i32
    %c0_i32_1 = arith.constant 0 : i32
    return %c0_i32, %c0_i32_0 : i32, i32
  }
  func.func @transform_5(%arg0: i32) -> (i32, i32, i32) {
    %c0_i32 = arith.constant 0 : i32
    %c0_i32_0 = arith.constant 0 : i32
    %c0_i32_1 = arith.constant 0 : i32
    %c0_i32_2 = arith.constant 0 : i32
    return %c0_i32, %c0_i32_0, %c0_i32_1 : i32, i32, i32
  }
  func.func @transform_6(%arg0: i32) -> (i32, i32) {
    %c0_i32 = arith.constant 0 : i32
    %c0_i32_0 = arith.constant 0 : i32
    %c0_i32_1 = arith.constant 0 : i32
    return %c0_i32, %c0_i32_0 : i32, i32
  }
  func.func @transform_7(%arg0: i32) -> (i32, i32, i32) {
    %c0_i32 = arith.constant 0 : i32
    %c0_i32_0 = arith.constant 0 : i32
    %c0_i32_1 = arith.constant 0 : i32
    %c0_i32_2 = arith.constant 0 : i32
    return %c0_i32, %c0_i32_0, %c0_i32_1 : i32, i32, i32
  }
  func.func @transform_8(%arg0: i32) -> (i32, i32) {
    %c0_i32 = arith.constant 0 : i32
    %c0_i32_0 = arith.constant 0 : i32
    %c0_i32_1 = arith.constant 0 : i32
    return %c0_i32, %c0_i32_0 : i32, i32
  }
  func.func @transform_9(%arg0: i32) -> (i32, i32) {
    %c0_i32 = arith.constant 0 : i32
    %c0_i32_0 = arith.constant 0 : i32
    %c0_i32_1 = arith.constant 0 : i32
    return %c0_i32, %c0_i32_0 : i32, i32
  }
  func.func @transform_10(%arg0: i32) -> (i32, i32) {
    %c0_i32 = arith.constant 0 : i32
    %c0_i32_0 = arith.constant 0 : i32
    %c0_i32_1 = arith.constant 0 : i32
    return %c0_i32, %c0_i32_0 : i32, i32
  }
  func.func @transform_11(%arg0: i32) -> (i32, i32, i32) {
    %c0_i32 = arith.constant 0 : i32
    %c0_i32_0 = arith.constant 0 : i32
    %c0_i32_1 = arith.constant 0 : i32
    %c0_i32_2 = arith.constant 0 : i32
    return %c0_i32, %c0_i32_0, %c0_i32_1 : i32, i32, i32
  }
  func.func @transform_12(%arg0: i32) -> (i32, i32) {
    %c0_i32 = arith.constant 0 : i32
    %c0_i32_0 = arith.constant 0 : i32
    %c0_i32_1 = arith.constant 0 : i32
    return %c0_i32, %c0_i32_0 : i32, i32
  }
  func.func @transform_13(%arg0: i32) -> (i32, i32, i32) {
    %c0_i32 = arith.constant 0 : i32
    %c0_i32_0 = arith.constant 0 : i32
    %c0_i32_1 = arith.constant 0 : i32
    %c0_i32_2 = arith.constant 0 : i32
    return %c0_i32, %c0_i32_0, %c0_i32_1 : i32, i32, i32
  }
  func.func @transform_14(%arg0: i32) -> (i32, i32) {
    %c0_i32 = arith.constant 0 : i32
    %c0_i32_0 = arith.constant 0 : i32
    %c0_i32_1 = arith.constant 0 : i32
    return %c0_i32, %c0_i32_0 : i32, i32
  }
  func.func @transform_15(%arg0: i32) -> (i32, i32) {
    %c0_i32 = arith.constant 0 : i32
    %c0_i32_0 = arith.constant 0 : i32
    %c0_i32_1 = arith.constant 0 : i32
    return %c0_i32, %c0_i32_0 : i32, i32
  }
  func.func @transform_16(%arg0: i32) -> (i32, i32) {
    %c0_i32 = arith.constant 0 : i32
    %c0_i32_0 = arith.constant 0 : i32
    %c0_i32_1 = arith.constant 0 : i32
    return %c0_i32, %c0_i32_0 : i32, i32
  }
  func.func @transform_17(%arg0: i32) -> (i32, i32) {
    %c0_i32 = arith.constant 0 : i32
    %c0_i32_0 = arith.constant 0 : i32
    %c0_i32_1 = arith.constant 0 : i32
    return %c0_i32, %c0_i32_0 : i32, i32
  }
  func.func @transform_18(%arg0: i32) -> (i32, i32) {
    %c0_i32 = arith.constant 0 : i32
    %c0_i32_0 = arith.constant 0 : i32
    return %arg0, %c0_i32 : i32, i32
  }
}

</mosaic_0001>

<bundles_post_ra>
// kernel: tpu_custom_call.1
= control target key start
LH: loop header
LB: loop body
LE: loop exit
PB: predicated region body
PF: predicated region fallthrough
CT: control target
= control target key end

     0   :  { %s19361_s0 = inlined_call_operand.vmem [shape: f32[64,16,128], index: 0, kind: input, shape index: {}]   ;;  %s19362_s1 = inlined_call_operand.vmem [shape: f32[64,16,1], index: 1, kind: input, shape index: {}]   ;;  %s19363_s2 = inlined_call_operand.hbm [shape: f32[16,128], index: 2, kind: input, shape index: {}]   ;;  %s19364_s3 = inlined_call_operand.hbm [shape: f32[2,128], index: 3, kind: input, shape index: {}]   ;;  %s19365_s4 = inlined_call_operand.hbm [shape: f32[2,128], index: 4, kind: input, shape index: {}]   ;;  %s19366_s5 = inlined_call_operand.hbm [shape: bf16[2,128,384], index: 5, kind: input, shape index: {}]   ;;  %s19367_s6 = inlined_call_operand.hbm [shape: f32[2,384], index: 6, kind: input, shape index: {}]   ;;  %s19368_s7 = inlined_call_operand.hbm [shape: bf16[2,128,128], index: 7, kind: input, shape index: {}]   ;;  %s19369_s8 = inlined_call_operand.hbm [shape: f32[2,128], index: 8, kind: input, shape index: {}]   ;;  %s19370_s9 = inlined_call_operand.hbm [shape: f32[2,128], index: 9, kind: input, shape index: {}]   ;;  %s19371_s10 = inlined_call_operand.hbm [shape: f32[2,128], index: 10, kind: input, shape index: {}]   ;;  %s19372_s11 = inlined_call_operand.hbm [shape: bf16[2,128,512], index: 11, kind: input, shape index: {}]   ;;  %s19373_s12 = inlined_call_operand.vmem [shape: f32[2,512], index: 12, kind: input, shape index: {}]   ;;  %s19374_s13 = inlined_call_operand.hbm [shape: bf16[2,512,128], index: 13, kind: input, shape index: {}]   ;;  %s19375_s14 = inlined_call_operand.hbm [shape: f32[2,128], index: 14, kind: input, shape index: {}]   ;;  %s19376_s15 = inlined_call_operand.hbm [shape: f32[1,128], index: 15, kind: input, shape index: {}]   ;;  %s19377_s16 = inlined_call_operand.hbm [shape: f32[1,128], index: 16, kind: input, shape index: {}]   ;;  %s19378_s17 = inlined_call_operand.vmem [shape: bf16[128,128], index: 17, kind: input, shape index: {}]   ;;  %s19379_s18 = inlined_call_operand.hbm [shape: f32[64,128], index: 18, kind: output, shape index: {}]  }
   0x1   :  { %19567 = sst [smem:[#allocation120_spill]] %s19361_s0 }
   0x2   :  { %19568 = sst [smem:[#allocation121_spill]] %s19362_s1 }
   0x3   :  { %19569 = sst [smem:[#allocation122_spill]] %s19363_s2 }
   0x4   :  { %19570 = sst [smem:[#allocation123_spill]] %s19364_s3 }
   0x5   :  { %19571 = sst [smem:[#allocation124_spill]] %s19366_s5 }
   0x6   :  { %19572 = sst [smem:[#allocation125_spill]] %s19368_s7 }
   0x7   :  { %19573 = sst [smem:[#allocation126_spill]] %s19373_s12 }
   0x8   :  { %19574 = sst [smem:[#allocation127_spill]] %s19378_s17 }
   0x9   :  { %19575 = sst [smem:[#allocation128_spill]] %s19379_s18 }
   0xa   :  { %23 = vsyncpa [#allocation3], 0 }
   0xb   :  { %24 = vsyncpa [#allocation6], 0 }
   0xc   :  { %25 = vsyncpa [#allocation9], 0 }
   0xd   :  { %26 = vsyncpa [#allocation12], 0 }
   0xe   :  { %27 = vsyncpa [#allocation15], 0 }
   0xf   :  { %28 = vsyncpa [#allocation18], 0 }
  0x10   :  { %29 = vsyncpa [#allocation21], 0 }
  0x11   :  { %30 = vsyncpa [#allocation24], 0 }
  0x12   :  { %31 = vsyncpa [#allocation4], 0 }
  0x13   :  { %33 = vsyncpa [#allocation4 + $0x1], 0  ;;  %s14347_s27 = smov 0   ;;  %s14349_s28 = smov 0  }
  0x14   :  { %s14351_s29 = smov 0   ;;  %s14353_s30 = smov 0  }
  0x15 LB: > { %19576 = sst [smem:[#allocation35_spill]] %s14073_s27  ;;  %s14368_s0 = sadd.s32 4294967295, %s14085_s30   ;;  %s14085_s30 = sphi %s14353_s30, %s20052_s30   ;;  %s14081_s29 = sphi %s14351_s29, %s20055_s29   ;;  %s14077_s28 = sphi %s14349_s28, %s20054_s28   ;;  %s14073_s27 = sphi %s14347_s27, %s20053_s27  }
  0x16   : > { %19577 = sst [smem:[#allocation36_spill]] %s14077_s28  ;;  %s10623_s19 = sadd.s32 4294967294, %s14085_s30  }
  0x17   : > { %19578 = sst [smem:[#allocation37_spill]] %s14081_s29  ;;  %s14372_s1 = sadd.s32 1, %s14085_s30  }
  0x18   : > { %19579 = sst [smem:[#allocation38_spill]] %s14085_s30  ;;  %s434_s20 = sadd.s32 1, %s14081_s29 }
  0x19   : > { %19580 = sst [smem:[#allocation39_spill]] %s14372_s1  ;;  %s431_s21 = ssub.s32 %s14085_s30, %s14372_s1 }
  0x1a   : > { %p444_p0 = scmp.ne.s32.totalorder %s14081_s29, %s14077_s28  ;;  %p432_p1 = scmp.eq.s32.totalorder %s431_s21, 0 }
  0x1b   : > { %p445_p2 = scmp.eq.s32.totalorder %s14368_s0, 3  ;;  %p450_p3 = scmp.ne.s32.totalorder %s14077_s28, %s14073_s27 }
  0x1c   : > { %p451_p4 = scmp.eq.s32.totalorder %s10623_s19, 3  ;;  %p10624_p7 = scmp.ge.s32.totalorder %s14085_s30, 1 }
  0x1d   : > { %s14383_s22 = scalar_select %p432_p1, %s14081_s29, %s434_s20  }
  0x1e   : > { %p14385_p5 = por %p445_p2, %p444_p0  ;;  %p14389_p6 = por %p451_p4, %p450_p3 }
  0x1f   : > { %19581 = sst [smem:[#allocation40_spill]] %s14383_s22  ;;  %p458_p8 = scmp.lt.s32.totalorder %s14085_s30, 5 }
  0x20   : > { %s19582_s2 = scalar_select %p14385_p5, 1, 0 }
  0x21   : > { %s19584_s23 = scalar_select %p14389_p6, 1, 0 }
  0x22   : > { %19583 = sst [smem:[#allocation41_spill]] %s19582_s2  ;;  %p19388_p9 = scmp.eq.s32.totalorder %s14368_s0, 0 }
  0x23   : > { %19585 = sst [smem:[#allocation42_spill]] %s19584_s23  ;;  %p14396_p10 = pnand %p10624_p7, %p458_p8 }
  0x24   : > { %s14219_s25 = smov [#allocation5]   ;;  %s14220_s19 = smov [#allocation8]  }
  0x25   : > { %s19586_s24 = scalar_select %p14396_p10, 1, 0 }
  0x26   : > { %s484_s26 = sshll.u32 %s14219_s25, 4  ;;  %p11971_p11 = pneg %p14396_p10  ;;  %s485_s26 = int_to_ptr.vmem [resolvable:$true] %s484_s26 }
  0x27   : > { %s505_s20 = sshll.u32 %s14220_s19, 4  ;;  %s14221_s22 = smov [#allocation11]   ;;  %s14408_s20 = int_to_ptr.vmem [resolvable:$true] %s505_s20 }
  0x28   : > { %p14404_p12 = pnand %p19388_p9, %p11971_p11  ;;  %s14410_s29 = sshll.u32 %s14221_s22, 4  ;;  %s530_s29 = int_to_ptr.vmem [resolvable:$true] %s14410_s29 }
  0x29   : > { %s19588_s3 = sld [smem:[#allocation123_spill]] }
  0x2a   : > { %p14420_p0 = pneg %p14404_p12 }
  0x2f   : > { %s13467_s25 = scalar_lea.hbm %s19588_s3, 32 }
  0x30   : > { %p13468_p13 = scmp.ne.s32.totalorder %s19588_s3, %s13467_s25  ;;  %p13474_p3 = scmp.lt.u32.totalorder %s13467_s25, %s19588_s3 }
  0x32   : > { %p13470_p1 = pnand %p14420_p0, %p13468_p13 }
  0x34   : > { %p13471_p2 = pneg %p13470_p1 }
  0x36   : > { %p13476_p4 = pnand %p13474_p3, %p13471_p2 }
  0x38   : > { %13479 = shalt.err (!%p13476_p4)
}
  0x39   : > { %s13480_s1 = scalar_lea.vmem %s485_s26, 32  ;;  %p13488_p9 = scmp.lt.s32.totalorder %s485_s26, %s485_s26 }
  0x3a   : > { %p13481_p7 = scmp.ne.s32.totalorder %s485_s26, %s13480_s1  ;;  %p13489_p6 = scmp.lt.s32.totalorder %s13480_s1, %s13480_s1 }
  0x3c   : > { %p13483_p8 = pnand %p13481_p7, %p14420_p0  ;;  %p13490_p5 = por %p13489_p6, %p13488_p9 }
  0x3e   : > { %p13484_p11 = pneg %p13483_p8 }
  0x40   : > { %p13491_p10 = pnand %p13490_p5, %p13484_p11 }
  0x42   : > { %13494 = shalt.err (!%p13491_p10)
}
  0x43   : > { %11977 = dma.hbm_to_vmem [thread:$0]  (!%p14404_p12), %s19588_s3, 32, %s485_s26, [#allocation6]  }
  0x44   : > { %s19590_s5 = sld [smem:[#allocation124_spill]] }
  0x4a   : > { %s13495_s25 = scalar_lea.hbm %s19590_s5, 6144 }
  0x4b   : > { %p13496_p13 = scmp.ne.s32.totalorder %s19590_s5, %s13495_s25  ;;  %p13502_p5 = scmp.lt.u32.totalorder %s13495_s25, %s19590_s5 }
  0x4d   : > { %p13498_p1 = pnand %p13496_p13, %p14420_p0 }
  0x4f   : > { %p13499_p6 = pneg %p13498_p1 }
  0x51   : > { %p13504_p9 = pnand %p13502_p5, %p13499_p6 }
  0x53   : > { %13507 = shalt.err (!%p13504_p9)
}
  0x54   : > { %s13508_s26 = scalar_lea.vmem %s14408_s20, 6144  ;;  %p13516_p4 = scmp.lt.s32.totalorder %s14408_s20, %s14408_s20 }
  0x55   : > { %p13509_p10 = scmp.ne.s32.totalorder %s14408_s20, %s13508_s26  ;;  %p13517_p7 = scmp.lt.s32.totalorder %s13508_s26, %s13508_s26 }
  0x57   : > { %p13511_p2 = pnand %p13509_p10, %p14420_p0  ;;  %p13518_p8 = por %p13517_p7, %p13516_p4 }
  0x59   : > { %p13512_p3 = pneg %p13511_p2 }
  0x5b   : > { %p13519_p11 = pnand %p13518_p8, %p13512_p3 }
  0x5d   : > { %13522 = shalt.err (!%p13519_p11)
}
  0x5e   : > { %s14222_s2 = smov 192   ;;  %s14223_s17 = smov 12  }
  0x5f   : > { %11983 = dma.hbm_to_vmem [thread:$0]  (!%p14404_p12), %s19590_s5, 6144, %s14408_s20, [#allocation9], %s14222_s2, %s14222_s2, %s14223_s17  }
  0x60   : > { %s19591_s7 = sld [smem:[#allocation125_spill]] }
  0x66   : > { %s13523_s25 = scalar_lea.hbm %s19591_s7, 2048 }
  0x67   : > { %p13524_p13 = scmp.ne.s32.totalorder %s19591_s7, %s13523_s25  ;;  %p13530_p5 = scmp.lt.u32.totalorder %s13523_s25, %s19591_s7 }
  0x69   : > { %p13526_p1 = pnand %p13524_p13, %p14420_p0 }
  0x6b   : > { %p13527_p6 = pneg %p13526_p1 }
  0x6d   : > { %p13532_p9 = pnand %p13530_p5, %p13527_p6 }
  0x6f   : > { %13535 = shalt.err (!%p13532_p9)
}
  0x70   : > { %s13536_s27 = scalar_lea.vmem %s530_s29, 2048  ;;  %p13544_p4 = scmp.lt.s32.totalorder %s530_s29, %s530_s29 }
  0x71   : > { %p13537_p10 = scmp.ne.s32.totalorder %s530_s29, %s13536_s27  ;;  %p13545_p7 = scmp.lt.s32.totalorder %s13536_s27, %s13536_s27 }
  0x73   : > { %p13539_p2 = pnand %p13537_p10, %p14420_p0  ;;  %p13546_p8 = por %p13545_p7, %p13544_p4 }
  0x75   : > { %p13540_p3 = pneg %p13539_p2 }
  0x77   : > { %p13547_p11 = pnand %p13546_p8, %p13540_p3 }
  0x79   : > { %13550 = shalt.err (!%p13547_p11)
}
  0x7a   : > { %s19396_s20 = smov 64   ;;  %s19397_s2 = smov 4  }
  0x7b   : > { %11989 = dma.hbm_to_vmem [thread:$0]  (!%p14404_p12), %s19591_s7, 2048, %s530_s29, [#allocation12], %s19396_s20, %s19396_s20, %s19397_s2  }
  0x7c   : > { %s14226_s30 = smov [#allocation14]   ;;  %s14227_s23 = smov [#allocation17]  }
  0x7d   : > { %s554_s18 = sshll.u32 %s14226_s30, 4  ;;  %s575_s25 = sshll.u32 %s14227_s23, 4  ;;  %s555_s18 = int_to_ptr.vmem [resolvable:$true] %s554_s18  ;;  %s576_s25 = int_to_ptr.vmem [resolvable:$true] %s575_s25 }
  0x7e   : > { %s13551_s26 = scalar_lea.hbm %s19370_s9, 32 }
  0x7f   : > { %p13552_p13 = scmp.ne.s32.totalorder %s19370_s9, %s13551_s26  ;;  %p13558_p5 = scmp.lt.u32.totalorder %s13551_s26, %s19370_s9 }
  0x81   : > { %p13554_p1 = pnand %p13552_p13, %p14420_p0 }
  0x83   : > { %p13555_p6 = pneg %p13554_p1 }
  0x85   : > { %p13560_p9 = pnand %p13558_p5, %p13555_p6 }
  0x87   : > { %13563 = shalt.err (!%p13560_p9)
}
  0x88   : > { %s13564_s29 = scalar_lea.vmem %s555_s18, 32  ;;  %p13572_p4 = scmp.lt.s32.totalorder %s555_s18, %s555_s18 }
  0x89   : > { %p13565_p10 = scmp.ne.s32.totalorder %s555_s18, %s13564_s29  ;;  %p13573_p7 = scmp.lt.s32.totalorder %s13564_s29, %s13564_s29 }
  0x8b   : > { %p13567_p2 = pnand %p13565_p10, %p14420_p0  ;;  %p13574_p8 = por %p13573_p7, %p13572_p4 }
  0x8d   : > { %p13568_p3 = pneg %p13567_p2 }
  0x8f   : > { %p13575_p11 = pnand %p13574_p8, %p13568_p3 }
  0x91   : > { %13578 = shalt.err (!%p13575_p11)
}
  0x92   : > { %11995 = dma.hbm_to_vmem [thread:$0]  (!%p14404_p12), %s19370_s9, 32, %s555_s18, [#allocation15]  }
  0x93   : > { %s13579_s17 = scalar_lea.hbm %s19372_s11, 8192 }
  0x94   : > { %p13580_p13 = scmp.ne.s32.totalorder %s19372_s11, %s13579_s17  ;;  %p13586_p5 = scmp.lt.u32.totalorder %s13579_s17, %s19372_s11 }
  0x96   : > { %p13582_p1 = pnand %p13580_p13, %p14420_p0 }
  0x98   : > { %p13583_p6 = pneg %p13582_p1 }
  0x9a   : > { %p13588_p9 = pnand %p13586_p5, %p13583_p6 }
  0x9c   : > { %13591 = shalt.err (!%p13588_p9)
}
  0x9d   : > { %s13592_s26 = scalar_lea.vmem %s576_s25, 8192  ;;  %p13600_p4 = scmp.lt.s32.totalorder %s576_s25, %s576_s25 }
  0x9e   : > { %p13593_p10 = scmp.ne.s32.totalorder %s576_s25, %s13592_s26  ;;  %p13601_p7 = scmp.lt.s32.totalorder %s13592_s26, %s13592_s26 }
  0xa0   : > { %p13595_p2 = pnand %p13593_p10, %p14420_p0  ;;  %p13602_p8 = por %p13601_p7, %p13600_p4 }
  0xa2   : > { %p13596_p3 = pneg %p13595_p2 }
  0xa4   : > { %p13603_p11 = pnand %p13602_p8, %p13596_p3 }
  0xa6   : > { %13606 = shalt.err (!%p13603_p11)
}
  0xa7   : > { %s14228_s18 = smov 256   ;;  %s14229_s27 = smov 16  }
  0xa8   : > { %12001 = dma.hbm_to_vmem [thread:$0]  (!%p14404_p12), %s19372_s11, 8192, %s576_s25, [#allocation18], %s14228_s18, %s14228_s18, %s14229_s27  }
  0xa9   : > { %s14230_s3 = smov [#allocation20]   ;;  %s14231_s28 = smov [#allocation2]  }
  0xaa   : > { %s605_s12 = sshll.u32 %s14230_s3, 4  ;;  %s470_s17 = sshll.u32 %s14231_s28, 4  ;;  %s606_s12 = int_to_ptr.vmem [resolvable:$true] %s605_s12  ;;  %s471_s17 = int_to_ptr.vmem [resolvable:$true] %s470_s17 }
  0xab   : > { %s13607_s22 = scalar_lea.hbm %s19375_s14, 32 }
  0xac   : > { %p13608_p13 = scmp.ne.s32.totalorder %s19375_s14, %s13607_s22  ;;  %p13614_p5 = scmp.lt.u32.totalorder %s13607_s22, %s19375_s14 }
  0xae   : > { %p13610_p1 = pnand %p13608_p13, %p14420_p0 }
  0xb0   : > { %p13611_p6 = pneg %p13610_p1 }
  0xb2   : > { %p13616_p9 = pnand %p13614_p5, %p13611_p6 }
  0xb4   : > { %13619 = shalt.err (!%p13616_p9)
}
  0xb5   : > { %s13620_s25 = scalar_lea.vmem %s606_s12, 32  ;;  %p13628_p4 = scmp.lt.s32.totalorder %s606_s12, %s606_s12 }
  0xb6   : > { %p13621_p10 = scmp.ne.s32.totalorder %s606_s12, %s13620_s25  ;;  %p13629_p7 = scmp.lt.s32.totalorder %s13620_s25, %s13620_s25 }
  0xb8   : > { %p13623_p2 = pnand %p13621_p10, %p14420_p0  ;;  %p13630_p8 = por %p13629_p7, %p13628_p4 }
  0xba   : > { %p13624_p3 = pneg %p13623_p2 }
  0xbc   : > { %p13631_p11 = pnand %p13630_p8, %p13624_p3 }
  0xbe   : > { %13634 = shalt.err (!%p13631_p11)
}
  0xbf   : > { %12007 = dma.hbm_to_vmem [thread:$0]  (!%p14404_p12), %s19375_s14, 32, %s606_s12, [#allocation21]  }
  0xc0   : > { %s19592_s29 = sld [smem:[#allocation122_spill]] }
  0xc6   : > { %s19593_s5 = smov %s19592_s29  ;;  %s13635_s3 = scalar_lea.hbm %s19592_s29, 256 }
  0xc7   : > { %p13636_p13 = scmp.ne.s32.totalorder %s19593_s5, %s13635_s3  ;;  %p13642_p5 = scmp.lt.u32.totalorder %s13635_s3, %s19593_s5 }
  0xc9   : > { %p13638_p1 = pnand %p13636_p13, %p14420_p0 }
  0xcb   : > { %p13639_p6 = pneg %p13638_p1 }
  0xcd   : > { %p13644_p9 = pnand %p13642_p5, %p13639_p6 }
  0xcf   : > { %13647 = shalt.err (!%p13644_p9)
}
  0xd0   : > { %s13648_s1 = scalar_lea.vmem %s471_s17, 256  ;;  %p13656_p4 = scmp.lt.s32.totalorder %s471_s17, %s471_s17 }
  0xd1   : > { %p13649_p10 = scmp.ne.s32.totalorder %s471_s17, %s13648_s1  ;;  %p13657_p7 = scmp.lt.s32.totalorder %s13648_s1, %s13648_s1 }
  0xd3   : > { %p13651_p2 = pnand %p13649_p10, %p14420_p0  ;;  %p13658_p8 = por %p13657_p7, %p13656_p4 }
  0xd5   : > { %p13652_p3 = pneg %p13651_p2 }
  0xd7   : > { %p13659_p11 = pnand %p13658_p8, %p13652_p3 }
  0xd9   : > { %13662 = shalt.err (!%p13659_p11)
}
  0xda   : > { %s14232_s12 = smov 128   ;;  %s14233_s26 = smov 8  }
  0xdb   : > { %11974 = dma.hbm_to_vmem [thread:$0]  (!%p14404_p12), %s19593_s5, 256, %s471_s17, [#allocation3], %s14232_s12, %s14232_s12, %s14233_s26  }
  0xdc   : > { %s14234_s27 = smov [#allocation7]   ;;  %s14235_s2 = smov [#allocation10]  }
  0xdd   : > { %s495_s20 = sshll.u32 %s14234_s27, 4  ;;  %s519_s29 = sshll.u32 %s14235_s2, 4  ;;  %s496_s20 = int_to_ptr.vmem [resolvable:$true] %s495_s20  ;;  %s520_s29 = int_to_ptr.vmem [resolvable:$true] %s519_s29 }
  0xde   : > { %s13663_s30 = scalar_lea.hbm %s19365_s4, 32 }
  0xdf   : > { %p13664_p13 = scmp.ne.s32.totalorder %s19365_s4, %s13663_s30  ;;  %p13670_p5 = scmp.lt.u32.totalorder %s13663_s30, %s19365_s4 }
  0xe1   : > { %p13666_p1 = pnand %p13664_p13, %p14420_p0 }
  0xe3   : > { %p13667_p6 = pneg %p13666_p1 }
  0xe5   : > { %p13672_p9 = pnand %p13670_p5, %p13667_p6 }
  0xe7   : > { %13675 = shalt.err (!%p13672_p9)
}
  0xe8   : > { %s13676_s17 = scalar_lea.vmem %s496_s20, 32  ;;  %p13684_p4 = scmp.lt.s32.totalorder %s496_s20, %s496_s20 }
  0xe9   : > { %p13677_p10 = scmp.ne.s32.totalorder %s496_s20, %s13676_s17  ;;  %p13685_p7 = scmp.lt.s32.totalorder %s13676_s17, %s13676_s17 }
  0xeb   : > { %p13679_p2 = pnand %p13677_p10, %p14420_p0  ;;  %p13686_p8 = por %p13685_p7, %p13684_p4 }
  0xed   : > { %p13680_p3 = pneg %p13679_p2 }
  0xef   : > { %p13687_p11 = pnand %p13686_p8, %p13680_p3 }
  0xf1   : > { %13690 = shalt.err (!%p13687_p11)
}
  0xf2   : > { %11980 = dma.hbm_to_vmem [thread:$0]  (!%p14404_p12), %s19365_s4, 32, %s496_s20, [#allocation6]  }
  0xf3   : > { %s13691_s18 = scalar_lea.hbm %s19367_s6, 96 }
  0xf4   : > { %p13692_p13 = scmp.ne.s32.totalorder %s19367_s6, %s13691_s18  ;;  %p13698_p5 = scmp.lt.u32.totalorder %s13691_s18, %s19367_s6 }
  0xf6   : > { %p13694_p1 = pnand %p13692_p13, %p14420_p0 }
  0xf8   : > { %p13695_p6 = pneg %p13694_p1 }
  0xfa   : > { %p13700_p9 = pnand %p13698_p5, %p13695_p6 }
  0xfc   : > { %13703 = shalt.err (!%p13700_p9)
}
  0xfd   : > { %s13704_s30 = scalar_lea.vmem %s520_s29, 96  ;;  %p13712_p4 = scmp.lt.s32.totalorder %s520_s29, %s520_s29 }
  0xfe   : > { %p13705_p10 = scmp.ne.s32.totalorder %s520_s29, %s13704_s30  ;;  %p13713_p7 = scmp.lt.s32.totalorder %s13704_s30, %s13704_s30 }
 0x100   : > { %p13707_p2 = pnand %p13705_p10, %p14420_p0  ;;  %p13714_p8 = por %p13713_p7, %p13712_p4 }
 0x102   : > { %p13708_p3 = pneg %p13707_p2 }
 0x104   : > { %p13715_p11 = pnand %p13714_p8, %p13708_p3 }
 0x106   : > { %13718 = shalt.err (!%p13715_p11)
}
 0x107   : > { %11986 = dma.hbm_to_vmem [thread:$0]  (!%p14404_p12), %s19367_s6, 96, %s520_s29, [#allocation9]  }
 0x108   : > { %s14236_s22 = smov [#allocation13]   ;;  %s14237_s17 = smov [#allocation16]  }
 0x109   : > { %s543_s1 = sshll.u32 %s14236_s22, 4  ;;  %s565_s12 = sshll.u32 %s14237_s17, 4  ;;  %s544_s1 = int_to_ptr.vmem [resolvable:$true] %s543_s1  ;;  %s566_s12 = int_to_ptr.vmem [resolvable:$true] %s565_s12 }
 0x10a   : > { %s13719_s25 = scalar_lea.hbm %s19369_s8, 32 }
 0x10b   : > { %p13720_p13 = scmp.ne.s32.totalorder %s19369_s8, %s13719_s25  ;;  %p13726_p5 = scmp.lt.u32.totalorder %s13719_s25, %s19369_s8 }
 0x10d   : > { %p13722_p1 = pnand %p13720_p13, %p14420_p0 }
 0x10f   : > { %p13723_p6 = pneg %p13722_p1 }
 0x111   : > { %p13728_p9 = pnand %p13726_p5, %p13723_p6 }
 0x113   : > { %13731 = shalt.err (!%p13728_p9)
}
 0x114   : > { %s13732_s29 = scalar_lea.vmem %s544_s1, 32  ;;  %p13740_p4 = scmp.lt.s32.totalorder %s544_s1, %s544_s1 }
 0x115   : > { %p13733_p10 = scmp.ne.s32.totalorder %s544_s1, %s13732_s29  ;;  %p13741_p7 = scmp.lt.s32.totalorder %s13732_s29, %s13732_s29 }
 0x117   : > { %p13735_p2 = pnand %p13733_p10, %p14420_p0  ;;  %p13742_p8 = por %p13741_p7, %p13740_p4 }
 0x119   : > { %p13736_p3 = pneg %p13735_p2 }
 0x11b   : > { %p13743_p11 = pnand %p13742_p8, %p13736_p3 }
 0x11d   : > { %13746 = shalt.err (!%p13743_p11)
}
 0x11e   : > { %11992 = dma.hbm_to_vmem [thread:$0]  (!%p14404_p12), %s19369_s8, 32, %s544_s1, [#allocation12]  }
 0x11f   : > { %s13747_s22 = scalar_lea.hbm %s19371_s10, 32 }
 0x120   : > { %p13748_p13 = scmp.ne.s32.totalorder %s19371_s10, %s13747_s22  ;;  %p13754_p5 = scmp.lt.u32.totalorder %s13747_s22, %s19371_s10 }
 0x122   : > { %p13750_p1 = pnand %p13748_p13, %p14420_p0 }
 0x124   : > { %p13751_p6 = pneg %p13750_p1 }
 0x126   : > { %p13756_p9 = pnand %p13754_p5, %p13751_p6 }
 0x128   : > { %13759 = shalt.err (!%p13756_p9)
}
 0x129   : > { %s13760_s18 = scalar_lea.vmem %s566_s12, 32  ;;  %p13768_p4 = scmp.lt.s32.totalorder %s566_s12, %s566_s12 }
 0x12a   : > { %p13761_p10 = scmp.ne.s32.totalorder %s566_s12, %s13760_s18  ;;  %p13769_p7 = scmp.lt.s32.totalorder %s13760_s18, %s13760_s18 }
 0x12c   : > { %p13763_p2 = pnand %p13761_p10, %p14420_p0  ;;  %p13770_p8 = por %p13769_p7, %p13768_p4 }
 0x12e   : > { %p13764_p3 = pneg %p13763_p2 }
 0x130   : > { %p13771_p11 = pnand %p13770_p8, %p13764_p3 }
 0x132   : > { %13774 = shalt.err (!%p13771_p11)
}
 0x133   : > { %11998 = dma.hbm_to_vmem [thread:$0]  (!%p14404_p12), %s19371_s10, 32, %s566_s12, [#allocation15]  }
 0x134   : > { %s14238_s2 = smov [#allocation19]   ;;  %s14239_s29 = smov [#allocation22]  }
 0x135   : > { %s591_s3 = sshll.u32 %s14238_s2, 4  ;;  %s616_s28 = sshll.u32 %s14239_s29, 4  ;;  %s592_s3 = int_to_ptr.vmem [resolvable:$true] %s591_s3  ;;  %s617_s28 = int_to_ptr.vmem [resolvable:$true] %s616_s28 }
 0x136   : > { %s13775_s23 = scalar_lea.hbm %s19374_s13, 8192 }
 0x137   : > { %p13776_p13 = scmp.ne.s32.totalorder %s19374_s13, %s13775_s23  ;;  %p13782_p5 = scmp.lt.u32.totalorder %s13775_s23, %s19374_s13 }
 0x139   : > { %p13778_p1 = pnand %p13776_p13, %p14420_p0 }
 0x13b   : > { %p13779_p6 = pneg %p13778_p1 }
 0x13d   : > { %p13784_p9 = pnand %p13782_p5, %p13779_p6 }
 0x13f   : > { %13787 = shalt.err (!%p13784_p9)
}
 0x140   : > { %s13788_s12 = scalar_lea.vmem %s592_s3, 8192  ;;  %p13796_p4 = scmp.lt.s32.totalorder %s592_s3, %s592_s3 }
 0x141   : > { %p13789_p10 = scmp.ne.s32.totalorder %s592_s3, %s13788_s12  ;;  %p13797_p7 = scmp.lt.s32.totalorder %s13788_s12, %s13788_s12 }
 0x143   : > { %p13791_p2 = pnand %p13789_p10, %p14420_p0  ;;  %p13798_p8 = por %p13797_p7, %p13796_p4 }
 0x145   : > { %p13792_p3 = pneg %p13791_p2 }
 0x147   : > { %p13799_p11 = pnand %p13798_p8, %p13792_p3 }
 0x149   : > { %13802 = shalt.err (!%p13799_p11)
}
 0x14a   : > { %s19594_s25 = smov 4   ;;  %s19595_s18 = smov 64  }
 0x14b   : > { %12004 = dma.hbm_to_vmem [thread:$0]  (!%p14404_p12), %s19374_s13, 8192, %s592_s3, [#allocation18], %s19595_s18, %s19595_s18, %s19594_s25  }
 0x14c   : > { %s13803_s30 = scalar_lea.hbm %s19376_s15, 16 }
 0x14d   : > { %p13804_p13 = scmp.ne.s32.totalorder %s19376_s15, %s13803_s30  ;;  %p13810_p5 = scmp.lt.u32.totalorder %s13803_s30, %s19376_s15 }
 0x14f   : > { %p13806_p1 = pnand %p13804_p13, %p14420_p0 }
 0x151   : > { %p13807_p6 = pneg %p13806_p1 }
 0x153   : > { %p13812_p9 = pnand %p13810_p5, %p13807_p6 }
 0x155   : > { %13815 = shalt.err (!%p13812_p9)
}
 0x156   : > { %s13816_s26 = scalar_lea.vmem %s617_s28, 16  ;;  %s13823_s3 = scalar_lea.vmem %s617_s28, 32 }
 0x157   : > { %p13817_p10 = scmp.ne.s32.totalorder %s617_s28, %s13816_s26  ;;  %p13824_p4 = scmp.lt.s32.totalorder %s617_s28, %s617_s28 }
 0x158   : > { %p13825_p7 = scmp.lt.s32.totalorder %s13823_s3, %s13816_s26 }
 0x159   : > { %p13819_p2 = pnand %p13817_p10, %p14420_p0 }
 0x15a   : > { %p13826_p8 = por %p13825_p7, %p13824_p4 }
 0x15b   : > { %p13820_p3 = pneg %p13819_p2 }
 0x15d   : > { %p13827_p11 = pnand %p13826_p8, %p13820_p3 }
 0x15f   : > { %13830 = shalt.err (!%p13827_p11)
}
 0x160   : > { %12010 = dma.hbm_to_vmem [thread:$0]  (!%p14404_p12), %s19376_s15, 16, %s617_s28, [#allocation21]  }
 0x161   : > { %s14240_s25 = smov [#allocation23]   ;;  %s13831_s2 = scalar_lea.hbm %s19377_s16, 16 }
 0x162   : > { %s627_s18 = sshll.u32 %s14240_s25, 4  ;;  %p13832_p13 = scmp.ne.s32.totalorder %s19377_s16, %s13831_s2  ;;  %s628_s18 = int_to_ptr.vmem [resolvable:$true] %s627_s18 }
 0x163   : > { %p13838_p5 = scmp.lt.u32.totalorder %s13831_s2, %s19377_s16 }
 0x164   : > { %p13834_p1 = pnand %p13832_p13, %p14420_p0 }
 0x166   : > { %p13835_p6 = pneg %p13834_p1 }
 0x168   : > { %p13840_p9 = pnand %p13838_p5, %p13835_p6 }
 0x16a   : > { %13843 = shalt.err (!%p13840_p9)
}
 0x16b   : > { %s13844_s28 = scalar_lea.vmem %s628_s18, 16  ;;  %s13851_s22 = scalar_lea.vmem %s628_s18, 32 }
 0x16c   : > { %p13845_p10 = scmp.ne.s32.totalorder %s628_s18, %s13844_s28  ;;  %p13852_p4 = scmp.lt.s32.totalorder %s628_s18, %s628_s18 }
 0x16d   : > { %p13853_p7 = scmp.lt.s32.totalorder %s13851_s22, %s13844_s28 }
 0x16e   : > { %p13847_p2 = pnand %p13845_p10, %p14420_p0 }
 0x16f   : > { %p13854_p8 = por %p13853_p7, %p13852_p4 }
 0x170   : > { %p13848_p3 = pneg %p13847_p2 }
 0x172   : > { %p13855_p11 = pnand %p13854_p8, %p13848_p3 }
 0x174   : > { %13858 = shalt.err (!%p13855_p11)
}
 0x175   : > { %12013 = dma.hbm_to_vmem [thread:$0]  (!%p14404_p12), %s19377_s16, 16, %s628_s18, [#allocation24]  }
 0x176   : > { %p19596_p13 = scmp.ne.s32.totalorder %s19586_s24, 0 }
 0x178   : > { %663 = sbr.rel (%p19596_p13) target bundleno = 4616 (0x1208), region = 92 }
 0x17f   : > { %p19597_p1 = scmp.eq.s32.totalorder %s14368_s0, 0 }
 0x181   : > { %14036 = dma.done.wait (%p19597_p1), [#allocation3], 256   ;;  %p19598_p0 = pmov %p19597_p1 }
 0x183   : > { %14038 = vsyncadd (%p19598_p0), [#allocation3], 4294967040  ;;  %p19599_p6 = pmov %p19598_p0 }
 0x184   : > { %p19600_p5 = pmov %p19598_p0 }
 0x185   : > { %14040 = dma.done.wait (%p19599_p6), [#allocation6], 64  }
 0x186   : > { %14042 = vsyncadd (%p19600_p5), [#allocation6], 4294967232  ;;  %p19601_p9 = pmov %p19598_p0 }
 0x187   : > { %p19602_p12 = pmov %p19598_p0 }
 0x188   : > { %14044 = dma.done.wait (%p19601_p9), [#allocation9], 6240  }
 0x189   : > { %14046 = vsyncadd (%p19602_p12), [#allocation9], 4294961056  ;;  %p19603_p10 = pmov %p19598_p0 }
 0x18a   : > { %p19604_p2 = pmov %p19598_p0 }
 0x18b   : > { %14048 = dma.done.wait (%p19603_p10), [#allocation12], 2080  }
 0x18c   : > { %14050 = vsyncadd (%p19604_p2), [#allocation12], 4294965216  ;;  %p19605_p3 = pmov %p19598_p0 }
 0x18d   : > { %p19606_p4 = pmov %p19598_p0 }
 0x18e   : > { %14052 = dma.done.wait (%p19605_p3), [#allocation15], 64  }
 0x18f   : > { %14054 = vsyncadd (%p19606_p4), [#allocation15], 4294967232  ;;  %p19607_p7 = pmov %p19598_p0 }
 0x190   : > { %p19608_p8 = pmov %p19598_p0 }
 0x191   : > { %14056 = dma.done.wait (%p19607_p7), [#allocation18], 16384  }
 0x192   : > { %14058 = vsyncadd (%p19608_p8), [#allocation18], 4294950912  ;;  %p19609_p11 = pmov %p19598_p0 }
 0x193   : > { %p19610_p13 = pmov %p19598_p0 }
 0x194   : > { %14060 = dma.done.wait (%p19609_p11), [#allocation21], 48  }
 0x195   : > { %14062 = vsyncadd (%p19610_p13), [#allocation21], 4294967248  ;;  %p19611_p1 = pmov %p19598_p0 }
 0x197   : > { %14064 = dma.done.wait (%p19611_p1), [#allocation24], 16  }
 0x198   : > { %14066 = vsyncadd (%p19598_p0), [#allocation24], 4294967280  ;;  %s19612_s24 = sld [smem:[#allocation36_spill]]  ;;  %s10656_s19 = sshll.u32 %s14368_s0, 4  ;;  %v858_v0 = vlaneseq  ;;  %v14241_v4 = vmov -1e+30  }
 0x199   : > { %p777_p6 = scmp.lt.s32.totalorder %s10656_s19, 63  ;;  %s19615_s18 = sld [smem:[#allocation121_spill]]  ;;  %v824_v25 = vld [vmem:[#allocation2] sm:$0xff]  ;;  %v825_v28 = vld [vmem:[#allocation2 + $0x8] sm:$0xff] }
 0x19a   : > { %v14722_v1 = vshrl.u32 %v858_v0, 7  ;;  %v862_v2 = vand.u32 127, %v858_v0  ;;  %s19617_s29 = sld [smem:[#allocation120_spill]]  ;;  %s14857_s23 = smov 0  }
 0x19b   : > { %s20057_s19 = smov (!%p777_p6, %s10656_s19), 63 }
 0x19c   : > { %19613 = vst [vmem:[#allocation43_spill] sm:$0xff] %v14722_v1  ;;  %v860_v3 = vadd.s32 8, %v14722_v1  ;;  %vm863_vm0 = vcmp.le.s32.totalorder %v862_v2, %v14722_v1  ;;  %s10980_s7 = sshll.u32 %s20057_s19, 4 }
 0x19d   : > { %v14726_v5 = vsel %vm863_vm0, 0.0, %v14241_v4 }
 0x19e   : > { %s773_s21 = sand.u32 1, %s19612_s24   ;;  %19614 = vst [vmem:[#allocation44_spill] sm:$0xff] %v14726_v5  ;;  %vm864_vm1 = vcmp.le.s32.totalorder %v862_v2, %v860_v3 }
 0x19f   : > { %s14720_s3 = sshll.u32 %s773_s21, 4  ;;  %s14731_s1 = scalar_lea.vmem %s19615_s18, %s10980_s7  ;;  %v14733_v6 = vsel %vm864_vm1, 0.0, %v14241_v4 }
 0x1a0   : > { %19616 = vst [vmem:[#allocation45_spill] sm:$0xff] %v14733_v6  ;;  %s14738_s30 = scalar_lea.vmem %s19617_s29, %s10980_s7  ;;  %s14785_s20 = scalar_lea.vmem [#allocation25], %s14720_s3 }
 0x1a1   : > { %v792_v7 = vld [vmem:[%s14738_s30] sm:$0xff]  ;;  %v794_v8 = vld [vmem:[%s14738_s30 + $0x10] sm:$0xff]  ;;  %v793_v10 = vld [vmem:[%s14738_s30 + $0x8] sm:$0xff] }
 0x1a2   : > { %v796_v9 = vld [vmem:[%s14738_s30 + $0x20] sm:$0xff]  ;;  %v795_v11 = vld [vmem:[%s14738_s30 + $0x18] sm:$0xff]  ;;  %v797_v12 = vld [vmem:[%s14738_s30 + $0x28] sm:$0xff]  ;;  %v14760_v29 = vadd.f32 %v824_v25, %v792_v7   ;;  %v14762_v30 = vadd.f32 %v824_v25, %v794_v8   ;;  %v14771_v36 = vadd.f32 %v825_v28, %v793_v10  }
 0x1a3   : > { %v798_v13 = vld [vmem:[%s14738_s30 + $0x30] sm:$0xff]  ;;  %v799_v14 = vld [vmem:[%s14738_s30 + $0x38] sm:$0xff]  ;;  %v800_v15 = vld [vmem:[%s14738_s30 + $0x40] sm:$0xff]  ;;  %v14764_v31 = vadd.f32 %v824_v25, %v796_v9   ;;  %v14773_v37 = vadd.f32 %v825_v28, %v795_v11   ;;  %v831_v38 = vadd.f32 %v825_v28, %v797_v12  }
 0x1a4   : > { %v801_v16 = vld [vmem:[%s14738_s30 + $0x48] sm:$0xff]  ;;  %v802_v17 = vld [vmem:[%s14738_s30 + $0x50] sm:$0xff]  ;;  %v803_v18 = vld [vmem:[%s14738_s30 + $0x58] sm:$0xff]  ;;  %v14766_v32 = vadd.f32 %v824_v25, %v798_v13   ;;  %v833_v39 = vadd.f32 %v825_v28, %v799_v14   ;;  %v834_v43 = vadd.f32 %v824_v25, %v800_v15  }
 0x1a5   : > { %v804_v19 = vld [vmem:[%s14738_s30 + $0x60] sm:$0xff]  ;;  %v805_v20 = vld [vmem:[%s14738_s30 + $0x68] sm:$0xff]  ;;  %v806_v21 = vld [vmem:[%s14738_s30 + $0x70] sm:$0xff]  ;;  %v835_v44 = vadd.f32 %v825_v28, %v801_v16   ;;  %v836_v45 = vadd.f32 %v824_v25, %v802_v17   ;;  %v837_v46 = vadd.f32 %v825_v28, %v803_v18  }
 0x1a6   : > { %v807_v22 = vld [vmem:[%s14738_s30 + $0x78] sm:$0xff]  ;;  %v808_v23 = vld [vmem:[%s14738_s30 + $0x80] sm:$0xff]  ;;  %v809_v24 = vld [vmem:[%s14738_s30 + $0x88] sm:$0xff]  ;;  %v838_v50 = vadd.f32 %v824_v25, %v804_v19   ;;  %v839_v51 = vadd.f32 %v825_v28, %v805_v20   ;;  %v840_v52 = vadd.f32 %v824_v25, %v806_v21  }
 0x1a7   : > { %v810_v26 = vld [vmem:[%s14738_s30 + $0x90] sm:$0xff]  ;;  %v811_v27 = vld [vmem:[%s14738_s30 + $0x98] sm:$0xff]  ;;  %v812_v33 = vld [vmem:[%s14738_s30 + $0xa0] sm:$0xff]  ;;  %v841_v53 = vadd.f32 %v825_v28, %v807_v22   ;;  %v842_v57 = vadd.f32 %v824_v25, %v808_v23   ;;  %v843_v58 = vadd.f32 %v825_v28, %v809_v24  }
 0x1a8   : > { %v813_v34 = vld [vmem:[%s14738_s30 + $0xa8] sm:$0xff]  ;;  %v814_v35 = vld [vmem:[%s14738_s30 + $0xb0] sm:$0xff]  ;;  %v815_v40 = vld [vmem:[%s14738_s30 + $0xb8] sm:$0xff]  ;;  %v844_v59 = vadd.f32 %v824_v25, %v810_v26   ;;  %v845_v60 = vadd.f32 %v825_v28, %v811_v27   ;;  %v846_v61 = vadd.f32 %v824_v25, %v812_v33  }
 0x1a9   : > { %v816_v41 = vld [vmem:[%s14738_s30 + $0xc0] sm:$0xff]  ;;  %v817_v42 = vld [vmem:[%s14738_s30 + $0xc8] sm:$0xff]  ;;  %v818_v47 = vld [vmem:[%s14738_s30 + $0xd0] sm:$0xff]  ;;  %v847_v62 = vadd.f32 %v825_v28, %v813_v34   ;;  %v848_v63 = vadd.f32 %v824_v25, %v814_v35   ;;  %v849_v0 = vadd.f32 %v825_v28, %v815_v40  }
 0x1aa   : > { %v819_v48 = vld [vmem:[%s14738_s30 + $0xd8] sm:$0xff]  ;;  %v820_v49 = vld [vmem:[%s14738_s30 + $0xe0] sm:$0xff]  ;;  %v821_v54 = vld [vmem:[%s14738_s30 + $0xe8] sm:$0xff]  ;;  %v850_v2 = vadd.f32 %v824_v25, %v816_v41   ;;  %v851_v3 = vadd.f32 %v825_v28, %v817_v42   ;;  %v852_v4 = vadd.f32 %v824_v25, %v818_v47  }
 0x1ab   : > { %v822_v55 = vld [vmem:[%s14738_s30 + $0xf0] sm:$0xff]  ;;  %v823_v56 = vld [vmem:[%s14738_s30 + $0xf8] sm:$0xff]  ;;  %v853_v7 = vadd.f32 %v825_v28, %v819_v48   ;;  %v854_v8 = vadd.f32 %v824_v25, %v820_v49   ;;  %v855_v9 = vadd.f32 %v825_v28, %v821_v54  }
 0x1ac   : > { %v856_v10 = vadd.f32 %v824_v25, %v822_v55   ;;  %v857_v11 = vadd.f32 %v825_v28, %v823_v56  }
 0x1ad LB: >> { %v19618_v5 = vld [vmem:[#allocation44_spill] sm:$0xff]  ;;  %v19619_v6 = vld [vmem:[#allocation45_spill] sm:$0xff]  ;;  %v19620_v1 = vld [vmem:[#allocation43_spill] sm:$0xff]  ;;  %19621 = vst [vmem:[#allocation46_spill] sm:$0xff] %v14089_v11  ;;  %909 = vadd.xlane.f32.xlu0 %v14213_v29  ;;  %913 = vadd.xlane.f32.xlu1 %v14205_v30  ;;  %s10982_s28 = smul.u32 192, %s14217_s23  ;;  %s905_s17 = scalar_lea.vmem [#allocation5], %s14217_s23  ;;  %v14097_v9 = vphi %v855_v9, %v19990_v9   ;;  %v14093_v10 = vphi %v856_v10, %v19989_v10   ;;  %v14089_v11 = vphi %v857_v11, %v19988_v11   ;;  %s14217_s23 = sphi %s14857_s23, %s20020_s23   ;;  %v14213_v29 = vphi %v14760_v29, %v20019_v29   ;;  %v14209_v36 = vphi %v14771_v36, %v20018_v36   ;;  %v14205_v30 = vphi %v14762_v30, %v20017_v30   ;;  %v14201_v37 = vphi %v14773_v37, %v20016_v37   ;;  %v14197_v31 = vphi %v14764_v31, %v20015_v31   ;;  %v14193_v38 = vphi %v831_v38, %v20014_v38   ;;  %v14189_v32 = vphi %v14766_v32, %v20013_v32   ;;  %v14185_v39 = vphi %v833_v39, %v20012_v39   ;;  %v14181_v43 = vphi %v834_v43, %v20011_v43   ;;  %v14177_v44 = vphi %v835_v44, %v20010_v44   ;;  %v14173_v45 = vphi %v836_v45, %v20009_v45   ;;  %v14169_v46 = vphi %v837_v46, %v20008_v46   ;;  %v14165_v50 = vphi %v838_v50, %v20007_v50   ;;  %v14161_v51 = vphi %v839_v51, %v20006_v51   ;;  %v14157_v52 = vphi %v840_v52, %v20005_v52   ;;  %v14153_v53 = vphi %v841_v53, %v20004_v53   ;;  %v14149_v57 = vphi %v842_v57, %v20003_v57   ;;  %v14145_v58 = vphi %v843_v58, %v20002_v58   ;;  %v14141_v59 = vphi %v844_v59, %v20001_v59   ;;  %v14137_v60 = vphi %v845_v60, %v20000_v60   ;;  %v14133_v61 = vphi %v846_v61, %v19999_v61   ;;  %v14129_v62 = vphi %v847_v62, %v19998_v62   ;;  %v14125_v63 = vphi %v848_v63, %v19997_v63   ;;  %v14121_v0 = vphi %v849_v0, %v19996_v0   ;;  %v14117_v2 = vphi %v850_v2, %v19995_v2   ;;  %v14113_v3 = vphi %v851_v3, %v19994_v3   ;;  %v14109_v4 = vphi %v852_v4, %v19993_v4   ;;  %v14105_v7 = vphi %v853_v7, %v19992_v7   ;;  %v14101_v8 = vphi %v854_v8, %v19991_v8  }
 0x1ae   : >> { %19622 = vst [vmem:[#allocation47_spill] sm:$0xff] %v14093_v10  ;;  %19623 = vst [vmem:[#allocation48_spill] sm:$0xff] %v14097_v9  ;;  %s907_s26 = scalar_lea.vmem [#allocation7], %s14217_s23  ;;  %s1867_s24 = sshra.s32 %s14217_s23, 1  ;;  %vm14244_vm2 = vmmov 0   ;;  %vm2036_vm3 = vcmask 523264  }
 0x1af   : >> { %19624 = vst [vmem:[#allocation49_spill] sm:$0xff] %v14101_v8  ;;  %19625 = vst [vmem:[#allocation50_spill] sm:$0xff] %v14105_v7  ;;  %s14983_s22 = scalar_lea.vmem [#allocation8], %s10982_s28  ;;  %s1870_s19 = sand.u32 1, %s14217_s23  ;;  %vm2853_vm4 = vcmask 130048  }
 0x1b0   : >> { %19626 = vst [vmem:[#allocation51_spill] sm:$0xff] %v14109_v4  ;;  %19627 = vst [vmem:[#allocation52_spill] sm:$0xff] %v14113_v3  ;;  %v12375_v12 = vld [vmem:[%s14983_s22 + $0x4] ss:$12 sps:$4 sm:$0xff]   ;;  %v12377_v13 = vld [vmem:[%s14983_s22] ss:$12 sps:$4 sm:$0xff]  }
 0x1b1   : >> { %19628 = vst [vmem:[#allocation53_spill] sm:$0xff] %v14117_v2  ;;  %19629 = vst [vmem:[#allocation54_spill] sm:$0xff] %v14121_v0  ;;  %911 = vadd.xlane.f32.xlu0 %v14209_v36  ;;  %915 = vadd.xlane.f32.xlu1 %v14201_v37  ;;  %v12378_v14 = vld [vmem:[%s14983_s22 + $0x1c] ss:$12 sps:$4 sm:$0xff]   ;;  %s10985_s3 = sshll.u32 %s1867_s24, 3  ;;  %s10689_s12 = smul.u32 6, %s1867_s24 }
 0x1b2   : >> { %19630 = vst [vmem:[#allocation55_spill] sm:$0xff] %v14125_v63  ;;  %19631 = vst [vmem:[#allocation56_spill] sm:$0xff] %v14129_v62  ;;  %1513 = vmatprep.subr.bf16.mxu0 %v12375_v12  ;;  %11897 = vmatprep.subr.bf16.mxu1 %v12375_v12  ;;  %s15317_s7 = sadd.s32 %s10985_s3, %s1870_s19  ;;  %s14245_s27 = smov 64  }
 0x1b3   : >> { %19632 = vst [vmem:[#allocation57_spill] sm:$0xff] %v14133_v61  ;;  %19633 = vst [vmem:[#allocation58_spill] sm:$0xff] %v14137_v60  ;;  %1514 = vmatpush1.bf16.msra.mxu0 %v12377_v13  ;;  %11905 = vmatpush1.bf16.msra.mxu1 %v12377_v13  ;;  %s1873_s25 = sadd.s32 %s10689_s12, %s1870_s19  ;;  %s10983_s2 = sshll.u32 %s14217_s23, 6 }
 0x1b4   : >> { %19634 = vst [vmem:[#allocation59_spill] sm:$0xff] %v14141_v59  ;;  %19635 = vst [vmem:[#allocation60_spill] sm:$0xff] %v14145_v58  ;;  %1515 = vmatprep.subr.bf16.mxu0 %v12378_v14  ;;  %11898 = vmatprep.subr.bf16.mxu1 %v12378_v14  ;;  %v12380_v14 = vld [vmem:[%s14983_s22 + $0x18] ss:$12 sps:$4 sm:$0xff]   ;;  %s1874_s18 = scalar_lea.vmem [#allocation10], %s1873_s25  ;;  %s16892_s29 = scalar_lea.vmem [#allocation11], %s10983_s2 }
 0x1b5   : >> { %19636 = vst [vmem:[#allocation61_spill] sm:$0xff] %v14149_v57  ;;  %19637 = vst [vmem:[#allocation62_spill] sm:$0xff] %v14153_v53  ;;  %917 = vadd.xlane.f32.xlu0 %v14197_v31  ;;  %919 = vadd.xlane.f32.xlu1 %v14193_v38  ;;  %s6378_s30 = scalar_lea.vmem [#allocation13], %s14217_s23  ;;  %s10984_s28 = sshll.u32 %s14217_s23, 8 }
 0x1b6   : >> { %19638 = vst [vmem:[#allocation63_spill] sm:$0xff] %v14157_v52  ;;  %19639 = vst [vmem:[#allocation64_spill] sm:$0xff] %v14161_v51  ;;  %s6418_s24 = scalar_lea.vmem [#allocation16], %s14217_s23  ;;  %s19868_s12 = sld [smem:[#allocation126_spill]] }
 0x1b7   : >> { %19640 = vst [vmem:[#allocation65_spill] sm:$0xff] %v14165_v50  ;;  %19641 = vst [vmem:[#allocation66_spill] sm:$0xff] %v14169_v46  ;;  %1516 = vmatpush1.bf16.msra.mxu0 %v12380_v14  ;;  %11906 = vmatpush1.bf16.msra.mxu1 %v12380_v14 }
 0x1b8   : >> { %19642 = vst [vmem:[#allocation67_spill] sm:$0xff] %v14173_v45  ;;  %19643 = vst [vmem:[#allocation68_spill] sm:$0xff] %v14177_v44 }
 0x1b9   : >> { %19644 = vst [vmem:[#allocation69_spill] sm:$0xff] %v14181_v43  ;;  %19645 = vst [vmem:[#allocation70_spill] sm:$0xff] %v14185_v39  ;;  %921 = vadd.xlane.f32.xlu0 %v14189_v32  ;;  %923 = vadd.xlane.f32.xlu1 %v14185_v39 }
 0x1ba   : >> { %19646 = vst [vmem:[#allocation71_spill] sm:$0xff] %v14189_v32  ;;  %19647 = vst [vmem:[#allocation72_spill] sm:$0xff] %v14193_v38 }
 0x1bb   : >> { %19648 = vst [vmem:[#allocation73_spill] sm:$0xff] %v14197_v31  ;;  %19649 = vst [vmem:[#allocation74_spill] sm:$0xff] %v14201_v37 }
 0x1bc   : >> { %19650 = vst [vmem:[#allocation75_spill] sm:$0xff] %v14205_v30  ;;  %19651 = vst [vmem:[#allocation76_spill] sm:$0xff] %v14209_v36  ;;  %s7444_s25 = scalar_lea.vmem %s19868_s12, %s15317_s7  ;;  %s9295_s7 = scalar_lea.vmem [#allocation20], %s14217_s23 }
 0x1bd   : >> { %19652 = vst [vmem:[#allocation77_spill] sm:$0xff] %v14213_v29  ;;  %925 = vadd.xlane.f32.xlu0 %v14181_v43  ;;  %927 = vadd.xlane.f32.xlu1 %v14177_v44 }
 0x1c1   : >> { %929 = vadd.xlane.f32.xlu0 %v14173_v45  ;;  %931 = vadd.xlane.f32.xlu1 %v14169_v46 }
 0x1c5   : >> { %933 = vadd.xlane.f32.xlu0 %v14165_v50  ;;  %935 = vadd.xlane.f32.xlu1 %v14161_v51 }
 0x1c9   : >> { %937 = vadd.xlane.f32.xlu0 %v14157_v52  ;;  %939 = vadd.xlane.f32.xlu1 %v14153_v53 }
 0x1cd   : >> { %941 = vadd.xlane.f32.xlu0 %v14149_v57  ;;  %943 = vadd.xlane.f32.xlu1 %v14145_v58 }
 0x1d1   : >> { %945 = vadd.xlane.f32.xlu0 %v14141_v59  ;;  %947 = vadd.xlane.f32.xlu1 %v14137_v60 }
 0x1d5   : >> { %949 = vadd.xlane.f32.xlu0 %v14133_v61  ;;  %951 = vadd.xlane.f32.xlu1 %v14129_v62 }
 0x1d9   : >> { %957 = vadd.xlane.f32.xlu0 %v14117_v2  ;;  %959 = vadd.xlane.f32.xlu1 %v14113_v3 }
 0x23a   : >> { %v910_v15 = vpop.xlane.xlu0 %909  ;;  %v914_v16 = vpop.xlane.xlu1 %913 }
 0x23b   : >> { %v974_v17 = vmul.f32 0.0078125, %v910_v15  ;;  %v976_v19 = vmul.f32 0.0078125, %v914_v16 }
 0x23d   : >> { %v14989_v18 = vsub.f32 %v14213_v29, %v974_v17  ;;  %v14997_v26 = vsub.f32 %v14205_v30, %v976_v19  ;;  %v12381_v17 = vld [vmem:[%s14983_s22 + $0x34] ss:$12 sps:$4 sm:$0xff]  }
 0x23e   : >> { %v912_v20 = vpop.xlane.xlu0 %911  ;;  %v916_v21 = vpop.xlane.xlu1 %915  ;;  %1517 = vmatprep.subr.bf16.mxu0 %v12381_v17  ;;  %11899 = vmatprep.subr.bf16.mxu1 %v12381_v17 }
 0x23f   : >> { %v975_v22 = vmul.f32 0.0078125, %v912_v20  ;;  %v1038_v23 = vmul.f32 %v14989_v18, %v14989_v18  ;;  %v977_v25 = vmul.f32 0.0078125, %v916_v21  ;;  %v1040_v34 = vmul.f32 %v14997_v26, %v14997_v26 }
 0x241   : >> { %1070 = vadd.xlane.f32.xlu0 %v1038_v23  ;;  %v14994_v24 = vsub.f32 %v14209_v36, %v975_v22  ;;  %v15005_v40 = vsub.f32 %v14201_v37, %v977_v25  ;;  %v12383_v22 = vld [vmem:[%s14983_s22 + $0x30] ss:$12 sps:$4 sm:$0xff]  }
 0x242   : >> { %v918_v27 = vpop.xlane.xlu0 %917  ;;  %v920_v28 = vpop.xlane.xlu1 %919  ;;  %1518 = vmatpush1.bf16.msra.mxu0 %v12383_v22  ;;  %11907 = vmatpush1.bf16.msra.mxu1 %v12383_v22 }
 0x243   : >> { %v1039_v33 = vmul.f32 %v14994_v24, %v14994_v24  ;;  %v978_v35 = vmul.f32 0.0078125, %v918_v27  ;;  %v1041_v47 = vmul.f32 %v15005_v40, %v15005_v40  ;;  %v979_v48 = vmul.f32 0.0078125, %v920_v28  ;;  %v12384_v27 = vld [vmem:[%s14983_s22 + $0x4c] ss:$12 sps:$4 sm:$0xff]  }
 0x244   : >> { %1519 = vmatprep.subr.bf16.mxu0 %v12384_v27  ;;  %11900 = vmatprep.subr.bf16.mxu1 %v12384_v27 }
 0x245   : >> { %953 = vadd.xlane.f32.xlu0 %v14125_v63  ;;  %1072 = vadd.xlane.f32.xlu1 %v1039_v33  ;;  %v15011_v49 = vsub.f32 %v14197_v31, %v978_v35  ;;  %v15017_v13 = vsub.f32 %v14193_v38, %v979_v48  ;;  %v12386_v35 = vld [vmem:[%s14983_s22 + $0x48] ss:$12 sps:$4 sm:$0xff]  }
 0x246   : >> { %v922_v41 = vpop.xlane.xlu0 %921  ;;  %v924_v42 = vpop.xlane.xlu1 %923  ;;  %1520 = vmatpush1.bf16.msra.mxu0 %v12386_v35  ;;  %11908 = vmatpush1.bf16.msra.mxu1 %v12386_v35 }
 0x247   : >> { %v1042_v56 = vmul.f32 %v15011_v49, %v15011_v49  ;;  %v980_v12 = vmul.f32 0.0078125, %v922_v41  ;;  %v1043_v19 = vmul.f32 %v15017_v13, %v15017_v13  ;;  %v981_v20 = vmul.f32 0.0078125, %v924_v42  ;;  %v12387_v42 = vld [vmem:[%s14983_s22 + $0x64] ss:$12 sps:$4 sm:$0xff]  }
 0x248   : >> { %1521 = vmatprep.subr.bf16.mxu0 %v12387_v42  ;;  %11901 = vmatprep.subr.bf16.mxu1 %v12387_v42  ;;  %v12393_v42 = vld [vmem:[%s14983_s22 + $0x94] ss:$12 sps:$4 sm:$0xff]  }
 0x249   : >> { %1074 = vadd.xlane.f32.xlu0 %v1040_v34  ;;  %955 = vadd.xlane.f32.xlu1 %v14121_v0  ;;  %v15025_v21 = vsub.f32 %v14189_v32, %v980_v12  ;;  %v15033_v34 = vsub.f32 %v14185_v39, %v981_v20  ;;  %v12389_v12 = vld [vmem:[%s14983_s22 + $0x60] ss:$12 sps:$4 sm:$0xff]   ;;  %v12390_v20 = vld [vmem:[%s14983_s22 + $0x7c] ss:$12 sps:$4 sm:$0xff]  }
 0x24a   : >> { %v926_v54 = vpop.xlane.xlu0 %925  ;;  %v928_v55 = vpop.xlane.xlu1 %927  ;;  %1522 = vmatpush1.bf16.msra.mxu0 %v12389_v12  ;;  %11909 = vmatpush1.bf16.msra.mxu1 %v12389_v12 }
 0x24b   : >> { %v1044_v28 = vmul.f32 %v15025_v21, %v15025_v21  ;;  %v982_v33 = vmul.f32 0.0078125, %v926_v54  ;;  %v983_v48 = vmul.f32 0.0078125, %v928_v55  ;;  %1523 = vmatprep.subr.bf16.mxu0 %v12390_v20  ;;  %11902 = vmatprep.subr.bf16.mxu1 %v12390_v20 }
 0x24d   : >> { %1076 = vadd.xlane.f32.xlu1 %v1041_v47  ;;  %961 = vadd.xlane.f32.xlu0 %v14109_v4  ;;  %v1045_v47 = vmul.f32 %v15033_v34, %v15033_v34  ;;  %v15041_v54 = vsub.f32 %v14181_v43, %v982_v33  ;;  %v15052_v27 = vsub.f32 %v14177_v44, %v983_v48 }
 0x24e   : >> { %v930_v15 = vpop.xlane.xlu0 %929  ;;  %v932_v16 = vpop.xlane.xlu1 %931 }
 0x24f   : >> { %v985_v17 = vmul.f32 0.0078125, %v932_v16  ;;  %v1046_v55 = vmul.f32 %v15041_v54, %v15041_v54 }
 0x251   : >> { %1078 = vadd.xlane.f32.xlu0 %v1042_v56  ;;  %963 = vadd.xlane.f32.xlu1 %v14105_v7  ;;  %v984_v56 = vmul.f32 0.0078125, %v930_v15  ;;  %v15056_v33 = vsub.f32 %v14169_v46, %v985_v17 }
 0x252   : >> { %v934_v23 = vpop.xlane.xlu0 %933  ;;  %v936_v25 = vpop.xlane.xlu1 %935 }
 0x253   : >> { %v986_v15 = vmul.f32 0.0078125, %v934_v23  ;;  %v15049_v22 = vsub.f32 %v14173_v45, %v984_v56  ;;  %v987_v16 = vmul.f32 0.0078125, %v936_v25  ;;  %v12395_v25 = vld [vmem:[%s14983_s22 + $0x90] ss:$12 sps:$4 sm:$0xff]   ;;  %v1049_v17 = vmul.f32 %v15056_v33, %v15056_v33 }
 0x255   : >> { %1080 = vadd.xlane.f32.xlu1 %v1043_v19  ;;  %965 = vadd.xlane.f32.xlu0 %v14101_v8  ;;  %v1048_v23 = vmul.f32 %v15049_v22, %v15049_v22  ;;  %v15065_v56 = vsub.f32 %v14165_v50, %v986_v15  ;;  %v15071_v20 = vsub.f32 %v14161_v51, %v987_v16 }
 0x256   : >> { %v938_v41 = vpop.xlane.xlu0 %937  ;;  %v940_v14 = vpop.xlane.xlu1 %939 }
 0x257   : >> { %v988_v48 = vmul.f32 0.0078125, %v938_v41  ;;  %v1050_v41 = vmul.f32 %v15065_v56, %v15065_v56  ;;  %v989_v15 = vmul.f32 0.0078125, %v940_v14  ;;  %v1051_v16 = vmul.f32 %v15071_v20, %v15071_v20 }
 0x259   : >> { %1082 = vadd.xlane.f32.xlu0 %v1044_v28  ;;  %967 = vadd.xlane.f32.xlu1 %v14097_v9  ;;  %v12392_v28 = vld [vmem:[%s14983_s22 + $0x78] ss:$12 sps:$4 sm:$0xff]   ;;  %v15077_v50 = vsub.f32 %v14157_v52, %v988_v48  ;;  %v15088_v48 = vsub.f32 %v14153_v53, %v989_v15 }
 0x25a   : >> { %v942_v19 = vpop.xlane.xlu0 %941  ;;  %1524 = vmatpush1.bf16.msra.mxu0 %v12392_v28  ;;  %11910 = vmatpush1.bf16.msra.mxu1 %v12392_v28  ;;  %v944_v35 = vpop.xlane.xlu1 %943 }
 0x25b   : >> { %1525 = vmatprep.subr.bf16.mxu0 %v12393_v42  ;;  %11903 = vmatprep.subr.bf16.mxu1 %v12393_v42  ;;  %v990_v28 = vmul.f32 0.0078125, %v942_v19  ;;  %v12398_v42 = vld [vmem:[%s14983_s22 + $0xa8] ss:$12 sps:$4 sm:$0xff]   ;;  %v1052_v14 = vmul.f32 %v15077_v50, %v15077_v50 }
 0x25d   : >> { %1084 = vadd.xlane.f32.xlu1 %v1045_v47  ;;  %969 = vadd.xlane.f32.xlu0 %v14093_v10  ;;  %v1047_v47 = vmul.f32 %v15052_v27, %v15052_v27 }
 0x25e   : >> { %v946_v12 = vpop.xlane.xlu0 %945  ;;  %1526 = vmatpush1.bf16.msra.mxu0 %v12395_v25  ;;  %11911 = vmatpush1.bf16.msra.mxu1 %v12395_v25  ;;  %v948_v46 = vpop.xlane.xlu1 %947  ;;  %v991_v25 = vmul.f32 0.0078125, %v944_v35 }
 0x25f   : >> { %v992_v19 = vmul.f32 0.0078125, %v946_v12 }
 0x260   : >> { %v15093_v35 = vsub.f32 %v14145_v58, %v991_v25 }
 0x261   : >> { %1086 = vadd.xlane.f32.xlu0 %v1046_v55  ;;  %971 = vadd.xlane.f32.xlu1 %v14089_v11  ;;  %v12396_v55 = vld [vmem:[%s14983_s22 + $0xac] ss:$12 sps:$4 sm:$0xff]  }
 0x262   : >> { %1527 = vmatprep.subr.bf16.mxu0 %v12396_v55  ;;  %11904 = vmatprep.subr.bf16.mxu1 %v12396_v55  ;;  %v19401_v55 = vmov 0  }
 0x263   : >> { %1528 = vmatpush1.bf16.msra.mxu0 %v12398_v42  ;;  %11912 = vmatpush1.bf16.msra.mxu1 %v12398_v42  ;;  %v993_v42 = vmul.f32 0.0078125, %v948_v46  ;;  %v1055_v46 = vmul.f32 %v15093_v35, %v15093_v35 }
 0x264   : >> { %1545 = vmatprep.mubr.bf16.mxu0 %v19401_v55  ;;  %1665 = vmatprep.mubr.bf16.mxu1 %v19401_v55 }
 0x265   : >> { %1090 = vadd.xlane.f32.xlu0 %v1048_v23  ;;  %1088 = vadd.xlane.f32.xlu1 %v1047_v47  ;;  %v950_v23 = vpop.xlane.xlu0 %949  ;;  %v15085_v47 = vsub.f32 %v14149_v57, %v990_v28  ;;  %v15100_v28 = vsub.f32 %v14141_v59, %v992_v19  ;;  %v15105_v25 = vsub.f32 %v14137_v60, %v993_v42 }
 0x266   : >> { %v994_v15 = vmul.f32 0.0078125, %v950_v23 }
 0x267   : >> { %v1054_v12 = vmul.f32 %v15085_v47, %v15085_v47  ;;  %v1057_v19 = vmul.f32 %v15105_v25, %v15105_v25 }
 0x268   : >> { %v15110_v58 = vsub.f32 %v14133_v61, %v994_v15 }
 0x269   : >> { %1094 = vadd.xlane.f32.xlu0 %v1050_v41  ;;  %1092 = vadd.xlane.f32.xlu1 %v1049_v17  ;;  %v952_v17 = vpop.xlane.xlu1 %951  ;;  %v1053_v41 = vmul.f32 %v15088_v48, %v15088_v48  ;;  %v958_v57 = vpop.xlane.xlu0 %957 }
 0x26a   : >> { %v998_v55 = vmul.f32 0.0078125, %v958_v57  ;;  %v1058_v42 = vmul.f32 %v15110_v58, %v15110_v58 }
 0x26d   : >> { %1098 = vadd.xlane.f32.xlu0 %v1052_v14  ;;  %1096 = vadd.xlane.f32.xlu1 %v1051_v16  ;;  %v1056_v16 = vmul.f32 %v15100_v28, %v15100_v28  ;;  %v995_v14 = vmul.f32 0.0078125, %v952_v17  ;;  %v960_v23 = vpop.xlane.xlu1 %959 }
 0x26e   : >> { %v999_v60 = vmul.f32 0.0078125, %v960_v23 }
 0x270   : >> { %v15127_v15 = vsub.f32 %v14113_v3, %v999_v60 }
 0x271   : >> { %1102 = vadd.xlane.f32.xlu0 %v1054_v12  ;;  %1100 = vadd.xlane.f32.xlu1 %v1053_v41  ;;  %v15117_v12 = vsub.f32 %v14117_v2, %v998_v55  ;;  %v15120_v41 = vsub.f32 %v14129_v62, %v995_v14 }
 0x272   : >> { %v1063_v55 = vmul.f32 %v15127_v15, %v15127_v15 }
 0x273   : >> { %v1062_v57 = vmul.f32 %v15117_v12, %v15117_v12  ;;  %v1059_v17 = vmul.f32 %v15120_v41, %v15120_v41 }
 0x275   : >> { %1106 = vadd.xlane.f32.xlu0 %v1056_v16  ;;  %1104 = vadd.xlane.f32.xlu1 %v1055_v46 }
 0x279   : >> { %1110 = vadd.xlane.f32.xlu0 %v1058_v42  ;;  %1108 = vadd.xlane.f32.xlu1 %v1057_v19 }
 0x27d   : >> { %1118 = vadd.xlane.f32.xlu0 %v1062_v57  ;;  %1112 = vadd.xlane.f32.xlu1 %v1059_v17 }
 0x281   : >> { %1120 = vadd.xlane.f32.xlu1 %v1063_v55 }
 0x2ce   : >> { %v1071_v46 = vpop.xlane.xlu0 %1070 }
 0x2cf   : >> { %v1134_v16 = vmul.f32 0.0078125, %v1071_v46 }
 0x2d1   : >> { %v1166_v14 = vadd.f32 1e-05, %v1134_v16 }
 0x2d2   : >> { %v954_v23 = vpop.xlane.xlu0 %953  ;;  %v1073_v19 = vpop.xlane.xlu1 %1072 }
 0x2d3   : >> { %12495 = vrsqrt.f32 %v1166_v14  ;;  %v996_v42 = vmul.f32 0.0078125, %v954_v23  ;;  %v1135_v2 = vmul.f32 0.0078125, %v1073_v19 }
 0x2d5   : >> { %v1167_v62 = vadd.f32 1e-05, %v1135_v2  ;;  %v15132_v61 = vsub.f32 %v14125_v63, %v996_v42  ;;  %v15158_v63 = vld [vmem:[%s907_s26] ss:$0 sm:$0xff]  ;;  %s6416_s26 = scalar_lea.vmem [#allocation14], %s14217_s23 }
 0x2d6   : >> { %v1075_v60 = vpop.xlane.xlu0 %1074  ;;  %v956_v3 = vpop.xlane.xlu1 %955 }
 0x2d7   : >> { %12497 = vrsqrt.f32 %v1167_v62  ;;  %v1136_v57 = vmul.f32 0.0078125, %v1075_v60  ;;  %v997_v17 = vmul.f32 0.0078125, %v956_v3  ;;  %v1060_v55 = vmul.f32 %v15132_v61, %v15132_v61 }
 0x2d9   : >> { %v1168_v59 = vadd.f32 1e-05, %v1136_v57  ;;  %1114 = vadd.xlane.f32.xlu0 %v1060_v55  ;;  %v15137_v46 = vsub.f32 %v14121_v0, %v997_v17 }
 0x2da   : >> { %v1077_v16 = vpop.xlane.xlu1 %1076  ;;  %v962_v14 = vpop.xlane.xlu0 %961 }
 0x2db   : >> { %12499 = vrsqrt.f32 %v1168_v59  ;;  %v1137_v2 = vmul.f32 0.0078125, %v1077_v16  ;;  %v1000_v23 = vmul.f32 0.0078125, %v962_v14  ;;  %v1061_v19 = vmul.f32 %v15137_v46, %v15137_v46  ;;  %v15148_v16 = vld [vmem:[%s905_s17] ss:$0 sm:$0xff]  ;;  %s17163_s17 = scalar_lea.vmem [#allocation19], %s10984_s28 }
 0x2dd   : >> { %v12496_v62 = vpop.eup %12495  ;;  %v1169_v42 = vadd.f32 1e-05, %v1137_v2  ;;  %1116 = vadd.xlane.f32.xlu1 %v1061_v19  ;;  %v15142_v3 = vsub.f32 %v14109_v4, %v1000_v23 }
 0x2de   : >> { %v1079_v60 = vpop.xlane.xlu0 %1078  ;;  %v964_v57 = vpop.xlane.xlu1 %963  ;;  %v1230_v17 = vmul.f32 %v12496_v62, %v14989_v18 }
 0x2df   : >> { %12501 = vrsqrt.f32 %v1169_v42  ;;  %v1138_v55 = vmul.f32 0.0078125, %v1079_v60  ;;  %v1001_v0 = vmul.f32 0.0078125, %v964_v57  ;;  %v1064_v59 = vmul.f32 %v15142_v3, %v15142_v3 }
 0x2e0   : >> { %v1266_v62 = vmul.f32 %v15148_v16, %v1230_v17 }
 0x2e1   : >> { %v12498_v14 = vpop.eup %12497  ;;  %v1170_v2 = vadd.f32 1e-05, %v1138_v55  ;;  %1122 = vadd.xlane.f32.xlu0 %v1064_v59  ;;  %v15151_v23 = vsub.f32 %v14105_v7, %v1001_v0 }
 0x2e2   : >> { %v1081_v19 = vpop.xlane.xlu1 %1080  ;;  %v966_v4 = vpop.xlane.xlu0 %965  ;;  %v1231_v18 = vmul.f32 %v12498_v14, %v14994_v24  ;;  %v1302_v17 = vadd.f32 %v15158_v63, %v1266_v62 }
 0x2e3   : >> { %12503 = vrsqrt.f32 %v1170_v2  ;;  %v1139_v42 = vmul.f32 0.0078125, %v1081_v19  ;;  %v1002_v60 = vmul.f32 0.0078125, %v966_v4  ;;  %v1065_v57 = vmul.f32 %v15151_v23, %v15151_v23 }
 0x2e4   : >> { %v1267_v55 = vmul.f32 %v15148_v16, %v1231_v18 }
 0x2e5   : >> { %v12500_v59 = vpop.eup %12499  ;;  %v1171_v0 = vadd.f32 1e-05, %v1139_v42  ;;  %1124 = vadd.xlane.f32.xlu1 %v1065_v57  ;;  %v15162_v7 = vsub.f32 %v14101_v8, %v1002_v60 }
 0x2e6   : >> { %v1083_v24 = vpop.xlane.xlu0 %1082  ;;  %v968_v14 = vpop.xlane.xlu1 %967  ;;  %v1303_v4 = vadd.f32 %v15158_v63, %v1267_v55  ;;  %v1232_v2 = vmul.f32 %v12500_v59, %v14997_v26 }
 0x2e7   : >> { %12505 = vrsqrt.f32 %v1171_v0  ;;  %v1140_v19 = vmul.f32 0.0078125, %v1083_v24  ;;  %v1003_v53 = vmul.f32 0.0078125, %v968_v14  ;;  %v1066_v18 = vmul.f32 %v15162_v7, %v15162_v7 }
 0x2e8   : >> { %v15169_v51 = vpack.c.bf16 %v1303_v4, %v1302_v17  ;;  %v1268_v59 = vmul.f32 %v15148_v16, %v1232_v2  ;;  %v19653_v17 = vmov 0  }
 0x2e9   : >> { %v12502_v42 = vpop.eup %12501  ;;  %v1172_v57 = vadd.f32 1e-05, %v1140_v19  ;;  %1126 = vadd.xlane.f32.xlu0 %v1066_v18  ;;  %v15172_v60 = vsub.f32 %v14097_v9, %v1003_v53 }
 0x2ea   : >> { %1546 = vmatmul.mubr.bf16.vlgmr.msra.gmra.mrb[0].mxu0 %v15169_v51  ;;  %v1085_v62 = vpop.xlane.xlu1 %1084  ;;  %v970_v55 = vpop.xlane.xlu0 %969  ;;  %v1233_v26 = vmul.f32 %v12502_v42, %v15005_v40  ;;  %v1304_v2 = vadd.f32 %v15158_v63, %v1268_v59 }
 0x2eb   : >> { %12507 = vrsqrt.f32 %v1172_v57  ;;  %v1141_v0 = vmul.f32 0.0078125, %v1085_v62  ;;  %v1004_v24 = vmul.f32 0.0078125, %v970_v55  ;;  %v1067_v14 = vmul.f32 %v15172_v60, %v15172_v60  ;;  %1555 = vmatprep.mubr.bf16.mxu0 %v19653_v17 }
 0x2ec   : >> { %v1269_v4 = vmul.f32 %v15148_v16, %v1233_v26 }
 0x2ed   : >> { %v12504_v53 = vpop.eup %12503  ;;  %v1173_v19 = vadd.f32 1e-05, %v1141_v0  ;;  %1128 = vadd.xlane.f32.xlu1 %v1067_v14  ;;  %v15182_v18 = vsub.f32 %v14093_v10, %v1004_v24 }
 0x2ee   : >> { %v1087_v9 = vpop.xlane.xlu0 %1086  ;;  %v972_v40 = vpop.xlane.xlu1 %971  ;;  %v1305_v42 = vadd.f32 %v15158_v63, %v1269_v4  ;;  %v1234_v57 = vmul.f32 %v12504_v53, %v15011_v49 }
 0x2ef   : >> { %12509 = vrsqrt.f32 %v1173_v19  ;;  %v1142_v62 = vmul.f32 0.0078125, %v1087_v9  ;;  %v1005_v55 = vmul.f32 0.0078125, %v972_v40  ;;  %v1068_v26 = vmul.f32 %v15182_v18, %v15182_v18 }
 0x2f0   : >> { %v15189_v8 = vpack.c.bf16 %v1305_v42, %v1304_v2  ;;  %v1270_v9 = vmul.f32 %v15148_v16, %v1234_v57 }
 0x2f1   : >> { %v12506_v0 = vpop.eup %12505  ;;  %v1174_v14 = vadd.f32 1e-05, %v1142_v62  ;;  %1130 = vadd.xlane.f32.xlu0 %v1068_v26  ;;  %v15192_v24 = vsub.f32 %v14089_v11, %v1005_v55 }
 0x2f2   : >> { %1556 = vmatmul.mubr.bf16.gmra.mrb[4].mxu0 %v15189_v8  ;;  %v1091_v59 = vpop.xlane.xlu0 %1090  ;;  %v1089_v4 = vpop.xlane.xlu1 %1088  ;;  %v1235_v49 = vmul.f32 %v12506_v0, %v15017_v13  ;;  %v1306_v13 = vadd.f32 %v15158_v63, %v1270_v9 }
 0x2f3   : >> { %12511 = vrsqrt.f32 %v1174_v14  ;;  %v1144_v53 = vmul.f32 0.0078125, %v1091_v59  ;;  %v1143_v19 = vmul.f32 0.0078125, %v1089_v4  ;;  %v1069_v40 = vmul.f32 %v15192_v24, %v15192_v24  ;;  %1565 = vmatprep.mubr.bf16.mxu0 %v19653_v17 }
 0x2f4   : >> { %v1271_v2 = vmul.f32 %v15148_v16, %v1235_v49 }
 0x2f5   : >> { %v12508_v42 = vpop.eup %12507  ;;  %v1175_v62 = vadd.f32 1e-05, %v1143_v19  ;;  %1132 = vadd.xlane.f32.xlu1 %v1069_v40  ;;  %v1176_v55 = vadd.f32 1e-05, %v1144_v53 }
 0x2f6   : >> { %v1095_v26 = vpop.xlane.xlu0 %1094  ;;  %v1093_v11 = vpop.xlane.xlu1 %1092  ;;  %v1307_v57 = vadd.f32 %v15158_v63, %v1271_v2  ;;  %v1236_v0 = vmul.f32 %v12508_v42, %v15025_v21 }
 0x2f7   : >> { %v1145_v14 = vmul.f32 0.0078125, %v1093_v11  ;;  %12513 = vrsqrt.f32 %v1175_v62  ;;  %v1146_v49 = vmul.f32 0.0078125, %v1095_v26 }
 0x2f8   : >> { %v15204_v59 = vpack.c.bf16 %v1307_v57, %v1306_v13  ;;  %12515 = vrsqrt.f32 %v1176_v55  ;;  %v1272_v9 = vmul.f32 %v15148_v16, %v1236_v0 }
 0x2f9   : >> { %v12510_v4 = vpop.eup %12509  ;;  %v1177_v10 = vadd.f32 1e-05, %v1145_v14  ;;  %v1178_v42 = vadd.f32 1e-05, %v1146_v49  ;;  %v15218_v49 = vld [vmem:[%s14983_s22 + $0x8] ss:$12 sps:$4 sm:$0xff]  }
 0x2fa   : >> { %1566 = vmatmul.mubr.bf16.gmra.mrb[8].mxu0 %v15204_v59  ;;  %v1099_v19 = vpop.xlane.xlu0 %1098  ;;  %v1097_v53 = vpop.xlane.xlu1 %1096  ;;  %v1237_v40 = vmul.f32 %v12510_v4, %v15033_v34  ;;  %v1308_v26 = vadd.f32 %v15158_v63, %v1272_v9  ;;  %11397 = vmatprep.subr.bf16.mxu1 %v15218_v49 }
 0x2fb   : >> { %v1147_v52 = vmul.f32 0.0078125, %v1097_v53  ;;  %1575 = vmatprep.mubr.bf16.mxu0 %v19653_v17  ;;  %12517 = vrsqrt.f32 %v1177_v10  ;;  %v1148_v10 = vmul.f32 0.0078125, %v1099_v19 }
 0x2fc   : >> { %v1273_v11 = vmul.f32 %v15148_v16, %v1237_v40 }
 0x2fd   : >> { %v12512_v21 = vpop.eup %12511  ;;  %v1179_v2 = vadd.f32 1e-05, %v1147_v52  ;;  %v1180_v19 = vadd.f32 1e-05, %v1148_v10 }
 0x2fe   : >> { %v1103_v62 = vpop.xlane.xlu0 %1102  ;;  %v1101_v55 = vpop.xlane.xlu1 %1100  ;;  %v1309_v13 = vadd.f32 %v15158_v63, %v1273_v11  ;;  %v1238_v34 = vmul.f32 %v12512_v21, %v15041_v54 }
 0x2ff   : >> { %12519 = vrsqrt.f32 %v1179_v2  ;;  %v1149_v57 = vmul.f32 0.0078125, %v1101_v55  ;;  %v1150_v44 = vmul.f32 0.0078125, %v1103_v62 }
 0x300   : >> { %v15214_v0 = vpack.c.bf16 %v1309_v13, %v1308_v26  ;;  %12521 = vrsqrt.f32 %v1178_v42  ;;  %v1274_v40 = vmul.f32 %v15148_v16, %v1238_v34 }
 0x301   : >> { %v12514_v14 = vpop.eup %12513  ;;  %v1181_v9 = vadd.f32 1e-05, %v1149_v57 }
 0x302   : >> { %1576 = vmatmul.mubr.bf16.gmra.mrb[12].mxu0 %v15214_v0  ;;  %v1107_v52 = vpop.xlane.xlu0 %1106  ;;  %v1105_v4 = vpop.xlane.xlu1 %1104  ;;  %v1239_v53 = vmul.f32 %v12514_v14, %v15052_v27  ;;  %v1310_v55 = vadd.f32 %v15158_v63, %v1274_v40 }
 0x303   : >> { %1585 = vmatprep.mubr.bf16.mxu0 %v19653_v17  ;;  %v12516_v54 = vpop.eup %12515  ;;  %12523 = vrsqrt.f32 %v1181_v9  ;;  %v1151_v27 = vmul.f32 0.0078125, %v1105_v4  ;;  %v1182_v9 = vadd.f32 1e-05, %v1150_v44 }
 0x304   : >> { %v1275_v11 = vmul.f32 %v15148_v16, %v1239_v53  ;;  %v1240_v13 = vmul.f32 %v12516_v54, %v15049_v22  ;;  %12525 = vrsqrt.f32 %v1180_v19 }
 0x305   : >> { %v12518_v21 = vpop.eup %12517  ;;  %v1183_v22 = vadd.f32 1e-05, %v1151_v27 }
 0x306   : >> { %v1111_v2 = vpop.xlane.xlu0 %1110  ;;  %v1109_v42 = vpop.xlane.xlu1 %1108  ;;  %v1311_v26 = vadd.f32 %v15158_v63, %v1275_v11  ;;  %v1241_v34 = vmul.f32 %v12518_v21, %v15056_v33  ;;  %v1276_v40 = vmul.f32 %v15148_v16, %v1240_v13 }
 0x308   : >> { %v15229_v14 = vpack.c.bf16 %v1311_v26, %v1310_v55  ;;  %v1277_v10 = vmul.f32 %v15148_v16, %v1241_v34  ;;  %v1312_v19 = vadd.f32 %v15158_v63, %v1276_v40  ;;  %v1153_v26 = vmul.f32 0.0078125, %v1109_v42 }
 0x309   : >> { %v12520_v57 = vpop.eup %12519 }
 0x30a   : >> { %v1119_v53 = vpop.xlane.xlu0 %1118  ;;  %v1113_v45 = vpop.xlane.xlu1 %1112  ;;  %1586 = vmatmul.mubr.bf16.gmra.mrb[16].mxu0 %v15229_v14  ;;  %v1313_v33 = vadd.f32 %v15158_v63, %v1277_v10  ;;  %v1243_v54 = vmul.f32 %v12520_v57, %v15071_v20  ;;  %v1185_v57 = vadd.f32 1e-05, %v1153_v26 }
 0x30b   : >> { %v1158_v43 = vmul.f32 0.0078125, %v1119_v53  ;;  %v12522_v11 = vpop.eup %12521  ;;  %1595 = vmatprep.mubr.bf16.mxu0 %v19653_v17  ;;  %v1152_v53 = vmul.f32 0.0078125, %v1107_v52  ;;  %v1155_v52 = vmul.f32 0.0078125, %v1113_v45 }
 0x30c   : >> { %v1242_v55 = vmul.f32 %v12522_v11, %v15065_v56  ;;  %v15239_v34 = vpack.c.bf16 %v1313_v33, %v1312_v19  ;;  %v1279_v27 = vmul.f32 %v15148_v16, %v1243_v54 }
 0x30d   : >> { %v1190_v4 = vadd.f32 1e-05, %v1158_v43  ;;  %v12524_v43 = vpop.eup %12523  ;;  %v1184_v10 = vadd.f32 1e-05, %v1152_v53  ;;  %v1187_v19 = vadd.f32 1e-05, %v1155_v52 }
 0x30e   : >> { %v1121_v62 = vpop.xlane.xlu1 %1120  ;;  %v1278_v44 = vmul.f32 %v15148_v16, %v1242_v55  ;;  %v12526_v20 = vpop.eup %12525  ;;  %v1315_v56 = vadd.f32 %v15158_v63, %v1279_v27  ;;  %v1245_v42 = vmul.f32 %v12524_v43, %v15088_v48 }
 0x30f   : >> { %12527 = vrsqrt.f32 %v1190_v4  ;;  %v1159_v21 = vmul.f32 0.0078125, %v1121_v62  ;;  %v1244_v11 = vmul.f32 %v12526_v20, %v15077_v50 }
 0x310   : >> { %12529 = vrsqrt.f32 %v1183_v22  ;;  %v1314_v40 = vadd.f32 %v15158_v63, %v1278_v44  ;;  %v1281_v33 = vmul.f32 %v15148_v16, %v1245_v42  ;;  %v12400_v42 = vld [vmem:[%s14983_s22 + $0x20] ss:$12 sps:$4 sm:$0xff]  }
 0x311   : >> { %v1191_v13 = vadd.f32 1e-05, %v1159_v21  ;;  %12531 = vrsqrt.f32 %v1182_v9  ;;  %v1154_v9 = vmul.f32 0.0078125, %v1111_v2  ;;  %v1280_v48 = vmul.f32 %v15148_v16, %v1244_v11 }
 0x312   : >> { %1596 = vmatmul.mubr.bf16.gmra.mrb[20].mxu0 %v15239_v34  ;;  %v15249_v4 = vpack.c.bf16 %v1315_v56, %v1314_v40  ;;  %v1317_v45 = vadd.f32 %v15158_v63, %v1281_v33 }
 0x313   : >> { %12533 = vrsqrt.f32 %v1191_v13  ;;  %1605 = vmatprep.mubr.bf16.mxu0 %v19653_v17  ;;  %v1186_v26 = vadd.f32 1e-05, %v1154_v9 }
 0x314   : >> { %12535 = vrsqrt.f32 %v1185_v57 }
 0x315   : >> { %12537 = vrsqrt.f32 %v1184_v10 }
 0x316   : >> { %12539 = vrsqrt.f32 %v1187_v19 }
 0x317   : >> { %12541 = vrsqrt.f32 %v1186_v26 }
 0x319   : >> { %v12528_v22 = vpop.eup %12527 }
 0x31a   : >> { %v12530_v54 = vpop.eup %12529  ;;  %v1254_v62 = vmul.f32 %v12528_v22, %v15117_v12  ;;  %1606 = vmatmul.mubr.bf16.gmra.mrb[24].mxu0 %v15249_v4  ;;  %v1316_v12 = vadd.f32 %v15158_v63, %v1280_v48  ;;  %v12401_v22 = vld [vmem:[%s14983_s22 + $0x38] ss:$12 sps:$4 sm:$0xff]  }
 0x31b   : >> { %v12532_v21 = vpop.eup %12531  ;;  %1615 = vmatprep.mubr.bf16.mxu0 %v19653_v17  ;;  %v1247_v55 = vmul.f32 %v12530_v54, %v15093_v35 }
 0x31c   : >> { %v1290_v2 = vmul.f32 %v15148_v16, %v1254_v62  ;;  %v1246_v27 = vmul.f32 %v12532_v21, %v15085_v47  ;;  %v15263_v53 = vpack.c.bf16 %v1317_v45, %v1316_v12 }
 0x31d   : >> { %v12534_v50 = vpop.eup %12533  ;;  %v1283_v44 = vmul.f32 %v15148_v16, %v1247_v55 }
 0x31e   : >> { %v1255_v13 = vmul.f32 %v12534_v50, %v15127_v15  ;;  %v12536_v20 = vpop.eup %12535  ;;  %v1326_v35 = vadd.f32 %v15158_v63, %v1290_v2  ;;  %v1282_v57 = vmul.f32 %v15148_v16, %v1246_v27  ;;  %v12403_v50 = vld [vmem:[%s14983_s22 + $0x68] ss:$12 sps:$4 sm:$0xff]   ;;  %v12405_v2 = vld [vmem:[%s14983_s22 + $0x98] ss:$12 sps:$4 sm:$0xff]   ;;  %v12406_v27 = vld [vmem:[%s14983_s22 + $0xb0] ss:$12 sps:$4 sm:$0xff]  }
 0x31f   : >> { %v12538_v56 = vpop.eup %12537  ;;  %v1319_v10 = vadd.f32 %v15158_v63, %v1283_v44  ;;  %v1249_v40 = vmul.f32 %v12536_v20, %v15105_v25 }
 0x320   : >> { %v1291_v43 = vmul.f32 %v15148_v16, %v1255_v13  ;;  %v1318_v11 = vadd.f32 %v15158_v63, %v1282_v57  ;;  %v1248_v52 = vmul.f32 %v12538_v56, %v15100_v28  ;;  %v12540_v9 = vpop.eup %12539  ;;  %v12402_v28 = vld [vmem:[%s14983_s22 + $0x50] ss:$12 sps:$4 sm:$0xff]  }
 0x321   : >> { %v1285_v54 = vmul.f32 %v15148_v16, %v1249_v40  ;;  %v12542_v62 = vpop.eup %12541  ;;  %v1251_v48 = vmul.f32 %v12540_v9, %v15120_v41  ;;  %v12404_v41 = vld [vmem:[%s14983_s22 + $0x80] ss:$12 sps:$4 sm:$0xff]   ;;  %s17130_s22 = scalar_lea.vmem [#allocation17], %s10984_s28 }
 0x322   : >> { %v1327_v15 = vadd.f32 %v15158_v63, %v1291_v43  ;;  %1616 = vmatmul.mubr.bf16.gmra.mrb[28].mxu0 %v15263_v53  ;;  %v15282_v33 = vpack.c.bf16 %v1319_v10, %v1318_v11  ;;  %v1284_v25 = vmul.f32 %v15148_v16, %v1248_v52  ;;  %v1250_v19 = vmul.f32 %v12542_v62, %v15110_v58 }
 0x323   : >> { %1625 = vmatprep.mubr.bf16.mxu0 %v19653_v17  ;;  %v1287_v55 = vmul.f32 %v15148_v16, %v1251_v48  ;;  %v19427_v43 = vmov 0.0  }
 0x324   : >> { %v15270_v47 = vpack.c.bf16 %v1327_v15, %v1326_v35  ;;  %v1320_v21 = vadd.f32 %v15158_v63, %v1284_v25  ;;  %v1286_v26 = vmul.f32 %v15148_v16, %v1250_v19  ;;  %11493 = vmatprep.subr.bf16.mxu0 %v19427_v43 }
 0x325   : >> { %v1323_v58 = vadd.f32 %v15158_v63, %v1287_v55 }
 0x326   : >> { %1666 = vmatmul.mubr.bf16.vlgmr.msra.gmra.mrb[0].mxu1 %v15270_v47  ;;  %v1322_v13 = vadd.f32 %v15158_v63, %v1286_v26 }
 0x327   : >> { %11398 = vmatpush3.bf16.msra.mxu1 %v15218_v49  ;;  %1675 = vmatprep.mubr.bf16.mxu1 %v19653_v17  ;;  %v1321_v49 = vadd.f32 %v15158_v63, %v1285_v54 }
 0x328   : >> { %11399 = vmatprep.subr.bf16.mxu1 %v12400_v42  ;;  %v15304_v12 = vpack.c.bf16 %v1323_v58, %v1322_v13 }
 0x329   : >> { %v15294_v45 = vpack.c.bf16 %v1321_v49, %v1320_v21 }
 0x32a   : >> { %1626 = vmatmul.mubr.bf16.gmra.mrb[32].mxu0 %v15282_v33 }
 0x32b   : >> { %11400 = vmatpush3.bf16.msra.mxu1 %v12400_v42  ;;  %1635 = vmatprep.mubr.bf16.mxu0 %v19653_v17 }
 0x32c   : >> { %11401 = vmatprep.subr.bf16.mxu1 %v12401_v22 }
 0x32f   : >> { %11402 = vmatpush3.bf16.msra.mxu1 %v12401_v22 }
 0x330   : >> { %11403 = vmatprep.subr.bf16.mxu1 %v12402_v28 }
 0x332   : >> { %1636 = vmatmul.mubr.bf16.gmra.mrb[36].mxu0 %v15294_v45 }
 0x333   : >> { %11404 = vmatpush3.bf16.msra.mxu1 %v12402_v28  ;;  %1645 = vmatprep.mubr.bf16.mxu0 %v19653_v17 }
 0x334   : >> { %11405 = vmatprep.subr.bf16.mxu1 %v12403_v50 }
 0x337   : >> { %11406 = vmatpush3.bf16.msra.mxu1 %v12403_v50 }
 0x338   : >> { %11407 = vmatprep.subr.bf16.mxu1 %v12404_v41 }
 0x33a   : >> { %1646 = vmatmul.mubr.bf16.gmra.mrb[40].mxu0 %v15304_v12 }
 0x33b   : >> { %11408 = vmatpush3.bf16.msra.mxu1 %v12404_v41  ;;  %1655 = vmatprep.mubr.bf16.mxu0 %v19653_v17 }
 0x33c   : >> { %11409 = vmatprep.subr.bf16.mxu1 %v12405_v2 }
 0x33f   : >> { %11410 = vmatpush3.bf16.msra.mxu1 %v12405_v2 }
 0x340   : >> { %11411 = vmatprep.subr.bf16.mxu1 %v12406_v27 }
 0x343   : >> { %11412 = vmatpush3.bf16.msra.mxu1 %v12406_v27 }
 0x344   : >> { %11445 = vmatprep.subr.bf16.mxu1 %v19427_v43 }
 0x366   : >> { %v1115_v44 = vpop.xlane.xlu0 %1114 }
 0x367   : >> { %v1156_v20 = vmul.f32 0.0078125, %v1115_v44 }
 0x369   : >> { %v1188_v35 = vadd.f32 1e-05, %v1156_v20 }
 0x36a   : >> { %v1117_v15 = vpop.xlane.xlu1 %1116 }
 0x36b   : >> { %12543 = vrsqrt.f32 %v1188_v35  ;;  %v1157_v57 = vmul.f32 0.0078125, %v1117_v15 }
 0x36d   : >> { %v1189_v56 = vadd.f32 1e-05, %v1157_v57 }
 0x36e   : >> { %v1123_v42 = vpop.xlane.xlu0 %1122 }
 0x36f   : >> { %12545 = vrsqrt.f32 %v1189_v56  ;;  %v1160_v10 = vmul.f32 0.0078125, %v1123_v42 }
 0x371   : >> { %v1192_v40 = vadd.f32 1e-05, %v1160_v10 }
 0x372   : >> { %v1125_v11 = vpop.xlane.xlu1 %1124 }
 0x373   : >> { %12547 = vrsqrt.f32 %v1192_v40  ;;  %v1161_v52 = vmul.f32 0.0078125, %v1125_v11 }
 0x375   : >> { %v12544_v22 = vpop.eup %12543  ;;  %v1193_v54 = vadd.f32 1e-05, %v1161_v52 }
 0x376   : >> { %v1127_v9 = vpop.xlane.xlu0 %1126  ;;  %v1252_v25 = vmul.f32 %v12544_v22, %v15132_v61 }
 0x377   : >> { %12549 = vrsqrt.f32 %v1193_v54  ;;  %v1162_v62 = vmul.f32 0.0078125, %v1127_v9 }
 0x378   : >> { %v1288_v19 = vmul.f32 %v15148_v16, %v1252_v25 }
 0x379   : >> { %v12546_v28 = vpop.eup %12545  ;;  %v1194_v49 = vadd.f32 1e-05, %v1162_v62 }
 0x37a   : >> { %v1129_v48 = vpop.xlane.xlu1 %1128  ;;  %v1253_v21 = vmul.f32 %v12546_v28, %v15137_v46  ;;  %v1324_v13 = vadd.f32 %v15158_v63, %v1288_v19 }
 0x37b   : >> { %12551 = vrsqrt.f32 %v1194_v49  ;;  %v1163_v50 = vmul.f32 0.0078125, %v1129_v48 }
 0x37c   : >> { %v1289_v55 = vmul.f32 %v15148_v16, %v1253_v21 }
 0x37d   : >> { %v12548_v26 = vpop.eup %12547  ;;  %v1195_v41 = vadd.f32 1e-05, %v1163_v50 }
 0x37e   : >> { %v1131_v58 = vpop.xlane.xlu0 %1130  ;;  %v1325_v61 = vadd.f32 %v15158_v63, %v1289_v55  ;;  %v1256_v2 = vmul.f32 %v12548_v26, %v15142_v3 }
 0x37f   : >> { %12553 = vrsqrt.f32 %v1195_v41  ;;  %v1164_v27 = vmul.f32 0.0078125, %v1131_v58 }
 0x380   : >> { %v15326_v44 = vpack.c.bf16 %v1325_v61, %v1324_v13  ;;  %v1292_v57 = vmul.f32 %v15148_v16, %v1256_v2 }
 0x381   : >> { %v12550_v46 = vpop.eup %12549  ;;  %v1196_v20 = vadd.f32 1e-05, %v1164_v27 }
 0x382   : >> { %1656 = vmatmul.mubr.bf16.gmra.mrb[44].mxu0 %v15326_v44  ;;  %v1133_v35 = vpop.xlane.xlu1 %1132  ;;  %v1257_v15 = vmul.f32 %v12550_v46, %v15151_v23  ;;  %v1328_v40 = vadd.f32 %v15158_v63, %v1292_v57 }
 0x383   : >> { %12555 = vrsqrt.f32 %v1196_v20  ;;  %v1165_v56 = vmul.f32 0.0078125, %v1133_v35  ;;  %11495 = vmatprep.mubr.msk.bf16.mxu0 %vm14244_vm2, %v19427_v43 }
 0x384   : >> { %v1293_v3 = vmul.f32 %v15148_v16, %v1257_v15 }
 0x385   : >> { %v12552_v42 = vpop.eup %12551  ;;  %v1197_v10 = vadd.f32 1e-05, %v1165_v56 }
 0x386   : >> { %v1329_v11 = vadd.f32 %v15158_v63, %v1293_v3  ;;  %v1258_v52 = vmul.f32 %v12552_v42, %v15162_v7 }
 0x387   : >> { %12557 = vrsqrt.f32 %v1197_v10 }
 0x388   : >> { %v15337_v23 = vpack.c.bf16 %v1329_v11, %v1328_v40  ;;  %v1294_v9 = vmul.f32 %v15148_v16, %v1258_v52 }
 0x389   : >> { %v12554_v22 = vpop.eup %12553 }
 0x38a   : >> { %1676 = vmatmul.mubr.bf16.gmra.mrb[4].mxu1 %v15337_v23  ;;  %v1259_v54 = vmul.f32 %v12554_v22, %v15172_v60  ;;  %v1330_v28 = vadd.f32 %v15158_v63, %v1294_v9 }
 0x38b   : >> { %1685 = vmatprep.mubr.bf16.mxu1 %v19653_v17 }
 0x38c   : >> { %v1295_v25 = vmul.f32 %v15148_v16, %v1259_v54 }
 0x38d   : >> { %v12556_v62 = vpop.eup %12555 }
 0x38e   : >> { %v1331_v49 = vadd.f32 %v15158_v63, %v1295_v25  ;;  %v1260_v7 = vmul.f32 %v12556_v62, %v15182_v18 }
 0x390   : >> { %v15347_v48 = vpack.c.bf16 %v1331_v49, %v1330_v28  ;;  %v1296_v19 = vmul.f32 %v15148_v16, %v1260_v7 }
 0x391   : >> { %v12558_v21 = vpop.eup %12557 }
 0x392   : >> { %1686 = vmatmul.mubr.bf16.gmra.mrb[8].mxu1 %v15347_v48  ;;  %v1261_v60 = vmul.f32 %v12558_v21, %v15192_v24  ;;  %v1332_v55 = vadd.f32 %v15158_v63, %v1296_v19 }
 0x393   : >> { %1695 = vmatprep.mubr.bf16.mxu1 %v19653_v17 }
 0x394   : >> { %v1297_v50 = vmul.f32 %v15148_v16, %v1261_v60 }
 0x396   : >> { %v1333_v26 = vadd.f32 %v15158_v63, %v1297_v50  ;;  %v19426_v63 = vsub.s32 0, %v19620_v1 }
 0x398   : >> { %v15356_v18 = vpack.c.bf16 %v1333_v26, %v1332_v55 }
 0x39a   : >> { %1696 = vmatmul.mubr.bf16.gmra.mrb[12].mxu1 %v15356_v18 }
 0x39b   : >> { %11413 = vmatprep.mubr.bf16.mxu1 %v15169_v51  ;;  %v15371_v51 = vld [vmem:[%s1874_s18] ss:$2 sm:$0x7]  ;;  %s872_s18 = sadd.s32 1, %s14217_s23  }
 0x39c   : >> { %v15379_v16 = vrot.slane %v15371_v51, %v19426_v63  ;;  %p18675_p5 = scmp.ge.s32.totalorder %s872_s18, 2   ;;  %s20020_s23 = smov %s872_s18 }
 0x39d   : > { %vm14248_vm5 = vmmov (%p18675_p5), 0   ;;  %vm10164_vm6 = vcmask (%p18675_p5), 1041409   ;;  %vm10166_vm7 = vcmask (%p18675_p5), 1042434   ;;  %vm10168_vm8 = vcmask (%p18675_p5), 1043459   ;;  %s10292_s28 = sshll.u32 (%p18675_p5), %s14785_s20, 4  ;;  %s19320_s19 = scalar_lea.sflag (%p18675_p5), [#allocation4], %s773_s21  ;;  %s19314_s28 = int_to_ptr.vmem [resolvable:$true] %s10292_s28 }
 0x39e   : > { %vm10170_vm9 = vcmask (%p18675_p5), 1044484   ;;  %vm10172_vm10 = vcmask (%p18675_p5), 1045509   ;;  %vm10174_vm11 = vcmask (%p18675_p5), 1046534   ;;  %vm10176_vm12 = vcmask (%p18675_p5), 1047559   ;;  %s14249_s3 = smov (%p18675_p5), [#allocation25]  }
 0x39f   : > { %s13863_s12 = sshll.u32 (%p18675_p5), %s14249_s3, 4  ;;  %s13864_s12 = int_to_ptr.vmem [resolvable:$false] %s13863_s12 }
 0x3a0   : > { %p13866_p3 = scmp.lt.s32.totalorder (%p18675_p5), %s19314_s28, %s13864_s12 }
 0x3a2   : >> { %11414 = vmatmul.mubr.bf16.vlgmr.msra.gmra.mrb[16].mxu1 %v15189_v8  ;;  %v19424_v8 = vsub.s32 1, %v19620_v1 }
 0x3a3   : >> { %11417 = vmatprep.mubr.bf16.mxu1 %v15204_v59 }
 0x3a4   : >> { %v15384_v59 = vrot.slane %v15371_v51, %v19424_v8 }
 0x3aa   : >> { %11418 = vmatmul.mubr.bf16.gmra.mrb[20].mxu1 %v15214_v0 }
 0x3ab   : >> { %11421 = vmatprep.mubr.bf16.mxu1 %v15229_v14 }
 0x3b2   : >> { %11422 = vmatmul.mubr.bf16.gmra.mrb[24].mxu1 %v15239_v34 }
 0x3b3   : >> { %11425 = vmatprep.mubr.bf16.mxu1 %v15249_v4 }
 0x3ba   : >> { %11426 = vmatmul.mubr.bf16.gmra.mrb[28].mxu1 %v15263_v53 }
 0x3bb   : >> { %11429 = vmatprep.mubr.bf16.mxu1 %v15282_v33 }
 0x3bd   : >> { %v1547_v24 = vpop.f32.mrb[0].mxu0 }
 0x3be   : >> { %v1549_v0 = vpop.f32.mrb[1].mxu0  ;;  %v1892_v34 = vadd.f32 %v15379_v16, %v1547_v24 }
 0x3bf   : >> { %v1551_v14 = vpop.f32.mrb[2].mxu0  ;;  %v1893_v33 = vadd.f32 %v15384_v59, %v1549_v0 }
 0x3c0   : >> { %v1895_v4 = vadd.f32 %v15379_v16, %v1551_v14  ;;  %v1553_v53 = vpop.f32.mrb[3].mxu0 }
 0x3c1   : >> { %v1896_v41 = vadd.f32 %v15384_v59, %v1553_v53 }
 0x3c2   : >> { %v15390_v58 = vpack.c.bf16 %v1895_v4, %v1892_v34  ;;  %11430 = vmatmul.mubr.bf16.gmra.mrb[32].mxu1 %v15294_v45 }
 0x3c3   : >> { %11433 = vmatprep.mubr.bf16.mxu1 %v15304_v12  ;;  %v15394_v13 = vpack.c.bf16 %v1896_v41, %v1893_v33 }
 0x3c4   : >> { %19654 = vst [vmem:[#allocation78_spill] sm:$0xff] %v15390_v58 }
 0x3c5   : >> { %v1557_v61 = vpop.f32.mrb[4].mxu0  ;;  %v2041_v2 = vsel %vm2036_vm3, %v15394_v13, 0 }
 0x3c6   : >> { %v1559_v27 = vpop.f32.mrb[5].mxu0  ;;  %11446 = vmatpush3.bf16.xpose.msra.mxu1 %v2041_v2  ;;  %v1898_v20 = vadd.f32 %v15379_v16, %v1557_v61 }
 0x3c7   : >> { %v1561_v46 = vpop.f32.mrb[6].mxu0  ;;  %11451 = vmatprep.subr.bf16.mxu1 %v19427_v43  ;;  %v1899_v45 = vadd.f32 %v15384_v59, %v1559_v27 }
 0x3c8   : >> { %v1901_v35 = vadd.f32 %v15379_v16, %v1561_v46  ;;  %v1563_v15 = vpop.f32.mrb[7].mxu0 }
 0x3c9   : >> { %v1902_v12 = vadd.f32 %v15384_v59, %v1563_v15 }
 0x3ca   : >> { %v15403_v57 = vpack.c.bf16 %v1901_v35, %v1898_v20  ;;  %11434 = vmatmul.mubr.bf16.gmra.mrb[36].mxu1 %v15326_v44 }
 0x3cb   : >> { %11437 = vmatprep.mubr.bf16.mxu1 %v15270_v47  ;;  %v15407_v56 = vpack.c.bf16 %v1902_v12, %v1899_v45 }
 0x3cc   : >> { %19655 = vst [vmem:[#allocation79_spill] sm:$0xff] %v15403_v57 }
 0x3cd   : >> { %v1567_v3 = vpop.f32.mrb[8].mxu0 }
 0x3ce   : >> { %v1569_v42 = vpop.f32.mrb[9].mxu0  ;;  %v1904_v40 = vadd.f32 %v15379_v16, %v1567_v3 }
 0x3cf   : >> { %v1571_v10 = vpop.f32.mrb[10].mxu0  ;;  %v1905_v22 = vadd.f32 %v15384_v59, %v1569_v42 }
 0x3d0   : >> { %v1907_v11 = vadd.f32 %v15379_v16, %v1571_v10  ;;  %v1573_v52 = vpop.f32.mrb[11].mxu0 }
 0x3d1   : >> { %v1908_v54 = vadd.f32 %v15384_v59, %v1573_v52 }
 0x3d2   : >> { %v15413_v9 = vpack.c.bf16 %v1907_v11, %v1904_v40  ;;  %11438 = vmatmul.mubr.bf16.gmra.mrb[40].mxu1 %v15337_v23 }
 0x3d3   : >> { %11441 = vmatprep.mubr.bf16.mxu1 %v15347_v48  ;;  %v15417_v47 = vpack.c.bf16 %v1908_v54, %v1905_v22 }
 0x3d5   : >> { %v1577_v44 = vpop.f32.mrb[12].mxu0  ;;  %v2135_v15 = vsel %vm2036_vm3, %v15417_v47, 0 }
 0x3d6   : >> { %v1579_v25 = vpop.f32.mrb[13].mxu0  ;;  %v1910_v28 = vadd.f32 %v15379_v16, %v1577_v44 }
 0x3d7   : >> { %v1581_v62 = vpop.f32.mrb[14].mxu0  ;;  %v1911_v21 = vadd.f32 %v15384_v59, %v1579_v25 }
 0x3d8   : >> { %v1913_v49 = vadd.f32 %v15379_v16, %v1581_v62  ;;  %v1583_v7 = vpop.f32.mrb[15].mxu0 }
 0x3d9   : >> { %v1914_v60 = vadd.f32 %v15384_v59, %v1583_v7 }
 0x3da   : >> { %v15423_v19 = vpack.c.bf16 %v1913_v49, %v1910_v28  ;;  %11442 = vmatmul.mubr.bf16.gmra.mrb[44].mxu1 %v15356_v18  ;;  %v2088_v18 = vsel %vm2036_vm3, %v15407_v56, 0 }
 0x3db   : >> { %11447 = vmatprep.mubr.msk.bf16.mxu1 %vm14244_vm2, %v19427_v43  ;;  %v15428_v23 = vpack.c.bf16 %v1914_v60, %v1911_v21 }
 0x3dc   : >> { %19656 = vst [vmem:[#allocation80_spill] sm:$0xff] %v15423_v19 }
 0x3dd   : >> { %19657 = vst [vmem:[#allocation81_spill] sm:$0xff] %v15428_v23  ;;  %v1587_v48 = vpop.f32.mrb[16].mxu0  ;;  %v2182_v44 = vsel %vm2036_vm3, %v15428_v23, 0 }
 0x3de   : >> { %v1589_v50 = vpop.f32.mrb[17].mxu0  ;;  %v1916_v26 = vadd.f32 %v15379_v16, %v1587_v48 }
 0x3df   : >> { %v1591_v55 = vpop.f32.mrb[18].mxu0  ;;  %v1917_v14 = vadd.f32 %v15384_v59, %v1589_v50 }
 0x3e0   : >> { %v1919_v24 = vadd.f32 %v15379_v16, %v1591_v55  ;;  %v1593_v0 = vpop.f32.mrb[19].mxu0 }
 0x3e1   : >> { %v1920_v34 = vadd.f32 %v15384_v59, %v1593_v0 }
 0x3e2   : >> { %11448 = vmatmul.mubr.msk.bf16.vlgmr.msra.gmra.mrb[48].mxu1 %vm2036_vm3, %v15390_v58  ;;  %v15438_v4 = vpack.c.bf16 %v1919_v24, %v1916_v26 }
 0x3e3   : >> { %11452 = vmatpush3.bf16.xpose.msra.mxu1 %v2088_v18  ;;  %11453 = vmatprep.mubr.msk.bf16.mxu1 %vm14244_vm2, %v19427_v43  ;;  %v15443_v53 = vpack.c.bf16 %v1920_v34, %v1917_v14 }
 0x3e4   : >> { %11457 = vmatprep.subr.bf16.mxu1 %v19427_v43 }
 0x3e5   : >> { %v1597_v33 = vpop.f32.mrb[20].mxu0  ;;  %v2229_v0 = vsel %vm2036_vm3, %v15443_v53, 0 }
 0x3e6   : >> { %v1599_v41 = vpop.f32.mrb[21].mxu0  ;;  %v1922_v2 = vadd.f32 %v15379_v16, %v1597_v33 }
 0x3e7   : >> { %v1601_v61 = vpop.f32.mrb[22].mxu0  ;;  %v1923_v20 = vadd.f32 %v15384_v59, %v1599_v41 }
 0x3e8   : >> { %v1925_v27 = vadd.f32 %v15379_v16, %v1601_v61  ;;  %v1603_v46 = vpop.f32.mrb[23].mxu0 }
 0x3e9   : >> { %v1926_v35 = vadd.f32 %v15384_v59, %v1603_v46 }
 0x3ea   : >> { %11454 = vmatmul.mubr.msk.bf16.vlgmr.msra.gmra.mrb[52].mxu1 %vm2036_vm3, %v15403_v57  ;;  %v15453_v45 = vpack.c.bf16 %v1925_v27, %v1922_v2 }
 0x3eb   : >> { %11458 = vmatpush3.bf16.xpose.msra.mxu1 %v2135_v15  ;;  %11459 = vmatprep.mubr.msk.bf16.mxu1 %vm14244_vm2, %v19427_v43  ;;  %v15458_v12 = vpack.c.bf16 %v1926_v35, %v1923_v20 }
 0x3ec   : >> { %19658 = vst [vmem:[#allocation82_spill] sm:$0xff] %v15453_v45  ;;  %11463 = vmatprep.subr.bf16.mxu1 %v19427_v43 }
 0x3ed   : >> { %19659 = vst [vmem:[#allocation83_spill] sm:$0xff] %v15458_v12  ;;  %v1607_v3 = vpop.f32.mrb[24].mxu0 }
 0x3ee   : >> { %v1609_v42 = vpop.f32.mrb[25].mxu0  ;;  %v1928_v40 = vadd.f32 %v15379_v16, %v1607_v3 }
 0x3ef   : >> { %v1611_v10 = vpop.f32.mrb[26].mxu0  ;;  %v1929_v22 = vadd.f32 %v15384_v59, %v1609_v42 }
 0x3f0   : >> { %v1931_v11 = vadd.f32 %v15379_v16, %v1611_v10  ;;  %v1613_v52 = vpop.f32.mrb[27].mxu0 }
 0x3f1   : >> { %v1932_v54 = vadd.f32 %v15384_v59, %v1613_v52 }
 0x3f2   : >> { %11460 = vmatmul.mubr.msk.bf16.vlgmr.msra.gmra.mrb[56].mxu1 %vm2036_vm3, %v15413_v9  ;;  %v15468_v25 = vpack.c.bf16 %v1931_v11, %v1928_v40 }
 0x3f3   : >> { %11464 = vmatpush3.bf16.xpose.msra.mxu1 %v2182_v44  ;;  %11465 = vmatprep.mubr.msk.bf16.mxu1 %vm14244_vm2, %v19427_v43  ;;  %v15473_v62 = vpack.c.bf16 %v1932_v54, %v1929_v22  ;;  %v2276_v22 = vsel %vm2036_vm3, %v15458_v12, 0 }
 0x3f4   : >> { %11469 = vmatprep.subr.bf16.mxu1 %v19427_v43 }
 0x3f5   : >> { %v1617_v28 = vpop.f32.mrb[28].mxu0 }
 0x3f6   : >> { %v1619_v49 = vpop.f32.mrb[29].mxu0  ;;  %v1934_v21 = vadd.f32 %v15379_v16, %v1617_v28 }
 0x3f7   : >> { %v1621_v7 = vpop.f32.mrb[30].mxu0  ;;  %v1935_v55 = vadd.f32 %v15384_v59, %v1619_v49 }
 0x3f8   : >> { %v1937_v60 = vadd.f32 %v15379_v16, %v1621_v7  ;;  %v1623_v48 = vpop.f32.mrb[31].mxu0 }
 0x3f9   : >> { %v1667_v50 = vpop.f32.mrb[0].mxu1  ;;  %v1938_v26 = vadd.f32 %v15384_v59, %v1623_v48 }
 0x3fa   : >> { %v1669_v24 = vpop.f32.mrb[1].mxu1  ;;  %11466 = vmatmul.mubr.msk.bf16.vlgmr.msra.gmra.mrb[60].mxu1 %vm2036_vm3, %v15423_v19  ;;  %v15483_v14 = vpack.c.bf16 %v1937_v60, %v1934_v21  ;;  %v1964_v18 = vadd.f32 %v15379_v16, %v1667_v50 }
 0x3fb   : >> { %11470 = vmatpush3.bf16.xpose.msra.mxu1 %v2229_v0  ;;  %v1671_v34 = vpop.f32.mrb[2].mxu1  ;;  %11471 = vmatprep.mubr.msk.bf16.mxu1 %vm14244_vm2, %v19427_v43  ;;  %v15490_v61 = vpack.c.bf16 %v1938_v26, %v1935_v55  ;;  %v1965_v2 = vadd.f32 %v15384_v59, %v1669_v24  ;;  %v2323_v24 = vsel %vm2036_vm3, %v15473_v62, 0 }
 0x3fc   : >> { %19660 = vst [vmem:[#allocation84_spill] sm:$0xff] %v15483_v14  ;;  %v1967_v33 = vadd.f32 %v15379_v16, %v1671_v34  ;;  %v1673_v41 = vpop.f32.mrb[3].mxu1  ;;  %11475 = vmatprep.subr.bf16.mxu1 %v19427_v43 }
 0x3fd   : >> { %19661 = vst [vmem:[#allocation85_spill] sm:$0xff] %v15490_v61  ;;  %v1968_v27 = vadd.f32 %v15384_v59, %v1673_v41  ;;  %v1627_v20 = vpop.f32.mrb[32].mxu0 }
 0x3fe   : >> { %v15494_v46 = vpack.c.bf16 %v1967_v33, %v1964_v18  ;;  %v1629_v35 = vpop.f32.mrb[33].mxu0  ;;  %v1940_v42 = vadd.f32 %v15379_v16, %v1627_v20 }
 0x3ff   : >> { %v15496_v15 = vpack.c.bf16 %v1968_v27, %v1965_v2  ;;  %v1631_v3 = vpop.f32.mrb[34].mxu0  ;;  %v1941_v11 = vadd.f32 %v15384_v59, %v1629_v35 }
 0x400   : >> { %19662 = vst [vmem:[#allocation86_spill] sm:$0xff] %v15494_v46  ;;  %v1943_v10 = vadd.f32 %v15379_v16, %v1631_v3  ;;  %v1633_v40 = vpop.f32.mrb[35].mxu0 }
 0x401   : >> { %19663 = vst [vmem:[#allocation87_spill] sm:$0xff] %v15496_v15  ;;  %v1944_v52 = vadd.f32 %v15384_v59, %v1633_v40 }
 0x402   : >> { %11472 = vmatmul.mubr.msk.bf16.vlgmr.msra.gmra.mrb[64].mxu1 %vm2036_vm3, %v15438_v4  ;;  %v15506_v54 = vpack.c.bf16 %v1943_v10, %v1940_v42  ;;  %v2370_v42 = vsel %vm2036_vm3, %v15490_v61, 0 }
 0x403   : >> { %11476 = vmatpush3.bf16.xpose.msra.mxu1 %v2276_v22  ;;  %11477 = vmatprep.mubr.msk.bf16.mxu1 %vm14244_vm2, %v19427_v43  ;;  %v15510_v44 = vpack.c.bf16 %v1944_v52, %v1941_v11  ;;  %v2605_v22 = vsel %vm2036_vm3, %v15496_v15, 0 }
 0x404   : >> { %11481 = vmatprep.subr.bf16.mxu1 %v19427_v43 }
 0x405   : >> { %v1637_v28 = vpop.f32.mrb[36].mxu0  ;;  %v2417_v49 = vsel %vm2036_vm3, %v15510_v44, 0 }
 0x406   : >> { %v1639_v7 = vpop.f32.mrb[37].mxu0  ;;  %11494 = vmatpush3.bf16.xpose.msra.mxu0 %v2417_v49  ;;  %v1946_v60 = vadd.f32 %v15379_v16, %v1637_v28 }
 0x407   : >> { %v1641_v21 = vpop.f32.mrb[38].mxu0  ;;  %11505 = vmatprep.subr.bf16.mxu0 %v19427_v43  ;;  %v1947_v55 = vadd.f32 %v15384_v59, %v1639_v7 }
 0x408   : >> { %v1949_v48 = vadd.f32 %v15379_v16, %v1641_v21  ;;  %v1643_v50 = vpop.f32.mrb[39].mxu0 }
 0x409   : >> { %v1950_v26 = vadd.f32 %v15384_v59, %v1643_v50 }
 0x40a   : >> { %11478 = vmatmul.mubr.msk.bf16.vlgmr.msra.gmra.mrb[68].mxu1 %vm2036_vm3, %v15453_v45  ;;  %v15524_v0 = vpack.c.bf16 %v1949_v48, %v1946_v60 }
 0x40b   : >> { %11482 = vmatpush3.bf16.xpose.msra.mxu1 %v2323_v24  ;;  %11483 = vmatprep.mubr.msk.bf16.mxu1 %vm14244_vm2, %v19427_v43  ;;  %v15529_v34 = vpack.c.bf16 %v1950_v26, %v1947_v55 }
 0x40c   : >> { %19664 = vst [vmem:[#allocation88_spill] sm:$0xff] %v15524_v0  ;;  %11487 = vmatprep.subr.bf16.mxu1 %v19427_v43 }
 0x40d   : >> { %19665 = vst [vmem:[#allocation89_spill] sm:$0xff] %v15529_v34  ;;  %v1647_v18 = vpop.f32.mrb[40].mxu0  ;;  %11496 = vmatmul.mubr.msk.bf16.vlgmr.msra.gmra.mrb[48].mxu0 %vm2036_vm3, %v15506_v54  ;;  %v2464_v52 = vsel %vm2036_vm3, %v15529_v34, 0 }
 0x40e   : >> { %v1649_v33 = vpop.f32.mrb[41].mxu0  ;;  %11507 = vmatprep.mubr.msk.bf16.mxu0 %vm14244_vm2, %v19427_v43  ;;  %v1952_v2 = vadd.f32 %v15379_v16, %v1647_v18 }
 0x40f   : >> { %v1651_v41 = vpop.f32.mrb[42].mxu0  ;;  %v1953_v35 = vadd.f32 %v15384_v59, %v1649_v33 }
 0x410   : >> { %v1955_v27 = vadd.f32 %v15379_v16, %v1651_v41  ;;  %v1653_v20 = vpop.f32.mrb[43].mxu0 }
 0x411   : >> { %v1956_v3 = vadd.f32 %v15384_v59, %v1653_v20 }
 0x412   : >> { %11484 = vmatmul.mubr.msk.bf16.vlgmr.msra.gmra.mrb[72].mxu1 %vm2036_vm3, %v15468_v25  ;;  %v15543_v10 = vpack.c.bf16 %v1955_v27, %v1952_v2 }
 0x413   : >> { %11488 = vmatpush3.bf16.xpose.msra.mxu1 %v2370_v42  ;;  %11489 = vmatprep.mubr.msk.bf16.mxu1 %vm14244_vm2, %v19427_v43  ;;  %v15547_v40 = vpack.c.bf16 %v1956_v3, %v1953_v35 }
 0x414   : >> { %19666 = vst [vmem:[#allocation90_spill] sm:$0xff] %v15543_v10  ;;  %11499 = vmatprep.subr.bf16.mxu1 %v19427_v43 }
 0x415   : >> { %v2511_v11 = vsel %vm2036_vm3, %v15547_v40, 0 }
 0x416   : >> { %11506 = vmatpush3.bf16.xpose.msra.mxu0 %v2511_v11 }
 0x417   : >> { %11517 = vmatprep.subr.bf16.mxu0 %v19427_v43 }
 0x41a   : >> { %11490 = vmatmul.mubr.msk.bf16.vlgmr.msra.gmra.mrb[76].mxu1 %vm2036_vm3, %v15483_v14 }
 0x41b   : >> { %11500 = vmatpush3.bf16.xpose.msra.mxu1 %v2464_v52  ;;  %11501 = vmatprep.mubr.msk.bf16.mxu1 %vm14244_vm2, %v19427_v43 }
 0x41c   : >> { %11511 = vmatprep.subr.bf16.mxu1 %v19427_v43 }
 0x41d   : >> { %11508 = vmatmul.mubr.msk.bf16.vlgmr.msra.gmra.mrb[52].mxu0 %vm2036_vm3, %v15543_v10 }
 0x41e   : >> { %11518 = vmatpush3.bf16.xpose.msra.mxu0 %v2605_v22  ;;  %11519 = vmatprep.mubr.msk.bf16.mxu0 %vm14244_vm2, %v19427_v43 }
 0x41f   : >> { %11529 = vmatprep.subr.bf16.mxu0 %v19427_v43 }
 0x422   : >> { %11502 = vmatmul.mubr.msk.bf16.vlgmr.msra.gmra.mrb[80].mxu1 %vm2036_vm3, %v15524_v0 }
 0x423   : >> { %11513 = vmatprep.mubr.msk.bf16.mxu1 %vm14244_vm2, %v19427_v43 }
 0x425   : >> { %11520 = vmatmul.mubr.msk.bf16.vlgmr.msra.gmra.mrb[56].mxu0 %vm2036_vm3, %v15494_v46 }
 0x426   : >> { %11531 = vmatprep.mubr.msk.bf16.mxu0 %vm14244_vm2, %v19427_v43 }
 0x455   : >> { %v1657_v28 = vpop.f32.mrb[44].mxu0 }
 0x456   : >> { %v1659_v49 = vpop.f32.mrb[45].mxu0  ;;  %v1958_v21 = vadd.f32 %v15379_v16, %v1657_v28 }
 0x457   : >> { %v1661_v7 = vpop.f32.mrb[46].mxu0  ;;  %v1959_v50 = vadd.f32 %v15384_v59, %v1659_v49 }
 0x458   : >> { %v1961_v60 = vadd.f32 %v15379_v16, %v1661_v7  ;;  %v1663_v48 = vpop.f32.mrb[47].mxu0 }
 0x459   : >> { %v1962_v55 = vadd.f32 %v15384_v59, %v1663_v48 }
 0x45a   : >> { %v15579_v26 = vpack.c.bf16 %v1961_v60, %v1958_v21 }
 0x45b   : >> { %v15581_v24 = vpack.c.bf16 %v1962_v55, %v1959_v50 }
 0x45c   : >> { %19667 = vst [vmem:[#allocation91_spill] sm:$0xff] %v15579_v26 }
 0x45d   : >> { %19668 = vst [vmem:[#allocation92_spill] sm:$0xff] %v15581_v24  ;;  %v1677_v18 = vpop.f32.mrb[4].mxu1  ;;  %v2558_v33 = vsel %vm2036_vm3, %v15581_v24, 0 }
 0x45e   : >> { %v1679_v41 = vpop.f32.mrb[5].mxu1  ;;  %11512 = vmatpush3.bf16.xpose.msra.mxu1 %v2558_v33  ;;  %v1970_v27 = vadd.f32 %v15379_v16, %v1677_v18 }
 0x45f   : >> { %v1681_v2 = vpop.f32.mrb[6].mxu1  ;;  %11523 = vmatprep.subr.bf16.mxu1 %v19427_v43  ;;  %v1971_v3 = vadd.f32 %v15384_v59, %v1679_v41 }
 0x460   : >> { %v1973_v20 = vadd.f32 %v15379_v16, %v1681_v2  ;;  %v1683_v35 = vpop.f32.mrb[7].mxu1 }
 0x461   : >> { %v1974_v42 = vadd.f32 %v15384_v59, %v1683_v35 }
 0x462   : >> { %v15590_v11 = vpack.c.bf16 %v1973_v20, %v1970_v27 }
 0x463   : >> { %v15592_v52 = vpack.c.bf16 %v1974_v42, %v1971_v3 }
 0x464   : >> { %19669 = vst [vmem:[#allocation93_spill] sm:$0xff] %v15590_v11 }
 0x465   : >> { %19670 = vst [vmem:[#allocation94_spill] sm:$0xff] %v15592_v52  ;;  %v1687_v22 = vpop.f32.mrb[8].mxu1  ;;  %11514 = vmatmul.mubr.msk.bf16.vlgmr.msra.gmra.mrb[84].mxu1 %vm2036_vm3, %v15579_v26  ;;  %v2652_v28 = vsel %vm2036_vm3, %v15592_v52, 0 }
 0x466   : >> { %v1689_v49 = vpop.f32.mrb[9].mxu1  ;;  %11524 = vmatpush3.bf16.xpose.msra.mxu1 %v2652_v28  ;;  %11525 = vmatprep.mubr.msk.bf16.mxu1 %vm14244_vm2, %v19427_v43  ;;  %v1976_v21 = vadd.f32 %v15379_v16, %v1687_v22  ;;  %v19425_v22 = vsub.s32 2, %v19620_v1 }
 0x467   : >> { %v1691_v7 = vpop.f32.mrb[10].mxu1  ;;  %11535 = vmatprep.subr.bf16.mxu1 %v19427_v43  ;;  %v1977_v50 = vadd.f32 %v15384_v59, %v1689_v49 }
 0x468   : >> { %v1979_v60 = vadd.f32 %v15379_v16, %v1691_v7  ;;  %v1693_v48 = vpop.f32.mrb[11].mxu1 }
 0x469   : >> { %v1980_v55 = vadd.f32 %v15384_v59, %v1693_v48 }
 0x46a   : >> { %v15605_v18 = vpack.c.bf16 %v1979_v60, %v1976_v21  ;;  %v15628_v60 = vrot.slane %v15371_v51, %v19425_v22 }
 0x46b   : >> { %v15607_v33 = vpack.c.bf16 %v1980_v55, %v1977_v50 }
 0x46c   : >> { %19671 = vst [vmem:[#allocation95_spill] sm:$0xff] %v15605_v18 }
 0x46d   : >> { %19672 = vst [vmem:[#allocation96_spill] sm:$0xff] %v15607_v33  ;;  %v1697_v41 = vpop.f32.mrb[12].mxu1  ;;  %11526 = vmatmul.mubr.msk.bf16.vlgmr.msra.gmra.mrb[88].mxu1 %vm2036_vm3, %v15590_v11  ;;  %v2699_v2 = vsel %vm2036_vm3, %v15607_v33, 0 }
 0x46e   : >> { %v1699_v27 = vpop.f32.mrb[13].mxu1  ;;  %11530 = vmatpush3.bf16.xpose.msra.mxu0 %v2699_v2  ;;  %11537 = vmatprep.mubr.msk.bf16.mxu1 %vm14244_vm2, %v19427_v43  ;;  %v1982_v35 = vadd.f32 %v15379_v16, %v1697_v41 }
 0x46f   : >> { %v1701_v20 = vpop.f32.mrb[14].mxu1  ;;  %11541 = vmatprep.subr.bf16.mxu0 %v19427_v43  ;;  %v1983_v28 = vadd.f32 %v15384_v59, %v1699_v27 }
 0x470   : >> { %v1985_v3 = vadd.f32 %v15379_v16, %v1701_v20  ;;  %v1703_v42 = vpop.f32.mrb[15].mxu1 }
 0x471   : >> { %v1986_v49 = vadd.f32 %v15384_v59, %v1703_v42 }
 0x472   : >> { %v15621_v7 = vpack.c.bf16 %v1985_v3, %v1982_v35 }
 0x473   : >> { %v15623_v21 = vpack.c.bf16 %v1986_v49, %v1983_v28 }
 0x474   : >> { %19673 = vst [vmem:[#allocation97_spill] sm:$0xff] %v15621_v7 }
 0x475   : >> { %19674 = vst [vmem:[#allocation98_spill] sm:$0xff] %v15623_v21  ;;  %v11415_v48 = vpop.f32.mrb[16].mxu1  ;;  %11532 = vmatmul.mubr.msk.bf16.vlgmr.msra.gmra.mrb[60].mxu0 %vm2036_vm3, %v15605_v18  ;;  %v2746_v16 = vsel %vm2036_vm3, %v15623_v21, 0 }
 0x476   : >> { %v1740_v50 = vpop.f32.mrb[17].mxu1  ;;  %11536 = vmatpush3.bf16.xpose.msra.mxu1 %v2746_v16  ;;  %11543 = vmatprep.mubr.msk.bf16.mxu0 %vm14244_vm2, %v19427_v43  ;;  %v1900_v55 = vadd.f32 %v11415_v48, %v15628_v60 }
 0x477   : >> { %v11416_v59 = vpop.f32.mrb[18].mxu1  ;;  %11547 = vmatprep.subr.bf16.mxu1 %v19427_v43  ;;  %v1894_v2 = vadd.f32 %v15628_v60, %v1740_v50 }
 0x478   : >> { %v1903_v51 = vadd.f32 %v11416_v59, %v15628_v60  ;;  %v1743_v41 = vpop.f32.mrb[19].mxu1 }
 0x479   : >> { %v1897_v27 = vadd.f32 %v15628_v60, %v1743_v41 }
 0x47a   : >> { %v15641_v20 = vpack.c.bf16 %v1903_v51, %v1900_v55 }
 0x47b   : >> { %v15643_v35 = vpack.c.bf16 %v1897_v27, %v1894_v2 }
 0x47c   : >> { %19675 = vst [vmem:[#allocation99_spill] sm:$0xff] %v15641_v20 }
 0x47d   : >> { %19676 = vst [vmem:[#allocation100_spill] sm:$0xff] %v15643_v35  ;;  %v11419_v3 = vpop.f32.mrb[20].mxu1  ;;  %11538 = vmatmul.mubr.msk.bf16.vlgmr.msra.gmra.mrb[92].mxu1 %vm2036_vm3, %v15621_v7  ;;  %11542 = vmatpush3.bf16.msra.mxu0 %v15643_v35 }
 0x47e   : >> { %v1912_v42 = vadd.f32 %v11419_v3, %v15628_v60  ;;  %v1756_v28 = vpop.f32.mrb[21].mxu1  ;;  %11548 = vmatpush3.bf16.msra.mxu1 %v15641_v20  ;;  %11553 = vmatprep.subr.bf16.mxu0 %v19427_v43 }
 0x47f   : >> { %v1906_v49 = vadd.f32 %v15628_v60, %v1756_v28  ;;  %v11420_v48 = vpop.f32.mrb[22].mxu1  ;;  %11549 = vmatprep.mubr.msk.bf16.mxu1 %vm14244_vm2, %v19427_v43  ;;  %11559 = vmatprep.subr.bf16.mxu1 %v19427_v43 }
 0x480   : >> { %v1915_v16 = vadd.f32 %v11420_v48, %v15628_v60  ;;  %v1759_v50 = vpop.f32.mrb[23].mxu1 }
 0x481   : >> { %v1909_v59 = vadd.f32 %v15628_v60, %v1759_v50 }
 0x482   : >> { %v15657_v55 = vpack.c.bf16 %v1915_v16, %v1912_v42 }
 0x483   : >> { %v15659_v51 = vpack.c.bf16 %v1909_v59, %v1906_v49 }
 0x485   : >> { %v11423_v41 = vpop.f32.mrb[24].mxu1 }
 0x486   : >> { %v1924_v2 = vadd.f32 %v11423_v41, %v15628_v60  ;;  %v1772_v27 = vpop.f32.mrb[25].mxu1 }
 0x487   : >> { %v1918_v3 = vadd.f32 %v15628_v60, %v1772_v27  ;;  %v11424_v28 = vpop.f32.mrb[26].mxu1 }
 0x488   : >> { %v1927_v8 = vadd.f32 %v11424_v28, %v15628_v60  ;;  %v1775_v22 = vpop.f32.mrb[27].mxu1 }
 0x489   : >> { %v1921_v63 = vadd.f32 %v15628_v60, %v1775_v22 }
 0x48a   : >> { %v15665_v48 = vpack.c.bf16 %v1927_v8, %v1924_v2 }
 0x48b   : >> { %v15667_v43 = vpack.c.bf16 %v1921_v63, %v1918_v3 }
 0x48d   : >> { %v11427_v42 = vpop.f32.mrb[28].mxu1 }
 0x48e   : >> { %v1936_v49 = vadd.f32 %v11427_v42, %v15628_v60  ;;  %v1788_v16 = vpop.f32.mrb[29].mxu1 }
 0x48f   : >> { %v1930_v50 = vadd.f32 %v15628_v60, %v1788_v16  ;;  %v11428_v59 = vpop.f32.mrb[30].mxu1 }
 0x490   : >> { %v1939_v41 = vadd.f32 %v11428_v59, %v15628_v60  ;;  %v1791_v27 = vpop.f32.mrb[31].mxu1 }
 0x491   : >> { %v1933_v1 = vadd.f32 %v15628_v60, %v1791_v27 }
 0x492   : >> { %v15673_v28 = vpack.c.bf16 %v1939_v41, %v1936_v49 }
 0x493   : >> { %v15675_v39 = vpack.c.bf16 %v1933_v1, %v1930_v50 }
 0x495   : >> { %v11431_v8 = vpop.f32.mrb[32].mxu1 }
 0x496   : >> { %v1948_v63 = vadd.f32 %v11431_v8, %v15628_v60  ;;  %v1804_v22 = vpop.f32.mrb[33].mxu1 }
 0x497   : >> { %v1942_v2 = vadd.f32 %v15628_v60, %v1804_v22  ;;  %v11432_v3 = vpop.f32.mrb[34].mxu1 }
 0x498   : >> { %v1951_v42 = vadd.f32 %v11432_v3, %v15628_v60  ;;  %v1807_v16 = vpop.f32.mrb[35].mxu1 }
 0x499   : >> { %v1945_v38 = vadd.f32 %v15628_v60, %v1807_v16 }
 0x49a   : >> { %v15681_v59 = vpack.c.bf16 %v1951_v42, %v1948_v63 }
 0x49b   : >> { %v15683_v32 = vpack.c.bf16 %v1945_v38, %v1942_v2 }
 0x49d   : >> { %v11435_v49 = vpop.f32.mrb[36].mxu1 }
 0x49e   : >> { %v1960_v1 = vadd.f32 %v11435_v49, %v15628_v60  ;;  %v1820_v50 = vpop.f32.mrb[37].mxu1 }
 0x49f   : >> { %v1954_v41 = vadd.f32 %v15628_v60, %v1820_v50  ;;  %v11436_v27 = vpop.f32.mrb[38].mxu1 }
 0x4a0   : >> { %v1963_v8 = vadd.f32 %v11436_v27, %v15628_v60  ;;  %v1823_v22 = vpop.f32.mrb[39].mxu1 }
 0x4a1   : >> { %v1957_v31 = vadd.f32 %v15628_v60, %v1823_v22 }
 0x4a2   : >> { %v15689_v3 = vpack.c.bf16 %v1963_v8, %v1960_v1 }
 0x4a3   : >> { %v15691_v37 = vpack.c.bf16 %v1957_v31, %v1954_v41 }
 0x4a4   : >> { %19677 = vst [vmem:[#allocation101_spill] sm:$0xff] %v15689_v3 }
 0x4a5   : >> { %19678 = vst [vmem:[#allocation102_spill] sm:$0xff] %v15691_v37  ;;  %v11439_v63 = vpop.f32.mrb[40].mxu1 }
 0x4a6   : >> { %v1972_v38 = vadd.f32 %v11439_v63, %v15628_v60  ;;  %v1836_v2 = vpop.f32.mrb[41].mxu1 }
 0x4a7   : >> { %v1966_v42 = vadd.f32 %v15628_v60, %v1836_v2  ;;  %v11440_v16 = vpop.f32.mrb[42].mxu1 }
 0x4a8   : >> { %v1975_v49 = vadd.f32 %v11440_v16, %v15628_v60  ;;  %v1839_v50 = vpop.f32.mrb[43].mxu1 }
 0x4a9   : >> { %v1969_v36 = vadd.f32 %v15628_v60, %v1839_v50 }
 0x4aa   : >> { %v15697_v27 = vpack.c.bf16 %v1975_v49, %v1972_v38 }
 0x4ab   : >> { %v15699_v30 = vpack.c.bf16 %v1969_v36, %v1966_v42 }
 0x4ac   : >> { %19679 = vst [vmem:[#allocation103_spill] sm:$0xff] %v15697_v27 }
 0x4ad   : >> { %19680 = vst [vmem:[#allocation104_spill] sm:$0xff] %v15699_v30  ;;  %v11443_v1 = vpop.f32.mrb[44].mxu1 }
 0x4ae   : >> { %v1984_v31 = vadd.f32 %v11443_v1, %v15628_v60  ;;  %v1852_v41 = vpop.f32.mrb[45].mxu1 }
 0x4af   : >> { %v1978_v8 = vadd.f32 %v15628_v60, %v1852_v41  ;;  %v11444_v22 = vpop.f32.mrb[46].mxu1 }
 0x4b0   : >> { %v1987_v63 = vadd.f32 %v11444_v22, %v15628_v60  ;;  %v1855_v2 = vpop.f32.mrb[47].mxu1 }
 0x4b1   : >> { %v1981_v29 = vadd.f32 %v15628_v60, %v1855_v2 }
 0x4b2   : >> { %v15705_v16 = vpack.c.bf16 %v1987_v63, %v1984_v31 }
 0x4b3   : >> { %v15707_v17 = vpack.c.bf16 %v1981_v29, %v1978_v8 }
 0x4b4   : >> { %19681 = vst [vmem:[#allocation105_spill] sm:$0xff] %v15705_v16 }
 0x4b5   : >> { %19682 = vst [vmem:[#allocation106_spill] sm:$0xff] %v15707_v17  ;;  %v2077_v38 = vpop.f32.mrb[48].mxu1 }
 0x4b6   : >> { %v11449_v49 = vpop.f32.mrb[49].mxu1  ;;  %v2789_v36 = vmul.f32 0.125, %v2077_v38 }
 0x4b7   : >> { %v2080_v42 = vpop.f32.mrb[50].mxu1 }
 0x4b8   : >> { %v11450_v50 = vpop.f32.mrb[51].mxu1  ;;  %v15710_v1 = vadd.f32 %v2789_v36, %v19618_v5  ;;  %v2790_v41 = vmul.f32 0.125, %v2080_v42 }
 0x4ba   : >> { %v2854_v22 = vsel %vm2853_vm4, %v15710_v1, -inf  ;;  %v15715_v27 = vadd.f32 %v2790_v41, %v19619_v6 }
 0x4bb   : >> { %2855 = vmax.xlane.f32.xlu0 %v2854_v22 }
 0x4bc   : >> { %v2857_v29 = vsel %vm2853_vm4, %v15715_v27, -inf }
 0x4bd   : >> { %2858 = vmax.xlane.f32.xlu1 %v2857_v29  ;;  %v2124_v60 = vpop.f32.mrb[52].mxu1 }
 0x4be   : >> { %v11455_v31 = vpop.f32.mrb[53].mxu1  ;;  %v2791_v8 = vmul.f32 0.125, %v2124_v60 }
 0x4bf   : >> { %v2127_v63 = vpop.f32.mrb[54].mxu1 }
 0x4c0   : >> { %v11456_v2 = vpop.f32.mrb[55].mxu1  ;;  %v15720_v38 = vadd.f32 %v2791_v8, %v19618_v5  ;;  %v2792_v49 = vmul.f32 0.125, %v2127_v63 }
 0x4c2   : >> { %v2860_v36 = vsel %vm2853_vm4, %v15720_v38, -inf  ;;  %v15725_v42 = vadd.f32 %v2792_v49, %v19619_v6 }
 0x4c3   : >> { %2861 = vmax.xlane.f32.xlu0 %v2860_v36 }
 0x4c4   : >> { %v2863_v50 = vsel %vm2853_vm4, %v15725_v42, -inf }
 0x4c5   : >> { %2864 = vmax.xlane.f32.xlu1 %v2863_v50  ;;  %v2171_v41 = vpop.f32.mrb[56].mxu1 }
 0x4c6   : >> { %v11461_v22 = vpop.f32.mrb[57].mxu1  ;;  %v2793_v29 = vmul.f32 0.125, %v2171_v41 }
 0x4c7   : >> { %v2174_v60 = vpop.f32.mrb[58].mxu1 }
 0x4c8   : >> { %v11462_v31 = vpop.f32.mrb[59].mxu1  ;;  %v15730_v8 = vadd.f32 %v2793_v29, %v19618_v5  ;;  %v2794_v63 = vmul.f32 0.125, %v2174_v60 }
 0x4ca   : >> { %v2866_v2 = vsel %vm2853_vm4, %v15730_v8, -inf  ;;  %v15735_v49 = vadd.f32 %v2794_v63, %v19619_v6 }
 0x4cb   : >> { %2867 = vmax.xlane.f32.xlu0 %v2866_v2 }
 0x4cc   : >> { %v2869_v36 = vsel %vm2853_vm4, %v15735_v49, -inf }
 0x4cd   : >> { %2870 = vmax.xlane.f32.xlu1 %v2869_v36  ;;  %v2218_v50 = vpop.f32.mrb[60].mxu1 }
 0x4ce   : >> { %v11467_v22 = vpop.f32.mrb[61].mxu1  ;;  %v2795_v41 = vmul.f32 0.125, %v2218_v50 }
 0x4cf   : >> { %v2221_v16 = vpop.f32.mrb[62].mxu1 }
 0x4d0   : >> { %v11468_v31 = vpop.f32.mrb[63].mxu1  ;;  %v15740_v29 = vadd.f32 %v2795_v41, %v19618_v5  ;;  %v2796_v60 = vmul.f32 0.125, %v2221_v16 }
 0x4d2   : >> { %v2872_v17 = vsel %vm2853_vm4, %v15740_v29, -inf  ;;  %v15745_v63 = vadd.f32 %v2796_v60, %v19619_v6 }
 0x4d3   : >> { %2873 = vmax.xlane.f32.xlu0 %v2872_v17 }
 0x4d4   : >> { %v2875_v2 = vsel %vm2853_vm4, %v15745_v63, -inf }
 0x4d5   : >> { %2876 = vmax.xlane.f32.xlu1 %v2875_v2  ;;  %v2265_v36 = vpop.f32.mrb[64].mxu1 }
 0x4d6   : >> { %v2797_v22 = vmul.f32 0.125, %v2265_v36  ;;  %v11473_v50 = vpop.f32.mrb[65].mxu1 }
 0x4d7   : >> { %v2268_v20 = vpop.f32.mrb[66].mxu1 }
 0x4d8   : >> { %v15750_v31 = vadd.f32 %v2797_v22, %v19618_v5  ;;  %v2798_v41 = vmul.f32 0.125, %v2268_v20  ;;  %v11474_v16 = vpop.f32.mrb[67].mxu1 }
 0x4da   : >> { %v15753_v7 = vadd.f32 %v2798_v41, %v19619_v6  ;;  %v2878_v60 = vsel %vm2853_vm4, %v15750_v31, -inf }
 0x4db   : >> { %2879 = vmax.xlane.f32.xlu0 %v2878_v60 }
 0x4dc   : >> { %v2881_v17 = vsel %vm2853_vm4, %v15753_v7, -inf }
 0x4dd   : >> { %2882 = vmax.xlane.f32.xlu1 %v2881_v17  ;;  %v2312_v2 = vpop.f32.mrb[68].mxu1 }
 0x4de   : >> { %v2799_v36 = vmul.f32 0.125, %v2312_v2  ;;  %v11479_v50 = vpop.f32.mrb[69].mxu1 }
 0x4df   : >> { %v2315_v21 = vpop.f32.mrb[70].mxu1 }
 0x4e0   : >> { %v15760_v22 = vadd.f32 %v2799_v36, %v19618_v5  ;;  %v2800_v20 = vmul.f32 0.125, %v2315_v21  ;;  %v11480_v16 = vpop.f32.mrb[71].mxu1  ;;  %v2453_v11 = vpop.f32.mrb[48].mxu0 }
 0x4e1   : >> { %v11497_v52 = vpop.f32.mrb[49].mxu0  ;;  %v2805_v34 = vmul.f32 0.125, %v2453_v11 }
 0x4e2   : >> { %v15763_v41 = vadd.f32 %v2800_v20, %v19619_v6  ;;  %v2884_v60 = vsel %vm2853_vm4, %v15760_v22, -inf  ;;  %v2456_v26 = vpop.f32.mrb[50].mxu0 }
 0x4e3   : >> { %2885 = vmax.xlane.f32.xlu0 %v2884_v60  ;;  %v11498_v17 = vpop.f32.mrb[51].mxu0 }
 0x4e4   : >> { %v2887_v2 = vsel %vm2853_vm4, %v15763_v41, -inf }
 0x4e5   : >> { %2888 = vmax.xlane.f32.xlu1 %v2887_v2  ;;  %v2359_v50 = vpop.f32.mrb[72].mxu1 }
 0x4e6   : >> { %v2801_v36 = vmul.f32 0.125, %v2359_v50  ;;  %v11485_v24 = vpop.f32.mrb[73].mxu1 }
 0x4e7   : >> { %v2362_v21 = vpop.f32.mrb[74].mxu1 }
 0x4e8   : >> { %v15770_v16 = vadd.f32 %v2801_v36, %v19618_v5  ;;  %v2802_v20 = vmul.f32 0.125, %v2362_v21  ;;  %v11486_v0 = vpop.f32.mrb[75].mxu1 }
 0x4ea   : >> { %v15773_v52 = vadd.f32 %v2802_v20, %v19619_v6  ;;  %v2890_v60 = vsel %vm2853_vm4, %v15770_v16, -inf  ;;  %v2806_v20 = vmul.f32 0.125, %v2456_v26 }
 0x4eb   : >> { %2891 = vmax.xlane.f32.xlu0 %v2890_v60 }
 0x4ec   : >> { %v2893_v17 = vsel %vm2853_vm4, %v15773_v52, -inf }
 0x4ed   : >> { %2894 = vmax.xlane.f32.xlu1 %v2893_v17  ;;  %v2406_v2 = vpop.f32.mrb[76].mxu1  ;;  %v15788_v17 = vadd.f32 %v2805_v34, %v19618_v5 }
 0x4ee   : >> { %v2803_v50 = vmul.f32 0.125, %v2406_v2  ;;  %v11491_v24 = vpop.f32.mrb[77].mxu1 }
 0x4ef   : >> { %v2409_v14 = vpop.f32.mrb[78].mxu1 }
 0x4f0   : >> { %v15780_v36 = vadd.f32 %v2803_v50, %v19618_v5  ;;  %v2804_v0 = vmul.f32 0.125, %v2409_v14  ;;  %v11492_v21 = vpop.f32.mrb[79].mxu1  ;;  %v2547_v61 = vpop.f32.mrb[52].mxu0  ;;  %v15793_v14 = vadd.f32 %v2806_v20, %v19619_v6 }
 0x4f1   : >> { %v11509_v60 = vpop.f32.mrb[53].mxu0  ;;  %v2902_v21 = vsel %vm2853_vm4, %v15788_v17, -inf }
 0x4f2   : >> { %v15783_v45 = vadd.f32 %v2804_v0, %v19619_v6  ;;  %v2896_v35 = vsel %vm2853_vm4, %v15780_v36, -inf  ;;  %v2550_v2 = vpop.f32.mrb[54].mxu0  ;;  %v2809_v60 = vmul.f32 0.125, %v2547_v61  ;;  %v2905_v18 = vsel %vm2853_vm4, %v15793_v14, -inf }
 0x4f3   : >> { %2897 = vmax.xlane.f32.xlu0 %v2896_v35  ;;  %v11510_v11 = vpop.f32.mrb[55].mxu0  ;;  %v2810_v20 = vmul.f32 0.125, %v2550_v2 }
 0x4f4   : >> { %v2899_v50 = vsel %vm2853_vm4, %v15783_v45, -inf }
 0x4f5   : >> { %2900 = vmax.xlane.f32.xlu1 %v2899_v50  ;;  %v2500_v26 = vpop.f32.mrb[80].mxu1  ;;  %v15813_v2 = vadd.f32 %v2810_v20, %v19619_v6 }
 0x4f6   : >> { %v2807_v24 = vmul.f32 0.125, %v2500_v26  ;;  %v11503_v0 = vpop.f32.mrb[81].mxu1 }
 0x4f7   : >> { %2903 = vmax.xlane.f32.xlu0 %v2902_v21  ;;  %v2503_v34 = vpop.f32.mrb[82].mxu1  ;;  %v15808_v0 = vadd.f32 %v2809_v60, %v19618_v5 }
 0x4f8   : >> { %v15798_v12 = vadd.f32 %v2807_v24, %v19618_v5  ;;  %v2808_v35 = vmul.f32 0.125, %v2503_v34  ;;  %v11504_v11 = vpop.f32.mrb[83].mxu1  ;;  %v2641_v19 = vpop.f32.mrb[56].mxu0 }
 0x4f9   : >> { %2906 = vmax.xlane.f32.xlu1 %v2905_v18  ;;  %v11521_v26 = vpop.f32.mrb[57].mxu0  ;;  %v2914_v18 = vsel %vm2853_vm4, %v15808_v0, -inf }
 0x4fa   : >> { %v15803_v50 = vadd.f32 %v2808_v35, %v19619_v6  ;;  %v2908_v61 = vsel %vm2853_vm4, %v15798_v12, -inf  ;;  %v2644_v24 = vpop.f32.mrb[58].mxu0  ;;  %v2917_v35 = vsel %vm2853_vm4, %v15813_v2, -inf }
 0x4fb   : >> { %2909 = vmax.xlane.f32.xlu0 %v2908_v61  ;;  %v11522_v21 = vpop.f32.mrb[59].mxu0  ;;  %v2813_v61 = vmul.f32 0.125, %v2641_v19  ;;  %v2814_v23 = vmul.f32 0.125, %v2644_v24 }
 0x4fc   : >> { %v2911_v34 = vsel %vm2853_vm4, %v15803_v50, -inf }
 0x4fd   : >> { %2912 = vmax.xlane.f32.xlu1 %v2911_v34  ;;  %v15828_v46 = vadd.f32 %v2813_v61, %v19618_v5 }
 0x4ff   : >> { %2915 = vmax.xlane.f32.xlu0 %v2914_v18 }
 0x501   : >> { %2918 = vmax.xlane.f32.xlu1 %v2917_v35  ;;  %v15833_v35 = vadd.f32 %v2814_v23, %v19619_v6 }
 0x538   : >> { %v2594_v60 = vpop.f32.mrb[84].mxu1 }
 0x539   : >> { %v2811_v11 = vmul.f32 0.125, %v2594_v60  ;;  %v11515_v26 = vpop.f32.mrb[85].mxu1 }
 0x53a   : >> { %v2597_v21 = vpop.f32.mrb[86].mxu1 }
 0x53b   : >> { %v15820_v33 = vadd.f32 %v2811_v11, %v19618_v5  ;;  %v2812_v30 = vmul.f32 0.125, %v2597_v21  ;;  %v11516_v20 = vpop.f32.mrb[87].mxu1 }
 0x53d   : >> { %v15823_v34 = vadd.f32 %v2812_v30, %v19619_v6  ;;  %v2920_v18 = vsel %vm2853_vm4, %v15820_v33, -inf  ;;  %v2926_v30 = vsel %vm2853_vm4, %v15828_v46, -inf }
 0x53e   : >> { %2921 = vmax.xlane.f32.xlu0 %v2920_v18  ;;  %v2929_v18 = vsel %vm2853_vm4, %v15833_v35, -inf }
 0x53f   : >> { %v2923_v19 = vsel %vm2853_vm4, %v15823_v34, -inf }
 0x540   : >> { %2924 = vmax.xlane.f32.xlu1 %v2923_v19  ;;  %v2688_v60 = vpop.f32.mrb[88].mxu1 }
 0x541   : >> { %v2815_v11 = vmul.f32 0.125, %v2688_v60  ;;  %v11527_v24 = vpop.f32.mrb[89].mxu1 }
 0x542   : >> { %2927 = vmax.xlane.f32.xlu0 %v2926_v30  ;;  %v2691_v26 = vpop.f32.mrb[90].mxu1 }
 0x543   : >> { %v15838_v21 = vadd.f32 %v2815_v11, %v19618_v5  ;;  %v2816_v61 = vmul.f32 0.125, %v2691_v26  ;;  %v11528_v20 = vpop.f32.mrb[91].mxu1 }
 0x544   : >> { %2930 = vmax.xlane.f32.xlu1 %v2929_v18 }
 0x545   : >> { %v15843_v23 = vadd.f32 %v2816_v61, %v19619_v6  ;;  %v2932_v19 = vsel %vm2853_vm4, %v15838_v21, -inf }
 0x546   : >> { %2933 = vmax.xlane.f32.xlu0 %v2932_v19 }
 0x547   : >> { %v2935_v60 = vsel %vm2853_vm4, %v15843_v23, -inf }
 0x548   : >> { %v2735_v24 = vpop.f32.mrb[60].mxu0  ;;  %v2856_v30 = vpop.xlane.xlu0 %2855  ;;  %2936 = vmax.xlane.f32.xlu1 %v2935_v60 }
 0x549   : >> { %v2950_v11 = vsub.f32 %v15710_v1, %v2856_v30  ;;  %v11533_v26 = vpop.f32.mrb[61].mxu0  ;;  %v2817_v20 = vmul.f32 0.125, %v2735_v24 }
 0x54a   : >> { %v2738_v3 = vpop.f32.mrb[62].mxu0  ;;  %v2859_v57 = vpop.xlane.xlu1 %2858 }
 0x54b   : >> { %v2982_v18 = vmul.f32 1.442695, %v2950_v11  ;;  %v2951_v61 = vsub.f32 %v15715_v27, %v2859_v57  ;;  %v11534_v15 = vpop.f32.mrb[63].mxu0  ;;  %v15852_v37 = vadd.f32 %v2817_v20, %v19618_v5  ;;  %v2818_v19 = vmul.f32 0.125, %v2738_v3 }
 0x54d   : >> { %12559 = vpow2.f32 %v2982_v18  ;;  %v2984_v58 = vmul.f32 1.442695, %v2951_v61  ;;  %v2938_v10 = vsel %vm2853_vm4, %v15852_v37, -inf  ;;  %v15857_v60 = vadd.f32 %v2818_v19, %v19619_v6 }
 0x54e   : >> { %2939 = vmax.xlane.f32.xlu0 %v2938_v10 }
 0x54f   : >> { %12561 = vpow2.f32 %v2984_v58  ;;  %v2941_v1 = vsel %vm2853_vm4, %v15857_v60, -inf }
 0x550   : >> { %v2862_v24 = vpop.xlane.xlu0 %2861  ;;  %2942 = vmax.xlane.f32.xlu1 %v2941_v1  ;;  %v2782_v57 = vpop.f32.mrb[92].mxu1 }
 0x551   : >> { %v2952_v15 = vsub.f32 %v15720_v38, %v2862_v24  ;;  %v2819_v27 = vmul.f32 0.125, %v2782_v57  ;;  %v11539_v3 = vpop.f32.mrb[93].mxu1 }
 0x552   : >> { %v2865_v30 = vpop.xlane.xlu1 %2864  ;;  %v2785_v11 = vpop.f32.mrb[94].mxu1 }
 0x553   : >> { %v2986_v26 = vmul.f32 1.442695, %v2952_v15  ;;  %v15863_v20 = vadd.f32 %v2819_v27, %v19618_v5  ;;  %v2953_v18 = vsub.f32 %v15725_v42, %v2865_v30  ;;  %v2820_v10 = vmul.f32 0.125, %v2785_v11  ;;  %v11540_v58 = vpop.f32.mrb[95].mxu1 }
 0x555   : >> { %12563 = vpow2.f32 %v2986_v26  ;;  %v2988_v61 = vmul.f32 1.442695, %v2953_v18  ;;  %v15867_v19 = vadd.f32 %v2820_v10, %v19619_v6  ;;  %v2944_v38 = vsel %vm2853_vm4, %v15863_v20, -inf }
 0x556   : >> { %2945 = vmax.xlane.f32.xlu0 %v2944_v38 }
 0x557   : >> { %v15871_v1 = vpop.eup %12559  ;;  %12565 = vpow2.f32 %v2988_v61  ;;  %v2947_v24 = vsel %vm2853_vm4, %v15867_v19, -inf }
 0x558   : >> { %v2868_v57 = vpop.xlane.xlu0 %2867  ;;  %2948 = vmax.xlane.f32.xlu1 %v2947_v24  ;;  %v3046_v42 = vsel %vm2853_vm4, %v15871_v1, 0.0 }
 0x559   : >> { %v15877_v15 = vpop.eup %12561  ;;  %v2954_v27 = vsub.f32 %v15730_v8, %v2868_v57 }
 0x55a   : >> { %v2871_v3 = vpop.xlane.xlu1 %2870  ;;  %3047 = vadd.xlane.f32.xlu0 %v3046_v42  ;;  %v3049_v30 = vsel %vm2853_vm4, %v15877_v15, 0.0 }
 0x55b   : >> { %v2990_v11 = vmul.f32 1.442695, %v2954_v27  ;;  %v2955_v26 = vsub.f32 %v15735_v49, %v2871_v3 }
 0x55c   : >> { %3050 = vadd.xlane.f32.xlu1 %v3049_v30 }
 0x55d   : >> { %12567 = vpow2.f32 %v2990_v11  ;;  %v2992_v18 = vmul.f32 1.442695, %v2955_v26 }
 0x55f   : >> { %v15883_v10 = vpop.eup %12563  ;;  %12569 = vpow2.f32 %v2992_v18 }
 0x560   : >> { %v2874_v58 = vpop.xlane.xlu0 %2873  ;;  %v3052_v61 = vsel %vm2853_vm4, %v15883_v10, 0.0 }
 0x561   : >> { %v15887_v38 = vpop.eup %12565  ;;  %v2956_v8 = vsub.f32 %v15740_v29, %v2874_v58  ;;  %3053 = vadd.xlane.f32.xlu0 %v3052_v61 }
 0x562   : >> { %v2877_v24 = vpop.xlane.xlu1 %2876  ;;  %v3055_v57 = vsel %vm2853_vm4, %v15887_v38, 0.0 }
 0x563   : >> { %v2994_v49 = vmul.f32 1.442695, %v2956_v8  ;;  %v2957_v42 = vsub.f32 %v15745_v63, %v2877_v24  ;;  %3056 = vadd.xlane.f32.xlu1 %v3055_v57 }
 0x565   : >> { %12571 = vpow2.f32 %v2994_v49  ;;  %v2996_v27 = vmul.f32 1.442695, %v2957_v42 }
 0x567   : >> { %v15893_v3 = vpop.eup %12567  ;;  %12573 = vpow2.f32 %v2996_v27 }
 0x568   : >> { %v2880_v30 = vpop.xlane.xlu0 %2879  ;;  %v3058_v11 = vsel %vm2853_vm4, %v15893_v3, 0.0 }
 0x569   : >> { %v15897_v26 = vpop.eup %12569  ;;  %v2958_v29 = vsub.f32 %v15750_v31, %v2880_v30  ;;  %3059 = vadd.xlane.f32.xlu0 %v3058_v11 }
 0x56a   : >> { %v2883_v18 = vpop.xlane.xlu1 %2882  ;;  %v3061_v58 = vsel %vm2853_vm4, %v15897_v26, 0.0 }
 0x56b   : >> { %v2998_v63 = vmul.f32 1.442695, %v2958_v29  ;;  %v2959_v61 = vsub.f32 %v15753_v7, %v2883_v18  ;;  %3062 = vadd.xlane.f32.xlu1 %v3061_v58 }
 0x56d   : >> { %12575 = vpow2.f32 %v2998_v63  ;;  %v3000_v8 = vmul.f32 1.442695, %v2959_v61 }
 0x56f   : >> { %v15903_v24 = vpop.eup %12571  ;;  %12577 = vpow2.f32 %v3000_v8 }
 0x570   : >> { %v2886_v57 = vpop.xlane.xlu0 %2885  ;;  %v3064_v49 = vsel %vm2853_vm4, %v15903_v24, 0.0 }
 0x571   : >> { %v15907_v42 = vpop.eup %12573  ;;  %v2960_v31 = vsub.f32 %v15760_v22, %v2886_v57  ;;  %3065 = vadd.xlane.f32.xlu0 %v3064_v49 }
 0x572   : >> { %v2889_v27 = vpop.xlane.xlu1 %2888  ;;  %v3067_v30 = vsel %vm2853_vm4, %v15907_v42, 0.0 }
 0x573   : >> { %v3002_v7 = vmul.f32 1.442695, %v2960_v31  ;;  %v2961_v11 = vsub.f32 %v15763_v41, %v2889_v27  ;;  %3068 = vadd.xlane.f32.xlu1 %v3067_v30 }
 0x575   : >> { %12579 = vpow2.f32 %v3002_v7  ;;  %v3004_v29 = vmul.f32 1.442695, %v2961_v11 }
 0x577   : >> { %v15913_v18 = vpop.eup %12575  ;;  %12581 = vpow2.f32 %v3004_v29 }
 0x578   : >> { %v2892_v58 = vpop.xlane.xlu0 %2891  ;;  %v3070_v63 = vsel %vm2853_vm4, %v15913_v18, 0.0 }
 0x579   : >> { %v15917_v61 = vpop.eup %12577  ;;  %v2962_v22 = vsub.f32 %v15770_v16, %v2892_v58  ;;  %3071 = vadd.xlane.f32.xlu0 %v3070_v63 }
 0x57a   : >> { %v2895_v8 = vpop.xlane.xlu1 %2894  ;;  %v3073_v57 = vsel %vm2853_vm4, %v15917_v61, 0.0 }
 0x57b   : >> { %v3006_v41 = vmul.f32 1.442695, %v2962_v22  ;;  %v2963_v49 = vsub.f32 %v15773_v52, %v2895_v8  ;;  %3074 = vadd.xlane.f32.xlu1 %v3073_v57 }
 0x57d   : >> { %12583 = vpow2.f32 %v3006_v41  ;;  %v3008_v31 = vmul.f32 1.442695, %v2963_v49 }
 0x57f   : >> { %v15923_v27 = vpop.eup %12579  ;;  %12585 = vpow2.f32 %v3008_v31 }
 0x580   : >> { %v2898_v30 = vpop.xlane.xlu0 %2897  ;;  %v3076_v7 = vsel %vm2853_vm4, %v15923_v27, 0.0 }
 0x581   : >> { %v15927_v11 = vpop.eup %12581  ;;  %v2964_v16 = vsub.f32 %v15780_v36, %v2898_v30  ;;  %3077 = vadd.xlane.f32.xlu0 %v3076_v7 }
 0x582   : >> { %v2901_v29 = vpop.xlane.xlu1 %2900  ;;  %v3079_v58 = vsel %vm2853_vm4, %v15927_v11, 0.0 }
 0x583   : >> { %v3010_v52 = vmul.f32 1.442695, %v2964_v16  ;;  %v2965_v63 = vsub.f32 %v15783_v45, %v2901_v29  ;;  %3080 = vadd.xlane.f32.xlu1 %v3079_v58 }
 0x584   : >> { %v2904_v22 = vpop.xlane.xlu0 %2903 }
 0x585   : >> { %12587 = vpow2.f32 %v3010_v52  ;;  %v3012_v8 = vmul.f32 1.442695, %v2965_v63  ;;  %v2966_v57 = vsub.f32 %v15788_v17, %v2904_v22 }
 0x586   : >> { %v2907_v41 = vpop.xlane.xlu1 %2906 }
 0x587   : >> { %v15934_v49 = vpop.eup %12583  ;;  %12589 = vpow2.f32 %v3012_v8  ;;  %v3014_v31 = vmul.f32 1.442695, %v2966_v57  ;;  %v2967_v36 = vsub.f32 %v15793_v14, %v2907_v41 }
 0x588   : >> { %v2910_v30 = vpop.xlane.xlu0 %2909  ;;  %v3082_v7 = vsel %vm2853_vm4, %v15934_v49, 0.0 }
 0x589   : >> { %v15939_v16 = vpop.eup %12585  ;;  %12591 = vpow2.f32 %v3014_v31  ;;  %v3016_v45 = vmul.f32 1.442695, %v2967_v36  ;;  %v2968_v29 = vsub.f32 %v15798_v12, %v2910_v30  ;;  %3083 = vadd.xlane.f32.xlu0 %v3082_v7 }
 0x58a   : >> { %v2913_v58 = vpop.xlane.xlu1 %2912  ;;  %v3085_v17 = vsel %vm2853_vm4, %v15939_v16, 0.0 }
 0x58b   : >> { %12593 = vpow2.f32 %v3016_v45  ;;  %v3018_v52 = vmul.f32 1.442695, %v2968_v29  ;;  %v2969_v63 = vsub.f32 %v15803_v50, %v2913_v58  ;;  %3086 = vadd.xlane.f32.xlu1 %v3085_v17 }
 0x58c   : >> { %v2916_v14 = vpop.xlane.xlu0 %2915 }
 0x58d   : >> { %12595 = vpow2.f32 %v3018_v52  ;;  %v3020_v22 = vmul.f32 1.442695, %v2969_v63  ;;  %v2970_v8 = vsub.f32 %v15808_v0, %v2916_v14 }
 0x58e   : >> { %v2919_v57 = vpop.xlane.xlu1 %2918 }
 0x58f   : >> { %v15946_v41 = vpop.eup %12587  ;;  %12597 = vpow2.f32 %v3020_v22  ;;  %v3022_v12 = vmul.f32 1.442695, %v2970_v8  ;;  %v2971_v31 = vsub.f32 %v15813_v2, %v2919_v57 }
 0x590   : >> { %v3088_v36 = vsel %vm2853_vm4, %v15946_v41, 0.0 }
 0x591   : >> { %v15951_v30 = vpop.eup %12589  ;;  %12599 = vpow2.f32 %v3022_v12  ;;  %v3024_v50 = vmul.f32 1.442695, %v2971_v31  ;;  %3089 = vadd.xlane.f32.xlu0 %v3088_v36 }
 0x592   : >> { %v3091_v7 = vsel %vm2853_vm4, %v15951_v30, 0.0 }
 0x593   : >> { %v15955_v45 = vpop.eup %12591  ;;  %12601 = vpow2.f32 %v3024_v50  ;;  %3092 = vadd.xlane.f32.xlu1 %v3091_v7 }
 0x594   : >> { %v3094_v0 = vsel %vm2853_vm4, %v15955_v45, 0.0 }
 0x595   : >> { %v15959_v29 = vpop.eup %12593  ;;  %3095 = vadd.xlane.f32.xlu0 %v3094_v0 }
 0x596   : >> { %v3097_v2 = vsel %vm2853_vm4, %v15959_v29, 0.0 }
 0x597   : >> { %v15963_v58 = vpop.eup %12595  ;;  %3098 = vadd.xlane.f32.xlu1 %v3097_v2 }
 0x598   : >> { %v3100_v17 = vsel %vm2853_vm4, %v15963_v58, 0.0 }
 0x599   : >> { %v15967_v52 = vpop.eup %12597  ;;  %3101 = vadd.xlane.f32.xlu0 %v3100_v17 }
 0x59a   : >> { %v3103_v63 = vsel %vm2853_vm4, %v15967_v52, 0.0 }
 0x59b   : >> { %v15971_v14 = vpop.eup %12599  ;;  %3104 = vadd.xlane.f32.xlu1 %v3103_v63 }
 0x59c   : >> { %v3106_v22 = vsel %vm2853_vm4, %v15971_v14, 0.0 }
 0x59d   : >> { %v15975_v8 = vpop.eup %12601  ;;  %3107 = vadd.xlane.f32.xlu0 %v3106_v22 }
 0x59e   : >> { %19683 = vst [vmem:[#allocation107_spill] sm:$0xff] %v15975_v8  ;;  %v3109_v57 = vsel %vm2853_vm4, %v15975_v8, 0.0 }
 0x59f   : >> { %3110 = vadd.xlane.f32.xlu1 %v3109_v57 }
 0x5cb   : >> { %v2922_v12 = vpop.xlane.xlu0 %2921 }
 0x5cc   : >> { %v2972_v31 = vsub.f32 %v15820_v33, %v2922_v12 }
 0x5cd   : >> { %v2925_v36 = vpop.xlane.xlu1 %2924 }
 0x5ce   : >> { %v3026_v50 = vmul.f32 1.442695, %v2972_v31  ;;  %v2973_v7 = vsub.f32 %v15823_v34, %v2925_v36 }
 0x5cf   : >> { %v2928_v0 = vpop.xlane.xlu0 %2927 }
 0x5d0   : >> { %12603 = vpow2.f32 %v3026_v50  ;;  %v3028_v2 = vmul.f32 1.442695, %v2973_v7  ;;  %v2974_v17 = vsub.f32 %v15828_v46, %v2928_v0 }
 0x5d1   : >> { %v2931_v63 = vpop.xlane.xlu1 %2930 }
 0x5d2   : >> { %12605 = vpow2.f32 %v3028_v2  ;;  %v3030_v6 = vmul.f32 1.442695, %v2974_v17  ;;  %v2975_v22 = vsub.f32 %v15833_v35, %v2931_v63 }
 0x5d3   : >> { %v2934_v5 = vpop.xlane.xlu0 %2933 }
 0x5d4   : >> { %12607 = vpow2.f32 %v3030_v6  ;;  %v3032_v57 = vmul.f32 1.442695, %v2975_v22  ;;  %v2976_v8 = vsub.f32 %v15838_v21, %v2934_v5 }
 0x5d5   : >> { %v2937_v33 = vpop.xlane.xlu1 %2936 }
 0x5d6   : >> { %12609 = vpow2.f32 %v3032_v57  ;;  %v3034_v12 = vmul.f32 1.442695, %v2976_v8  ;;  %v2977_v34 = vsub.f32 %v15843_v23, %v2937_v33 }
 0x5d8   : >> { %12611 = vpow2.f32 %v3034_v12  ;;  %v3036_v31 = vmul.f32 1.442695, %v2977_v34 }
 0x5da   : >> { %v15985_v36 = vpop.eup %12603  ;;  %12613 = vpow2.f32 %v3036_v31 }
 0x5db   : >> { %v2940_v46 = vpop.xlane.xlu0 %2939  ;;  %v3112_v50 = vsel %vm2853_vm4, %v15985_v36, 0.0 }
 0x5dc   : >> { %v15989_v35 = vpop.eup %12605  ;;  %v2978_v6 = vsub.f32 %v15852_v37, %v2940_v46  ;;  %3113 = vadd.xlane.f32.xlu0 %v3112_v50 }
 0x5dd   : >> { %v2943_v5 = vpop.xlane.xlu1 %2942  ;;  %v3115_v21 = vsel %vm2853_vm4, %v15989_v35, 0.0 }
 0x5de   : >> { %v15994_v8 = vpop.eup %12607  ;;  %v3038_v23 = vmul.f32 1.442695, %v2978_v6  ;;  %v2979_v7 = vsub.f32 %v15857_v60, %v2943_v5  ;;  %3116 = vadd.xlane.f32.xlu1 %v3115_v21 }
 0x5df   : >> { %v3118_v0 = vsel %vm2853_vm4, %v15994_v8, 0.0 }
 0x5e0   : >> { %v15999_v2 = vpop.eup %12609  ;;  %12615 = vpow2.f32 %v3038_v23  ;;  %v3040_v17 = vmul.f32 1.442695, %v2979_v7  ;;  %3119 = vadd.xlane.f32.xlu0 %v3118_v0 }
 0x5e1   : >> { %v3121_v37 = vsel %vm2853_vm4, %v15999_v2, 0.0 }
 0x5e2   : >> { %v16003_v63 = vpop.eup %12611  ;;  %12617 = vpow2.f32 %v3040_v17  ;;  %3122 = vadd.xlane.f32.xlu1 %v3121_v37 }
 0x5e3   : >> { %v2946_v22 = vpop.xlane.xlu0 %2945  ;;  %v3124_v60 = vsel %vm2853_vm4, %v16003_v63, 0.0 }
 0x5e4   : >> { %v16007_v57 = vpop.eup %12613  ;;  %v2980_v33 = vsub.f32 %v15863_v20, %v2946_v22  ;;  %3125 = vadd.xlane.f32.xlu0 %v3124_v60 }
 0x5e5   : >> { %v16010_v12 = vpop.xlane.xlu1 %2948  ;;  %v3127_v34 = vsel %vm2853_vm4, %v16007_v57, 0.0 }
 0x5e6   : >> { %v3042_v31 = vmul.f32 1.442695, %v2980_v33  ;;  %3128 = vadd.xlane.f32.xlu1 %v3127_v34 }
 0x5e7   : >> { %v3048_v46 = vpop.xlane.xlu0 %3047 }
 0x5e8   : >> { %12619 = vpow2.f32 %v3042_v31 }
 0x5e9   : >> { %12621 = vrcp.f32 %v3048_v46  ;;  %v3051_v50 = vpop.xlane.xlu1 %3050 }
 0x5ea   : >> { %v16014_v6 = vpop.eup %12615  ;;  %12623 = vrcp.f32 %v3051_v50 }
 0x5eb   : >> { %v3130_v5 = vsel %vm2853_vm4, %v16014_v6, 0.0 }
 0x5ec   : >> { %v16018_v21 = vpop.eup %12617  ;;  %3131 = vadd.xlane.f32.xlu0 %v3130_v5 }
 0x5ed   : >> { %v3133_v20 = vsel %vm2853_vm4, %v16018_v21, 0.0 }
 0x5ee   : >> { %v3054_v23 = vpop.xlane.xlu0 %3053  ;;  %3134 = vadd.xlane.f32.xlu1 %v3133_v20  ;;  %v19684_v20 = vmov 0.0  }
 0x5ef   : >> { %12625 = vrcp.f32 %v3054_v23 }
 0x5f0   : >> { %v3057_v7 = vpop.xlane.xlu1 %3056 }
 0x5f1   : >> { %12627 = vrcp.f32 %v3057_v7 }
 0x5f2   : >> { %v16022_v0 = vpop.eup %12619 }
 0x5f3   : >> { %v12622_v17 = vpop.eup %12621  ;;  %v3136_v37 = vsel %vm2853_vm4, %v16022_v0, 0.0 }
 0x5f4   : >> { %3137 = vadd.xlane.f32.xlu0 %v3136_v37  ;;  %v12624_v22 = vpop.eup %12623  ;;  %v3143_v60 = vmul.f32 %v12622_v17, %v15871_v1 }
 0x5f5   : >> { %v3145_v33 = vmul.f32 %v12624_v22, %v15877_v15 }
 0x5f6   : >> { %v3060_v34 = vpop.xlane.xlu0 %3059 }
 0x5f7   : >> { %12629 = vrcp.f32 %v3060_v34  ;;  %v3206_v46 = vpack.c.bf16 %v3145_v33, %v3143_v60 }
 0x5f8   : >> { %v3063_v31 = vpop.xlane.xlu1 %3062 }
 0x5f9   : >> { %v12626_v50 = vpop.eup %12625  ;;  %12631 = vrcp.f32 %v3063_v31  ;;  %11544 = vmatmul.mubr.msk.bf16.vlgmr.msra.gmra.mrb[64].mxu0 %vm2853_vm4, %v3206_v46  ;;  %v2981_v46 = vsub.f32 %v15867_v19, %v16010_v12 }
 0x5fa   : >> { %11554 = vmatpush3.bf16.msra.mxu0 %v15659_v51  ;;  %11555 = vmatprep.mubr.msk.bf16.mxu0 %vm14244_vm2, %v19684_v20  ;;  %v3147_v23 = vmul.f32 %v12626_v50, %v15883_v10 }
 0x5fb   : >> { %v12628_v5 = vpop.eup %12627  ;;  %11565 = vmatprep.subr.bf16.mxu0 %v19684_v20 }
 0x5fc   : >> { %v3149_v1 = vmul.f32 %v12628_v5, %v15887_v38 }
 0x5fe   : >> { %v3066_v15 = vpop.xlane.xlu0 %3065  ;;  %v3207_v7 = vpack.c.bf16 %v3149_v1, %v3147_v23  ;;  %v3044_v1 = vmul.f32 1.442695, %v2981_v46 }
 0x5ff   : >> { %12633 = vrcp.f32 %v3066_v15  ;;  %3999 = vrot.lane.b32.xlu1 %v15407_v56, %s14245_s27 }
 0x600   : >> { %11550 = vmatmul.mubr.msk.bf16.vlgmr.msra.gmra.mrb[96].mxu1 %vm2853_vm4, %v3207_v7  ;;  %v3069_v17 = vpop.xlane.xlu1 %3068 }
 0x601   : >> { %v12630_v37 = vpop.eup %12629  ;;  %11560 = vmatpush3.bf16.msra.mxu1 %v15657_v55  ;;  %12635 = vrcp.f32 %v3069_v17  ;;  %11561 = vmatprep.mubr.msk.bf16.mxu1 %vm14244_vm2, %v19684_v20 }
 0x602   : >> { %11571 = vmatprep.subr.bf16.mxu1 %v19684_v20  ;;  %v3151_v38 = vmul.f32 %v12630_v37, %v15893_v3 }
 0x603   : >> { %v12632_v10 = vpop.eup %12631 }
 0x604   : >> { %v3153_v22 = vmul.f32 %v12632_v10, %v15897_v26 }
 0x606   : >> { %v3072_v60 = vpop.xlane.xlu0 %3071  ;;  %v3208_v33 = vpack.c.bf16 %v3153_v22, %v3151_v38 }
 0x607   : >> { %12637 = vrcp.f32 %v3072_v60 }
 0x608   : >> { %11556 = vmatmul.mubr.msk.bf16.vlgmr.msra.gmra.mrb[68].mxu0 %vm2853_vm4, %v3208_v33  ;;  %v3075_v56 = vpop.xlane.xlu1 %3074 }
 0x609   : >> { %v12634_v34 = vpop.eup %12633  ;;  %11566 = vmatpush3.bf16.msra.mxu0 %v15667_v43  ;;  %12639 = vrcp.f32 %v3075_v56  ;;  %11567 = vmatprep.mubr.msk.bf16.mxu0 %vm14244_vm2, %v19684_v20 }
 0x60a   : >> { %3946 = vrot.lane.b32.xlu0 %v15394_v13, %s14245_s27  ;;  %11577 = vmatprep.subr.bf16.mxu0 %v19684_v20  ;;  %v3155_v26 = vmul.f32 %v12634_v34, %v15903_v24 }
 0x60b   : >> { %v12636_v3 = vpop.eup %12635 }
 0x60c   : >> { %v3157_v31 = vmul.f32 %v12636_v3, %v15907_v42 }
 0x60e   : >> { %4052 = vrot.lane.b32.xlu0 %v15417_v47, %s14245_s27  ;;  %v3078_v50 = vpop.xlane.xlu0 %3077  ;;  %v3209_v5 = vpack.c.bf16 %v3157_v31, %v3155_v26 }
 0x60f   : >> { %12641 = vrcp.f32 %v3078_v50 }
 0x610   : >> { %11562 = vmatmul.mubr.msk.bf16.vlgmr.msra.gmra.mrb[100].mxu1 %vm2853_vm4, %v3209_v5  ;;  %v3081_v23 = vpop.xlane.xlu1 %3080 }
 0x611   : >> { %v12638_v13 = vpop.eup %12637  ;;  %11572 = vmatpush3.bf16.msra.mxu1 %v15665_v48  ;;  %12643 = vrcp.f32 %v3081_v23  ;;  %11573 = vmatprep.mubr.msk.bf16.mxu1 %vm14244_vm2, %v19684_v20 }
 0x612   : >> { %4049 = vrot.lane.b32.xlu0 %v15413_v9, %s14245_s27  ;;  %11583 = vmatprep.subr.bf16.mxu1 %v19684_v20  ;;  %v3159_v19 = vmul.f32 %v12638_v13, %v15913_v18  ;;  %12645 = vpow2.f32 %v3044_v1 }
 0x613   : >> { %v12640_v47 = vpop.eup %12639 }
 0x614   : >> { %v3161_v24 = vmul.f32 %v12640_v47, %v15917_v61  ;;  %v19687_v47 = vld [vmem:[#allocation102_spill] sm:$0xff] }
 0x616   : >> { %4158 = vrot.lane.b32.xlu0 %v15443_v53, %s14245_s27  ;;  %v3084_v42 = vpop.xlane.xlu0 %3083  ;;  %v3210_v12 = vpack.c.bf16 %v3161_v24, %v3159_v19  ;;  %v19688_v19 = vld [vmem:[#allocation87_spill] sm:$0xff] }
 0x617   : >> { %12647 = vrcp.f32 %v3084_v42  ;;  %v19689_v42 = vld [vmem:[#allocation107_spill] sm:$0xff] }
 0x618   : >> { %11568 = vmatmul.mubr.msk.bf16.vlgmr.msra.gmra.mrb[72].mxu0 %vm2853_vm4, %v3210_v12  ;;  %v3087_v15 = vpop.xlane.xlu1 %3086 }
 0x619   : >> { %v12642_v7 = vpop.eup %12641  ;;  %11578 = vmatpush3.bf16.msra.mxu0 %v15675_v39  ;;  %12649 = vrcp.f32 %v3087_v15  ;;  %11579 = vmatprep.mubr.msk.bf16.mxu0 %vm14244_vm2, %v19684_v20  ;;  %v19690_v15 = vld [vmem:[#allocation79_spill] sm:$0xff] }
 0x61a   : >> { %4155 = vrot.lane.b32.xlu0 %v15438_v4, %s14245_s27  ;;  %11589 = vmatprep.subr.bf16.mxu0 %v19684_v20  ;;  %v3163_v53 = vmul.f32 %v12642_v7, %v15923_v27  ;;  %v19691_v7 = vld [vmem:[#allocation101_spill] sm:$0xff] }
 0x61b   : >> { %v12644_v9 = vpop.eup %12643 }
 0x61c   : >> { %v3165_v18 = vmul.f32 %v12644_v9, %v15927_v11  ;;  %v16079_v37 = vpop.eup %12645  ;;  %v19692_v9 = vld [vmem:[#allocation86_spill] sm:$0xff] }
 0x61e   : >> { %4264 = vrot.lane.b32.xlu0 %v15473_v62, %s14245_s27  ;;  %v3090_v61 = vpop.xlane.xlu0 %3089  ;;  %v3211_v17 = vpack.c.bf16 %v3165_v18, %v3163_v53  ;;  %v3139_v62 = vsel %vm2853_vm4, %v16079_v37, 0.0  ;;  %v19694_v18 = vld [vmem:[#allocation104_spill] sm:$0xff] }
 0x61f   : >> { %12651 = vrcp.f32 %v3090_v61  ;;  %v19695_v61 = vld [vmem:[#allocation96_spill] sm:$0xff] }
 0x620   : >> { %11574 = vmatmul.mubr.msk.bf16.vlgmr.msra.gmra.mrb[104].mxu1 %vm2853_vm4, %v3211_v17  ;;  %v3093_v10 = vpop.xlane.xlu1 %3092  ;;  %v19696_v17 = vld [vmem:[#allocation80_spill] sm:$0xff] }
 0x621   : >> { %v12648_v38 = vpop.eup %12647  ;;  %11584 = vmatpush3.bf16.msra.mxu1 %v15673_v28  ;;  %12653 = vrcp.f32 %v3093_v10  ;;  %11585 = vmatprep.mubr.msk.bf16.mxu1 %vm14244_vm2, %v19684_v20  ;;  %v19697_v10 = vld [vmem:[#allocation95_spill] sm:$0xff] }
 0x622   : >> { %4261 = vrot.lane.b32.xlu0 %v15468_v25, %s14245_s27  ;;  %v3096_v4 = vpop.xlane.xlu0 %3095  ;;  %11595 = vmatprep.subr.bf16.mxu1 %v19684_v20  ;;  %v3167_v11 = vmul.f32 %v12648_v38, %v15934_v49  ;;  %v19698_v38 = vld [vmem:[#allocation83_spill] sm:$0xff] }
 0x623   : >> { %v12650_v27 = vpop.eup %12649  ;;  %12655 = vrcp.f32 %v3096_v4  ;;  %3140 = vadd.xlane.f32.xlu1 %v3139_v62  ;;  %v19699_v4 = vld [vmem:[#allocation100_spill] sm:$0xff]  ;;  %v19700_v62 = vld [vmem:[#allocation82_spill] sm:$0xff] }
 0x624   : >> { %v3169_v22 = vmul.f32 %v12650_v27, %v15939_v16  ;;  %v3099_v60 = vpop.xlane.xlu1 %3098  ;;  %v19701_v27 = vld [vmem:[#allocation85_spill] sm:$0xff] }
 0x625   : >> { %12657 = vrcp.f32 %v3099_v60  ;;  %v19704_v60 = vld [vmem:[#allocation88_spill] sm:$0xff] }
 0x626   : >> { %4370 = vrot.lane.b32.xlu0 %v15510_v44, %s14245_s27  ;;  %v3102_v33 = vpop.xlane.xlu0 %3101  ;;  %v3212_v25 = vpack.c.bf16 %v3169_v22, %v3167_v11  ;;  %v19702_v11 = vld [vmem:[#allocation84_spill] sm:$0xff]  ;;  %v19703_v22 = vld [vmem:[#allocation89_spill] sm:$0xff] }
 0x627   : >> { %12659 = vrcp.f32 %v3102_v33  ;;  %v19706_v33 = vld [vmem:[#allocation91_spill] sm:$0xff] }
 0x628   : >> { %11580 = vmatmul.mubr.msk.bf16.vlgmr.msra.gmra.mrb[76].mxu0 %vm2853_vm4, %v3212_v25  ;;  %v3105_v56 = vpop.xlane.xlu1 %3104  ;;  %v19708_v25 = vld [vmem:[#allocation93_spill] sm:$0xff] }
 0x629   : >> { %v12652_v34 = vpop.eup %12651  ;;  %11590 = vmatpush3.bf16.msra.mxu0 %v15683_v32  ;;  %12661 = vrcp.f32 %v3105_v56  ;;  %11591 = vmatprep.mubr.msk.bf16.mxu0 %vm14244_vm2, %v19684_v20 }
 0x62a   : >> { %4367 = vrot.lane.b32.xlu0 %v15506_v54, %s14245_s27  ;;  %v3108_v49 = vpop.xlane.xlu0 %3107  ;;  %11601 = vmatprep.subr.bf16.mxu0 %v19684_v20  ;;  %v3171_v16 = vmul.f32 %v12652_v34, %v15946_v41  ;;  %v19685_v41 = vld [vmem:[#allocation90_spill] sm:$0xff] }
 0x62b   : >> { %v12654_v44 = vpop.eup %12653  ;;  %12663 = vrcp.f32 %v3108_v49  ;;  %v19709_v34 = vld [vmem:[#allocation98_spill] sm:$0xff] }
 0x62c   : >> { %v3173_v3 = vmul.f32 %v12654_v44, %v15951_v30  ;;  %v3111_v26 = vpop.xlane.xlu1 %3110 }
 0x62d   : >> { %v12656_v31 = vpop.eup %12655  ;;  %12665 = vrcp.f32 %v3111_v26 }
 0x62e   : >> { %4476 = vrot.lane.b32.xlu0 %v15547_v40, %s14245_s27  ;;  %v3213_v46 = vpack.c.bf16 %v3173_v3, %v3171_v16  ;;  %v3175_v5 = vmul.f32 %v12656_v31, %v15955_v45  ;;  %v19710_v16 = vld [vmem:[#allocation97_spill] sm:$0xff] }
 0x62f   : >> { %v12658_v50 = vpop.eup %12657 }
 0x630   : >> { %v3177_v54 = vmul.f32 %v12658_v50, %v15959_v29  ;;  %11586 = vmatmul.mubr.msk.bf16.vlgmr.msra.gmra.mrb[108].mxu1 %vm2853_vm4, %v3213_v46  ;;  %v19686_v29 = vld [vmem:[#allocation78_spill] sm:$0xff]  ;;  %v19711_v46 = vld [vmem:[#allocation99_spill] sm:$0xff] }
 0x631   : >> { %v12660_v23 = vpop.eup %12659  ;;  %11596 = vmatpush3.bf16.msra.mxu1 %v15681_v59  ;;  %11597 = vmatprep.mubr.msk.bf16.mxu1 %vm14244_vm2, %v19684_v20 }
 0x632   : >> { %4473 = vrot.lane.b32.xlu0 %v19685_v41, %s14245_s27  ;;  %v3214_v30 = vpack.c.bf16 %v3177_v54, %v3175_v5  ;;  %11607 = vmatprep.subr.bf16.mxu1 %v19684_v20  ;;  %v3179_v13 = vmul.f32 %v12660_v23, %v15963_v58 }
 0x633   : >> { %v12662_v40 = vpop.eup %12661 }
 0x634   : >> { %v3181_v45 = vmul.f32 %v12662_v40, %v15967_v52  ;;  %3943 = vrot.lane.b32.xlu1 %v19686_v29, %s14245_s27  ;;  %11592 = vmatmul.mubr.msk.bf16.vlgmr.msra.gmra.mrb[80].mxu0 %vm2853_vm4, %v3214_v30 }
 0x635   : >> { %v12664_v1 = vpop.eup %12663  ;;  %11602 = vmatpush3.bf16.msra.mxu0 %v19687_v47  ;;  %11603 = vmatprep.mubr.msk.bf16.mxu0 %vm14244_vm2, %v19684_v20 }
 0x636   : >> { %4582 = vrot.lane.b32.xlu0 %v19688_v19, %s14245_s27  ;;  %v3215_v24 = vpack.c.bf16 %v3181_v45, %v3179_v13  ;;  %11613 = vmatprep.subr.bf16.mxu0 %v19684_v20  ;;  %v3183_v52 = vmul.f32 %v12664_v1, %v15971_v14  ;;  %v19693_v14 = vld [vmem:[#allocation81_spill] sm:$0xff]  ;;  %v19712_v19 = vld [vmem:[#allocation103_spill] sm:$0xff] }
 0x637   : >> { %v12666_v58 = vpop.eup %12665 }
 0x638   : >> { %v3185_v12 = vmul.f32 %v12666_v58, %v19689_v42  ;;  %3996 = vrot.lane.b32.xlu1 %v19690_v15, %s14245_s27  ;;  %11598 = vmatmul.mubr.msk.bf16.vlgmr.msra.gmra.mrb[112].mxu1 %vm2853_vm4, %v3215_v24 }
 0x639   : >> { %11608 = vmatpush3.bf16.msra.mxu1 %v19691_v7  ;;  %11609 = vmatprep.mubr.msk.bf16.mxu1 %vm14244_vm2, %v19684_v20 }
 0x63a   : >> { %4579 = vrot.lane.b32.xlu0 %v19692_v9, %s14245_s27  ;;  %v3216_v53 = vpack.c.bf16 %v3185_v12, %v3183_v52  ;;  %11619 = vmatprep.subr.bf16.mxu1 %v19684_v20 }
 0x63c   : >> { %4105 = vrot.lane.b32.xlu1 %v19693_v14, %s14245_s27  ;;  %11604 = vmatmul.mubr.msk.bf16.vlgmr.msra.gmra.mrb[84].mxu0 %vm2853_vm4, %v3216_v53 }
 0x63d   : >> { %11614 = vmatpush3.bf16.msra.mxu0 %v19694_v18  ;;  %11615 = vmatprep.mubr.msk.bf16.mxu0 %vm14244_vm2, %v19684_v20 }
 0x63e   : >> { %4688 = vrot.lane.b32.xlu0 %v19695_v61, %s14245_s27  ;;  %11625 = vmatprep.subr.bf16.mxu0 %v19684_v20 }
 0x640   : >> { %4102 = vrot.lane.b32.xlu1 %v19696_v17, %s14245_s27 }
 0x642   : >> { %4685 = vrot.lane.b32.xlu0 %v19697_v10, %s14245_s27 }
 0x644   : >> { %4211 = vrot.lane.b32.xlu1 %v19698_v38, %s14245_s27 }
 0x646   : >> { %5223 = vrot.lane.b32.xlu0 %v19699_v4, %s14245_s27 }
 0x648   : >> { %4208 = vrot.lane.b32.xlu1 %v19700_v62, %s14245_s27 }
 0x64a   : >> { %5319 = vrot.lane.b32.xlu0 %v15659_v51, %s14245_s27  ;;  %v19705_v51 = vld [vmem:[#allocation92_spill] sm:$0xff] }
 0x64c   : >> { %4317 = vrot.lane.b32.xlu1 %v19701_v27, %s14245_s27 }
 0x64e   : >> { %5415 = vrot.lane.b32.xlu0 %v15667_v43, %s14245_s27  ;;  %v19707_v43 = vld [vmem:[#allocation94_spill] sm:$0xff] }
 0x650   : >> { %4314 = vrot.lane.b32.xlu1 %v19702_v11, %s14245_s27 }
 0x652   : >> { %5511 = vrot.lane.b32.xlu0 %v15675_v39, %s14245_s27 }
 0x654   : >> { %4423 = vrot.lane.b32.xlu1 %v19703_v22, %s14245_s27 }
 0x658   : >> { %4420 = vrot.lane.b32.xlu1 %v19704_v60, %s14245_s27 }
 0x65c   : >> { %4529 = vrot.lane.b32.xlu1 %v19705_v51, %s14245_s27 }
 0x660   : >> { %4526 = vrot.lane.b32.xlu1 %v19706_v33, %s14245_s27 }
 0x664   : >> { %4635 = vrot.lane.b32.xlu1 %v19707_v43, %s14245_s27 }
 0x668   : >> { %4632 = vrot.lane.b32.xlu1 %v19708_v25, %s14245_s27 }
 0x669   : >> { %v3114_v56 = vpop.xlane.xlu0 %3113 }
 0x66a   : >> { %12667 = vrcp.f32 %v3114_v56 }
 0x66b   : >> { %v3117_v39 = vpop.xlane.xlu1 %3116 }
 0x66c   : >> { %12669 = vrcp.f32 %v3117_v39  ;;  %4741 = vrot.lane.b32.xlu1 %v19709_v34, %s14245_s27 }
 0x66d   : >> { %v3120_v49 = vpop.xlane.xlu0 %3119 }
 0x66e   : >> { %12671 = vrcp.f32 %v3120_v49 }
 0x66f   : >> { %v3123_v44 = vpop.xlane.xlu1 %3122 }
 0x670   : >> { %12673 = vrcp.f32 %v3123_v44  ;;  %4738 = vrot.lane.b32.xlu1 %v19710_v16, %s14245_s27 }
 0x671   : >> { %v3126_v3 = vpop.xlane.xlu0 %3125 }
 0x672   : >> { %12675 = vrcp.f32 %v3126_v3 }
 0x673   : >> { %v3129_v26 = vpop.xlane.xlu1 %3128 }
 0x674   : >> { %v12668_v31 = vpop.eup %12667  ;;  %12677 = vrcp.f32 %v3129_v26  ;;  %5271 = vrot.lane.b32.xlu1 %v19711_v46, %s14245_s27 }
 0x675   : >> { %v3187_v5 = vmul.f32 %v12668_v31, %v15985_v36 }
 0x676   : >> { %v12670_v50 = vpop.eup %12669 }
 0x677   : >> { %v3189_v54 = vmul.f32 %v12670_v50, %v15989_v35 }
 0x678   : >> { %v12672_v23 = vpop.eup %12671  ;;  %5367 = vrot.lane.b32.xlu1 %v15657_v55, %s14245_s27 }
 0x679   : >> { %v3132_v41 = vpop.xlane.xlu0 %3131  ;;  %v3217_v30 = vpack.c.bf16 %v3189_v54, %v3187_v5  ;;  %v3191_v13 = vmul.f32 %v12672_v23, %v15994_v8 }
 0x67a   : >> { %v12674_v40 = vpop.eup %12673  ;;  %12679 = vrcp.f32 %v3132_v41 }
 0x67b   : >> { %v3193_v45 = vmul.f32 %v12674_v40, %v15999_v2  ;;  %11610 = vmatmul.mubr.msk.bf16.vlgmr.msra.gmra.mrb[116].mxu1 %vm2853_vm4, %v3217_v30  ;;  %v3135_v29 = vpop.xlane.xlu1 %3134  ;;  %v19713_v2 = vld [vmem:[#allocation106_spill] sm:$0xff] }
 0x67c   : >> { %v12676_v1 = vpop.eup %12675  ;;  %11620 = vmatpush3.bf16.msra.mxu1 %v19712_v19  ;;  %12681 = vrcp.f32 %v3135_v29  ;;  %5463 = vrot.lane.b32.xlu1 %v15665_v48, %s14245_s27 }
 0x67d   : >> { %v3218_v36 = vpack.c.bf16 %v3193_v45, %v3191_v13  ;;  %11621 = vmatprep.mubr.msk.bf16.mxu1 %vm14244_vm2, %v19684_v20  ;;  %11631 = vmatprep.subr.bf16.mxu1 %v19684_v20  ;;  %v3195_v35 = vmul.f32 %v12676_v1, %v16003_v63  ;;  %v19714_v63 = vld [vmem:[#allocation105_spill] sm:$0xff] }
 0x67e   : >> { %v12678_v55 = vpop.eup %12677 }
 0x67f   : >> { %v3197_v8 = vmul.f32 %v12678_v55, %v16007_v57  ;;  %11616 = vmatmul.mubr.msk.bf16.vlgmr.msra.gmra.mrb[88].mxu0 %vm2853_vm4, %v3218_v36  ;;  %v4000_v17 = vpop.permute.xlu1 %3999 }
 0x680   : >> { %11626 = vmatpush3.bf16.msra.mxu0 %v19713_v2  ;;  %5559 = vrot.lane.b32.xlu1 %v15673_v28, %s14245_s27  ;;  %v4005_v56 = vsel %vm2036_vm3, %v4000_v17, 0 }
 0x681   : >> { %v3219_v24 = vpack.c.bf16 %v3197_v8, %v3195_v35  ;;  %11627 = vmatprep.mubr.msk.bf16.mxu0 %vm14244_vm2, %v19684_v20  ;;  %11637 = vmatprep.subr.bf16.mxu0 %v19684_v20  ;;  %v3138_v48 = vpop.xlane.xlu0 %3137 }
 0x682   : >> { %12683 = vrcp.f32 %v3138_v48 }
 0x683   : >> { %11622 = vmatmul.mubr.msk.bf16.vlgmr.msra.gmra.mrb[120].mxu1 %vm2853_vm4, %v3219_v24 }
 0x684   : >> { %v12680_v58 = vpop.eup %12679  ;;  %11632 = vmatpush3.bf16.msra.mxu1 %v19714_v63  ;;  %11633 = vmatprep.mubr.msk.bf16.mxu1 %vm14244_vm2, %v19684_v20 }
 0x685   : >> { %11643 = vmatprep.subr.bf16.mxu1 %v19684_v20  ;;  %v3199_v28 = vmul.f32 %v12680_v58, %v16014_v6  ;;  %v3947_v42 = vpop.permute.xlu0 %3946 }
 0x686   : >> { %v12682_v57 = vpop.eup %12681  ;;  %v3952_v15 = vsel %vm2036_vm3, %v3947_v42, 0 }
 0x687   : >> { %v3201_v52 = vmul.f32 %v12682_v57, %v16018_v21 }
 0x689   : >> { %v3220_v12 = vpack.c.bf16 %v3201_v52, %v3199_v28  ;;  %v4053_v9 = vpop.permute.xlu0 %4052 }
 0x68a   : >> { %v4058_v38 = vsel %vm2036_vm3, %v4053_v9, 0 }
 0x68b   : >> { %11628 = vmatmul.mubr.msk.bf16.vlgmr.msra.gmra.mrb[92].mxu0 %vm2853_vm4, %v3220_v12 }
 0x68c   : >> { %11638 = vmatpush3.bf16.xpose.msra.mxu0 %v3952_v15  ;;  %11639 = vmatprep.mubr.msk.bf16.mxu0 %vm14244_vm2, %v19684_v20  ;;  %v12684_v27 = vpop.eup %12683 }
 0x68d   : >> { %11649 = vmatprep.subr.bf16.mxu0 %v19684_v20  ;;  %v4050_v53 = vpop.permute.xlu0 %4049  ;;  %v3203_v22 = vmul.f32 %v12684_v27, %v16022_v0 }
 0x691   : >> { %v4159_v14 = vpop.permute.xlu0 %4158 }
 0x692   : >> { %v4164_v33 = vsel %vm2036_vm3, %v4159_v14, 0 }
 0x695   : >> { %v4156_v61 = vpop.permute.xlu0 %4155 }
 0x699   : >> { %v4265_v21 = vpop.permute.xlu0 %4264 }
 0x69a   : >> { %v4270_v34 = vsel %vm2036_vm3, %v4265_v21, 0 }
 0x69d   : >> { %v4262_v4 = vpop.permute.xlu0 %4261 }
 0x6a1   : >> { %v4371_v43 = vpop.permute.xlu0 %4370 }
 0x6a2   : >> { %v4376_v26 = vsel %vm2036_vm3, %v4371_v43, 0 }
 0x6b0   : >> { %v3141_v6 = vpop.xlane.xlu1 %3140 }
 0x6b1   : >> { %12685 = vrcp.f32 %v3141_v6 }
 0x6b4   : >> { %v3944_v10 = vpop.permute.xlu1 %3943 }
 0x6b5   : >> { %11640 = vmatmul.mubr.msk.bf16.vlgmr.msra.gmra.mrb[96].mxu0 %vm2036_vm3, %v3944_v10 }
 0x6b6   : >> { %11650 = vmatpush3.bf16.xpose.msra.mxu0 %v4058_v38  ;;  %11651 = vmatprep.mubr.msk.bf16.mxu0 %vm14244_vm2, %v19684_v20 }
 0x6b7   : >> { %11661 = vmatprep.subr.bf16.mxu0 %v19684_v20 }
 0x6b8   : >> { %v3997_v62 = vpop.permute.xlu1 %3996 }
 0x6bb   : >> { %v12686_v11 = vpop.eup %12685 }
 0x6bc   : >> { %v3205_v60 = vmul.f32 %v12686_v11, %v16079_v37  ;;  %v4106_v51 = vpop.permute.xlu1 %4105  ;;  %v4368_v37 = vpop.permute.xlu0 %4367 }
 0x6bd   : >> { %11652 = vmatmul.mubr.msk.bf16.vlgmr.msra.gmra.mrb[100].mxu0 %vm2036_vm3, %v4050_v53  ;;  %v4111_v49 = vsel %vm2036_vm3, %v4106_v51, 0 }
 0x6be   : >> { %11662 = vmatpush3.bf16.xpose.msra.mxu0 %v4164_v33  ;;  %v3221_v25 = vpack.c.bf16 %v3205_v60, %v3203_v22  ;;  %11663 = vmatprep.mubr.msk.bf16.mxu0 %vm14244_vm2, %v19684_v20 }
 0x6bf   : >> { %11673 = vmatprep.subr.bf16.mxu0 %v19684_v20 }
 0x6c0   : >> { %11634 = vmatmul.mubr.msk.bf16.vlgmr.msra.gmra.mrb[124].mxu1 %vm2853_vm4, %v3221_v25  ;;  %v4103_v0 = vpop.permute.xlu1 %4102  ;;  %v4477_v16 = vpop.permute.xlu0 %4476 }
 0x6c1   : >> { %11644 = vmatpush3.bf16.xpose.msra.mxu1 %v4005_v56  ;;  %11645 = vmatprep.mubr.msk.bf16.mxu1 %vm14244_vm2, %v19684_v20  ;;  %v4482_v29 = vsel %vm2036_vm3, %v4477_v16, 0 }
 0x6c2   : >> { %11655 = vmatprep.subr.bf16.mxu1 %v19684_v20 }
 0x6c4   : >> { %v4212_v39 = vpop.permute.xlu1 %4211  ;;  %v4474_v50 = vpop.permute.xlu0 %4473 }
 0x6c5   : >> { %11664 = vmatmul.mubr.msk.bf16.vlgmr.msra.gmra.mrb[104].mxu0 %vm2036_vm3, %v4156_v61  ;;  %v4217_v54 = vsel %vm2036_vm3, %v4212_v39, 0 }
 0x6c6   : >> { %11674 = vmatpush3.bf16.xpose.msra.mxu0 %v4270_v34  ;;  %11675 = vmatprep.mubr.msk.bf16.mxu0 %vm14244_vm2, %v19684_v20 }
 0x6c7   : >> { %11685 = vmatprep.subr.bf16.mxu0 %v19684_v20 }
 0x6c8   : >> { %11646 = vmatmul.mubr.msk.bf16.vlgmr.msra.gmra.mrb[128].mxu1 %vm2036_vm3, %v3997_v62  ;;  %v4209_v44 = vpop.permute.xlu1 %4208  ;;  %v4583_v1 = vpop.permute.xlu0 %4582 }
 0x6c9   : >> { %11656 = vmatpush3.bf16.xpose.msra.mxu1 %v4111_v49  ;;  %11657 = vmatprep.mubr.msk.bf16.mxu1 %vm14244_vm2, %v19684_v20  ;;  %v4588_v52 = vsel %vm2036_vm3, %v4583_v1, 0 }
 0x6ca   : >> { %11667 = vmatprep.subr.bf16.mxu1 %v19684_v20 }
 0x6cc   : >> { %v4318_v3 = vpop.permute.xlu1 %4317  ;;  %v16245_v31 = vpop.f32.mrb[64].mxu0 }
 0x6cd   : >> { %19715 = vst [vmem:[#allocation90_spill] sm:$0xff] %v16245_v31  ;;  %11676 = vmatmul.mubr.msk.bf16.vlgmr.msra.gmra.mrb[108].mxu0 %vm2036_vm3, %v4262_v4  ;;  %v11545_v46 = vpop.f32.mrb[65].mxu0  ;;  %v4323_v8 = vsel %vm2036_vm3, %v4318_v3, 0  ;;  %v4580_v48 = vpop.permute.xlu0 %4579 }
 0x6ce   : >> { %11686 = vmatpush3.bf16.xpose.msra.mxu0 %v4376_v26  ;;  %11687 = vmatprep.mubr.msk.bf16.mxu0 %vm14244_vm2, %v19684_v20  ;;  %v16250_v5 = vpop.f32.mrb[66].mxu0 }
 0x6cf   : >> { %19716 = vst [vmem:[#allocation78_spill] sm:$0xff] %v16250_v5  ;;  %11697 = vmatprep.subr.bf16.mxu0 %v19684_v20  ;;  %v11546_v41 = vpop.f32.mrb[67].mxu0 }
 0x6d0   : >> { %11658 = vmatmul.mubr.msk.bf16.vlgmr.msra.gmra.mrb[132].mxu1 %vm2036_vm3, %v4103_v0  ;;  %v4315_v30 = vpop.permute.xlu1 %4314 }
 0x6d1   : >> { %11668 = vmatpush3.bf16.xpose.msra.mxu1 %v4217_v54  ;;  %11669 = vmatprep.mubr.msk.bf16.mxu1 %vm14244_vm2, %v19684_v20  ;;  %v4689_v53 = vpop.permute.xlu0 %4688 }
 0x6d2   : >> { %11679 = vmatprep.subr.bf16.mxu1 %v19684_v20  ;;  %v4694_v6 = vsel %vm2036_vm3, %v4689_v53, 0 }
 0x6d3   : >> { %v16260_v40 = vpop.f32.mrb[96].mxu1 }
 0x6d4   : >> { %19717 = vst [vmem:[#allocation102_spill] sm:$0xff] %v16260_v40  ;;  %v4424_v13 = vpop.permute.xlu1 %4423  ;;  %v11551_v45 = vpop.f32.mrb[97].mxu1 }
 0x6d5   : >> { %v16263_v36 = vpop.f32.mrb[98].mxu1  ;;  %11688 = vmatmul.mubr.msk.bf16.vlgmr.msra.gmra.mrb[112].mxu0 %vm2036_vm3, %v4368_v37  ;;  %v4429_v9 = vsel %vm2036_vm3, %v4424_v13, 0  ;;  %v4686_v4 = vpop.permute.xlu0 %4685 }
 0x6d6   : >> { %19718 = vst [vmem:[#allocation87_spill] sm:$0xff] %v16263_v36  ;;  %11698 = vmatpush3.bf16.xpose.msra.mxu0 %v4482_v29  ;;  %v11552_v35 = vpop.f32.mrb[99].mxu1  ;;  %11699 = vmatprep.mubr.msk.bf16.mxu0 %vm14244_vm2, %v19684_v20 }
 0x6d7   : >> { %11709 = vmatprep.subr.bf16.mxu0 %v19684_v20 }
 0x6d8   : >> { %11670 = vmatmul.mubr.msk.bf16.vlgmr.msra.gmra.mrb[136].mxu1 %vm2036_vm3, %v4209_v44  ;;  %v4421_v24 = vpop.permute.xlu1 %4420 }
 0x6d9   : >> { %11680 = vmatpush3.bf16.xpose.msra.mxu1 %v4323_v8  ;;  %11681 = vmatprep.mubr.msk.bf16.mxu1 %vm14244_vm2, %v19684_v20  ;;  %v5224_v60 = vpop.permute.xlu0 %5223 }
 0x6da   : >> { %11691 = vmatprep.subr.bf16.mxu1 %v19684_v20 }
 0x6db   : >> { %v16276_v58 = vpop.f32.mrb[68].mxu0 }
 0x6dc   : >> { %19719 = vst [vmem:[#allocation107_spill] sm:$0xff] %v16276_v58  ;;  %v11557_v57 = vpop.f32.mrb[69].mxu0  ;;  %v4530_v28 = vpop.permute.xlu1 %4529 }
 0x6dd   : >> { %v16279_v42 = vpop.f32.mrb[70].mxu0  ;;  %11700 = vmatmul.mubr.msk.bf16.vlgmr.msra.gmra.mrb[116].mxu0 %vm2036_vm3, %v4474_v50  ;;  %v4535_v62 = vsel %vm2036_vm3, %v4530_v28, 0 }
 0x6de   : >> { %19720 = vst [vmem:[#allocation79_spill] sm:$0xff] %v16279_v42  ;;  %11710 = vmatpush3.bf16.xpose.msra.mxu0 %v4588_v52  ;;  %v11558_v15 = vpop.f32.mrb[71].mxu0  ;;  %11711 = vmatprep.mubr.msk.bf16.mxu0 %vm14244_vm2, %v19684_v20 }
 0x6df   : >> { %11721 = vmatprep.subr.bf16.mxu0 %v19684_v20 }
 0x6e0   : >> { %11682 = vmatmul.mubr.msk.bf16.vlgmr.msra.gmra.mrb[140].mxu1 %vm2036_vm3, %v4315_v30  ;;  %v4527_v14 = vpop.permute.xlu1 %4526 }
 0x6e1   : >> { %11692 = vmatpush3.bf16.xpose.msra.mxu1 %v4429_v9  ;;  %11693 = vmatprep.mubr.msk.bf16.mxu1 %vm14244_vm2, %v19684_v20 }
 0x6e2   : >> { %11703 = vmatprep.subr.bf16.mxu1 %v19684_v20 }
 0x6e3   : >> { %v16292_v61 = vpop.f32.mrb[100].mxu1 }
 0x6e4   : >> { %19721 = vst [vmem:[#allocation101_spill] sm:$0xff] %v16292_v61  ;;  %v11563_v17 = vpop.f32.mrb[101].mxu1  ;;  %v4636_v27 = vpop.permute.xlu1 %4635 }
 0x6e5   : >> { %v16295_v21 = vpop.f32.mrb[102].mxu1  ;;  %11712 = vmatmul.mubr.msk.bf16.vlgmr.msra.gmra.mrb[120].mxu0 %vm2036_vm3, %v4580_v48  ;;  %v4641_v56 = vsel %vm2036_vm3, %v4636_v27, 0 }
 0x6e6   : >> { %19722 = vst [vmem:[#allocation86_spill] sm:$0xff] %v16295_v21  ;;  %11722 = vmatpush3.bf16.xpose.msra.mxu0 %v4694_v6  ;;  %v11564_v38 = vpop.f32.mrb[103].mxu1  ;;  %11723 = vmatprep.mubr.msk.bf16.mxu0 %vm14244_vm2, %v19684_v20 }
 0x6e7   : >> { %11733 = vmatprep.subr.bf16.mxu0 %v19684_v20 }
 0x6e8   : >> { %11694 = vmatmul.mubr.msk.bf16.vlgmr.msra.gmra.mrb[144].mxu1 %vm2036_vm3, %v4421_v24  ;;  %v4633_v33 = vpop.permute.xlu1 %4632 }
 0x6e9   : >> { %11704 = vmatpush3.bf16.xpose.msra.mxu1 %v4535_v62  ;;  %11705 = vmatprep.mubr.msk.bf16.mxu1 %vm14244_vm2, %v19684_v20 }
 0x6ea   : >> { %11715 = vmatprep.subr.bf16.mxu1 %v19684_v20 }
 0x6eb   : >> { %v16308_v11 = vpop.f32.mrb[72].mxu0 }
 0x6ec   : >> { %19723 = vst [vmem:[#allocation81_spill] sm:$0xff] %v16308_v11  ;;  %v11569_v22 = vpop.f32.mrb[73].mxu0  ;;  %v4742_v37 = vpop.permute.xlu1 %4741 }
 0x6ed   : >> { %v16310_v51 = vpop.f32.mrb[74].mxu0  ;;  %11724 = vmatmul.mubr.msk.bf16.vlgmr.msra.gmra.mrb[124].mxu0 %vm2036_vm3, %v4686_v4  ;;  %v4747_v16 = vsel %vm2036_vm3, %v4742_v37, 0 }
 0x6ee   : >> { %19724 = vst [vmem:[#allocation104_spill] sm:$0xff] %v16310_v51  ;;  %11734 = vmatpush3.bf16.msra.mxu0 %v5224_v60  ;;  %v11570_v25 = vpop.f32.mrb[75].mxu0  ;;  %11735 = vmatprep.mubr.msk.bf16.mxu0 %vm14244_vm2, %v19684_v20 }
 0x6ef   : >> { %11745 = vmatprep.subr.bf16.mxu0 %v19684_v20 }
 0x6f0   : >> { %11706 = vmatmul.mubr.msk.bf16.vlgmr.msra.gmra.mrb[148].mxu1 %vm2036_vm3, %v4527_v14  ;;  %v4739_v3 = vpop.permute.xlu1 %4738 }
 0x6f1   : >> { %11716 = vmatpush3.bf16.xpose.msra.mxu1 %v4641_v56  ;;  %11717 = vmatprep.mubr.msk.bf16.mxu1 %vm14244_vm2, %v19684_v20 }
 0x6f2   : >> { %11727 = vmatprep.subr.bf16.mxu1 %v19684_v20 }
 0x6f3   : >> { %v16323_v0 = vpop.f32.mrb[104].mxu1 }
 0x6f4   : >> { %19725 = vst [vmem:[#allocation96_spill] sm:$0xff] %v16323_v0  ;;  %v11575_v39 = vpop.f32.mrb[105].mxu1  ;;  %v5272_v30 = vpop.permute.xlu1 %5271 }
 0x6f5   : >> { %v16325_v34 = vpop.f32.mrb[106].mxu1 }
 0x6f6   : >> { %19726 = vst [vmem:[#allocation80_spill] sm:$0xff] %v16325_v34  ;;  %v11576_v44 = vpop.f32.mrb[107].mxu1 }
 0x6f8   : >> { %11718 = vmatmul.mubr.msk.bf16.vlgmr.msra.gmra.mrb[152].mxu1 %vm2036_vm3, %v4633_v33 }
 0x6f9   : >> { %11728 = vmatpush3.bf16.xpose.msra.mxu1 %v4747_v16  ;;  %11729 = vmatprep.mubr.msk.bf16.mxu1 %vm14244_vm2, %v19684_v20 }
 0x6fa   : >> { %11739 = vmatprep.subr.bf16.mxu1 %v19684_v20 }
 0x6fb   : >> { %v16334_v26 = vpop.f32.mrb[76].mxu0 }
 0x6fc   : >> { %19727 = vst [vmem:[#allocation95_spill] sm:$0xff] %v16334_v26  ;;  %v11581_v46 = vpop.f32.mrb[77].mxu0 }
 0x6fd   : >> { %v16336_v50 = vpop.f32.mrb[78].mxu0 }
 0x6fe   : >> { %19728 = vst [vmem:[#allocation83_spill] sm:$0xff] %v16336_v50  ;;  %v11582_v41 = vpop.f32.mrb[79].mxu0 }
 0x700   : >> { %11730 = vmatmul.mubr.msk.bf16.vlgmr.msra.gmra.mrb[156].mxu1 %vm2036_vm3, %v4739_v3 }
 0x701   : >> { %11740 = vmatpush3.bf16.msra.mxu1 %v5272_v30  ;;  %11741 = vmatprep.mubr.msk.bf16.mxu1 %vm14244_vm2, %v19684_v20  ;;  %v19746_v30 = vld [vmem:[#allocation45_spill] sm:$0xff] }
 0x702   : >> { %11751 = vmatprep.subr.bf16.mxu1 %v19684_v20 }
 0x703   : >> { %v16344_v13 = vpop.f32.mrb[108].mxu1 }
 0x704   : >> { %19729 = vst [vmem:[#allocation100_spill] sm:$0xff] %v16344_v13  ;;  %v11587_v45 = vpop.f32.mrb[109].mxu1 }
 0x705   : >> { %v16346_v29 = vpop.f32.mrb[110].mxu1 }
 0x706   : >> { %19730 = vst [vmem:[#allocation82_spill] sm:$0xff] %v16346_v29  ;;  %v11588_v35 = vpop.f32.mrb[111].mxu1 }
 0x707   : >> { %v16350_v8 = vpop.f32.mrb[80].mxu0 }
 0x708   : >> { %19731 = vst [vmem:[#allocation85_spill] sm:$0xff] %v16350_v8  ;;  %v11593_v24 = vpop.f32.mrb[81].mxu0 }
 0x709   : >> { %v16352_v48 = vpop.f32.mrb[82].mxu0 }
 0x70a   : >> { %19732 = vst [vmem:[#allocation84_spill] sm:$0xff] %v16352_v48  ;;  %v11594_v28 = vpop.f32.mrb[83].mxu0 }
 0x70b   : >> { %v16356_v52 = vpop.f32.mrb[112].mxu1 }
 0x70c   : >> { %19733 = vst [vmem:[#allocation89_spill] sm:$0xff] %v16356_v52  ;;  %v11599_v15 = vpop.f32.mrb[113].mxu1 }
 0x70d   : >> { %v16358_v9 = vpop.f32.mrb[114].mxu1 }
 0x70e   : >> { %19734 = vst [vmem:[#allocation88_spill] sm:$0xff] %v16358_v9  ;;  %v11600_v14 = vpop.f32.mrb[115].mxu1 }
 0x70f   : >> { %v16362_v17 = vpop.f32.mrb[84].mxu0 }
 0x710   : >> { %19735 = vst [vmem:[#allocation92_spill] sm:$0xff] %v16362_v17  ;;  %v11605_v6 = vpop.f32.mrb[85].mxu0 }
 0x711   : >> { %v16364_v38 = vpop.f32.mrb[86].mxu0 }
 0x712   : >> { %19736 = vst [vmem:[#allocation91_spill] sm:$0xff] %v16364_v38  ;;  %v11606_v62 = vpop.f32.mrb[87].mxu0 }
 0x74e   : >> { %v16368_v27 = vpop.f32.mrb[116].mxu1 }
 0x74f   : >> { %19737 = vst [vmem:[#allocation94_spill] sm:$0xff] %v16368_v27  ;;  %v11611_v22 = vpop.f32.mrb[117].mxu1 }
 0x750   : >> { %v16370_v60 = vpop.f32.mrb[118].mxu1 }
 0x751   : >> { %19738 = vst [vmem:[#allocation93_spill] sm:$0xff] %v16370_v60  ;;  %v11612_v25 = vpop.f32.mrb[119].mxu1 }
 0x752   : >> { %v16374_v56 = vpop.f32.mrb[88].mxu0 }
 0x753   : >> { %19739 = vst [vmem:[#allocation98_spill] sm:$0xff] %v16374_v56  ;;  %v11617_v37 = vpop.f32.mrb[89].mxu0 }
 0x754   : >> { %v16376_v39 = vpop.f32.mrb[90].mxu0  ;;  %v19745_v37 = vld [vmem:[#allocation44_spill] sm:$0xff] }
 0x755   : >> { %19740 = vst [vmem:[#allocation97_spill] sm:$0xff] %v16376_v39  ;;  %v11618_v16 = vpop.f32.mrb[91].mxu0 }
 0x756   : >> { %v16380_v3 = vpop.f32.mrb[120].mxu1 }
 0x757   : >> { %19741 = vst [vmem:[#allocation99_spill] sm:$0xff] %v16380_v3  ;;  %v11623_v46 = vpop.f32.mrb[121].mxu1 }
 0x758   : >> { %v16382_v41 = vpop.f32.mrb[122].mxu1 }
 0x759   : >> { %19742 = vst [vmem:[#allocation103_spill] sm:$0xff] %v16382_v41  ;;  %v11624_v45 = vpop.f32.mrb[123].mxu1 }
 0x75e   : >> { %v16386_v35 = vpop.f32.mrb[92].mxu0 }
 0x75f   : >> { %19743 = vst [vmem:[#allocation106_spill] sm:$0xff] %v16386_v35  ;;  %v11629_v24 = vpop.f32.mrb[93].mxu0 }
 0x760   : >> { %v16388_v28 = vpop.f32.mrb[94].mxu0 }
 0x761   : >> { %19744 = vst [vmem:[#allocation105_spill] sm:$0xff] %v16388_v28  ;;  %v11630_v14 = vpop.f32.mrb[95].mxu0 }
 0x788   : >> { %v3988_v6 = vpop.f32.mrb[96].mxu0 }
 0x789   : >> { %v4790_v62 = vmul.f32 0.125, %v3988_v6  ;;  %v11641_v22 = vpop.f32.mrb[97].mxu0 }
 0x78a   : >> { %v3991_v25 = vpop.f32.mrb[98].mxu0 }
 0x78b   : >> { %v16393_v16 = vadd.f32 %v4790_v62, %v19745_v37  ;;  %v4791_v46 = vmul.f32 0.125, %v3991_v25  ;;  %v11642_v33 = vpop.f32.mrb[99].mxu0 }
 0x78d   : >> { %v16396_v45 = vadd.f32 %v4791_v46, %v19746_v30  ;;  %v4854_v24 = vsel %vm2853_vm4, %v16393_v16, -inf }
 0x78e   : >> { %4855 = vmax.xlane.f32.xlu0 %v4854_v24 }
 0x78f   : >> { %v4857_v15 = vsel %vm2853_vm4, %v16396_v45, -inf }
 0x790   : >> { %4858 = vmax.xlane.f32.xlu1 %v4857_v15  ;;  %v4094_v14 = vpop.f32.mrb[100].mxu0 }
 0x791   : >> { %v11653_v6 = vpop.f32.mrb[101].mxu0  ;;  %v4794_v1 = vmul.f32 0.125, %v4094_v14 }
 0x792   : >> { %v4097_v22 = vpop.f32.mrb[102].mxu0 }
 0x793   : >> { %v4795_v44 = vmul.f32 0.125, %v4097_v22  ;;  %v16402_v4 = vpop.f32.mrb[124].mxu1  ;;  %v11654_v62 = vpop.f32.mrb[103].mxu0 }
 0x794   : >> { %19747 = vst [vmem:[#allocation108_spill] sm:$0xff] %v16402_v4  ;;  %v11635_v25 = vpop.f32.mrb[125].mxu1 }
 0x795   : >> { %v16405_v33 = vadd.f32 %v4795_v44, %v19746_v30  ;;  %v16407_v46 = vpop.f32.mrb[126].mxu1 }
 0x796   : >> { %19748 = vst [vmem:[#allocation109_spill] sm:$0xff] %v16407_v46  ;;  %v11636_v53 = vpop.f32.mrb[127].mxu1 }
 0x797   : >> { %v4869_v15 = vsel %vm2853_vm4, %v16405_v33, -inf  ;;  %v16421_v53 = vadd.f32 %v4794_v1, %v19745_v37 }
 0x798   : >> { %4870 = vmax.xlane.f32.xlu1 %v4869_v15  ;;  %v16413_v6 = vpop.f32.mrb[104].mxu0 }
 0x799   : >> { %v11665_v22 = vpop.f32.mrb[105].mxu0  ;;  %v4866_v1 = vsel %vm2853_vm4, %v16421_v53, -inf  ;;  %v4798_v29 = vmul.f32 0.125, %v16413_v6 }
 0x79a   : >> { %v16415_v57 = vpop.f32.mrb[106].mxu0 }
 0x79b   : >> { %v4041_v62 = vpop.f32.mrb[128].mxu1  ;;  %v11666_v25 = vpop.f32.mrb[107].mxu0 }
 0x79c   : >> { %v4792_v44 = vmul.f32 0.125, %v4041_v62  ;;  %v11647_v54 = vpop.f32.mrb[129].mxu1 }
 0x79d   : >> { %v4044_v49 = vpop.f32.mrb[130].mxu1 }
 0x79e   : >> { %v16418_v43 = vadd.f32 %v4792_v44, %v19745_v37  ;;  %v11648_v24 = vpop.f32.mrb[131].mxu1  ;;  %v4793_v10 = vmul.f32 0.125, %v4044_v49 }
 0x7a0   : >> { %v16423_v15 = vpop.f32.mrb[108].mxu0  ;;  %v4860_v22 = vsel %vm2853_vm4, %v16418_v43, -inf  ;;  %v16428_v54 = vadd.f32 %v4793_v10, %v19746_v30 }
 0x7a1   : >> { %4861 = vmax.xlane.f32.xlu0 %v4860_v22  ;;  %v11677_v12 = vpop.f32.mrb[109].mxu0 }
 0x7a2   : >> { %v4309_v25 = vpop.f32.mrb[110].mxu0  ;;  %v4863_v12 = vsel %vm2853_vm4, %v16428_v54, -inf }
 0x7a3   : >> { %v4147_v14 = vpop.f32.mrb[132].mxu1  ;;  %v11678_v62 = vpop.f32.mrb[111].mxu0 }
 0x7a4   : >> { %v4796_v44 = vmul.f32 0.125, %v4147_v14  ;;  %v11659_v55 = vpop.f32.mrb[133].mxu1 }
 0x7a5   : >> { %v4150_v24 = vpop.f32.mrb[134].mxu1  ;;  %4867 = vmax.xlane.f32.xlu0 %v4866_v1 }
 0x7a6   : >> { %v11660_v49 = vpop.f32.mrb[135].mxu1  ;;  %v16433_v23 = vadd.f32 %v4796_v44, %v19745_v37 }
 0x7a8   : >> { %v16435_v4 = vpop.f32.mrb[112].mxu0  ;;  %v4872_v1 = vsel %vm2853_vm4, %v16433_v23, -inf }
 0x7a9   : >> { %4864 = vmax.xlane.f32.xlu0 %v4863_v12  ;;  %5655 = vrot.lane.b32.xlu1 %v15681_v59, %s14245_s27  ;;  %v11689_v10 = vpop.f32.mrb[113].mxu0 }
 0x7aa   : >> { %v4415_v55 = vpop.f32.mrb[114].mxu0 }
 0x7ab   : >> { %v16441_v22 = vpop.f32.mrb[136].mxu1  ;;  %v11690_v14 = vpop.f32.mrb[115].mxu0 }
 0x7ac   : >> { %v11671_v62 = vpop.f32.mrb[137].mxu1 }
 0x7ad   : >> { %v4256_v44 = vpop.f32.mrb[138].mxu1  ;;  %4873 = vmax.xlane.f32.xlu0 %v4872_v1 }
 0x7ae   : >> { %v11672_v49 = vpop.f32.mrb[139].mxu1  ;;  %v4801_v8 = vmul.f32 0.125, %v4256_v44 }
 0x7b0   : >> { %v16445_v46 = vpop.f32.mrb[116].mxu0 }
 0x7b1   : >> { %v11701_v3 = vpop.f32.mrb[117].mxu0 }
 0x7b2   : >> { %v4521_v41 = vpop.f32.mrb[118].mxu0 }
 0x7b3   : >> { %v16447_v12 = vpop.f32.mrb[140].mxu1  ;;  %v11702_v35 = vpop.f32.mrb[119].mxu0 }
 0x7b4   : >> { %v11683_v59 = vpop.f32.mrb[141].mxu1 }
 0x7b5   : >> { %v4362_v10 = vpop.f32.mrb[142].mxu1  ;;  %v4797_v59 = vmul.f32 0.125, %v4150_v24 }
 0x7b6   : >> { %v11684_v28 = vpop.f32.mrb[143].mxu1 }
 0x7b8   : >> { %v16449_v27 = vpop.f32.mrb[120].mxu0 }
 0x7b9   : >> { %v11713_v14 = vpop.f32.mrb[121].mxu0 }
 0x7ba   : >> { %v16451_v62 = vpop.f32.mrb[122].mxu0 }
 0x7bb   : >> { %v16453_v60 = vpop.f32.mrb[144].mxu1  ;;  %v11714_v56 = vpop.f32.mrb[123].mxu0 }
 0x7bc   : >> { %v11695_v1 = vpop.f32.mrb[145].mxu1  ;;  %v4799_v56 = vmul.f32 0.125, %v16415_v57 }
 0x7bd   : >> { %v4468_v49 = vpop.f32.mrb[146].mxu1  ;;  %v16465_v1 = vadd.f32 %v4797_v59, %v19746_v30 }
 0x7be   : >> { %v11696_v39 = vpop.f32.mrb[147].mxu1 }
 0x7c0   : >> { %v16455_v17 = vpop.f32.mrb[124].mxu0 }
 0x7c1   : >> { %v11725_v3 = vpop.f32.mrb[125].mxu0 }
 0x7c2   : >> { %v16457_v38 = vpop.f32.mrb[126].mxu0  ;;  %v16470_v3 = vadd.f32 %v4799_v56, %v19746_v30 }
 0x7c3   : >> { %v16459_v35 = vpop.f32.mrb[148].mxu1  ;;  %5607 = vrot.lane.b32.xlu0 %v15683_v32, %s14245_s27  ;;  %v11726_v28 = vpop.f32.mrb[127].mxu0  ;;  %v4875_v32 = vsel %vm2853_vm4, %v16465_v1, -inf }
 0x7c4   : >> { %v11707_v14 = vpop.f32.mrb[149].mxu1  ;;  %v4881_v57 = vsel %vm2853_vm4, %v16470_v3, -inf }
 0x7c5   : >> { %v4574_v52 = vpop.f32.mrb[150].mxu1  ;;  %v4803_v14 = vmul.f32 0.125, %v4309_v25 }
 0x7c6   : >> { %v11708_v9 = vpop.f32.mrb[151].mxu1 }
 0x7c7   : >> { %v16475_v9 = vadd.f32 %v4801_v8, %v19746_v30  ;;  %v16482_v56 = vadd.f32 %v4803_v14, %v19746_v30 }
 0x7c9   : >> { %v4887_v13 = vsel %vm2853_vm4, %v16475_v9, -inf }
 0x7cb   : >> { %v16467_v39 = vpop.f32.mrb[152].mxu1 }
 0x7cc   : >> { %v11719_v48 = vpop.f32.mrb[153].mxu1 }
 0x7cd   : >> { %v4680_v28 = vpop.f32.mrb[154].mxu1  ;;  %4876 = vmax.xlane.f32.xlu1 %v4875_v32  ;;  %v4805_v48 = vmul.f32 0.125, %v4362_v10  ;;  %v4809_v10 = vmul.f32 0.125, %v4468_v49 }
 0x7ce   : >> { %v11720_v24 = vpop.f32.mrb[155].mxu1 }
 0x7cf   : >> { %v4807_v24 = vmul.f32 0.125, %v4415_v55  ;;  %v16487_v8 = vadd.f32 %v4805_v48, %v19746_v30  ;;  %v4800_v55 = vmul.f32 0.125, %v16441_v22  ;;  %v4811_v48 = vmul.f32 0.125, %v4521_v41 }
 0x7d0   : >> { %v4813_v41 = vmul.f32 0.125, %v4574_v52 }
 0x7d1   : >> { %4882 = vmax.xlane.f32.xlu1 %v4881_v57  ;;  %v4893_v57 = vsel %vm2853_vm4, %v16482_v56, -inf  ;;  %v16493_v14 = vadd.f32 %v4807_v24, %v19746_v30  ;;  %v4802_v24 = vmul.f32 0.125, %v16423_v15  ;;  %v16508_v49 = vadd.f32 %v4800_v55, %v19745_v37 }
 0x7d2   : >> { %v16513_v22 = vadd.f32 %v4811_v48, %v19746_v30  ;;  %v4804_v15 = vmul.f32 0.125, %v16447_v12  ;;  %v4815_v55 = vmul.f32 0.125, %v16451_v62  ;;  %v4806_v48 = vmul.f32 0.125, %v16435_v4 }
 0x7d3   : >> { %v16479_v59 = vpop.f32.mrb[156].mxu1  ;;  %v4905_v6 = vsel %vm2853_vm4, %v16493_v14, -inf  ;;  %v4817_v62 = vmul.f32 0.125, %v4680_v28  ;;  %v4808_v4 = vmul.f32 0.125, %v16453_v60 }
 0x7d4   : >> { %v11731_v44 = vpop.f32.mrb[157].mxu1  ;;  %v4917_v52 = vsel %vm2853_vm4, %v16513_v22, -inf }
 0x7d5   : >> { %v4786_v32 = vpop.f32.mrb[158].mxu1  ;;  %4888 = vmax.xlane.f32.xlu1 %v4887_v13  ;;  %v4899_v44 = vsel %vm2853_vm4, %v16487_v8, -inf  ;;  %v16498_v13 = vadd.f32 %v4798_v29, %v19745_v37 }
 0x7d6   : >> { %v11732_v25 = vpop.f32.mrb[159].mxu1 }
 0x7d7   : >> { %v16502_v25 = vadd.f32 %v4809_v10, %v19746_v30  ;;  %v4878_v29 = vsel %vm2853_vm4, %v16498_v13, -inf  ;;  %v16518_v10 = vadd.f32 %v4802_v24, %v19745_v37  ;;  %v16531_v24 = vadd.f32 %v4804_v15, %v19745_v37 }
 0x7d9   : >> { %4894 = vmax.xlane.f32.xlu1 %v4893_v57  ;;  %v4911_v57 = vsel %vm2853_vm4, %v16502_v25, -inf  ;;  %v4890_v12 = vsel %vm2853_vm4, %v16518_v10, -inf  ;;  %v4896_v15 = vsel %vm2853_vm4, %v16531_v24, -inf }
 0x7dd   : >> { %4900 = vmax.xlane.f32.xlu1 %v4899_v44  ;;  %v4884_v44 = vsel %vm2853_vm4, %v16508_v49, -inf }
 0x7e1   : >> { %4906 = vmax.xlane.f32.xlu1 %v4905_v6  ;;  %v16525_v6 = vadd.f32 %v4813_v41, %v19746_v30 }
 0x7e2   : >> { %4879 = vmax.xlane.f32.xlu0 %v4878_v29  ;;  %v16536_v29 = vadd.f32 %v4815_v55, %v19746_v30  ;;  %v4810_v55 = vmul.f32 0.125, %v16445_v46  ;;  %v4812_v46 = vmul.f32 0.125, %v16459_v35 }
 0x7e3   : >> { %v4923_v41 = vsel %vm2853_vm4, %v16525_v6, -inf }
 0x7e4   : >> { %v4929_v28 = vsel %vm2853_vm4, %v16536_v29, -inf }
 0x7e5   : >> { %4912 = vmax.xlane.f32.xlu1 %v4911_v57  ;;  %v16541_v57 = vadd.f32 %v4806_v48, %v19745_v37  ;;  %v16554_v48 = vadd.f32 %v4808_v4, %v19745_v37 }
 0x7e6   : >> { %4885 = vmax.xlane.f32.xlu0 %v4884_v44  ;;  %v4819_v44 = vmul.f32 0.125, %v16457_v38  ;;  %v4821_v38 = vmul.f32 0.125, %v4786_v32  ;;  %v4814_v32 = vmul.f32 0.125, %v16449_v27 }
 0x7e7   : >> { %v4902_v60 = vsel %vm2853_vm4, %v16541_v57, -inf  ;;  %v4908_v4 = vsel %vm2853_vm4, %v16554_v48, -inf }
 0x7e9   : >> { %4918 = vmax.xlane.f32.xlu1 %v4917_v52  ;;  %v16548_v52 = vadd.f32 %v4817_v62, %v19746_v30 }
 0x7ea   : >> { %4891 = vmax.xlane.f32.xlu0 %v4890_v12  ;;  %v16559_v12 = vadd.f32 %v4819_v44, %v19746_v30 }
 0x7eb   : >> { %v4935_v62 = vsel %vm2853_vm4, %v16548_v52, -inf }
 0x7ec   : >> { %v4941_v44 = vsel %vm2853_vm4, %v16559_v12, -inf }
 0x7ed   : >> { %4924 = vmax.xlane.f32.xlu1 %v4923_v41  ;;  %v16564_v41 = vadd.f32 %v4810_v55, %v19745_v37 }
 0x7ee   : >> { %4897 = vmax.xlane.f32.xlu0 %v4896_v15  ;;  %v16570_v15 = vadd.f32 %v4821_v38, %v19746_v30  ;;  %v4816_v30 = vmul.f32 0.125, %v16467_v39  ;;  %v4818_v38 = vmul.f32 0.125, %v16455_v17 }
 0x7ef   : >> { %v4914_v35 = vsel %vm2853_vm4, %v16564_v41, -inf }
 0x7f0   : >> { %v4947_v55 = vsel %vm2853_vm4, %v16570_v15, -inf }
 0x7f1   : >> { %4930 = vmax.xlane.f32.xlu1 %v4929_v28  ;;  %v16576_v28 = vadd.f32 %v4812_v46, %v19745_v37 }
 0x7f2   : >> { %4903 = vmax.xlane.f32.xlu0 %v4902_v60  ;;  %v16583_v60 = vadd.f32 %v4814_v32, %v19745_v37 }
 0x7f3   : >> { %v4920_v27 = vsel %vm2853_vm4, %v16576_v28, -inf }
 0x7f4   : >> { %v4926_v46 = vsel %vm2853_vm4, %v16583_v60, -inf }
 0x7f5   : >> { %4936 = vmax.xlane.f32.xlu1 %v4935_v62  ;;  %v16590_v62 = vadd.f32 %v4816_v30, %v19745_v37 }
 0x7f6   : >> { %4909 = vmax.xlane.f32.xlu0 %v4908_v4  ;;  %v16595_v4 = vadd.f32 %v4818_v38, %v19745_v37 }
 0x7f7   : >> { %v4932_v39 = vsel %vm2853_vm4, %v16590_v62, -inf }
 0x7f8   : >> { %v4938_v17 = vsel %vm2853_vm4, %v16595_v4, -inf }
 0x7f9   : >> { %4942 = vmax.xlane.f32.xlu1 %v4941_v44  ;;  %v4820_v44 = vmul.f32 0.125, %v16479_v59 }
 0x7fa   : >> { %4915 = vmax.xlane.f32.xlu0 %v4914_v35  ;;  %v16605_v35 = vpop.permute.xlu0 %5319 }
 0x7fb   : >> { %v16601_v32 = vadd.f32 %v4820_v44, %v19745_v37 }
 0x7fd   : >> { %4948 = vmax.xlane.f32.xlu1 %v4947_v55  ;;  %v16607_v55 = vpop.permute.xlu1 %5367  ;;  %v4944_v30 = vsel %vm2853_vm4, %v16601_v32, -inf }
 0x7fe   : >> { %4921 = vmax.xlane.f32.xlu0 %v4920_v27  ;;  %v16611_v59 = vpop.permute.xlu0 %5415 }
 0x801   : >> { %v16613_v27 = vpop.permute.xlu1 %5463 }
 0x802   : >> { %4927 = vmax.xlane.f32.xlu0 %v4926_v46  ;;  %v16615_v38 = vpop.permute.xlu0 %5511 }
 0x805   : >> { %v16617_v37 = vpop.permute.xlu1 %5559 }
 0x806   : >> { %4933 = vmax.xlane.f32.xlu0 %v4932_v39 }
 0x80a   : >> { %4939 = vmax.xlane.f32.xlu0 %v4938_v17 }
 0x80e   : >> { %4945 = vmax.xlane.f32.xlu0 %v4944_v30 }
 0x81b   : >> { %v4856_v46 = vpop.xlane.xlu0 %4855 }
 0x81c   : >> { %v4950_v44 = vsub.f32 %v16393_v16, %v4856_v46 }
 0x81d   : >> { %v4859_v39 = vpop.xlane.xlu1 %4858 }
 0x81e   : >> { %v4982_v17 = vmul.f32 1.442695, %v4950_v44  ;;  %v4951_v26 = vsub.f32 %v16396_v45, %v4859_v39 }
 0x820   : >> { %12687 = vpow2.f32 %v4982_v17  ;;  %v4984_v50 = vmul.f32 1.442695, %v4951_v26 }
 0x822   : >> { %12689 = vpow2.f32 %v4984_v50 }
 0x825   : >> { %v4871_v45 = vpop.xlane.xlu1 %4870 }
 0x826   : >> { %v4955_v50 = vsub.f32 %v16405_v33, %v4871_v45 }
 0x828   : >> { %v4992_v61 = vmul.f32 1.442695, %v4955_v50 }
 0x829   : >> { %v16654_v45 = vpop.permute.xlu1 %5655 }
 0x82a   : >> { %v16621_v0 = vpop.eup %12687  ;;  %19749 = vst [vmem:[#allocation110_spill] sm:$0xff] %v16654_v45 }
 0x82b   : >> { %v5046_v30 = vsel %vm2853_vm4, %v16621_v0, 0.0 }
 0x82c   : >> { %v16625_v34 = vpop.eup %12689  ;;  %5047 = vadd.xlane.f32.xlu0 %v5046_v30 }
 0x82d   : >> { %v5049_v11 = vsel %vm2853_vm4, %v16625_v34, 0.0 }
 0x82e   : >> { %v4862_v51 = vpop.xlane.xlu0 %4861  ;;  %5050 = vadd.xlane.f32.xlu1 %v5049_v11 }
 0x82f   : >> { %v4952_v16 = vsub.f32 %v16418_v43, %v4862_v51 }
 0x831   : >> { %v4986_v46 = vmul.f32 1.442695, %v4952_v16 }
 0x832   : >> { %v4868_v44 = vpop.xlane.xlu0 %4867 }
 0x833   : >> { %12691 = vpow2.f32 %v4986_v46  ;;  %v4954_v26 = vsub.f32 %v16421_v53, %v4868_v44 }
 0x835   : >> { %v4990_v39 = vmul.f32 1.442695, %v4954_v26 }
 0x836   : >> { %v4865_v17 = vpop.xlane.xlu0 %4864 }
 0x837   : >> { %12693 = vpow2.f32 %v4990_v39  ;;  %v4953_v30 = vsub.f32 %v16428_v54, %v4865_v17 }
 0x839   : >> { %v4988_v21 = vmul.f32 1.442695, %v4953_v30 }
 0x83a   : >> { %v4874_v58 = vpop.xlane.xlu0 %4873 }
 0x83b   : >> { %12695 = vpow2.f32 %v4988_v21  ;;  %v4956_v11 = vsub.f32 %v16433_v23, %v4874_v58 }
 0x83c   : >> { %12697 = vpow2.f32 %v4992_v61 }
 0x83d   : >> { %v16634_v51 = vpop.eup %12691  ;;  %v4994_v43 = vmul.f32 1.442695, %v4956_v11 }
 0x83e   : >> { %v5052_v53 = vsel %vm2853_vm4, %v16634_v51, 0.0  ;;  %v16657_v30 = vpop.permute.xlu0 %5607 }
 0x83f   : >> { %12699 = vpow2.f32 %v4994_v43  ;;  %5053 = vadd.xlane.f32.xlu0 %v5052_v53 }
 0x841   : >> { %v16638_v33 = vpop.eup %12693 }
 0x842   : >> { %v5058_v54 = vsel %vm2853_vm4, %v16638_v33, 0.0 }
 0x843   : >> { %5059 = vadd.xlane.f32.xlu0 %v5058_v54 }
 0x845   : >> { %v16642_v16 = vpop.eup %12695 }
 0x846   : >> { %v5055_v23 = vsel %vm2853_vm4, %v16642_v16, 0.0  ;;  %v16646_v58 = vpop.eup %12697 }
 0x847   : >> { %5056 = vadd.xlane.f32.xlu1 %v5055_v23  ;;  %v5061_v46 = vsel %vm2853_vm4, %v16646_v58, 0.0 }
 0x849   : >> { %v16648_v61 = vpop.eup %12699 }
 0x84a   : >> { %v5064_v21 = vsel %vm2853_vm4, %v16648_v61, 0.0 }
 0x84b   : >> { %5065 = vadd.xlane.f32.xlu0 %v5064_v21  ;;  %5062 = vadd.xlane.f32.xlu1 %v5061_v46 }
 0x85a   : >> { %v4877_v44 = vpop.xlane.xlu1 %4876 }
 0x85b   : >> { %v4957_v53 = vsub.f32 %v16465_v1, %v4877_v44 }
 0x85d   : >> { %v4996_v42 = vmul.f32 1.442695, %v4957_v53 }
 0x85e   : >> { %v4883_v26 = vpop.xlane.xlu1 %4882 }
 0x85f   : >> { %v4959_v50 = vsub.f32 %v16470_v3, %v4883_v26 }
 0x861   : >> { %v5000_v39 = vmul.f32 1.442695, %v4959_v50 }
 0x862   : >> { %v4889_v17 = vpop.xlane.xlu1 %4888 }
 0x863   : >> { %12701 = vpow2.f32 %v5000_v39  ;;  %v4961_v40 = vsub.f32 %v16475_v9, %v4889_v17 }
 0x866   : >> { %v4895_v11 = vpop.xlane.xlu1 %4894 }
 0x867   : >> { %v4963_v3 = vsub.f32 %v16482_v56, %v4895_v11 }
 0x869   : >> { %v5008_v1 = vmul.f32 1.442695, %v4963_v3 }
 0x86a   : >> { %v4901_v46 = vpop.xlane.xlu1 %4900 }
 0x86d   : >> { %v16659_v43 = vpop.eup %12701 }
 0x86e   : >> { %v5073_v54 = vsel %vm2853_vm4, %v16659_v43, 0.0  ;;  %v4907_v36 = vpop.xlane.xlu1 %4906 }
 0x86f   : >> { %v4880_v23 = vpop.xlane.xlu0 %4879  ;;  %5074 = vadd.xlane.f32.xlu0 %v5073_v54  ;;  %v4967_v53 = vsub.f32 %v16493_v14, %v4907_v36 }
 0x870   : >> { %v4958_v21 = vsub.f32 %v16498_v13, %v4880_v23  ;;  %v5004_v13 = vmul.f32 1.442695, %v4961_v40 }
 0x871   : >> { %v5016_v9 = vmul.f32 1.442695, %v4967_v53 }
 0x872   : >> { %v4998_v26 = vmul.f32 1.442695, %v4958_v21 }
 0x873   : >> { %v4886_v50 = vpop.xlane.xlu0 %4885 }
 0x874   : >> { %12703 = vpow2.f32 %v4998_v26  ;;  %v4960_v39 = vsub.f32 %v16508_v49, %v4886_v50 }
 0x875   : >> { %12705 = vpow2.f32 %v4996_v42  ;;  %v4965_v42 = vsub.f32 %v16487_v8, %v4901_v46 }
 0x876   : >> { %v5002_v44 = vmul.f32 1.442695, %v4960_v39 }
 0x877   : >> { %v4892_v31 = vpop.xlane.xlu0 %4891 }
 0x878   : >> { %12707 = vpow2.f32 %v5002_v44  ;;  %v4962_v54 = vsub.f32 %v16518_v10, %v4892_v31  ;;  %v5012_v10 = vmul.f32 1.442695, %v4965_v42 }
 0x879   : >> { %12709 = vpow2.f32 %v5008_v1 }
 0x87a   : >> { %v5006_v56 = vmul.f32 1.442695, %v4962_v54 }
 0x87b   : >> { %v4898_v11 = vpop.xlane.xlu0 %4897 }
 0x87c   : >> { %12711 = vpow2.f32 %v5006_v56  ;;  %v4964_v23 = vsub.f32 %v16531_v24, %v4898_v11 }
 0x87d   : >> { %12713 = vpow2.f32 %v5004_v13 }
 0x87e   : >> { %v16671_v49 = vpop.eup %12703  ;;  %v5010_v17 = vmul.f32 1.442695, %v4964_v23 }
 0x87f   : >> { %v4904_v21 = vpop.xlane.xlu0 %4903  ;;  %v5070_v31 = vsel %vm2853_vm4, %v16671_v49, 0.0  ;;  %v16676_v40 = vpop.eup %12705 }
 0x880   : >> { %12715 = vpow2.f32 %v5010_v17  ;;  %v4966_v36 = vsub.f32 %v16541_v57, %v4904_v21  ;;  %5071 = vadd.xlane.f32.xlu1 %v5070_v31  ;;  %v5067_v46 = vsel %vm2853_vm4, %v16676_v40, 0.0  ;;  %v4913_v21 = vpop.xlane.xlu1 %4912 }
 0x881   : >> { %12717 = vpow2.f32 %v5016_v9 }
 0x882   : >> { %v16679_v14 = vpop.eup %12707  ;;  %v5014_v24 = vmul.f32 1.442695, %v4966_v36 }
 0x883   : >> { %v4910_v3 = vpop.xlane.xlu0 %4909  ;;  %v5076_v8 = vsel %vm2853_vm4, %v16679_v14, 0.0  ;;  %v16685_v26 = vpop.eup %12709 }
 0x884   : >> { %12719 = vpow2.f32 %v5014_v24  ;;  %v4968_v50 = vsub.f32 %v16554_v48, %v4910_v3  ;;  %5077 = vadd.xlane.f32.xlu0 %v5076_v8  ;;  %5068 = vadd.xlane.f32.xlu1 %v5067_v46  ;;  %v5085_v1 = vsel %vm2853_vm4, %v16685_v26, 0.0  ;;  %v4919_v24 = vpop.xlane.xlu1 %4918 }
 0x885   : >> { %12721 = vpow2.f32 %v5012_v10 }
 0x886   : >> { %v16688_v57 = vpop.eup %12711  ;;  %v5018_v39 = vmul.f32 1.442695, %v4968_v50 }
 0x887   : >> { %v5082_v44 = vsel %vm2853_vm4, %v16688_v57, 0.0  ;;  %v16694_v54 = vpop.eup %12713  ;;  %v4916_v10 = vpop.xlane.xlu0 %4915 }
 0x888   : >> { %12723 = vpow2.f32 %v5018_v39  ;;  %5086 = vadd.xlane.f32.xlu0 %v5085_v1  ;;  %5083 = vadd.xlane.f32.xlu1 %v5082_v44  ;;  %v5079_v53 = vsel %vm2853_vm4, %v16694_v54, 0.0  ;;  %v4925_v8 = vpop.xlane.xlu1 %4924 }
 0x88a   : >> { %v16696_v13 = vpop.eup %12715 }
 0x88b   : >> { %v5088_v48 = vsel %vm2853_vm4, %v16696_v13, 0.0  ;;  %v16702_v56 = vpop.eup %12717  ;;  %v4922_v3 = vpop.xlane.xlu0 %4921 }
 0x88c   : >> { %5089 = vadd.xlane.f32.xlu0 %v5088_v48  ;;  %5080 = vadd.xlane.f32.xlu1 %v5079_v53  ;;  %v5097_v23 = vsel %vm2853_vm4, %v16702_v56, 0.0  ;;  %v4931_v50 = vpop.xlane.xlu1 %4930  ;;  %v4971_v48 = vsub.f32 %v16513_v22, %v4919_v24 }
 0x88e   : >> { %v16704_v11 = vpop.eup %12719 }
 0x88f   : >> { %v5094_v42 = vsel %vm2853_vm4, %v16704_v11, 0.0  ;;  %v16710_v9 = vpop.eup %12721  ;;  %v4928_v46 = vpop.xlane.xlu0 %4927 }
 0x890   : >> { %19750 = vst [vmem:[#allocation111_spill] sm:$0xff] %v16710_v9  ;;  %5098 = vadd.xlane.f32.xlu0 %v5097_v23  ;;  %5095 = vadd.xlane.f32.xlu1 %v5094_v42  ;;  %v5091_v36 = vsel %vm2853_vm4, %v16710_v9, 0.0  ;;  %v4937_v1 = vpop.xlane.xlu1 %4936  ;;  %v4970_v23 = vsub.f32 %v16564_v41, %v4916_v10  ;;  %v5024_v42 = vmul.f32 1.442695, %v4971_v48  ;;  %v4974_v24 = vsub.f32 %v16583_v60, %v4928_v46 }
 0x891   : >> { %v4973_v10 = vsub.f32 %v16525_v6, %v4925_v8 }
 0x892   : >> { %v16712_v17 = vpop.eup %12723  ;;  %v5022_v5 = vmul.f32 1.442695, %v4970_v23  ;;  %12725 = vpow2.f32 %v5024_v42 }
 0x893   : >> { %19751 = vst [vmem:[#allocation112_spill] sm:$0xff] %v16712_v17  ;;  %v5100_v31 = vsel %vm2853_vm4, %v16712_v17, 0.0  ;;  %v4934_v39 = vpop.xlane.xlu0 %4933 }
 0x894   : >> { %5101 = vadd.xlane.f32.xlu0 %v5100_v31  ;;  %5092 = vadd.xlane.f32.xlu1 %v5091_v36  ;;  %v4943_v53 = vpop.xlane.xlu1 %4942  ;;  %v4969_v36 = vsub.f32 %v16502_v25, %v4913_v21  ;;  %v4976_v21 = vsub.f32 %v16590_v62, %v4934_v39 }
 0x895   : >> { %v4979_v48 = vsub.f32 %v16559_v12, %v4943_v53 }
 0x896   : >> { %v5020_v9 = vmul.f32 1.442695, %v4969_v36 }
 0x897   : >> { %v4940_v44 = vpop.xlane.xlu0 %4939  ;;  %v5040_v62 = vmul.f32 1.442695, %v4979_v48 }
 0x898   : >> { %v16725_v17 = vpop.xlane.xlu1 %4948 }
 0x89b   : >> { %v4946_v31 = vpop.xlane.xlu0 %4945 }
 0x8a5   : >> { %5751 = vrot.lane.b32.xlu1 %v19691_v7, %s14245_s27  ;;  %v4972_v7 = vsub.f32 %v16576_v28, %v4922_v3  ;;  %v5030_v28 = vmul.f32 1.442695, %v4974_v24  ;;  %v5028_v3 = vmul.f32 1.442695, %v4973_v10 }
 0x8a7   : >> { %v5026_v22 = vmul.f32 1.442695, %v4972_v7 }
 0x8aa   : >> { %5703 = vrot.lane.b32.xlu0 %v19687_v47, %s14245_s27  ;;  %v4975_v47 = vsub.f32 %v16536_v29, %v4931_v50  ;;  %v5034_v29 = vmul.f32 1.442695, %v4976_v21  ;;  %v4980_v50 = vsub.f32 %v16601_v32, %v4946_v31 }
 0x8ac   : >> { %v5032_v25 = vmul.f32 1.442695, %v4975_v47  ;;  %v5042_v32 = vmul.f32 1.442695, %v4980_v50 }
 0x8b9   : >> { %v5048_v45 = vpop.xlane.xlu0 %5047 }
 0x8ba   : >> { %12727 = vrcp.f32 %v5048_v45  ;;  %v16733_v45 = vpop.eup %12725 }
 0x8bb   : >> { %12729 = vpow2.f32 %v5022_v5  ;;  %v5051_v41 = vpop.xlane.xlu1 %5050  ;;  %v4978_v5 = vsub.f32 %v16595_v4, %v4940_v44  ;;  %v5109_v4 = vsel %vm2853_vm4, %v16733_v45, 0.0 }
 0x8bc   : >> { %12731 = vrcp.f32 %v5051_v41 }
 0x8bd   : >> { %12733 = vpow2.f32 %v5020_v9  ;;  %v4977_v9 = vsub.f32 %v16548_v52, %v4937_v1  ;;  %v5038_v8 = vmul.f32 1.442695, %v4978_v5 }
 0x8be   : >> { %12735 = vpow2.f32 %v5026_v22 }
 0x8bf   : >> { %12737 = vpow2.f32 %v5032_v25  ;;  %v5036_v1 = vmul.f32 1.442695, %v4977_v9 }
 0x8c0   : >> { %12739 = vpow2.f32 %v5030_v28 }
 0x8c1   : >> { %12741 = vpow2.f32 %v5028_v3 }
 0x8c2   : >> { %12743 = vpow2.f32 %v5034_v29 }
 0x8c3   : >> { %12745 = vpow2.f32 %v5040_v62 }
 0x8c4   : >> { %v12728_v60 = vpop.eup %12727  ;;  %12747 = vpow2.f32 %v5038_v8 }
 0x8c5   : >> { %v16736_v46 = vpop.eup %12729  ;;  %v5143_v12 = vmul.f32 %v12728_v60, %v16621_v0  ;;  %12749 = vpow2.f32 %v5036_v1 }
 0x8c6   : >> { %v12732_v6 = vpop.eup %12731  ;;  %v5106_v44 = vsel %vm2853_vm4, %v16736_v46, 0.0  ;;  %12751 = vpow2.f32 %v5042_v32 }
 0x8c7   : >> { %v5145_v39 = vmul.f32 %v12732_v6, %v16625_v34  ;;  %v16742_v53 = vpop.eup %12733 }
 0x8c8   : >> { %v16748_v23 = vpop.eup %12735  ;;  %v5103_v42 = vsel %vm2853_vm4, %v16742_v53, 0.0 }
 0x8c9   : >> { %5110 = vadd.xlane.f32.xlu0 %v5109_v4  ;;  %5107 = vadd.xlane.f32.xlu1 %v5106_v44  ;;  %v5206_v52 = vpack.c.bf16 %v5145_v39, %v5143_v12  ;;  %v16751_v0 = vpop.eup %12737  ;;  %v5112_v34 = vsel %vm2853_vm4, %v16748_v23, 0.0 }
 0x8ca   : >> { %v16760_v31 = vpop.eup %12739  ;;  %v5121_v47 = vsel %vm2853_vm4, %v16751_v0, 0.0 }
 0x8cb   : >> { %11736 = vmatmul.mubr.msk.bf16.vlgmr.msra.gmra.mrb[128].mxu0 %vm2853_vm4, %v5206_v52  ;;  %v16763_v36 = vpop.eup %12741  ;;  %v5118_v22 = vsel %vm2853_vm4, %v16760_v31, 0.0 }
 0x8cc   : >> { %11746 = vmatpush3.bf16.msra.mxu0 %v16605_v35  ;;  %11747 = vmatprep.mubr.msk.bf16.mxu0 %vm14244_vm2, %v19684_v20  ;;  %v5054_v35 = vpop.xlane.xlu0 %5053  ;;  %v16765_v7 = vpop.eup %12743  ;;  %v5115_v25 = vsel %vm2853_vm4, %v16763_v36, 0.0 }
 0x8cd   : >> { %5113 = vadd.xlane.f32.xlu0 %v5112_v34  ;;  %5104 = vadd.xlane.f32.xlu1 %v5103_v42  ;;  %12753 = vrcp.f32 %v5054_v35  ;;  %v16771_v24 = vpop.eup %12745  ;;  %v5124_v10 = vsel %vm2853_vm4, %v16765_v7, 0.0 }
 0x8ce   : >> { %11757 = vmatprep.subr.bf16.mxu0 %v19684_v20  ;;  %v16777_v21 = vpop.eup %12747  ;;  %v5133_v5 = vsel %vm2853_vm4, %v16771_v24, 0.0 }
 0x8cf   : >> { %v16779_v3 = vpop.eup %12749  ;;  %v5130_v29 = vsel %vm2853_vm4, %v16777_v21, 0.0 }
 0x8d0   : >> { %v5060_v28 = vpop.xlane.xlu0 %5059  ;;  %v16785_v60 = vpop.eup %12751  ;;  %v5127_v6 = vsel %vm2853_vm4, %v16779_v3, 0.0 }
 0x8d1   : >> { %5122 = vadd.xlane.f32.xlu0 %v5121_v47  ;;  %5119 = vadd.xlane.f32.xlu1 %v5118_v22  ;;  %v5136_v9 = vsel %vm2853_vm4, %v16785_v60, 0.0 }
 0x8d4   : >> { %v5057_v41 = vpop.xlane.xlu1 %5056 }
 0x8d5   : >> { %12755 = vrcp.f32 %v5057_v41  ;;  %5125 = vadd.xlane.f32.xlu0 %v5124_v10  ;;  %5116 = vadd.xlane.f32.xlu1 %v5115_v25 }
 0x8d6   : >> { %12757 = vrcp.f32 %v5060_v28 }
 0x8d7   : >> { %v12754_v62 = vpop.eup %12753 }
 0x8d8   : >> { %v5063_v48 = vpop.xlane.xlu1 %5062  ;;  %v5147_v50 = vmul.f32 %v12754_v62, %v16634_v51 }
 0x8d9   : >> { %5131 = vadd.xlane.f32.xlu1 %v5130_v29  ;;  %5134 = vadd.xlane.f32.xlu0 %v5133_v5  ;;  %12759 = vrcp.f32 %v5063_v48 }
 0x8dd   : >> { %5128 = vadd.xlane.f32.xlu1 %v5127_v6  ;;  %5137 = vadd.xlane.f32.xlu0 %v5136_v9 }
 0x8df   : >> { %v12756_v8 = vpop.eup %12755 }
 0x8e0   : >> { %v5149_v12 = vmul.f32 %v12756_v8, %v16642_v16  ;;  %v12758_v39 = vpop.eup %12757 }
 0x8e1   : >> { %v5151_v52 = vmul.f32 %v12758_v39, %v16638_v33  ;;  %v5066_v33 = vpop.xlane.xlu0 %5065 }
 0x8e2   : >> { %v5207_v4 = vpack.c.bf16 %v5149_v12, %v5147_v50 }
 0x8e3   : >> { %v12760_v44 = vpop.eup %12759 }
 0x8e4   : >> { %11742 = vmatmul.mubr.msk.bf16.vlgmr.msra.gmra.mrb[160].mxu1 %vm2853_vm4, %v5207_v4  ;;  %v5153_v1 = vmul.f32 %v12760_v44, %v16646_v58 }
 0x8e5   : >> { %11752 = vmatpush3.bf16.msra.mxu1 %v16607_v55  ;;  %11753 = vmatprep.mubr.msk.bf16.mxu1 %vm14244_vm2, %v19684_v20  ;;  %v4981_v55 = vsub.f32 %v16570_v15, %v16725_v17 }
 0x8e6   : >> { %11763 = vmatprep.subr.bf16.mxu1 %v19684_v20  ;;  %v5208_v32 = vpack.c.bf16 %v5153_v1, %v5151_v52  ;;  %v19752_v1 = vld [vmem:[#allocation111_spill] sm:$0xff] }
 0x8e7   : >> { %v5044_v51 = vmul.f32 1.442695, %v4981_v55 }
 0x8e8   : >> { %11748 = vmatmul.mubr.msk.bf16.vlgmr.msra.gmra.mrb[132].mxu0 %vm2853_vm4, %v5208_v32 }
 0x8e9   : >> { %11758 = vmatpush3.bf16.msra.mxu0 %v16611_v59  ;;  %11759 = vmatprep.mubr.msk.bf16.mxu0 %vm14244_vm2, %v19684_v20  ;;  %12761 = vpow2.f32 %v5044_v51 }
 0x8ea   : >> { %11769 = vmatprep.subr.bf16.mxu0 %v19684_v20 }
 0x8ee   : >> { %5847 = vrot.lane.b32.xlu1 %v19712_v19, %s14245_s27 }
 0x8f2   : >> { %5895 = vrot.lane.b32.xlu1 %v19713_v2, %s14245_s27 }
 0x8f3   : >> { %5799 = vrot.lane.b32.xlu0 %v19694_v18, %s14245_s27  ;;  %v16813_v19 = vpop.eup %12761 }
 0x8f4   : >> { %v5139_v18 = vsel %vm2853_vm4, %v16813_v19, 0.0 }
 0x8fc   : >> { %v5075_v59 = vpop.xlane.xlu0 %5074 }
 0x8fd   : >> { %12763 = vrcp.f32 %v5075_v59 }
 0x907   : >> { %v12764_v35 = vpop.eup %12763 }
 0x908   : >> { %v5161_v17 = vmul.f32 %v12764_v35, %v16659_v43 }
 0x90d   : >> { %v5072_v16 = vpop.xlane.xlu1 %5071 }
 0x90e   : >> { %12765 = vrcp.f32 %v5072_v16 }
 0x90f   : >> { %12767 = vrcp.f32 %v5066_v33 }
 0x911   : >> { %v5078_v58 = vpop.xlane.xlu0 %5077  ;;  %v5069_v34 = vpop.xlane.xlu1 %5068 }
 0x912   : >> { %12769 = vrcp.f32 %v5069_v34 }
 0x915   : >> { %v5087_v2 = vpop.xlane.xlu0 %5086  ;;  %v5084_v42 = vpop.xlane.xlu1 %5083 }
 0x916   : >> { %12771 = vrcp.f32 %v5087_v2  ;;  %5140 = vadd.xlane.f32.xlu1 %v5139_v18 }
 0x917   : >> { %12773 = vrcp.f32 %v5084_v42 }
 0x918   : >> { %v12766_v15 = vpop.eup %12765  ;;  %12775 = vrcp.f32 %v5078_v58 }
 0x919   : >> { %v5159_v47 = vmul.f32 %v12766_v15, %v16671_v49  ;;  %v5090_v22 = vpop.xlane.xlu0 %5089  ;;  %v5081_v41 = vpop.xlane.xlu1 %5080 }
 0x91a   : >> { %v12768_v10 = vpop.eup %12767  ;;  %12777 = vrcp.f32 %v5081_v41 }
 0x91b   : >> { %v5210_v25 = vpack.c.bf16 %v5161_v17, %v5159_v47  ;;  %v5155_v5 = vmul.f32 %v12768_v10, %v16648_v61 }
 0x91c   : >> { %v12770_v28 = vpop.eup %12769 }
 0x91d   : >> { %v5099_v48 = vpop.xlane.xlu0 %5098  ;;  %11760 = vmatmul.mubr.msk.bf16.vlgmr.msra.gmra.mrb[136].mxu0 %vm2853_vm4, %v5210_v25  ;;  %v5096_v29 = vpop.xlane.xlu1 %5095  ;;  %v5157_v6 = vmul.f32 %v12770_v28, %v16676_v40  ;;  %v19754_v25 = vld [vmem:[#allocation112_spill] sm:$0xff] }
 0x91e   : >> { %12779 = vrcp.f32 %v5099_v48  ;;  %11770 = vmatpush3.bf16.msra.mxu0 %v16615_v38  ;;  %11771 = vmatprep.mubr.msk.bf16.mxu0 %vm14244_vm2, %v19684_v20 }
 0x91f   : >> { %12781 = vrcp.f32 %v5096_v29  ;;  %11781 = vmatprep.subr.bf16.mxu0 %v19684_v20  ;;  %v5209_v49 = vpack.c.bf16 %v5157_v6, %v5155_v5 }
 0x920   : >> { %v12772_v43 = vpop.eup %12771  ;;  %12783 = vrcp.f32 %v5090_v22 }
 0x921   : >> { %v12774_v9 = vpop.eup %12773  ;;  %v5169_v62 = vmul.f32 %v12772_v43, %v16685_v26  ;;  %v5093_v8 = vpop.xlane.xlu1 %5092  ;;  %11754 = vmatmul.mubr.msk.bf16.vlgmr.msra.gmra.mrb[164].mxu1 %vm2853_vm4, %v5209_v49 }
 0x922   : >> { %v5167_v61 = vmul.f32 %v12774_v9, %v16688_v57  ;;  %v12776_v40 = vpop.eup %12775  ;;  %11764 = vmatpush3.bf16.msra.mxu1 %v16613_v27  ;;  %12785 = vrcp.f32 %v5093_v8  ;;  %11765 = vmatprep.mubr.msk.bf16.mxu1 %vm14244_vm2, %v19684_v20  ;;  %v5102_v57 = vpop.xlane.xlu0 %5101 }
 0x923   : >> { %11775 = vmatprep.subr.bf16.mxu1 %v19684_v20  ;;  %v5163_v12 = vmul.f32 %v12776_v40, %v16679_v14 }
 0x924   : >> { %v5212_v38 = vpack.c.bf16 %v5169_v62, %v5167_v61  ;;  %v12778_v50 = vpop.eup %12777 }
 0x925   : >> { %v5165_v26 = vmul.f32 %v12778_v50, %v16694_v54 }
 0x926   : >> { %11772 = vmatmul.mubr.msk.bf16.vlgmr.msra.gmra.mrb[140].mxu0 %vm2853_vm4, %v5212_v38  ;;  %v5704_v55 = vpop.permute.xlu0 %5703 }
 0x927   : >> { %11782 = vmatpush3.bf16.msra.mxu0 %v16657_v30  ;;  %5943 = vrot.lane.b32.xlu1 %v19714_v63, %s14245_s27  ;;  %v5211_v39 = vpack.c.bf16 %v5165_v26, %v5163_v12 }
 0x928   : >> { %v12780_v27 = vpop.eup %12779  ;;  %11783 = vmatprep.mubr.msk.bf16.mxu0 %vm14244_vm2, %v19684_v20  ;;  %11793 = vmatprep.subr.bf16.mxu0 %v19684_v20 }
 0x929   : >> { %v12782_v4 = vpop.eup %12781  ;;  %v5177_v14 = vmul.f32 %v12780_v27, %v16702_v56  ;;  %11766 = vmatmul.mubr.msk.bf16.vlgmr.msra.gmra.mrb[168].mxu1 %vm2853_vm4, %v5211_v39 }
 0x92a   : >> { %v5175_v54 = vmul.f32 %v12782_v4, %v16704_v11  ;;  %v12784_v44 = vpop.eup %12783  ;;  %11776 = vmatpush3.bf16.msra.mxu1 %v16617_v37  ;;  %11777 = vmatprep.mubr.msk.bf16.mxu1 %vm14244_vm2, %v19684_v20  ;;  %v19753_v37 = vld [vmem:[#allocation110_spill] sm:$0xff] }
 0x92b   : >> { %11787 = vmatprep.subr.bf16.mxu1 %v19684_v20  ;;  %v5171_v52 = vmul.f32 %v12784_v44, %v16696_v13  ;;  %v5752_v13 = vpop.permute.xlu1 %5751 }
 0x92c   : >> { %v5214_v63 = vpack.c.bf16 %v5177_v14, %v5175_v54  ;;  %v12786_v30 = vpop.eup %12785 }
 0x92d   : >> { %v5173_v32 = vmul.f32 %v12786_v30, %v19752_v1 }
 0x92e   : >> { %11784 = vmatmul.mubr.msk.bf16.vlgmr.msra.gmra.mrb[144].mxu0 %vm2853_vm4, %v5214_v63  ;;  %v12412_v63 = vld [vmem:[%s16892_s29 + $0x28] sm:$0xff]  }
 0x92f   : >> { %11794 = vmatpush3.bf16.msra.mxu0 %v5704_v55  ;;  %11795 = vmatprep.mubr.msk.bf16.mxu0 %vm14244_vm2, %v19684_v20  ;;  %v5213_v56 = vpack.c.bf16 %v5173_v32, %v5171_v52  ;;  %v12413_v55 = vld [vmem:[%s16892_s29 + $0x30] sm:$0xff]  }
 0x930   : >> { %11805 = vmatprep.subr.bf16.mxu0 %v19684_v20 }
 0x931   : >> { %11778 = vmatmul.mubr.msk.bf16.vlgmr.msra.gmra.mrb[172].mxu1 %vm2853_vm4, %v5213_v56 }
 0x932   : >> { %11788 = vmatpush3.bf16.msra.mxu1 %v19753_v37  ;;  %11789 = vmatprep.mubr.msk.bf16.mxu1 %vm14244_vm2, %v19684_v20  ;;  %v12414_v37 = vld [vmem:[%s16892_s29 + $0x38] sm:$0xff]  }
 0x933   : >> { %11799 = vmatprep.subr.bf16.mxu1 %v19684_v20 }
 0x956   : >> { %v5111_v11 = vpop.xlane.xlu0 %5110  ;;  %v5108_v51 = vpop.xlane.xlu1 %5107 }
 0x957   : >> { %12787 = vrcp.f32 %v5111_v11 }
 0x958   : >> { %12789 = vrcp.f32 %v5108_v51 }
 0x959   : >> { %12791 = vrcp.f32 %v5102_v57 }
 0x95a   : >> { %v5114_v33 = vpop.xlane.xlu0 %5113  ;;  %v5105_v59 = vpop.xlane.xlu1 %5104 }
 0x95b   : >> { %12793 = vrcp.f32 %v5105_v59 }
 0x95e   : >> { %v5123_v16 = vpop.xlane.xlu0 %5122  ;;  %v5120_v58 = vpop.xlane.xlu1 %5119 }
 0x95f   : >> { %12795 = vrcp.f32 %v5123_v16  ;;  %v19755_v16 = vmov 0  }
 0x960   : >> { %12797 = vrcp.f32 %v5120_v58 }
 0x961   : >> { %v12788_v34 = vpop.eup %12787  ;;  %12799 = vrcp.f32 %v5114_v33 }
 0x962   : >> { %v12790_v2 = vpop.eup %12789  ;;  %v5185_v42 = vmul.f32 %v12788_v34, %v16733_v45  ;;  %v5126_v18 = vpop.xlane.xlu0 %5125 }
 0x963   : >> { %v5117_v35 = vpop.xlane.xlu1 %5116  ;;  %v5183_v15 = vmul.f32 %v12790_v2, %v16736_v46  ;;  %v12792_v17 = vpop.eup %12791 }
 0x964   : >> { %12801 = vrcp.f32 %v5117_v35  ;;  %v5179_v28 = vmul.f32 %v12792_v17, %v19754_v25 }
 0x965   : >> { %v5216_v47 = vpack.c.bf16 %v5185_v42, %v5183_v15  ;;  %v12794_v22 = vpop.eup %12793 }
 0x966   : >> { %v5135_v41 = vpop.xlane.xlu0 %5134  ;;  %v5181_v48 = vmul.f32 %v12794_v22, %v16742_v53 }
 0x967   : >> { %v5132_v10 = vpop.xlane.xlu1 %5131  ;;  %12803 = vrcp.f32 %v5135_v41  ;;  %11796 = vmatmul.mubr.msk.bf16.vlgmr.msra.gmra.mrb[148].mxu0 %vm2853_vm4, %v5216_v47 }
 0x968   : >> { %12805 = vrcp.f32 %v5132_v10  ;;  %11807 = vmatprep.mubr.msk.bf16.mxu0 %vm14244_vm2, %v19684_v20  ;;  %v5215_v29 = vpack.c.bf16 %v5181_v48, %v5179_v28 }
 0x969   : >> { %v12796_v45 = vpop.eup %12795  ;;  %12807 = vrcp.f32 %v5126_v18 }
 0x96a   : >> { %v12798_v46 = vpop.eup %12797  ;;  %v5138_v5 = vpop.xlane.xlu0 %5137  ;;  %11790 = vmatmul.mubr.msk.bf16.vlgmr.msra.gmra.mrb[176].mxu1 %vm2853_vm4, %v5215_v29  ;;  %v5193_v49 = vmul.f32 %v12796_v45, %v16751_v0 }
 0x96b   : >> { %v5129_v6 = vpop.xlane.xlu1 %5128  ;;  %v12800_v43 = vpop.eup %12799  ;;  %v5191_v53 = vmul.f32 %v12798_v46, %v16760_v31  ;;  %11800 = vmatpush3.bf16.msra.mxu1 %v5752_v13  ;;  %11801 = vmatprep.mubr.msk.bf16.mxu1 %vm14244_vm2, %v19684_v20 }
 0x96c   : >> { %12809 = vrcp.f32 %v5129_v6  ;;  %11811 = vmatprep.subr.bf16.mxu1 %v19684_v20  ;;  %v5187_v61 = vmul.f32 %v12800_v43, %v16748_v23 }
 0x96d   : >> { %v5218_v38 = vpack.c.bf16 %v5193_v49, %v5191_v53  ;;  %12811 = vrcp.f32 %v5138_v5 }
 0x96e   : >> { %v12802_v9 = vpop.eup %12801  ;;  %v5800_v62 = vpop.permute.xlu0 %5799 }
 0x96f   : >> { %v5848_v8 = vpop.permute.xlu1 %5847  ;;  %v5189_v40 = vmul.f32 %v12802_v9, %v16763_v36  ;;  %11806 = vmatpush3.bf16.msra.mxu0 %v5800_v62 }
 0x970   : >> { %11817 = vmatprep.subr.bf16.mxu0 %v19684_v20 }
 0x971   : >> { %v12804_v0 = vpop.eup %12803  ;;  %v5217_v31 = vpack.c.bf16 %v5189_v40, %v5187_v61 }
 0x972   : >> { %v12806_v50 = vpop.eup %12805  ;;  %11808 = vmatmul.mubr.msk.bf16.vlgmr.msra.gmra.mrb[152].mxu0 %vm2853_vm4, %v5218_v38  ;;  %v5201_v27 = vmul.f32 %v12804_v0, %v16771_v24  ;;  %v12408_v24 = vld [vmem:[%s16892_s29 + $0x8] sm:$0xff]  }
 0x973   : >> { %v5896_v12 = vpop.permute.xlu1 %5895  ;;  %11802 = vmatmul.mubr.msk.bf16.vlgmr.msra.gmra.mrb[180].mxu1 %vm2853_vm4, %v5217_v31  ;;  %v12808_v26 = vpop.eup %12807  ;;  %v5199_v23 = vmul.f32 %v12806_v50, %v16777_v21  ;;  %11819 = vmatprep.mubr.msk.bf16.mxu0 %vm14244_vm2, %v19684_v20  ;;  %v12409_v21 = vld [vmem:[%s16892_s29 + $0x10] sm:$0xff]  }
 0x974   : >> { %11818 = vmatpush3.bf16.msra.mxu0 %v5896_v12  ;;  %11812 = vmatpush3.bf16.msra.mxu1 %v5848_v8  ;;  %v5195_v57 = vmul.f32 %v12808_v26, %v16765_v7  ;;  %v12407_v7 = vld [vmem:[%s16892_s29] sm:$0xff]  }
 0x975   : >> { %11813 = vmatprep.mubr.msk.bf16.mxu1 %vm14244_vm2, %v19684_v20  ;;  %11823 = vmatprep.subr.bf16.mxu1 %v19684_v20  ;;  %v5220_v4 = vpack.c.bf16 %v5201_v27, %v5199_v23 }
 0x976   : >> { %v12810_v36 = vpop.eup %12809  ;;  %11829 = vmatprep.subr.bf16.mxu0 %v12407_v7 }
 0x977   : >> { %v5197_v39 = vmul.f32 %v12810_v36, %v16779_v3  ;;  %v12410_v3 = vld [vmem:[%s16892_s29 + $0x18] sm:$0xff]   ;;  %v12812_v13 = vpop.eup %12811 }
 0x978   : >> { %v5203_v51 = vmul.f32 %v12812_v13, %v16785_v60 }
 0x979   : >> { %v5219_v14 = vpack.c.bf16 %v5197_v39, %v5195_v57 }
 0x97a   : >> { %11820 = vmatmul.mubr.msk.bf16.vlgmr.msra.gmra.mrb[156].mxu0 %vm2853_vm4, %v5220_v4  ;;  %v19756_v4 = vld [vmem:[#allocation78_spill] sm:$0xff] }
 0x97b   : >> { %11814 = vmatmul.mubr.msk.bf16.vlgmr.msra.gmra.mrb[184].mxu1 %vm2853_vm4, %v5219_v14  ;;  %11830 = vmatpush3.bf16.msra.mxu0 %v12407_v7  ;;  %v19757_v14 = vld [vmem:[#allocation90_spill] sm:$0xff] }
 0x97c   : >> { %11825 = vmatprep.mubr.msk.bf16.mxu1 %vm14244_vm2, %v19684_v20  ;;  %11831 = vmatprep.subr.bf16.mxu0 %v12408_v24  ;;  %v12411_v20 = vld [vmem:[%s16892_s29 + $0x20] sm:$0xff]   ;;  %v19758_v7 = vpack.c.bf16 %v19756_v4, %v19757_v14  ;;  %s20032_s29 = sld [smem:[#allocation127_spill]] (%p18675_p5) }
 0x97f   : >> { %11832 = vmatpush3.bf16.msra.mxu0 %v12408_v24 }
 0x980   : >> { %11833 = vmatprep.subr.bf16.mxu0 %v12409_v21 }
 0x983   : >> { %11834 = vmatpush3.bf16.msra.mxu0 %v12409_v21 }
 0x984   : >> { %11835 = vmatprep.subr.bf16.mxu0 %v12410_v3 }
 0x987   : >> { %11836 = vmatpush3.bf16.msra.mxu0 %v12410_v3  ;;  %v19759_v3 = vld [vmem:[#allocation87_spill] sm:$0xff] }
 0x988   : >> { %11837 = vmatprep.subr.bf16.mxu0 %v12411_v20 }
 0x98b   : >> { %11838 = vmatpush3.bf16.msra.mxu0 %v12411_v20  ;;  %v19760_v20 = vld [vmem:[#allocation102_spill] sm:$0xff] }
 0x98c   : >> { %11839 = vmatprep.subr.bf16.mxu0 %v12412_v63 }
 0x98f   : >> { %11840 = vmatpush3.bf16.msra.mxu0 %v12412_v63 }
 0x990   : >> { %11841 = vmatprep.subr.bf16.mxu0 %v12413_v55 }
 0x993   : >> { %11842 = vmatpush3.bf16.msra.mxu0 %v12413_v55 }
 0x994   : >> { %11843 = vmatprep.subr.bf16.mxu0 %v12414_v37 }
 0x997   : >> { %11844 = vmatpush3.bf16.msra.mxu0 %v12414_v37 }
 0x99e   : >> { %v5263_v54 = vpop.f32.mrb[128].mxu0 }
 0x99f   : >> { %v11737_v44 = vpop.f32.mrb[129].mxu0 }
 0x9a0   : >> { %v5266_v30 = vpop.f32.mrb[130].mxu0 }
 0x9a1   : >> { %v5990_v52 = vpack.c.bf16 %v5266_v30, %v5263_v54  ;;  %v11738_v1 = vpop.f32.mrb[131].mxu0  ;;  %v19761_v54 = vpack.c.bf16 %v19759_v3, %v19760_v20  ;;  %v19762_v30 = vld [vmem:[#allocation79_spill] sm:$0xff] }
 0x9a3   : >> { %v5141_v32 = vpop.xlane.xlu1 %5140  ;;  %6022 = vrot.lane.b32.xlu0 %v5990_v52, %s14245_s27  ;;  %v19763_v52 = vld [vmem:[#allocation107_spill] sm:$0xff] }
 0x9a4   : >> { %12813 = vrcp.f32 %v5141_v32  ;;  %v19764_v1 = vpack.c.bf16 %v19762_v30, %v19763_v52 }
 0x9a7   : >> { %v5944_v56 = vpop.permute.xlu1 %5943 }
 0x9a8   : >> { %11824 = vmatpush3.bf16.msra.mxu1 %v5944_v56 }
 0x9ae   : >> { %v12814_v11 = vpop.eup %12813 }
 0x9af   : >> { %v5205_v33 = vmul.f32 %v12814_v11, %v16813_v19 }
 0x9b1   : >> { %v5221_v59 = vpack.c.bf16 %v5205_v33, %v5203_v51 }
 0x9b3   : >> { %11826 = vmatmul.mubr.msk.bf16.vlgmr.msra.gmra.mrb[188].mxu1 %vm2853_vm4, %v5221_v59 }
 0x9b4   : >> { %7087 = vmatprep.mubr.bf16.mxu1 %v19755_v16 }
 0x9b7   : >> { %v5311_v58 = vpop.f32.mrb[160].mxu1 }
 0x9b8   : >> { %v11743_v34 = vpop.f32.mrb[161].mxu1 }
 0x9b9   : >> { %v5314_v2 = vpop.f32.mrb[162].mxu1 }
 0x9ba   : >> { %v5991_v42 = vpack.c.bf16 %v5314_v2, %v5311_v58  ;;  %v11744_v18 = vpop.f32.mrb[163].mxu1 }
 0x9bb   : >> { %v5359_v35 = vpop.f32.mrb[132].mxu0 }
 0x9bc   : >> { %6024 = vrot.lane.b32.xlu1 %v5991_v42, %s14245_s27  ;;  %v11749_v15 = vpop.f32.mrb[133].mxu0 }
 0x9bd   : >> { %v5362_v17 = vpop.f32.mrb[134].mxu0 }
 0x9be   : >> { %v5992_v47 = vpack.c.bf16 %v5362_v17, %v5359_v35  ;;  %v11750_v22 = vpop.f32.mrb[135].mxu0 }
 0x9c0   : >> { %6026 = vrot.lane.b32.xlu0 %v5992_v47, %s14245_s27 }
 0x9f0   : >> { %v5455_v60 = vpop.f32.mrb[136].mxu0 }
 0x9f1   : >> { %v11761_v19 = vpop.f32.mrb[137].mxu0 }
 0x9f2   : >> { %v5458_v41 = vpop.f32.mrb[138].mxu0 }
 0x9f3   : >> { %v5994_v10 = vpack.c.bf16 %v5458_v41, %v5455_v60  ;;  %v11762_v25 = vpop.f32.mrb[139].mxu0 }
 0x9f4   : >> { %v5407_v28 = vpop.f32.mrb[164].mxu1 }
 0x9f5   : >> { %6030 = vrot.lane.b32.xlu0 %v5994_v10, %s14245_s27  ;;  %v11755_v48 = vpop.f32.mrb[165].mxu1 }
 0x9f6   : >> { %v5410_v45 = vpop.f32.mrb[166].mxu1 }
 0x9f7   : >> { %v5993_v29 = vpack.c.bf16 %v5410_v45, %v5407_v28  ;;  %v11756_v46 = vpop.f32.mrb[167].mxu1 }
 0x9f9   : >> { %v5551_v5 = vpop.f32.mrb[140].mxu0  ;;  %6028 = vrot.lane.b32.xlu1 %v5993_v29, %s14245_s27 }
 0x9fa   : >> { %v11773_v6 = vpop.f32.mrb[141].mxu0 }
 0x9fb   : >> { %v5554_v43 = vpop.f32.mrb[142].mxu0 }
 0x9fc   : >> { %v5996_v49 = vpack.c.bf16 %v5554_v43, %v5551_v5  ;;  %v11774_v53 = vpop.f32.mrb[143].mxu0  ;;  %v5503_v9 = vpop.f32.mrb[168].mxu1 }
 0x9fd   : >> { %v11767_v62 = vpop.f32.mrb[169].mxu1  ;;  %v19765_v53 = vld [vmem:[#allocation86_spill] sm:$0xff] }
 0x9fe   : >> { %6034 = vrot.lane.b32.xlu0 %v5996_v49, %s14245_s27  ;;  %v5506_v8 = vpop.f32.mrb[170].mxu1 }
 0x9ff   : >> { %v5995_v61 = vpack.c.bf16 %v5506_v8, %v5503_v9  ;;  %v11768_v40 = vpop.f32.mrb[171].mxu1  ;;  %v19766_v9 = vld [vmem:[#allocation101_spill] sm:$0xff] }
 0xa00   : >> { %v19767_v62 = vpack.c.bf16 %v19765_v53, %v19766_v9  ;;  %v19769_v40 = vld [vmem:[#allocation81_spill] sm:$0xff] }
 0xa01   : >> { %v5647_v38 = vpop.f32.mrb[144].mxu0  ;;  %6032 = vrot.lane.b32.xlu1 %v5995_v61, %s14245_s27  ;;  %v19768_v61 = vld [vmem:[#allocation104_spill] sm:$0xff]  ;;  %v19801_v9 = vld [vmem:[#allocation109_spill] sm:$0xff] }
 0xa02   : >> { %v11785_v0 = vpop.f32.mrb[145].mxu0 }
 0xa03   : >> { %v5650_v31 = vpop.f32.mrb[146].mxu0 }
 0xa04   : >> { %v5998_v50 = vpack.c.bf16 %v5650_v31, %v5647_v38  ;;  %v11786_v12 = vpop.f32.mrb[147].mxu0  ;;  %v5599_v26 = vpop.f32.mrb[172].mxu1  ;;  %v19770_v38 = vpack.c.bf16 %v19768_v61, %v19769_v40 }
 0xa05   : >> { %v11779_v27 = vpop.f32.mrb[173].mxu1  ;;  %v19771_v12 = vld [vmem:[#allocation80_spill] sm:$0xff] }
 0xa06   : >> { %6038 = vrot.lane.b32.xlu0 %v5998_v50, %s14245_s27  ;;  %v5602_v23 = vpop.f32.mrb[174].mxu1 }
 0xa07   : >> { %v5997_v36 = vpack.c.bf16 %v5602_v23, %v5599_v26  ;;  %v11780_v57 = vpop.f32.mrb[175].mxu1  ;;  %v19772_v26 = vld [vmem:[#allocation96_spill] sm:$0xff] }
 0xa08   : >> { %v19773_v27 = vpack.c.bf16 %v19771_v12, %v19772_v26  ;;  %v19775_v57 = vld [vmem:[#allocation95_spill] sm:$0xff] }
 0xa09   : >> { %6036 = vrot.lane.b32.xlu1 %v5997_v36, %s14245_s27  ;;  %v19774_v36 = vld [vmem:[#allocation83_spill] sm:$0xff] }
 0xa15   : >> { %v6023_v39 = vpop.permute.xlu0 %6022 }
 0xa16   : >> { %v6056_v24 = vsel %vm2036_vm3, %v19758_v7, %v6023_v39  ;;  %v19776_v39 = vpack.c.bf16 %v19774_v36, %v19775_v57  ;;  %v19807_v57 = vld [vmem:[#allocation76_spill] sm:$0xff] }
 0xa17   : >> { %11845 = vmatprep.mubr.bf16.mxu0 %v6056_v24  ;;  %v19777_v24 = vld [vmem:[#allocation82_spill] sm:$0xff] }
 0xa2e   : >> { %v6025_v21 = vpop.permute.xlu1 %6024 }
 0xa2f   : >> { %v6060_v44 = vsel %vm2036_vm3, %v19761_v54, %v6025_v21  ;;  %v19778_v21 = vld [vmem:[#allocation100_spill] sm:$0xff] }
 0xa30   : >> { %11846 = vmatmul.mubr.bf16.vlgmr.msra.gmra.mrb[160].mxu0 %v6060_v44  ;;  %v19779_v3 = vpack.c.bf16 %v19777_v24, %v19778_v21  ;;  %v19780_v54 = vld [vmem:[#allocation84_spill] sm:$0xff]  ;;  %v19781_v44 = vld [vmem:[#allocation85_spill] sm:$0xff] }
 0xa32   : >> { %v6027_v63 = vpop.permute.xlu0 %6026 }
 0xa33   : >> { %v6064_v32 = vsel %vm2036_vm3, %v19764_v1, %v6027_v63  ;;  %v19782_v63 = vpack.c.bf16 %v19780_v54, %v19781_v44  ;;  %v19812_v54 = vld [vmem:[#allocation73_spill] sm:$0xff] }
 0xa34   : >> { %11849 = vmatprep.mubr.bf16.mxu0 %v6064_v32 }
 0xa3a   : >> { %v5743_v55 = vpop.f32.mrb[148].mxu0 }
 0xa3b   : >> { %v11797_v56 = vpop.f32.mrb[149].mxu0 }
 0xa3c   : >> { %v5746_v37 = vpop.f32.mrb[150].mxu0 }
 0xa3d   : >> { %v6000_v13 = vpack.c.bf16 %v5746_v37, %v5743_v55  ;;  %v11798_v11 = vpop.f32.mrb[151].mxu0  ;;  %v5695_v51 = vpop.f32.mrb[176].mxu1 }
 0xa3e   : >> { %v11791_v33 = vpop.f32.mrb[177].mxu1  ;;  %v19783_v11 = vld [vmem:[#allocation88_spill] sm:$0xff] }
 0xa3f   : >> { %6042 = vrot.lane.b32.xlu0 %v6000_v13, %s14245_s27  ;;  %v5698_v59 = vpop.f32.mrb[178].mxu1 }
 0xa40   : >> { %v5999_v58 = vpack.c.bf16 %v5698_v59, %v5695_v51  ;;  %v11792_v34 = vpop.f32.mrb[179].mxu1  ;;  %v19784_v51 = vld [vmem:[#allocation89_spill] sm:$0xff] }
 0xa41   : >> { %v19785_v33 = vpack.c.bf16 %v19783_v11, %v19784_v51  ;;  %v19787_v34 = vld [vmem:[#allocation92_spill] sm:$0xff] }
 0xa42   : >> { %6040 = vrot.lane.b32.xlu1 %v5999_v58, %s14245_s27  ;;  %v19786_v58 = vld [vmem:[#allocation91_spill] sm:$0xff] }
 0xa45   : >> { %v5839_v2 = vpop.f32.mrb[152].mxu0 }
 0xa46   : >> { %v5791_v42 = vpop.f32.mrb[180].mxu1  ;;  %v11809_v18 = vpop.f32.mrb[153].mxu0 }
 0xa47   : >> { %v11803_v35 = vpop.f32.mrb[181].mxu1  ;;  %v5842_v15 = vpop.f32.mrb[154].mxu0 }
 0xa48   : >> { %v5794_v17 = vpop.f32.mrb[182].mxu1  ;;  %v6002_v47 = vpack.c.bf16 %v5842_v15, %v5839_v2  ;;  %v11810_v22 = vpop.f32.mrb[155].mxu0  ;;  %v19788_v2 = vpack.c.bf16 %v19786_v58, %v19787_v34  ;;  %v19789_v15 = vld [vmem:[#allocation97_spill] sm:$0xff] }
 0xa49   : >> { %v6001_v60 = vpack.c.bf16 %v5794_v17, %v5791_v42  ;;  %v11804_v19 = vpop.f32.mrb[183].mxu1  ;;  %v19790_v17 = vld [vmem:[#allocation98_spill] sm:$0xff]  ;;  %v19820_v34 = vld [vmem:[#allocation69_spill] sm:$0xff] }
 0xa4a   : >> { %6046 = vrot.lane.b32.xlu0 %v6002_v47, %s14245_s27  ;;  %v19791_v47 = vpack.c.bf16 %v19789_v15, %v19790_v17  ;;  %v19793_v19 = vld [vmem:[#allocation94_spill] sm:$0xff] }
 0xa4b   : >> { %6044 = vrot.lane.b32.xlu1 %v6001_v60, %s14245_s27  ;;  %v19792_v60 = vld [vmem:[#allocation93_spill] sm:$0xff] }
 0xa4d   : >> { %v5935_v41 = vpop.f32.mrb[156].mxu0 }
 0xa4e   : >> { %v5887_v10 = vpop.f32.mrb[184].mxu1  ;;  %v11821_v25 = vpop.f32.mrb[157].mxu0 }
 0xa4f   : >> { %v11815_v28 = vpop.f32.mrb[185].mxu1  ;;  %v5938_v48 = vpop.f32.mrb[158].mxu0 }
 0xa50   : >> { %v5890_v45 = vpop.f32.mrb[186].mxu1  ;;  %v6004_v29 = vpack.c.bf16 %v5938_v48, %v5935_v41  ;;  %v11822_v46 = vpop.f32.mrb[159].mxu0  ;;  %v19794_v41 = vpack.c.bf16 %v19792_v60, %v19793_v19  ;;  %v19795_v48 = vld [vmem:[#allocation105_spill] sm:$0xff]  ;;  %v19824_v60 = vld [vmem:[#allocation66_spill] sm:$0xff] }
 0xa51   : >> { %v6003_v5 = vpack.c.bf16 %v5890_v45, %v5887_v10  ;;  %v11816_v6 = vpop.f32.mrb[187].mxu1  ;;  %v19796_v45 = vld [vmem:[#allocation106_spill] sm:$0xff] }
 0xa52   : >> { %6050 = vrot.lane.b32.xlu0 %v6004_v29, %s14245_s27  ;;  %v19797_v29 = vpack.c.bf16 %v19795_v48, %v19796_v45  ;;  %v19799_v6 = vld [vmem:[#allocation99_spill] sm:$0xff]  ;;  %v19828_v45 = vld [vmem:[#allocation65_spill] sm:$0xff] }
 0xa53   : >> { %6048 = vrot.lane.b32.xlu1 %v6003_v5, %s14245_s27  ;;  %v19798_v5 = vld [vmem:[#allocation103_spill] sm:$0xff] }
 0xa67   : >> { %v6031_v43 = vpop.permute.xlu0 %6030 }
 0xa68   : >> { %v6072_v0 = vsel %vm2036_vm3, %v19770_v38, %v6031_v43  ;;  %v19800_v43 = vpack.c.bf16 %v19798_v5, %v19799_v6  ;;  %v16988_v38 = vld [vmem:[%s6378_s30] ss:$0 sm:$0xff]  ;;  %s10987_s30 = sshll.u32 (%p18675_p5), %s14368_s0, 8  ;;  %s13859_s0 = scalar_lea.vmem (%p18675_p5), %s19314_s28, 256 }
 0xa69   : >> { %v19829_v6 = vld [vmem:[#allocation63_spill] sm:$0xff]  ;;  %p13860_p9 = scmp.ne.s32.totalorder (%p18675_p5), %s19314_s28, %s13859_s0 }
 0xa6b   : >> { %v6029_v49 = vpop.permute.xlu1 %6028 }
 0xa6c   : >> { %v6068_v8 = vsel %vm2036_vm3, %v19767_v62, %v6029_v49  ;;  %v19802_v62 = vld [vmem:[#allocation108_spill] sm:$0xff] }
 0xa6d   : >> { %11850 = vmatmul.mubr.bf16.gmra.mrb[164].mxu0 %v6068_v8  ;;  %v19803_v8 = vpack.c.bf16 %v19801_v9, %v19802_v62  ;;  %v19832_v62 = vld [vmem:[#allocation62_spill] sm:$0xff] }
 0xa6e   : >> { %11853 = vmatprep.mubr.bf16.mxu0 %v6072_v0 }
 0xa70   : >> { %v6035_v31 = vpop.permute.xlu0 %6034 }
 0xa71   : >> { %v6080_v4 = vsel %vm2036_vm3, %v19776_v39, %v6035_v31  ;;  %v19804_v31 = vld [vmem:[#allocation77_spill] sm:$0xff] }
 0xa73   : >> { %v6033_v50 = vpop.permute.xlu1 %6032 }
 0xa74   : >> { %v6076_v23 = vsel %vm2036_vm3, %v19773_v27, %v6033_v50  ;;  %v19805_v27 = vld [vmem:[#allocation75_spill] sm:$0xff] }
 0xa75   : >> { %11854 = vmatmul.mubr.bf16.gmra.mrb[168].mxu0 %v6076_v23 }
 0xa76   : >> { %11857 = vmatprep.mubr.bf16.mxu0 %v6080_v4 }
 0xa78   : >> { %v6039_v14 = vpop.permute.xlu0 %6038 }
 0xa79   : >> { %v6088_v30 = vsel %vm2036_vm3, %v19782_v63, %v6039_v14 }
 0xa7b   : >> { %v6037_v7 = vpop.permute.xlu1 %6036 }
 0xa7c   : >> { %v6084_v20 = vsel %vm2036_vm3, %v19779_v3, %v6037_v7  ;;  %v19810_v7 = vld [vmem:[#allocation74_spill] sm:$0xff] }
 0xa7d   : >> { %11858 = vmatmul.mubr.bf16.gmra.mrb[172].mxu0 %v6084_v20 }
 0xa7e   : >> { %11861 = vmatprep.mubr.bf16.mxu0 %v6088_v30 }
 0xa86   : >> { %v5983_v52 = vpop.f32.mrb[188].mxu1 }
 0xa87   : >> { %v11827_v1 = vpop.f32.mrb[189].mxu1 }
 0xa88   : >> { %v5986_v32 = vpop.f32.mrb[190].mxu1 }
 0xa89   : >> { %v6005_v55 = vpack.c.bf16 %v5986_v32, %v5983_v52  ;;  %v11828_v56 = vpop.f32.mrb[191].mxu1  ;;  %v19813_v52 = vld [vmem:[#allocation71_spill] sm:$0xff] }
 0xa8b   : >> { %6052 = vrot.lane.b32.xlu1 %v6005_v55, %s14245_s27  ;;  %v19815_v55 = vld [vmem:[#allocation72_spill] sm:$0xff] }
 0xab1   : >> { %v6043_v37 = vpop.permute.xlu0 %6042 }
 0xab2   : >> { %v6096_v42 = vsel %vm2036_vm3, %v19788_v2, %v6043_v37  ;;  %v19816_v37 = vld [vmem:[#allocation70_spill] sm:$0xff] }
 0xab4   : >> { %v6041_v13 = vpop.permute.xlu1 %6040 }
 0xab5   : >> { %v6092_v59 = vsel %vm2036_vm3, %v19785_v33, %v6041_v13 }
 0xab6   : >> { %11862 = vmatmul.mubr.bf16.gmra.mrb[176].mxu0 %v6092_v59 }
 0xab7   : >> { %11865 = vmatprep.mubr.bf16.mxu0 %v6096_v42 }
 0xabc   : >> { %v6047_v18 = vpop.permute.xlu0 %6046 }
 0xabd   : >> { %v6045_v35 = vpop.permute.xlu1 %6044  ;;  %v6104_v22 = vsel %vm2036_vm3, %v19791_v47, %v6047_v18  ;;  %v19823_v47 = vld [vmem:[#allocation68_spill] sm:$0xff] }
 0xabe   : >> { %v6100_v10 = vsel %vm2036_vm3, %v19794_v41, %v6045_v35  ;;  %v19821_v35 = vld [vmem:[#allocation67_spill] sm:$0xff] }
 0xabf   : >> { %11866 = vmatmul.mubr.bf16.gmra.mrb[180].mxu0 %v6100_v10 }
 0xac0   : >> { %11869 = vmatprep.mubr.bf16.mxu0 %v6104_v22 }
 0xac4   : >> { %v6051_v25 = vpop.permute.xlu0 %6050 }
 0xac5   : >> { %v6049_v28 = vpop.permute.xlu1 %6048  ;;  %v6112_v46 = vsel %vm2036_vm3, %v19797_v29, %v6051_v25 }
 0xac6   : >> { %v6108_v49 = vsel %vm2036_vm3, %v19800_v43, %v6049_v28 }
 0xac7   : >> { %11870 = vmatmul.mubr.bf16.gmra.mrb[184].mxu0 %v6108_v49 }
 0xac8   : >> { %11873 = vmatprep.mubr.bf16.mxu0 %v6112_v46 }
 0xafd   : >> { %v6053_v53 = vpop.permute.xlu1 %6052 }
 0xafe   : >> { %v6116_v61 = vsel %vm2036_vm3, %v19803_v8, %v6053_v53  ;;  %v19831_v53 = vld [vmem:[#allocation64_spill] sm:$0xff] }
 0xaff   : >> { %11874 = vmatmul.mubr.bf16.gmra.mrb[188].mxu0 %v6116_v61 }
 0xb00   : >> { %7280 = vmatprep.mubr.bf16.mxu0 %v19755_v16 }
 0xb03   : >> { %v11847_v40 = vpop.f32.mrb[160].mxu0 }
 0xb04   : >> { %v6219_v0 = vpop.f32.mrb[161].mxu0  ;;  %v6348_v23 = vadd.f32 %v19805_v27, %v11847_v40 }
 0xb05   : >> { %v6346_v50 = vadd.f32 %v19804_v31, %v6219_v0  ;;  %v11848_v12 = vpop.f32.mrb[162].mxu0 }
 0xb06   : >> { %v6222_v26 = vpop.f32.mrb[163].mxu0  ;;  %v17001_v14 = vadd.f32 %v16988_v38, %v6348_v23  ;;  %v6349_v24 = vadd.f32 %v19810_v7, %v11848_v12  ;;  %v19836_v12 = vld [vmem:[#allocation61_spill] sm:$0xff] }
 0xb07   : >> { %v16993_v36 = vadd.f32 %v16988_v38, %v6346_v50  ;;  %v6347_v39 = vadd.f32 %v19807_v57, %v6222_v26  ;;  %v19837_v57 = vld [vmem:[#allocation59_spill] sm:$0xff] }
 0xb08   : >> { %19809 = vst [vmem:[#allocation112_spill] sm:$0xff] %v17001_v14  ;;  %v17007_v21 = vadd.f32 %v16988_v38, %v6349_v24  ;;  %v19839_v24 = vld [vmem:[#allocation60_spill] sm:$0xff] }
 0xb09   : >> { %19806 = vst [vmem:[#allocation111_spill] sm:$0xff] %v16993_v36  ;;  %v16997_v4 = vadd.f32 %v16988_v38, %v6347_v39  ;;  %6420 = vadd.xlane.f32.xlu0 %v16993_v36 }
 0xb0a   : >> { %19811 = vst [vmem:[#allocation78_spill] sm:$0xff] %v17007_v21 }
 0xb0b   : >> { %19808 = vst [vmem:[#allocation110_spill] sm:$0xff] %v16997_v4  ;;  %6422 = vadd.xlane.f32.xlu1 %v16997_v4 }
 0xb0d   : >> { %6424 = vadd.xlane.f32.xlu0 %v17001_v14 }
 0xb11   : >> { %6426 = vadd.xlane.f32.xlu0 %v17007_v21 }
 0xb40   : >> { %v11851_v3 = vpop.f32.mrb[164].mxu0 }
 0xb41   : >> { %v6235_v20 = vpop.f32.mrb[165].mxu0  ;;  %v6352_v1 = vadd.f32 %v19813_v52, %v11851_v3 }
 0xb42   : >> { %v6350_v44 = vadd.f32 %v19812_v54, %v6235_v20  ;;  %v11852_v63 = vpop.f32.mrb[166].mxu0  ;;  %v19840_v20 = vld [vmem:[#allocation58_spill] sm:$0xff] }
 0xb43   : >> { %v6238_v30 = vpop.f32.mrb[167].mxu0  ;;  %v6353_v13 = vadd.f32 %v19816_v37, %v11852_v63  ;;  %v17022_v51 = vadd.f32 %v16988_v38, %v6352_v1 }
 0xb44   : >> { %v17013_v32 = vadd.f32 %v16988_v38, %v6350_v44  ;;  %v6351_v56 = vadd.f32 %v19815_v55, %v6238_v30 }
 0xb45   : >> { %19818 = vst [vmem:[#allocation102_spill] sm:$0xff] %v17022_v51  ;;  %v17026_v58 = vadd.f32 %v16988_v38, %v6353_v13 }
 0xb46   : >> { %19814 = vst [vmem:[#allocation90_spill] sm:$0xff] %v17013_v32  ;;  %v17018_v11 = vadd.f32 %v16988_v38, %v6351_v56  ;;  %6428 = vadd.xlane.f32.xlu0 %v17013_v32 }
 0xb47   : >> { %19819 = vst [vmem:[#allocation79_spill] sm:$0xff] %v17026_v58 }
 0xb48   : >> { %19817 = vst [vmem:[#allocation87_spill] sm:$0xff] %v17018_v11  ;;  %6430 = vadd.xlane.f32.xlu1 %v17018_v11  ;;  %v11855_v33 = vpop.f32.mrb[168].mxu0 }
 0xb49   : >> { %v6251_v59 = vpop.f32.mrb[169].mxu0  ;;  %v6356_v15 = vadd.f32 %v19821_v35, %v11855_v33 }
 0xb4a   : >> { %v6354_v2 = vadd.f32 %v19820_v34, %v6251_v59  ;;  %6432 = vadd.xlane.f32.xlu0 %v17022_v51  ;;  %v11856_v42 = vpop.f32.mrb[170].mxu0 }
 0xb4b   : >> { %v6254_v18 = vpop.f32.mrb[171].mxu0  ;;  %v6357_v19 = vadd.f32 %v19824_v60, %v11856_v42  ;;  %v17042_v10 = vadd.f32 %v16988_v38, %v6356_v15 }
 0xb4c   : >> { %v17032_v17 = vadd.f32 %v16988_v38, %v6354_v2  ;;  %v6355_v22 = vadd.f32 %v19823_v47, %v6254_v18  ;;  %6434 = vadd.xlane.f32.xlu1 %v17026_v58  ;;  %v19844_v18 = vld [vmem:[#allocation57_spill] sm:$0xff] }
 0xb4d   : >> { %19826 = vst [vmem:[#allocation101_spill] sm:$0xff] %v17042_v10  ;;  %v17046_v48 = vadd.f32 %v16988_v38, %v6357_v19 }
 0xb4e   : >> { %19822 = vst [vmem:[#allocation107_spill] sm:$0xff] %v17032_v17  ;;  %v17038_v41 = vadd.f32 %v16988_v38, %v6355_v22  ;;  %6436 = vadd.xlane.f32.xlu0 %v17032_v17 }
 0xb4f   : >> { %19827 = vst [vmem:[#allocation104_spill] sm:$0xff] %v17046_v48 }
 0xb50   : >> { %19825 = vst [vmem:[#allocation86_spill] sm:$0xff] %v17038_v41  ;;  %6438 = vadd.xlane.f32.xlu1 %v17038_v41  ;;  %v11859_v25 = vpop.f32.mrb[172].mxu0 }
 0xb51   : >> { %v6267_v28 = vpop.f32.mrb[173].mxu0  ;;  %v6360_v43 = vadd.f32 %v19829_v6, %v11859_v25  ;;  %v19845_v25 = vld [vmem:[#allocation56_spill] sm:$0xff] }
 0xb52   : >> { %v6358_v29 = vadd.f32 %v19828_v45, %v6267_v28  ;;  %6440 = vadd.xlane.f32.xlu0 %v17042_v10  ;;  %v11860_v46 = vpop.f32.mrb[174].mxu0 }
 0xb53   : >> { %v6270_v5 = vpop.f32.mrb[175].mxu0  ;;  %v6361_v8 = vadd.f32 %v19832_v62, %v11860_v46  ;;  %v17062_v40 = vadd.f32 %v16988_v38, %v6360_v43  ;;  %v19848_v62 = vld [vmem:[#allocation55_spill] sm:$0xff] }
 0xb54   : >> { %v17052_v49 = vadd.f32 %v16988_v38, %v6358_v29  ;;  %v6359_v9 = vadd.f32 %v19831_v53, %v6270_v5  ;;  %6442 = vadd.xlane.f32.xlu1 %v17046_v48 }
 0xb55   : >> { %19834 = vst [vmem:[#allocation96_spill] sm:$0xff] %v17062_v40  ;;  %v17066_v0 = vadd.f32 %v16988_v38, %v6361_v8 }
 0xb56   : >> { %19830 = vst [vmem:[#allocation81_spill] sm:$0xff] %v17052_v49  ;;  %v17058_v61 = vadd.f32 %v16988_v38, %v6359_v9  ;;  %6444 = vadd.xlane.f32.xlu0 %v17052_v49 }
 0xb57   : >> { %19835 = vst [vmem:[#allocation83_spill] sm:$0xff] %v17066_v0 }
 0xb58   : >> { %19833 = vst [vmem:[#allocation80_spill] sm:$0xff] %v17058_v61  ;;  %6446 = vadd.xlane.f32.xlu1 %v17058_v61 }
 0xb5a   : >> { %6448 = vadd.xlane.f32.xlu0 %v17062_v40 }
 0xb5c   : >> { %6450 = vadd.xlane.f32.xlu1 %v17066_v0 }
 0xb89   : >> { %v11863_v31 = vpop.f32.mrb[176].mxu0 }
 0xb8a   : >> { %v6283_v50 = vpop.f32.mrb[177].mxu0  ;;  %v6364_v39 = vadd.f32 %v19837_v57, %v11863_v31  ;;  %v12418_v57 = vld [vmem:[%s17130_s22 + $0x8] ss:$16 sps:$4 sm:$0xff]  }
 0xb8b   : >> { %v6362_v26 = vadd.f32 %v19836_v12, %v6283_v50  ;;  %v11864_v27 = vpop.f32.mrb[178].mxu0  ;;  %v12417_v50 = vld [vmem:[%s17130_s22 + $0x4] ss:$16 sps:$4 sm:$0xff]  }
 0xb8c   : >> { %v6286_v23 = vpop.f32.mrb[179].mxu0  ;;  %v6365_v54 = vadd.f32 %v19840_v20, %v11864_v27  ;;  %v17082_v63 = vadd.f32 %v16988_v38, %v6364_v39  ;;  %v19849_v12 = vld [vmem:[#allocation54_spill] sm:$0xff]  ;;  %7055 = vmatprep.subr.bf16.mxu1 %v12417_v50 }
 0xb8d   : >> { %v17073_v7 = vadd.f32 %v16988_v38, %v6362_v26  ;;  %v6363_v3 = vadd.f32 %v19839_v24, %v6286_v23  ;;  %v12415_v23 = vld [vmem:[%s17130_s22] ss:$16 sps:$4 sm:$0xff]   ;;  %v12420_v39 = vld [vmem:[%s17130_s22 + $0xc] ss:$16 sps:$4 sm:$0xff]   ;;  %v12423_v20 = vld [vmem:[%s17130_s22 + $0x24] ss:$16 sps:$4 sm:$0xff]  }
 0xb8e   : >> { %19842 = vst [vmem:[#allocation100_spill] sm:$0xff] %v17082_v63  ;;  %v17086_v1 = vadd.f32 %v16988_v38, %v6365_v54  ;;  %7056 = vmatpush1.bf16.msra.mxu1 %v12415_v23  ;;  %7248 = vmatprep.subr.bf16.mxu0 %v12420_v39  ;;  %v12424_v54 = vld [vmem:[%s17130_s22 + $0x28] ss:$16 sps:$4 sm:$0xff]   ;;  %v12456_v50 = vld [vmem:[%s17130_s22 + $0xcc] ss:$16 sps:$4 sm:$0xff]  }
 0xb8f   : >> { %19838 = vst [vmem:[#allocation95_spill] sm:$0xff] %v17073_v7  ;;  %v17078_v44 = vadd.f32 %v16988_v38, %v6363_v3  ;;  %6452 = vadd.xlane.f32.xlu0 %v17073_v7  ;;  %v12421_v3 = vld [vmem:[%s17130_s22 + $0x20] ss:$16 sps:$4 sm:$0xff]   ;;  %7249 = vmatpush1.bf16.msra.mxu0 %v12418_v57  ;;  %v12462_v23 = vld [vmem:[%s17130_s22 + $0xec] ss:$16 sps:$4 sm:$0xff]  }
 0xb90   : >> { %19843 = vst [vmem:[#allocation84_spill] sm:$0xff] %v17086_v1  ;;  %7057 = vmatprep.subr.bf16.mxu1 %v12423_v20 }
 0xb91   : >> { %19841 = vst [vmem:[#allocation82_spill] sm:$0xff] %v17078_v44  ;;  %6454 = vadd.xlane.f32.xlu1 %v17078_v44 }
 0xb92   : >> { %v11867_v30 = vpop.f32.mrb[180].mxu0  ;;  %7058 = vmatpush1.bf16.msra.mxu1 %v12421_v3 }
 0xb93   : >> { %v6299_v52 = vpop.f32.mrb[181].mxu0  ;;  %6456 = vadd.xlane.f32.xlu0 %v17082_v63  ;;  %v6368_v8 = vadd.f32 %v19848_v62, %v11867_v30  ;;  %v12451_v62 = vld [vmem:[%s17130_s22 + $0xc0] ss:$16 sps:$4 sm:$0xff]  }
 0xb94   : >> { %v11868_v55 = vpop.f32.mrb[182].mxu0  ;;  %v6366_v35 = vadd.f32 %v19844_v18, %v6299_v52  ;;  %v12426_v52 = vld [vmem:[%s17130_s22 + $0x2c] ss:$16 sps:$4 sm:$0xff]   ;;  %v12436_v18 = vld [vmem:[%s17130_s22 + $0x68] ss:$16 sps:$4 sm:$0xff]  }
 0xb95   : >> { %v6302_v56 = vpop.f32.mrb[183].mxu0  ;;  %6458 = vadd.xlane.f32.xlu1 %v17086_v1  ;;  %v6369_v26 = vadd.f32 %v19849_v12, %v11868_v55  ;;  %v17140_v24 = vadd.f32 %v16988_v38, %v6368_v8  ;;  %7250 = vmatprep.subr.bf16.mxu0 %v12426_v52  ;;  %v12429_v55 = vld [vmem:[%s17130_s22 + $0x44] ss:$16 sps:$4 sm:$0xff]   ;;  %v12457_v12 = vld [vmem:[%s17130_s22 + $0xe0] ss:$16 sps:$4 sm:$0xff]  }
 0xb96   : >> { %v6421_v37 = vpop.xlane.xlu0 %6420  ;;  %v6367_v28 = vadd.f32 %v19845_v25, %v6302_v56  ;;  %v17111_v5 = vadd.f32 %v16988_v38, %v6366_v35  ;;  %v12432_v56 = vld [vmem:[%s17130_s22 + $0x4c] ss:$16 sps:$4 sm:$0xff]   ;;  %7251 = vmatpush1.bf16.msra.mxu0 %v12424_v54  ;;  %7059 = vmatprep.subr.bf16.mxu1 %v12429_v55  ;;  %v12441_v35 = vld [vmem:[%s17130_s22 + $0x84] ss:$16 sps:$4 sm:$0xff]   ;;  %v12442_v25 = vld [vmem:[%s17130_s22 + $0x88] ss:$16 sps:$4 sm:$0xff]  }
 0xb97   : >> { %v6484_v13 = vmul.f32 0.0078125, %v6421_v37  ;;  %19850 = vst [vmem:[#allocation89_spill] sm:$0xff] %v17140_v24  ;;  %v17146_v30 = vadd.f32 %v16988_v38, %v6369_v26  ;;  %v12427_v37 = vld [vmem:[%s17130_s22 + $0x40] ss:$16 sps:$4 sm:$0xff]   ;;  %7252 = vmatprep.subr.bf16.mxu0 %v12432_v56  ;;  %v12453_v8 = vld [vmem:[%s17130_s22 + $0xc4] ss:$16 sps:$4 sm:$0xff]  }
 0xb98   : >> { %v6423_v33 = vpop.xlane.xlu1 %6422  ;;  %19846 = vst [vmem:[#allocation85_spill] sm:$0xff] %v17111_v5  ;;  %v17117_v53 = vadd.f32 %v16988_v38, %v6367_v28  ;;  %7060 = vmatpush1.bf16.msra.mxu1 %v12427_v37  ;;  %v12447_v28 = vld [vmem:[%s17130_s22 + $0xa4] ss:$16 sps:$4 sm:$0xff]  }
 0xb99   : >> { %v17091_v59 = vsub.f32 %v16993_v36, %v6484_v13  ;;  %v6485_v34 = vmul.f32 0.0078125, %v6423_v33  ;;  %19851 = vst [vmem:[#allocation91_spill] sm:$0xff] %v17146_v30  ;;  %v12430_v13 = vld [vmem:[%s17130_s22 + $0x48] ss:$16 sps:$4 sm:$0xff]   ;;  %v12435_v33 = vld [vmem:[%s17130_s22 + $0x64] ss:$16 sps:$4 sm:$0xff]  }
 0xb9a   : >> { %v17093_v2 = vpop.f32.mrb[184].mxu0  ;;  %v6425_v42 = vpop.xlane.xlu0 %6424  ;;  %19847 = vst [vmem:[#allocation88_spill] sm:$0xff] %v17117_v53  ;;  %7253 = vmatpush1.bf16.msra.mxu0 %v12430_v13  ;;  %7061 = vmatprep.subr.bf16.mxu1 %v12435_v33  ;;  %v12459_v26 = vld [vmem:[%s17130_s22 + $0xe4] ss:$16 sps:$4 sm:$0xff]  }
 0xb9b   : >> { %v17097_v15 = vsub.f32 %v16997_v4, %v6485_v34  ;;  %v6486_v47 = vmul.f32 0.0078125, %v6425_v42  ;;  %v17099_v22 = vpop.f32.mrb[185].mxu0  ;;  %v6548_v60 = vmul.f32 %v17091_v59, %v17091_v59  ;;  %v12438_v34 = vld [vmem:[%s17130_s22 + $0x6c] ss:$16 sps:$4 sm:$0xff]   ;;  %v12433_v42 = vld [vmem:[%s17130_s22 + $0x60] ss:$16 sps:$4 sm:$0xff]  }
 0xb9c   : >> { %v17103_v19 = vpop.f32.mrb[186].mxu0  ;;  %7254 = vmatprep.subr.bf16.mxu0 %v12438_v34  ;;  %7062 = vmatpush1.bf16.msra.mxu1 %v12433_v42  ;;  %v19852_v33 = vld [vmem:[#allocation53_spill] sm:$0xff] }
 0xb9d   : >> { %v17106_v45 = vpop.f32.mrb[187].mxu0  ;;  %6580 = vadd.xlane.f32.xlu0 %v6548_v60  ;;  %v6549_v29 = vmul.f32 %v17097_v15, %v17097_v15  ;;  %v17114_v6 = vsub.f32 %v17001_v14, %v6486_v47  ;;  %v12444_v47 = vld [vmem:[%s17130_s22 + $0x8c] ss:$16 sps:$4 sm:$0xff]   ;;  %v12439_v60 = vld [vmem:[%s17130_s22 + $0x80] ss:$16 sps:$4 sm:$0xff]   ;;  %7063 = vmatprep.subr.bf16.mxu1 %v12441_v35  ;;  %v6370_v34 = vadd.f32 %v19852_v33, %v17099_v22 }
 0xb9e   : >> { %v6427_v46 = vpop.xlane.xlu0 %6426  ;;  %7255 = vmatpush1.bf16.msra.mxu0 %v12436_v18 }
 0xb9f   : >> { %v6487_v43 = vmul.f32 0.0078125, %v6427_v46  ;;  %6582 = vadd.xlane.f32.xlu1 %v6549_v29  ;;  %v6550_v31 = vmul.f32 %v17114_v6, %v17114_v6  ;;  %7256 = vmatprep.subr.bf16.mxu0 %v12444_v47  ;;  %v12450_v29 = vld [vmem:[%s17130_s22 + $0xac] ss:$16 sps:$4 sm:$0xff]   ;;  %v12445_v46 = vld [vmem:[%s17130_s22 + $0xa0] ss:$16 sps:$4 sm:$0xff]  }
 0xba0   : >> { %7064 = vmatpush1.bf16.msra.mxu1 %v12439_v60  ;;  %v19853_v60 = vld [vmem:[#allocation52_spill] sm:$0xff] }
 0xba1   : >> { %v17120_v9 = vsub.f32 %v17007_v21, %v6487_v43  ;;  %6460 = vadd.xlane.f32.xlu0 %v17111_v5  ;;  %v12448_v43 = vld [vmem:[%s17130_s22 + $0xa8] ss:$16 sps:$4 sm:$0xff]   ;;  %7065 = vmatprep.subr.bf16.mxu1 %v12447_v28 }
 0xba2   : >> { %7257 = vmatpush1.bf16.msra.mxu0 %v12442_v25  ;;  %v6371_v25 = vadd.f32 %v19853_v60, %v17106_v45  ;;  %v19861_v60 = vld [vmem:[#allocation48_spill] sm:$0xff] }
 0xba3   : >> { %6462 = vadd.xlane.f32.xlu1 %v17117_v53  ;;  %v6551_v27 = vmul.f32 %v17120_v9, %v17120_v9  ;;  %7258 = vmatprep.subr.bf16.mxu0 %v12450_v29 }
 0xba4   : >> { %7066 = vmatpush1.bf16.msra.mxu1 %v12445_v46  ;;  %v17194_v46 = vadd.f32 %v16988_v38, %v6370_v34  ;;  %v19860_v34 = vld [vmem:[#allocation49_spill] sm:$0xff] }
 0xba5   : >> { %6584 = vadd.xlane.f32.xlu0 %v6550_v31  ;;  %v12454_v31 = vld [vmem:[%s17130_s22 + $0xc8] ss:$16 sps:$4 sm:$0xff]   ;;  %7067 = vmatprep.subr.bf16.mxu1 %v12453_v8 }
 0xba6   : >> { %7259 = vmatpush1.bf16.msra.mxu0 %v12448_v43  ;;  %19854 = vst [vmem:[#allocation92_spill] sm:$0xff] %v17194_v46 }
 0xba7   : >> { %6586 = vadd.xlane.f32.xlu1 %v6551_v27  ;;  %7260 = vmatprep.subr.bf16.mxu0 %v12456_v50  ;;  %v12460_v27 = vld [vmem:[%s17130_s22 + $0xe8] ss:$16 sps:$4 sm:$0xff]   ;;  %s20033_s22 = smov (%p18675_p5), %s20032_s29 }
 0xba8   : >> { %7068 = vmatpush1.bf16.msra.mxu1 %v12451_v62  ;;  %v17200_v62 = vadd.f32 %v16988_v38, %v6371_v25 }
 0xba9   : >> { %6464 = vadd.xlane.f32.xlu0 %v17140_v24  ;;  %7069 = vmatprep.subr.bf16.mxu1 %v12459_v26 }
 0xbaa   : >> { %7261 = vmatpush1.bf16.msra.mxu0 %v12454_v31  ;;  %19855 = vst [vmem:[#allocation97_spill] sm:$0xff] %v17200_v62  ;;  %v19856_v31 = vld [vmem:[#allocation51_spill] sm:$0xff] }
 0xbab   : >> { %6466 = vadd.xlane.f32.xlu1 %v17146_v30  ;;  %7262 = vmatprep.subr.bf16.mxu0 %v12462_v23  ;;  %v6372_v50 = vadd.f32 %v19856_v31, %v17093_v2 }
 0xbac   : >> { %7070 = vmatpush1.bf16.msra.mxu1 %v12457_v12 }
 0xbae   : >> { %7263 = vmatpush1.bf16.msra.mxu0 %v12460_v27  ;;  %v19857_v27 = vld [vmem:[#allocation50_spill] sm:$0xff] }
 0xbaf   : >> { %v6373_v23 = vadd.f32 %v19857_v27, %v17103_v19 }
 0xbd2   : >> { %v11875_v57 = vpop.f32.mrb[188].mxu0 }
 0xbd3   : >> { %v6331_v39 = vpop.f32.mrb[189].mxu0  ;;  %v6429_v3 = vpop.xlane.xlu0 %6428 }
 0xbd4   : >> { %v11876_v20 = vpop.f32.mrb[190].mxu0  ;;  %v6488_v54 = vmul.f32 0.0078125, %v6429_v3 }
 0xbd5   : >> { %v6334_v52 = vpop.f32.mrb[191].mxu0  ;;  %v6431_v55 = vpop.xlane.xlu1 %6430 }
 0xbd6   : >> { %v17180_v56 = vsub.f32 %v17013_v32, %v6488_v54  ;;  %v6489_v37 = vmul.f32 0.0078125, %v6431_v55  ;;  %v17216_v55 = vadd.f32 %v16988_v38, %v6372_v50  ;;  %v6375_v25 = vadd.f32 %v19861_v60, %v6334_v52  ;;  %v19864_v52 = vld [vmem:[#allocation47_spill] sm:$0xff] }
 0xbd7   : >> { %v6433_v13 = vpop.xlane.xlu0 %6432 }
 0xbd8   : >> { %v17185_v42 = vsub.f32 %v17018_v11, %v6489_v37  ;;  %v6490_v18 = vmul.f32 0.0078125, %v6433_v13  ;;  %v6552_v35 = vmul.f32 %v17180_v56, %v17180_v56  ;;  %19858 = vst [vmem:[#allocation98_spill] sm:$0xff] %v17216_v55  ;;  %v17222_v13 = vadd.f32 %v16988_v38, %v6373_v23 }
 0xbd9   : >> { %v6435_v47 = vpop.xlane.xlu1 %6434  ;;  %v17242_v50 = vadd.f32 %v16988_v38, %v6375_v25 }
 0xbda   : >> { %v6491_v28 = vmul.f32 0.0078125, %v6435_v47  ;;  %6588 = vadd.xlane.f32.xlu0 %v6552_v35  ;;  %v6553_v29 = vmul.f32 %v17185_v42, %v17185_v42  ;;  %v17197_v22 = vsub.f32 %v17022_v51, %v6490_v18  ;;  %19859 = vst [vmem:[#allocation93_spill] sm:$0xff] %v17222_v13  ;;  %v6374_v18 = vadd.f32 %v19860_v34, %v6331_v39 }
 0xbdb   : >> { %v6437_v43 = vpop.xlane.xlu0 %6436  ;;  %19863 = vst [vmem:[#allocation105_spill] sm:$0xff] %v17242_v50 }
 0xbdc   : >> { %6590 = vadd.xlane.f32.xlu1 %v6553_v29  ;;  %v17203_v8 = vsub.f32 %v17026_v58, %v6491_v28  ;;  %v6492_v12 = vmul.f32 0.0078125, %v6437_v43  ;;  %v6554_v26 = vmul.f32 %v17197_v22, %v17197_v22 }
 0xbdd   : >> { %v6439_v45 = vpop.xlane.xlu1 %6438 }
 0xbde   : >> { %6468 = vadd.xlane.f32.xlu0 %v17194_v46  ;;  %v6493_v3 = vmul.f32 0.0078125, %v6439_v45  ;;  %v6555_v54 = vmul.f32 %v17203_v8, %v17203_v8  ;;  %v17219_v37 = vsub.f32 %v17032_v17, %v6492_v12  ;;  %v17236_v45 = vadd.f32 %v16988_v38, %v6374_v18 }
 0xbdf   : >> { %v6441_v2 = vpop.xlane.xlu0 %6440 }
 0xbe0   : >> { %6470 = vadd.xlane.f32.xlu1 %v17200_v62  ;;  %v17225_v33 = vsub.f32 %v17038_v41, %v6493_v3  ;;  %v6494_v35 = vmul.f32 0.0078125, %v6441_v2  ;;  %v6556_v47 = vmul.f32 %v17219_v37, %v17219_v37  ;;  %19862 = vst [vmem:[#allocation94_spill] sm:$0xff] %v17236_v45 }
 0xbe1   : >> { %v6443_v19 = vpop.xlane.xlu1 %6442 }
 0xbe2   : >> { %6592 = vadd.xlane.f32.xlu0 %v6554_v26  ;;  %v6495_v28 = vmul.f32 0.0078125, %v6443_v19  ;;  %v6557_v29 = vmul.f32 %v17225_v33, %v17225_v33  ;;  %v17239_v31 = vsub.f32 %v17042_v10, %v6494_v35  ;;  %v6376_v26 = vadd.f32 %v19864_v52, %v11875_v57 }
 0xbe3   : >> { %v6445_v43 = vpop.xlane.xlu0 %6444 }
 0xbe4   : >> { %6594 = vadd.xlane.f32.xlu1 %v6555_v54  ;;  %v17245_v12 = vsub.f32 %v17046_v48, %v6495_v28  ;;  %v6496_v27 = vmul.f32 0.0078125, %v6445_v43  ;;  %v6558_v23 = vmul.f32 %v17239_v31, %v17239_v31  ;;  %v19865_v54 = vld [vmem:[#allocation46_spill] sm:$0xff]  ;;  %v17256_v35 = vadd.f32 %v16988_v38, %v6376_v26 }
 0xbe5   : >> { %v6447_v39 = vpop.xlane.xlu1 %6446  ;;  %v6377_v2 = vadd.f32 %v19865_v54, %v11876_v20 }
 0xbe6   : >> { %6472 = vadd.xlane.f32.xlu0 %v17216_v55  ;;  %v6497_v19 = vmul.f32 0.0078125, %v6447_v39  ;;  %v6559_v34 = vmul.f32 %v17245_v12, %v17245_v12  ;;  %19866 = vst [vmem:[#allocation106_spill] sm:$0xff] %v17256_v35  ;;  %v17259_v57 = vsub.f32 %v17052_v49, %v6496_v27 }
 0xbe7   : >> { %v6449_v3 = vpop.xlane.xlu0 %6448  ;;  %v17262_v60 = vadd.f32 %v16988_v38, %v6377_v2 }
 0xbe8   : >> { %6474 = vadd.xlane.f32.xlu1 %v17222_v13  ;;  %v17265_v25 = vsub.f32 %v17058_v61, %v6497_v19 }
 0xbe9   : >> { %v6451_v18 = vpop.xlane.xlu1 %6450  ;;  %19867 = vst [vmem:[#allocation103_spill] sm:$0xff] %v17262_v60 }
 0xbea   : >> { %6596 = vadd.xlane.f32.xlu0 %v6556_v47  ;;  %v6498_v47 = vmul.f32 0.0078125, %v6449_v3  ;;  %v6499_v20 = vmul.f32 0.0078125, %v6451_v18  ;;  %v6561_v38 = vmul.f32 %v17265_v25, %v17265_v25 }
 0xbec   : >> { %6598 = vadd.xlane.f32.xlu1 %v6557_v29  ;;  %v17269_v28 = vsub.f32 %v17062_v40, %v6498_v47  ;;  %v6560_v29 = vmul.f32 %v17259_v57, %v17259_v57  ;;  %v17275_v43 = vsub.f32 %v17066_v0, %v6499_v20 }
 0xbee   : >> { %6476 = vadd.xlane.f32.xlu0 %v17236_v45  ;;  %v6562_v39 = vmul.f32 %v17269_v28, %v17269_v28  ;;  %v6563_v52 = vmul.f32 %v17275_v43, %v17275_v43 }
 0xbf0   : >> { %6478 = vadd.xlane.f32.xlu1 %v17242_v50 }
 0xbf2   : >> { %6600 = vadd.xlane.f32.xlu0 %v6558_v23 }
 0xbf4   : >> { %6602 = vadd.xlane.f32.xlu1 %v6559_v34 }
 0xbf6   : >> { %6480 = vadd.xlane.f32.xlu0 %v17256_v35 }
 0xbf8   : >> { %6482 = vadd.xlane.f32.xlu1 %v17262_v60 }
 0xbfa   : >> { %6604 = vadd.xlane.f32.xlu0 %v6560_v29 }
 0xbfc   : >> { %6606 = vadd.xlane.f32.xlu1 %v6561_v38 }
 0xbfe   : >> { %6608 = vadd.xlane.f32.xlu0 %v6562_v39 }
 0xc00   : >> { %6610 = vadd.xlane.f32.xlu1 %v6563_v52 }
 0xc1c   : >> { %v6453_v26 = vpop.xlane.xlu0 %6452 }
 0xc1d   : >> { %v6500_v27 = vmul.f32 0.0078125, %v6453_v26 }
 0xc1e   : >> { %v6455_v23 = vpop.xlane.xlu1 %6454 }
 0xc1f   : >> { %v17284_v3 = vsub.f32 %v17073_v7, %v6500_v27  ;;  %v6501_v54 = vmul.f32 0.0078125, %v6455_v23 }
 0xc20   : >> { %v6457_v2 = vpop.xlane.xlu0 %6456 }
 0xc21   : >> { %v17287_v19 = vsub.f32 %v17078_v44, %v6501_v54  ;;  %v6502_v34 = vmul.f32 0.0078125, %v6457_v2  ;;  %v6564_v18 = vmul.f32 %v17284_v3, %v17284_v3 }
 0xc22   : >> { %v6459_v47 = vpop.xlane.xlu1 %6458 }
 0xc23   : >> { %v17292_v20 = vsub.f32 %v17082_v63, %v6502_v34  ;;  %v6503_v29 = vmul.f32 0.0078125, %v6459_v47  ;;  %6612 = vadd.xlane.f32.xlu0 %v6564_v18  ;;  %v6565_v38 = vmul.f32 %v17287_v19, %v17287_v19 }
 0xc25   : >> { %v17297_v39 = vsub.f32 %v17086_v1, %v6503_v29  ;;  %6614 = vadd.xlane.f32.xlu1 %v6565_v38  ;;  %v6566_v52 = vmul.f32 %v17292_v20, %v17292_v20 }
 0xc27   : >> { %6616 = vadd.xlane.f32.xlu0 %v6566_v52  ;;  %v6567_v26 = vmul.f32 %v17297_v39, %v17297_v39 }
 0xc29   : >> { %6618 = vadd.xlane.f32.xlu1 %v6567_v26 }
 0xc2a   : >> { %v6581_v27 = vpop.xlane.xlu0 %6580 }
 0xc2b   : >> { %v6644_v23 = vmul.f32 0.0078125, %v6581_v27 }
 0xc2c   : >> { %v6583_v54 = vpop.xlane.xlu1 %6582 }
 0xc2d   : >> { %v6676_v2 = vadd.f32 1e-05, %v6644_v23  ;;  %v6645_v34 = vmul.f32 0.0078125, %v6583_v54 }
 0xc2e   : >> { %v6461_v18 = vpop.xlane.xlu0 %6460 }
 0xc2f   : >> { %12815 = vrsqrt.f32 %v6676_v2  ;;  %v6677_v47 = vadd.f32 1e-05, %v6645_v34  ;;  %v6504_v63 = vmul.f32 0.0078125, %v6461_v18 }
 0xc30   : >> { %v6463_v29 = vpop.xlane.xlu1 %6462 }
 0xc31   : >> { %12817 = vrsqrt.f32 %v6677_v47  ;;  %v17304_v38 = vsub.f32 %v17111_v5, %v6504_v63  ;;  %v6505_v1 = vmul.f32 0.0078125, %v6463_v29 }
 0xc32   : >> { %v6585_v52 = vpop.xlane.xlu0 %6584 }
 0xc33   : >> { %v17307_v44 = vsub.f32 %v17117_v53, %v6505_v1  ;;  %v6646_v26 = vmul.f32 0.0078125, %v6585_v52  ;;  %v6568_v27 = vmul.f32 %v17304_v38, %v17304_v38 }
 0xc34   : >> { %v6587_v23 = vpop.xlane.xlu1 %6586 }
 0xc35   : >> { %v6678_v54 = vadd.f32 1e-05, %v6646_v26  ;;  %v6647_v2 = vmul.f32 0.0078125, %v6587_v23  ;;  %6620 = vadd.xlane.f32.xlu0 %v6568_v27  ;;  %v6569_v34 = vmul.f32 %v17307_v44, %v17307_v44  ;;  %v17319_v26 = vld [vmem:[%s6416_s26] ss:$0 sm:$0xff] }
 0xc36   : >> { %v6465_v63 = vpop.xlane.xlu0 %6464 }
 0xc37   : >> { %12819 = vrsqrt.f32 %v6678_v54  ;;  %v6679_v18 = vadd.f32 1e-05, %v6647_v2  ;;  %v6506_v47 = vmul.f32 0.0078125, %v6465_v63  ;;  %6622 = vadd.xlane.f32.xlu1 %v6569_v34 }
 0xc38   : >> { %v6467_v1 = vpop.xlane.xlu1 %6466 }
 0xc39   : >> { %v12816_v29 = vpop.eup %12815  ;;  %12821 = vrsqrt.f32 %v6679_v18  ;;  %v17314_v52 = vsub.f32 %v17140_v24, %v6506_v47  ;;  %v6507_v53 = vmul.f32 0.0078125, %v6467_v1  ;;  %v17334_v47 = vld [vmem:[%s6418_s24] ss:$0 sm:$0xff] }
 0xc3a   : >> { %v6740_v27 = vmul.f32 %v12816_v29, %v17091_v59 }
 0xc3b   : >> { %v12818_v23 = vpop.eup %12817  ;;  %v17323_v54 = vsub.f32 %v17146_v30, %v6507_v53  ;;  %v6570_v2 = vmul.f32 %v17314_v52, %v17314_v52 }
 0xc3c   : >> { %v6741_v34 = vmul.f32 %v12818_v23, %v17097_v15  ;;  %v6776_v63 = vmul.f32 %v17319_v26, %v6740_v27 }
 0xc3d   : >> { %6624 = vadd.xlane.f32.xlu0 %v6570_v2  ;;  %v6571_v18 = vmul.f32 %v17323_v54, %v17323_v54 }
 0xc3e   : >> { %v6777_v59 = vmul.f32 %v17319_v26, %v6741_v34  ;;  %v6812_v53 = vadd.f32 %v17334_v47, %v6776_v63 }
 0xc3f   : >> { %6626 = vadd.xlane.f32.xlu1 %v6571_v18 }
 0xc40   : >> { %v6813_v1 = vadd.f32 %v17334_v47, %v6777_v59 }
 0xc41   : >> { %v12820_v29 = vpop.eup %12819 }
 0xc42   : >> { %v6844_v30 = vpack.c.bf16 %v6813_v1, %v6812_v53  ;;  %v6742_v15 = vmul.f32 %v12820_v29, %v17114_v6 }
 0xc43   : >> { %v12822_v27 = vpop.eup %12821 }
 0xc44   : >> { %7088 = vmatmul.mubr.bf16.vlgmr.msra.gmra.mrb[192].mxu1 %v6844_v30  ;;  %7281 = vmatmul.mubr.bf16.vlgmr.msra.gmra.mrb[192].mxu0 %v6844_v30  ;;  %v6743_v23 = vmul.f32 %v12822_v27, %v17120_v9  ;;  %v6778_v2 = vmul.f32 %v17319_v26, %v6742_v15 }
 0xc45   : >> { %7097 = vmatprep.mubr.bf16.mxu1 %v19755_v16  ;;  %7290 = vmatprep.mubr.bf16.mxu0 %v19755_v16 }
 0xc46   : >> { %v6779_v34 = vmul.f32 %v17319_v26, %v6743_v23  ;;  %v6814_v63 = vadd.f32 %v17334_v47, %v6778_v2 }
 0xc48   : >> { %v6815_v18 = vadd.f32 %v17334_v47, %v6779_v34 }
 0xc4a   : >> { %v6845_v59 = vpack.c.bf16 %v6815_v18, %v6814_v63 }
 0xc4c   : >> { %7098 = vmatmul.mubr.bf16.gmra.mrb[196].mxu1 %v6845_v59  ;;  %7291 = vmatmul.mubr.bf16.gmra.mrb[196].mxu0 %v6845_v59 }
 0xc4d   : >> { %7107 = vmatprep.mubr.bf16.mxu1 %v19755_v16  ;;  %7300 = vmatprep.mubr.bf16.mxu0 %v19755_v16 }
 0xc67   : >> { %v6589_v6 = vpop.xlane.xlu0 %6588 }
 0xc68   : >> { %v6648_v9 = vmul.f32 0.0078125, %v6589_v6 }
 0xc69   : >> { %v6591_v30 = vpop.xlane.xlu1 %6590 }
 0xc6a   : >> { %v6680_v53 = vadd.f32 1e-05, %v6648_v9  ;;  %v6649_v1 = vmul.f32 0.0078125, %v6591_v30 }
 0xc6b   : >> { %v6469_v29 = vpop.xlane.xlu0 %6468 }
 0xc6c   : >> { %12823 = vrsqrt.f32 %v6680_v53  ;;  %v6681_v15 = vadd.f32 1e-05, %v6649_v1  ;;  %v6508_v27 = vmul.f32 0.0078125, %v6469_v29 }
 0xc6d   : >> { %v6471_v23 = vpop.xlane.xlu1 %6470 }
 0xc6e   : >> { %12825 = vrsqrt.f32 %v6681_v15  ;;  %v17350_v2 = vsub.f32 %v17194_v46, %v6508_v27  ;;  %v6509_v34 = vmul.f32 0.0078125, %v6471_v23 }
 0xc6f   : >> { %v6593_v63 = vpop.xlane.xlu0 %6592 }
 0xc70   : >> { %v17353_v18 = vsub.f32 %v17200_v62, %v6509_v34  ;;  %v6650_v59 = vmul.f32 0.0078125, %v6593_v63  ;;  %v6572_v6 = vmul.f32 %v17350_v2, %v17350_v2 }
 0xc71   : >> { %v6595_v9 = vpop.xlane.xlu1 %6594 }
 0xc72   : >> { %v6682_v30 = vadd.f32 1e-05, %v6650_v59  ;;  %v6651_v24 = vmul.f32 0.0078125, %v6595_v9  ;;  %6628 = vadd.xlane.f32.xlu0 %v6572_v6  ;;  %v6573_v53 = vmul.f32 %v17353_v18, %v17353_v18 }
 0xc73   : >> { %v6473_v1 = vpop.xlane.xlu0 %6472 }
 0xc74   : >> { %12827 = vrsqrt.f32 %v6682_v30  ;;  %v6683_v29 = vadd.f32 1e-05, %v6651_v24  ;;  %v6510_v15 = vmul.f32 0.0078125, %v6473_v1  ;;  %6630 = vadd.xlane.f32.xlu1 %v6573_v53 }
 0xc75   : >> { %v6475_v27 = vpop.xlane.xlu1 %6474 }
 0xc76   : >> { %v12824_v23 = vpop.eup %12823  ;;  %12829 = vrsqrt.f32 %v6683_v29  ;;  %v17360_v34 = vsub.f32 %v17216_v55, %v6510_v15  ;;  %v6511_v63 = vmul.f32 0.0078125, %v6475_v27 }
 0xc77   : >> { %v6597_v62 = vpop.xlane.xlu0 %6596  ;;  %v6744_v59 = vmul.f32 %v12824_v23, %v17180_v56 }
 0xc78   : >> { %v12826_v9 = vpop.eup %12825  ;;  %v17364_v6 = vsub.f32 %v17222_v13, %v6511_v63  ;;  %v6652_v46 = vmul.f32 0.0078125, %v6597_v62  ;;  %v6574_v24 = vmul.f32 %v17360_v34, %v17360_v34 }
 0xc79   : >> { %v6599_v30 = vpop.xlane.xlu1 %6598  ;;  %v6745_v53 = vmul.f32 %v12826_v9, %v17185_v42  ;;  %v6780_v1 = vmul.f32 %v17319_v26, %v6744_v59 }
 0xc7a   : >> { %v6684_v29 = vadd.f32 1e-05, %v6652_v46  ;;  %v6653_v15 = vmul.f32 0.0078125, %v6599_v30  ;;  %6632 = vadd.xlane.f32.xlu0 %v6574_v24  ;;  %v6575_v27 = vmul.f32 %v17364_v6, %v17364_v6 }
 0xc7b   : >> { %v6477_v56 = vpop.xlane.xlu0 %6476  ;;  %v6781_v23 = vmul.f32 %v17319_v26, %v6745_v53  ;;  %v6816_v55 = vadd.f32 %v17334_v47, %v6780_v1 }
 0xc7c   : >> { %12831 = vrsqrt.f32 %v6684_v29  ;;  %v6685_v63 = vadd.f32 1e-05, %v6653_v15  ;;  %v6512_v62 = vmul.f32 0.0078125, %v6477_v56  ;;  %6634 = vadd.xlane.f32.xlu1 %v6575_v27 }
 0xc7d   : >> { %v6479_v13 = vpop.xlane.xlu1 %6478  ;;  %v6817_v42 = vadd.f32 %v17334_v47, %v6781_v23 }
 0xc7e   : >> { %v12828_v9 = vpop.eup %12827  ;;  %12833 = vrsqrt.f32 %v6685_v63  ;;  %v17376_v46 = vsub.f32 %v17236_v45, %v6512_v62  ;;  %v6513_v59 = vmul.f32 0.0078125, %v6479_v13 }
 0xc7f   : >> { %v6601_v24 = vpop.xlane.xlu0 %6600  ;;  %v6846_v30 = vpack.c.bf16 %v6817_v42, %v6816_v55  ;;  %v6746_v5 = vmul.f32 %v12828_v9, %v17197_v22 }
 0xc80   : >> { %v12830_v53 = vpop.eup %12829  ;;  %v17380_v29 = vsub.f32 %v17242_v50, %v6513_v59  ;;  %v6654_v15 = vmul.f32 0.0078125, %v6601_v24  ;;  %v6576_v1 = vmul.f32 %v17376_v46, %v17376_v46 }
 0xc81   : >> { %7108 = vmatmul.mubr.bf16.gmra.mrb[200].mxu1 %v6846_v30  ;;  %7301 = vmatmul.mubr.bf16.gmra.mrb[200].mxu0 %v6846_v30  ;;  %v6603_v27 = vpop.xlane.xlu1 %6602  ;;  %v6747_v56 = vmul.f32 %v12830_v53, %v17203_v8  ;;  %v6782_v23 = vmul.f32 %v17319_v26, %v6746_v5 }
 0xc82   : >> { %v6686_v13 = vadd.f32 1e-05, %v6654_v15  ;;  %v6655_v63 = vmul.f32 0.0078125, %v6603_v27  ;;  %6636 = vadd.xlane.f32.xlu0 %v6576_v1  ;;  %v6577_v22 = vmul.f32 %v17380_v29, %v17380_v29  ;;  %7117 = vmatprep.mubr.bf16.mxu1 %v19755_v16 }
 0xc83   : >> { %v6481_v55 = vpop.xlane.xlu0 %6480  ;;  %7310 = vmatprep.mubr.bf16.mxu0 %v19755_v16  ;;  %v6783_v62 = vmul.f32 %v17319_v26, %v6747_v56  ;;  %v6818_v5 = vadd.f32 %v17334_v47, %v6782_v23 }
 0xc84   : >> { %12835 = vrsqrt.f32 %v6686_v13  ;;  %v6687_v42 = vadd.f32 1e-05, %v6655_v63  ;;  %v6514_v9 = vmul.f32 0.0078125, %v6481_v55  ;;  %6638 = vadd.xlane.f32.xlu1 %v6577_v22 }
 0xc85   : >> { %v6483_v8 = vpop.xlane.xlu1 %6482  ;;  %v6819_v59 = vadd.f32 %v17334_v47, %v6783_v62 }
 0xc86   : >> { %v12832_v24 = vpop.eup %12831  ;;  %12837 = vrsqrt.f32 %v6687_v42  ;;  %v17394_v30 = vsub.f32 %v17256_v35, %v6514_v9  ;;  %v6515_v53 = vmul.f32 0.0078125, %v6483_v8 }
 0xc87   : >> { %v6605_v15 = vpop.xlane.xlu0 %6604  ;;  %v6847_v1 = vpack.c.bf16 %v6819_v59, %v6818_v5  ;;  %v6748_v27 = vmul.f32 %v12832_v24, %v17219_v37 }
 0xc88   : >> { %v12834_v56 = vpop.eup %12833  ;;  %v17398_v13 = vsub.f32 %v17262_v60, %v6515_v53  ;;  %v6656_v63 = vmul.f32 0.0078125, %v6605_v15  ;;  %v6578_v23 = vmul.f32 %v17394_v30, %v17394_v30 }
 0xc89   : >> { %7118 = vmatmul.mubr.bf16.gmra.mrb[204].mxu1 %v6847_v1  ;;  %7311 = vmatmul.mubr.bf16.gmra.mrb[204].mxu0 %v6847_v1  ;;  %v6607_v22 = vpop.xlane.xlu1 %6606  ;;  %v6749_v55 = vmul.f32 %v12834_v56, %v17225_v33  ;;  %v6784_v62 = vmul.f32 %v17319_v26, %v6748_v27 }
 0xc8a   : >> { %v6688_v42 = vadd.f32 1e-05, %v6656_v63  ;;  %v6657_v9 = vmul.f32 0.0078125, %v6607_v22  ;;  %6640 = vadd.xlane.f32.xlu0 %v6578_v23  ;;  %v6579_v37 = vmul.f32 %v17398_v13, %v17398_v13  ;;  %7127 = vmatprep.mubr.bf16.mxu1 %v19755_v16 }
 0xc8b   : >> { %v6609_v8 = vpop.xlane.xlu0 %6608  ;;  %7320 = vmatprep.mubr.bf16.mxu0 %v19755_v16  ;;  %v6785_v5 = vmul.f32 %v17319_v26, %v6749_v55  ;;  %v6820_v53 = vadd.f32 %v17334_v47, %v6784_v62 }
 0xc8c   : >> { %12839 = vrsqrt.f32 %v6688_v42  ;;  %v6689_v59 = vadd.f32 1e-05, %v6657_v9  ;;  %v6658_v24 = vmul.f32 0.0078125, %v6609_v8  ;;  %6642 = vadd.xlane.f32.xlu1 %v6579_v37 }
 0xc8d   : >> { %v6611_v33 = vpop.xlane.xlu1 %6610  ;;  %v6821_v15 = vadd.f32 %v17334_v47, %v6785_v5 }
 0xc8e   : >> { %v12836_v1 = vpop.eup %12835  ;;  %12841 = vrsqrt.f32 %v6689_v59  ;;  %v6690_v27 = vadd.f32 1e-05, %v6658_v24  ;;  %v6659_v56 = vmul.f32 0.0078125, %v6611_v33 }
 0xc8f   : >> { %v6848_v63 = vpack.c.bf16 %v6821_v15, %v6820_v53  ;;  %v6750_v23 = vmul.f32 %v12836_v1, %v17239_v31 }
 0xc90   : >> { %v12838_v22 = vpop.eup %12837  ;;  %12843 = vrsqrt.f32 %v6690_v27  ;;  %v6691_v60 = vadd.f32 1e-05, %v6659_v56 }
 0xc91   : >> { %7128 = vmatmul.mubr.bf16.gmra.mrb[208].mxu1 %v6848_v63  ;;  %7321 = vmatmul.mubr.bf16.gmra.mrb[208].mxu0 %v6848_v63  ;;  %v6751_v55 = vmul.f32 %v12838_v22, %v17245_v12  ;;  %v6786_v42 = vmul.f32 %v17319_v26, %v6750_v23  ;;  %v12463_v23 = vld [vmem:[%s17163_s17 + $0x40] sm:$0xff]  }
 0xc92   : >> { %12845 = vrsqrt.f32 %v6691_v60  ;;  %7137 = vmatprep.mubr.bf16.mxu1 %v19755_v16  ;;  %7330 = vmatprep.mubr.bf16.mxu0 %v19755_v16  ;;  %v12464_v22 = vld [vmem:[%s17163_s17 + $0xc0] sm:$0xff]  }
 0xc93   : >> { %v6787_v62 = vmul.f32 %v17319_v26, %v6751_v55  ;;  %v6822_v9 = vadd.f32 %v17334_v47, %v6786_v42  ;;  %v12465_v55 = vld [vmem:[%s17163_s17] sm:$0xff]   ;;  %11164 = vmatprep.subr.bf16.mxu1 %v12463_v23  ;;  %11276 = vmatprep.subr.bf16.mxu0 %v12464_v22  ;;  %v12475_v22 = vld [vmem:[%s17163_s17 + $0x58] sm:$0xff]  }
 0xc94   : >> { %v12466_v42 = vld [vmem:[%s17163_s17 + $0x80] sm:$0xff]   ;;  %11165 = vmatpush3.bf16.msra.mxu1 %v12465_v55  ;;  %v12476_v55 = vld [vmem:[%s17163_s17 + $0xd8] sm:$0xff]  }
 0xc95   : >> { %v6823_v31 = vadd.f32 %v17334_v47, %v6787_v62  ;;  %11277 = vmatpush3.bf16.msra.mxu0 %v12466_v42 }
 0xc96   : >> { %v12840_v37 = vpop.eup %12839 }
 0xc97   : >> { %v6849_v8 = vpack.c.bf16 %v6823_v31, %v6822_v9  ;;  %v6752_v5 = vmul.f32 %v12840_v37, %v17259_v57  ;;  %v12467_v31 = vld [vmem:[%s17163_s17 + $0x48] sm:$0xff]  }
 0xc98   : >> { %v12842_v59 = vpop.eup %12841  ;;  %v12468_v37 = vld [vmem:[%s17163_s17 + $0xc8] sm:$0xff]   ;;  %11166 = vmatprep.subr.bf16.mxu1 %v12467_v31  ;;  %v12481_v31 = vld [vmem:[%s17163_s17 + $0x20] sm:$0xff]  }
 0xc99   : >> { %7138 = vmatmul.mubr.bf16.gmra.mrb[212].mxu1 %v6849_v8  ;;  %7331 = vmatmul.mubr.bf16.gmra.mrb[212].mxu0 %v6849_v8  ;;  %v6753_v12 = vmul.f32 %v12842_v59, %v17265_v25  ;;  %v6788_v60 = vmul.f32 %v17319_v26, %v6752_v5  ;;  %v12469_v5 = vld [vmem:[%s17163_s17 + $0x8] sm:$0xff]  }
 0xc9a   : >> { %v12844_v24 = vpop.eup %12843  ;;  %7147 = vmatprep.mubr.bf16.mxu1 %v19755_v16  ;;  %7340 = vmatprep.mubr.bf16.mxu0 %v19755_v16  ;;  %v12470_v59 = vld [vmem:[%s17163_s17 + $0x88] sm:$0xff]  }
 0xc9b   : >> { %v6789_v33 = vmul.f32 %v17319_v26, %v6753_v12  ;;  %v6824_v57 = vadd.f32 %v17334_v47, %v6788_v60  ;;  %v6754_v25 = vmul.f32 %v12844_v24, %v17269_v28  ;;  %11278 = vmatprep.subr.bf16.mxu0 %v12468_v37  ;;  %11167 = vmatpush3.bf16.msra.mxu1 %v12469_v5  ;;  %v12482_v37 = vld [vmem:[%s17163_s17 + $0xa0] sm:$0xff]  }
 0xc9c   : >> { %v12846_v53 = vpop.eup %12845  ;;  %11279 = vmatpush3.bf16.msra.mxu0 %v12470_v59  ;;  %v12483_v59 = vld [vmem:[%s17163_s17 + $0x68] sm:$0xff]  }
 0xc9d   : >> { %v6825_v15 = vadd.f32 %v17334_v47, %v6789_v33  ;;  %v6755_v1 = vmul.f32 %v12846_v53, %v17275_v43  ;;  %v6790_v63 = vmul.f32 %v17319_v26, %v6754_v25  ;;  %v12471_v53 = vld [vmem:[%s17163_s17 + $0x50] sm:$0xff]  }
 0xc9e   : >> { %11168 = vmatprep.subr.bf16.mxu1 %v12471_v53  ;;  %v12486_v53 = vld [vmem:[%s17163_s17 + $0xa8] sm:$0xff]  }
 0xc9f   : >> { %v6850_v27 = vpack.c.bf16 %v6825_v15, %v6824_v57  ;;  %v6791_v56 = vmul.f32 %v17319_v26, %v6755_v1  ;;  %v6826_v43 = vadd.f32 %v17334_v47, %v6790_v63  ;;  %v12472_v57 = vld [vmem:[%s17163_s17 + $0xd0] sm:$0xff]  }
 0xca0   : >> { %v12473_v1 = vld [vmem:[%s17163_s17 + $0x10] sm:$0xff]   ;;  %11280 = vmatprep.subr.bf16.mxu0 %v12472_v57 }
 0xca1   : >> { %7148 = vmatmul.mubr.bf16.gmra.mrb[216].mxu1 %v6850_v27  ;;  %7341 = vmatmul.mubr.bf16.gmra.mrb[216].mxu0 %v6850_v27  ;;  %v6827_v28 = vadd.f32 %v17334_v47, %v6791_v56  ;;  %v12474_v27 = vld [vmem:[%s17163_s17 + $0x90] sm:$0xff]  }
 0xca2   : >> { %7157 = vmatprep.mubr.bf16.mxu1 %v19755_v16  ;;  %7350 = vmatprep.mubr.bf16.mxu0 %v19755_v16 }
 0xca3   : >> { %v6851_v62 = vpack.c.bf16 %v6827_v28, %v6826_v43  ;;  %11169 = vmatpush3.bf16.msra.mxu1 %v12473_v1  ;;  %11281 = vmatpush3.bf16.msra.mxu0 %v12474_v27  ;;  %v12477_v28 = vld [vmem:[%s17163_s17 + $0x18] sm:$0xff]  }
 0xca4   : >> { %v12478_v43 = vld [vmem:[%s17163_s17 + $0x98] sm:$0xff]   ;;  %11170 = vmatprep.subr.bf16.mxu1 %v12475_v22  ;;  %11282 = vmatprep.subr.bf16.mxu0 %v12476_v55  ;;  %v12488_v22 = vld [vmem:[%s17163_s17 + $0xf0] sm:$0xff]  }
 0xca7   : >> { %11171 = vmatpush3.bf16.msra.mxu1 %v12477_v28  ;;  %11283 = vmatpush3.bf16.msra.mxu0 %v12478_v43  ;;  %v12489_v28 = vld [vmem:[%s17163_s17 + $0x30] sm:$0xff]  }
 0xca8   : >> { %v12490_v43 = vld [vmem:[%s17163_s17 + $0xb0] sm:$0xff]  }
 0xca9   : >> { %7158 = vmatmul.mubr.bf16.gmra.mrb[220].mxu1 %v6851_v62  ;;  %7351 = vmatmul.mubr.bf16.gmra.mrb[220].mxu0 %v6851_v62  ;;  %v12479_v62 = vld [vmem:[%s17163_s17 + $0x60] sm:$0xff]  }
 0xcaa   : >> { %7167 = vmatprep.mubr.bf16.mxu1 %v19755_v16  ;;  %7360 = vmatprep.mubr.bf16.mxu0 %v19755_v16 }
 0xcab   : >> { %11172 = vmatprep.subr.bf16.mxu1 %v12479_v62 }
 0xcac   : >> { %11173 = vmatpush3.bf16.msra.mxu1 %v12481_v31 }
 0xcad   : >> { %11174 = vmatprep.subr.bf16.mxu1 %v12483_v59 }
 0xcb0   : >> { %v6613_v9 = vpop.xlane.xlu0 %6612 }
 0xcb1   : >> { %v6660_v8 = vmul.f32 0.0078125, %v6613_v9  ;;  %v12480_v9 = vld [vmem:[%s17163_s17 + $0xe0] sm:$0xff]  }
 0xcb2   : >> { %v6615_v12 = vpop.xlane.xlu1 %6614  ;;  %11284 = vmatprep.subr.bf16.mxu0 %v12480_v9 }
 0xcb3   : >> { %v6692_v60 = vadd.f32 1e-05, %v6660_v8  ;;  %v6661_v24 = vmul.f32 0.0078125, %v6615_v12  ;;  %11285 = vmatpush3.bf16.msra.mxu0 %v12482_v37  ;;  %v12484_v12 = vld [vmem:[%s17163_s17 + $0xe8] sm:$0xff]  }
 0xcb4   : >> { %v6617_v33 = vpop.xlane.xlu0 %6616  ;;  %11286 = vmatprep.subr.bf16.mxu0 %v12484_v12  ;;  %v12493_v12 = vld [vmem:[%s17163_s17 + $0x38] sm:$0xff]  }
 0xcb5   : >> { %12847 = vrsqrt.f32 %v6692_v60  ;;  %v6693_v15 = vadd.f32 1e-05, %v6661_v24  ;;  %v6662_v25 = vmul.f32 0.0078125, %v6617_v33  ;;  %v12485_v33 = vld [vmem:[%s17163_s17 + $0x28] sm:$0xff]  }
 0xcb6   : >> { %v6619_v56 = vpop.xlane.xlu1 %6618  ;;  %11175 = vmatpush3.bf16.msra.mxu1 %v12485_v33 }
 0xcb7   : >> { %12849 = vrsqrt.f32 %v6693_v15  ;;  %v6694_v63 = vadd.f32 1e-05, %v6662_v25  ;;  %v6663_v23 = vmul.f32 0.0078125, %v6619_v56  ;;  %11287 = vmatpush3.bf16.msra.mxu0 %v12486_v53 }
 0xcb8   : >> { %11288 = vmatprep.subr.bf16.mxu0 %v12488_v22 }
 0xcb9   : >> { %12851 = vrsqrt.f32 %v6694_v63  ;;  %v6695_v42 = vadd.f32 1e-05, %v6663_v23  ;;  %v12487_v23 = vld [vmem:[%s17163_s17 + $0x70] sm:$0xff]  }
 0xcba   : >> { %11176 = vmatprep.subr.bf16.mxu1 %v12487_v23 }
 0xcbb   : >> { %12853 = vrsqrt.f32 %v6695_v42  ;;  %11177 = vmatpush3.bf16.msra.mxu1 %v12489_v28  ;;  %11289 = vmatpush3.bf16.msra.mxu0 %v12490_v43 }
 0xcbf   : >> { %v12848_v8 = vpop.eup %12847 }
 0xcc0   : >> { %v6756_v5 = vmul.f32 %v12848_v8, %v17284_v3 }
 0xcc1   : >> { %v12850_v60 = vpop.eup %12849 }
 0xcc2   : >> { %v6621_v24 = vpop.xlane.xlu0 %6620  ;;  %v6757_v15 = vmul.f32 %v12850_v60, %v17287_v19  ;;  %v6792_v25 = vmul.f32 %v17319_v26, %v6756_v5  ;;  %v12491_v5 = vld [vmem:[%s17163_s17 + $0x78] sm:$0xff]  }
 0xcc3   : >> { %v6664_v57 = vmul.f32 0.0078125, %v6621_v24  ;;  %v12852_v1 = vpop.eup %12851  ;;  %v12494_v60 = vld [vmem:[%s17163_s17 + $0xb8] sm:$0xff]   ;;  %11178 = vmatprep.subr.bf16.mxu1 %v12491_v5 }
 0xcc4   : >> { %v6623_v27 = vpop.xlane.xlu1 %6622  ;;  %v6793_v63 = vmul.f32 %v17319_v26, %v6757_v15  ;;  %v6828_v19 = vadd.f32 %v17334_v47, %v6792_v25  ;;  %v6758_v42 = vmul.f32 %v12852_v1, %v17292_v20  ;;  %v12492_v20 = vld [vmem:[%s17163_s17 + $0xf8] sm:$0xff]   ;;  %11179 = vmatpush3.bf16.msra.mxu1 %v12493_v12 }
 0xcc5   : >> { %v6696_v3 = vadd.f32 1e-05, %v6664_v57  ;;  %v6665_v56 = vmul.f32 0.0078125, %v6623_v27  ;;  %v12854_v55 = vpop.eup %12853  ;;  %11290 = vmatprep.subr.bf16.mxu0 %v12492_v20 }
 0xcc6   : >> { %v6829_v9 = vadd.f32 %v17334_v47, %v6793_v63  ;;  %v6759_v31 = vmul.f32 %v12854_v55, %v17297_v39  ;;  %v6794_v33 = vmul.f32 %v17319_v26, %v6758_v42  ;;  %11291 = vmatpush3.bf16.msra.mxu0 %v12494_v60 }
 0xcc7   : >> { %12855 = vrsqrt.f32 %v6696_v3  ;;  %v6697_v62 = vadd.f32 1e-05, %v6665_v56 }
 0xcc8   : >> { %v6852_v37 = vpack.c.bf16 %v6829_v9, %v6828_v19  ;;  %v6795_v8 = vmul.f32 %v17319_v26, %v6759_v31  ;;  %v6830_v1 = vadd.f32 %v17334_v47, %v6794_v33 }
 0xcc9   : >> { %12857 = vrsqrt.f32 %v6697_v62 }
 0xcca   : >> { %v6625_v59 = vpop.xlane.xlu0 %6624  ;;  %7168 = vmatmul.mubr.bf16.gmra.mrb[224].mxu1 %v6852_v37  ;;  %7361 = vmatmul.mubr.bf16.gmra.mrb[224].mxu0 %v6852_v37  ;;  %v6831_v15 = vadd.f32 %v17334_v47, %v6795_v8 }
 0xccb   : >> { %v6666_v24 = vmul.f32 0.0078125, %v6625_v59  ;;  %7177 = vmatprep.mubr.bf16.mxu1 %v19755_v16  ;;  %7370 = vmatprep.mubr.bf16.mxu0 %v19755_v16 }
 0xccc   : >> { %v6627_v53 = vpop.xlane.xlu1 %6626  ;;  %v6853_v3 = vpack.c.bf16 %v6831_v15, %v6830_v1 }
 0xccd   : >> { %v6698_v39 = vadd.f32 1e-05, %v6666_v24  ;;  %v6667_v57 = vmul.f32 0.0078125, %v6627_v53 }
 0xccf   : >> { %12859 = vrsqrt.f32 %v6698_v39  ;;  %v6699_v25 = vadd.f32 1e-05, %v6667_v57 }
 0xcd1   : >> { %v12856_v27 = vpop.eup %12855  ;;  %12861 = vrsqrt.f32 %v6699_v25 }
 0xcd2   : >> { %v6760_v56 = vmul.f32 %v12856_v27, %v17304_v38  ;;  %7178 = vmatmul.mubr.bf16.gmra.mrb[228].mxu1 %v6853_v3  ;;  %7371 = vmatmul.mubr.bf16.gmra.mrb[228].mxu0 %v6853_v3 }
 0xcd3   : >> { %v12858_v63 = vpop.eup %12857  ;;  %7187 = vmatprep.mubr.bf16.mxu1 %v19755_v16  ;;  %7380 = vmatprep.mubr.bf16.mxu0 %v19755_v16 }
 0xcd4   : >> { %v6761_v23 = vmul.f32 %v12858_v63, %v17307_v44  ;;  %v6796_v22 = vmul.f32 %v17319_v26, %v6760_v56  ;;  %v7445_v63 = vld [vmem:[%s7444_s25] ss:$2 sm:$0xf]  ;;  %s13865_s25 = scalar_lea.vmem (%p18675_p5), %s13864_s12, 512 }
 0xcd5   : > { %p13867_p4 = scmp.lt.s32.totalorder (%p18675_p5), %s13865_s25, %s13859_s0 }
 0xcd6   : >> { %v6797_v55 = vmul.f32 %v17319_v26, %v6761_v23  ;;  %v6832_v19 = vadd.f32 %v17334_v47, %v6796_v22  ;;  %v19869_v22 = vld [vmem:[#allocation43_spill] sm:$0xff] }
 0xcd7   : > { %p13868_p7 = por (%p18675_p5), %p13867_p4, %p13866_p3 }
 0xcd8   : >> { %v6833_v42 = vadd.f32 %v17334_v47, %v6797_v55  ;;  %v7461_v55 = vsub.s32 3, %v19869_v22 }
 0xcd9   : >> { %v12860_v28 = vpop.eup %12859 }
 0xcda   : >> { %v6854_v43 = vpack.c.bf16 %v6833_v42, %v6832_v19  ;;  %v6762_v38 = vmul.f32 %v12860_v28, %v17314_v52 }
 0xcdb   : >> { %v12862_v62 = vpop.eup %12861 }
 0xcdc   : >> { %7188 = vmatmul.mubr.bf16.gmra.mrb[232].mxu1 %v6854_v43  ;;  %7381 = vmatmul.mubr.bf16.gmra.mrb[232].mxu0 %v6854_v43  ;;  %v6763_v9 = vmul.f32 %v12862_v62, %v17323_v54  ;;  %v6798_v31 = vmul.f32 %v17319_v26, %v6762_v38  ;;  %v19870_v38 = vsub.s32 0, %v19869_v22 }
 0xcdd   : >> { %7197 = vmatprep.mubr.bf16.mxu1 %v19755_v16  ;;  %7390 = vmatprep.mubr.bf16.mxu0 %v19755_v16 }
 0xcde   : >> { %v6799_v44 = vmul.f32 %v17319_v26, %v6763_v9  ;;  %v6834_v37 = vadd.f32 %v17334_v47, %v6798_v31  ;;  %v17511_v62 = vrot.slane %v7445_v63, %v19870_v38  ;;  %v19871_v9 = vsub.s32 2, %v19869_v22 }
 0xce0   : >> { %v6835_v8 = vadd.f32 %v17334_v47, %v6799_v44 }
 0xce2   : >> { %v6855_v5 = vpack.c.bf16 %v6835_v8, %v6834_v37  ;;  %v19872_v37 = vsub.s32 1, %v19869_v22 }
 0xce4   : >> { %7198 = vmatmul.mubr.bf16.gmra.mrb[236].mxu1 %v6855_v5  ;;  %7391 = vmatmul.mubr.bf16.gmra.mrb[236].mxu0 %v6855_v5  ;;  %v17520_v8 = vrot.slane %v7445_v63, %v19872_v37 }
 0xce5   : >> { %7207 = vmatprep.mubr.bf16.mxu1 %v19755_v16  ;;  %7400 = vmatprep.mubr.bf16.mxu0 %v19755_v16 }
 0xcff   : >> { %v6629_v52 = vpop.xlane.xlu0 %6628 }
 0xd00   : >> { %v6668_v54 = vmul.f32 0.0078125, %v6629_v52 }
 0xd01   : >> { %v6631_v20 = vpop.xlane.xlu1 %6630 }
 0xd02   : >> { %v6700_v59 = vadd.f32 1e-05, %v6668_v54  ;;  %v6669_v12 = vmul.f32 0.0078125, %v6631_v20 }
 0xd04   : >> { %12863 = vrsqrt.f32 %v6700_v59  ;;  %v6701_v60 = vadd.f32 1e-05, %v6669_v12 }
 0xd06   : >> { %12865 = vrsqrt.f32 %v6701_v60 }
 0xd07   : >> { %v6633_v24 = vpop.xlane.xlu0 %6632 }
 0xd08   : >> { %v6670_v33 = vmul.f32 0.0078125, %v6633_v24 }
 0xd09   : >> { %v6635_v53 = vpop.xlane.xlu1 %6634 }
 0xd0a   : >> { %v6702_v39 = vadd.f32 1e-05, %v6670_v33  ;;  %v6671_v57 = vmul.f32 0.0078125, %v6635_v53 }
 0xd0c   : >> { %12867 = vrsqrt.f32 %v6702_v39  ;;  %v6703_v15 = vadd.f32 1e-05, %v6671_v57 }
 0xd0e   : >> { %v12864_v25 = vpop.eup %12863  ;;  %12869 = vrsqrt.f32 %v6703_v15 }
 0xd0f   : >> { %v6637_v1 = vpop.xlane.xlu0 %6636  ;;  %v6764_v27 = vmul.f32 %v12864_v25, %v17350_v2  ;;  %v17515_v2 = vrot.slane %v7445_v63, %v19871_v9 }
 0xd10   : >> { %v12866_v3 = vpop.eup %12865  ;;  %v6672_v56 = vmul.f32 0.0078125, %v6637_v1 }
 0xd11   : >> { %v6639_v23 = vpop.xlane.xlu1 %6638  ;;  %v6765_v19 = vmul.f32 %v12866_v3, %v17353_v18  ;;  %v6800_v42 = vmul.f32 %v17319_v26, %v6764_v27  ;;  %v17522_v18 = vrot.slane %v7445_v63, %v7461_v55 }
 0xd12   : >> { %v6673_v28 = vmul.f32 0.0078125, %v6639_v23  ;;  %v6704_v43 = vadd.f32 1e-05, %v6672_v56 }
 0xd13   : >> { %v6801_v31 = vmul.f32 %v17319_v26, %v6765_v19  ;;  %v6836_v5 = vadd.f32 %v17334_v47, %v6800_v42 }
 0xd14   : >> { %v6705_v44 = vadd.f32 1e-05, %v6673_v28  ;;  %12871 = vrsqrt.f32 %v6704_v43 }
 0xd15   : >> { %v6837_v52 = vadd.f32 %v17334_v47, %v6801_v31 }
 0xd16   : >> { %v12868_v54 = vpop.eup %12867  ;;  %12873 = vrsqrt.f32 %v6705_v44 }
 0xd17   : >> { %v7089_v20 = vpop.f32.mrb[192].mxu1  ;;  %v7282_v59 = vpop.f32.mrb[192].mxu0  ;;  %v6856_v53 = vpack.c.bf16 %v6837_v52, %v6836_v5  ;;  %v6766_v1 = vmul.f32 %v12868_v54, %v17360_v34 }
 0xd18   : >> { %v17527_v12 = vadd.f32 %v17511_v62, %v7089_v20  ;;  %v6641_v60 = vpop.xlane.xlu0 %6640  ;;  %v17530_v24 = vadd.f32 %v17515_v2, %v7282_v59  ;;  %v7091_v33 = vpop.f32.mrb[193].mxu1 }
 0xd19   : >> { %v6674_v39 = vmul.f32 0.0078125, %v6641_v60  ;;  %v17533_v57 = vadd.f32 %v17520_v8, %v7091_v33  ;;  %v7284_v15 = vpop.f32.mrb[193].mxu0  ;;  %v7093_v25 = vpop.f32.mrb[194].mxu1  ;;  %7208 = vmatmul.mubr.bf16.gmra.mrb[240].mxu1 %v6856_v53  ;;  %7401 = vmatmul.mubr.bf16.gmra.mrb[240].mxu0 %v6856_v53 }
 0xd1a   : >> { %v10803_v27 = vmul.f32 -1.702, %v17527_v12  ;;  %v10805_v3 = vmul.f32 -1.702, %v17530_v24  ;;  %v17539_v56 = vadd.f32 %v17522_v18, %v7284_v15  ;;  %v17542_v63 = vadd.f32 %v17511_v62, %v7093_v25  ;;  %v7286_v23 = vpop.f32.mrb[194].mxu0  ;;  %v6643_v22 = vpop.xlane.xlu1 %6642  ;;  %7217 = vmatprep.mubr.bf16.mxu1 %v19755_v16  ;;  %7410 = vmatprep.mubr.bf16.mxu0 %v19755_v16 }
 0xd1b   : >> { %v6706_v55 = vadd.f32 1e-05, %v6674_v39  ;;  %v10804_v19 = vmul.f32 -1.702, %v17533_v57  ;;  %v17546_v42 = vadd.f32 %v17515_v2, %v7286_v23  ;;  %v6675_v34 = vmul.f32 0.0078125, %v6643_v22  ;;  %v7095_v28 = vpop.f32.mrb[195].mxu1  ;;  %v12870_v43 = vpop.eup %12869 }
 0xd1c   : >> { %v7851_v38 = vmul.f32 1.442695, %v10803_v27  ;;  %v7855_v9 = vmul.f32 1.442695, %v10805_v3  ;;  %v10806_v31 = vmul.f32 -1.702, %v17539_v56  ;;  %v17552_v44 = vadd.f32 %v17520_v8, %v7095_v28 }
 0xd1d   : >> { %12875 = vrsqrt.f32 %v6706_v55  ;;  %v7853_v37 = vmul.f32 1.442695, %v10804_v19  ;;  %v10807_v5 = vmul.f32 -1.702, %v17542_v63  ;;  %v10809_v52 = vmul.f32 -1.702, %v17546_v42 }
 0xd1e   : >> { %12877 = vpow2.f32 %v7851_v38  ;;  %v7857_v54 = vmul.f32 1.442695, %v10806_v31  ;;  %v6707_v20 = vadd.f32 1e-05, %v6675_v34  ;;  %v10808_v59 = vmul.f32 -1.702, %v17552_v44 }
 0xd1f   : >> { %12879 = vpow2.f32 %v7855_v9  ;;  %v7859_v60 = vmul.f32 1.442695, %v10807_v5  ;;  %v7863_v33 = vmul.f32 1.442695, %v10809_v52  ;;  %v7288_v53 = vpop.f32.mrb[195].mxu0  ;;  %v7099_v39 = vpop.f32.mrb[196].mxu1  ;;  %v6767_v15 = vmul.f32 %v12870_v43, %v17364_v6 }
 0xd20   : >> { %12881 = vpow2.f32 %v7853_v37  ;;  %v7861_v25 = vmul.f32 1.442695, %v10808_v59  ;;  %v17559_v27 = vadd.f32 %v17522_v18, %v7288_v53  ;;  %v17562_v3 = vadd.f32 %v17511_v62, %v7099_v39  ;;  %v7292_v23 = vpop.f32.mrb[196].mxu0  ;;  %v7101_v22 = vpop.f32.mrb[197].mxu1 }
 0xd21   : >> { %12883 = vpow2.f32 %v7857_v54  ;;  %v17565_v55 = vadd.f32 %v17515_v2, %v7292_v23  ;;  %v17568_v19 = vadd.f32 %v17520_v8, %v7101_v22  ;;  %v7294_v34 = vpop.f32.mrb[197].mxu0  ;;  %v7103_v28 = vpop.f32.mrb[198].mxu1  ;;  %v6802_v6 = vmul.f32 %v17319_v26, %v6766_v1 }
 0xd22   : >> { %v12872_v43 = vpop.eup %12871  ;;  %12885 = vpow2.f32 %v7859_v60  ;;  %v10810_v38 = vmul.f32 -1.702, %v17559_v27  ;;  %v10811_v9 = vmul.f32 -1.702, %v17562_v3  ;;  %v17574_v31 = vadd.f32 %v17522_v18, %v7294_v34  ;;  %v7296_v37 = vpop.f32.mrb[198].mxu0 }
 0xd23   : >> { %v7105_v5 = vpop.f32.mrb[199].mxu1  ;;  %v12874_v52 = vpop.eup %12873  ;;  %12887 = vpow2.f32 %v7863_v33  ;;  %v10813_v54 = vmul.f32 -1.702, %v17565_v55  ;;  %v10812_v59 = vmul.f32 -1.702, %v17568_v19  ;;  %v17579_v53 = vadd.f32 %v17511_v62, %v7103_v28 }
 0xd24   : >> { %v7298_v1 = vpop.f32.mrb[199].mxu0  ;;  %12889 = vrsqrt.f32 %v6707_v20  ;;  %v7865_v60 = vmul.f32 1.442695, %v10810_v38  ;;  %v7867_v39 = vmul.f32 1.442695, %v10811_v9  ;;  %v6803_v33 = vmul.f32 %v17319_v26, %v6767_v15 }
 0xd25   : >> { %v10814_v23 = vmul.f32 -1.702, %v17574_v31  ;;  %12891 = vpow2.f32 %v7861_v25  ;;  %v7871_v22 = vmul.f32 1.442695, %v10813_v54  ;;  %v7869_v34 = vmul.f32 1.442695, %v10812_v59 }
 0xd26   : >> { %12893 = vpow2.f32 %v7865_v60  ;;  %v10815_v45 = vmul.f32 -1.702, %v17579_v53  ;;  %v6838_v28 = vadd.f32 %v17334_v47, %v6802_v6  ;;  %v6839_v20 = vadd.f32 %v17334_v47, %v6803_v33 }
 0xd27   : >> { %v7873_v35 = vmul.f32 1.442695, %v10814_v23  ;;  %v12876_v50 = vpop.eup %12875  ;;  %12895 = vpow2.f32 %v7867_v39  ;;  %v6768_v25 = vmul.f32 %v12872_v43, %v17376_v46  ;;  %v17588_v0 = vadd.f32 %v17515_v2, %v7296_v37 }
 0xd28   : >> { %v12878_v7 = vpop.eup %12877  ;;  %12897 = vpow2.f32 %v7871_v22  ;;  %v6857_v60 = vpack.c.bf16 %v6839_v20, %v6838_v28  ;;  %v7875_v23 = vmul.f32 1.442695, %v10815_v45  ;;  %v6769_v46 = vmul.f32 %v12874_v52, %v17380_v29 }
 0xd29   : >> { %v12880_v38 = vpop.eup %12879  ;;  %v8107_v9 = vadd.f32 1.0, %v12878_v7  ;;  %12899 = vpow2.f32 %v7869_v34  ;;  %v17591_v7 = vadd.f32 %v17520_v8, %v7105_v5  ;;  %v17595_v34 = vadd.f32 %v17522_v18, %v7298_v1 }
 0xd2a   : >> { %v12882_v54 = vpop.eup %12881  ;;  %v8109_v59 = vadd.f32 1.0, %v12880_v38  ;;  %12901 = vpow2.f32 %v7873_v35  ;;  %7218 = vmatmul.mubr.bf16.gmra.mrb[244].mxu1 %v6857_v60  ;;  %7411 = vmatmul.mubr.bf16.gmra.mrb[244].mxu0 %v6857_v60  ;;  %v6804_v45 = vmul.f32 %v17319_v26, %v6768_v25  ;;  %v6805_v5 = vmul.f32 %v17319_v26, %v6769_v46 }
 0xd2b   : >> { %v12884_v15 = vpop.eup %12883  ;;  %12903 = vrcp.f32 %v8107_v9  ;;  %v8108_v39 = vadd.f32 1.0, %v12882_v54  ;;  %7227 = vmatprep.mubr.bf16.mxu1 %v19755_v16  ;;  %7420 = vmatprep.mubr.bf16.mxu0 %v19755_v16  ;;  %v6770_v29 = vmul.f32 %v12876_v50, %v17394_v30  ;;  %v10817_v28 = vmul.f32 -1.702, %v17588_v0  ;;  %v13391_v50 = vld [vmem:[%s6416_s26] ss:$0 sm:$0xff] }
 0xd2c   : >> { %v12886_v22 = vpop.eup %12885  ;;  %12905 = vrcp.f32 %v8109_v59  ;;  %v8110_v6 = vadd.f32 1.0, %v12884_v15  ;;  %v6840_v9 = vadd.f32 %v17334_v47, %v6804_v45  ;;  %v6841_v25 = vadd.f32 %v17334_v47, %v6805_v5  ;;  %v13392_v47 = vld [vmem:[%s6418_s24] ss:$0 sm:$0xff] }
 0xd2d   : >> { %v12888_v43 = vpop.eup %12887  ;;  %12907 = vrcp.f32 %v8108_v39  ;;  %v8111_v35 = vadd.f32 1.0, %v12886_v22  ;;  %v10816_v26 = vmul.f32 -1.702, %v17591_v7  ;;  %v6806_v39 = vmul.f32 %v13391_v50, %v6770_v29 }
 0xd2e   : >> { %v12890_v37 = vpop.eup %12889  ;;  %12909 = vrcp.f32 %v8110_v6  ;;  %v8113_v33 = vadd.f32 1.0, %v12888_v43  ;;  %v6858_v15 = vpack.c.bf16 %v6841_v25, %v6840_v9  ;;  %v7879_v46 = vmul.f32 1.442695, %v10817_v28 }
 0xd2f   : >> { %v12892_v52 = vpop.eup %12891  ;;  %12911 = vrcp.f32 %v8111_v35  ;;  %v6771_v1 = vmul.f32 %v12890_v37, %v17398_v13  ;;  %v10818_v13 = vmul.f32 -1.702, %v17595_v34  ;;  %v7877_v35 = vmul.f32 1.442695, %v10816_v26 }
 0xd30   : >> { %v12894_v20 = vpop.eup %12893  ;;  %12913 = vrcp.f32 %v8113_v33  ;;  %v8112_v38 = vadd.f32 1.0, %v12892_v52  ;;  %v6842_v33 = vadd.f32 %v13392_v47, %v6806_v39 }
 0xd31   : >> { %v12896_v54 = vpop.eup %12895  ;;  %v8114_v59 = vadd.f32 1.0, %v12894_v20  ;;  %12915 = vpow2.f32 %v7875_v23  ;;  %v6807_v30 = vmul.f32 %v13391_v50, %v6771_v1  ;;  %v7881_v37 = vmul.f32 1.442695, %v10818_v13 }
 0xd32   : >> { %v12898_v60 = vpop.eup %12897  ;;  %12917 = vrcp.f32 %v8112_v38  ;;  %7228 = vmatmul.mubr.bf16.gmra.mrb[248].mxu1 %v6858_v15  ;;  %7421 = vmatmul.mubr.bf16.gmra.mrb[248].mxu0 %v6858_v15  ;;  %v8115_v52 = vadd.f32 1.0, %v12896_v54 }
 0xd33   : >> { %v12900_v22 = vpop.eup %12899  ;;  %12919 = vrcp.f32 %v8114_v59  ;;  %v6843_v23 = vadd.f32 %v13392_v47, %v6807_v30  ;;  %7237 = vmatprep.mubr.bf16.mxu1 %v19755_v16  ;;  %7430 = vmatprep.mubr.bf16.mxu0 %v19755_v16 }
 0xd34   : >> { %v12902_v6 = vpop.eup %12901  ;;  %12921 = vpow2.f32 %v7879_v46  ;;  %v8117_v46 = vadd.f32 1.0, %v12898_v60 }
 0xd35   : >> { %v12904_v43 = vpop.eup %12903  ;;  %v6859_v1 = vpack.c.bf16 %v6843_v23, %v6842_v33  ;;  %12923 = vpow2.f32 %v7877_v35  ;;  %v8118_v47 = vadd.f32 1.0, %v12902_v6 }
 0xd36   : >> { %v12906_v45 = vpop.eup %12905  ;;  %v8491_v38 = vmul.f32 %v12904_v43, %v17527_v12  ;;  %12925 = vpow2.f32 %v7881_v37 }
 0xd37   : >> { %v12908_v5 = vpop.eup %12907  ;;  %v8493_v59 = vmul.f32 %v12906_v45, %v17530_v24  ;;  %12927 = vrcp.f32 %v8115_v52  ;;  %v8116_v24 = vadd.f32 1.0, %v12900_v22 }
 0xd38   : >> { %v12910_v29 = vpop.eup %12909  ;;  %v8492_v13 = vmul.f32 %v12908_v5, %v17533_v57 }
 0xd39   : >> { %v12912_v28 = vpop.eup %12911 }
 0xd3a   : >> { %v12914_v20 = vpop.eup %12913  ;;  %v8495_v9 = vmul.f32 %v12912_v28, %v17542_v63  ;;  %7238 = vmatmul.mubr.bf16.gmra.mrb[252].mxu1 %v6859_v1  ;;  %7431 = vmatmul.mubr.bf16.gmra.mrb[252].mxu0 %v6859_v1  ;;  %v8494_v63 = vmul.f32 %v12910_v29, %v17539_v56 }
 0xd3b   : >> { %v12916_v25 = vpop.eup %12915  ;;  %v8497_v16 = vmul.f32 %v12914_v20, %v17546_v42 }
 0xd3c   : >> { %v12918_v26 = vpop.eup %12917  ;;  %v8619_v50 = vpack.c.bf16 %v8495_v9, %v8491_v38  ;;  %v8119_v30 = vadd.f32 1.0, %v12916_v25 }
 0xd3d   : >> { %v12920_v54 = vpop.eup %12919  ;;  %v8621_v15 = vpack.c.bf16 %v8497_v16, %v8493_v59  ;;  %v8496_v12 = vmul.f32 %v12918_v26, %v17552_v44 }
 0xd3e   : >> { %v8498_v39 = vmul.f32 %v12920_v54, %v17559_v27  ;;  %12929 = vrcp.f32 %v8119_v30  ;;  %v12922_v43 = vpop.eup %12921 }
 0xd3f   : >> { %v8620_v42 = vpack.c.bf16 %v8496_v12, %v8492_v13  ;;  %12931 = vrcp.f32 %v8117_v46  ;;  %v12924_v35 = vpop.eup %12923  ;;  %v8121_v57 = vadd.f32 1.0, %v12922_v43 }
 0xd40   : >> { %v8622_v23 = vpack.c.bf16 %v8498_v39, %v8494_v63  ;;  %12933 = vrcp.f32 %v8116_v24  ;;  %v12926_v45 = vpop.eup %12925  ;;  %v8120_v44 = vadd.f32 1.0, %v12924_v35 }
 0xd41   : >> { %8973 = vmatprep.mubr.bf16.mxu1 %v8620_v42  ;;  %12935 = vrcp.f32 %v8118_v47  ;;  %v8122_v56 = vadd.f32 1.0, %v12926_v45  ;;  %v12928_v27 = vpop.eup %12927 }
 0xd42   : >> { %9134 = vmatprep.mubr.bf16.mxu0 %v8622_v23  ;;  %8974 = vmatmul.mubr.bf16.vlgmr.msra.gmra.mrb[0].mxu1 %v8619_v50  ;;  %12937 = vrcp.f32 %v8121_v57  ;;  %v8499_v22 = vmul.f32 %v12928_v27, %v17562_v3 }
 0xd43   : >> { %9135 = vmatmul.mubr.bf16.vlgmr.msra.gmra.mrb[0].mxu0 %v8621_v15  ;;  %12939 = vrcp.f32 %v8120_v44 }
 0xd44   : >> { %12941 = vrcp.f32 %v8122_v56 }
 0xd48   : >> { %v12930_v60 = vpop.eup %12929 }
 0xd49   : >> { %v8503_v6 = vmul.f32 %v12930_v60, %v17579_v53  ;;  %v12932_v33 = vpop.eup %12931 }
 0xd4a   : >> { %v12934_v5 = vpop.eup %12933  ;;  %v8501_v28 = vmul.f32 %v12932_v33, %v17565_v55 }
 0xd4b   : >> { %v8623_v37 = vpack.c.bf16 %v8503_v6, %v8499_v22  ;;  %v12936_v29 = vpop.eup %12935  ;;  %v8500_v9 = vmul.f32 %v12934_v5, %v17568_v19 }
 0xd4c   : >> { %v12938_v52 = vpop.eup %12937  ;;  %v8502_v59 = vmul.f32 %v12936_v29, %v17574_v31 }
 0xd4d   : >> { %v12940_v1 = vpop.eup %12939  ;;  %v8505_v20 = vmul.f32 %v12938_v52, %v17588_v0 }
 0xd4e   : >> { %v12942_v38 = vpop.eup %12941  ;;  %v8504_v25 = vmul.f32 %v12940_v1, %v17591_v7 }
 0xd4f   : >> { %v8625_v3 = vpack.c.bf16 %v8505_v20, %v8501_v28  ;;  %v8506_v53 = vmul.f32 %v12942_v38, %v17595_v34 }
 0xd50   : >> { %v8624_v16 = vpack.c.bf16 %v8504_v25, %v8500_v9 }
 0xd51   : >> { %v8626_v26 = vpack.c.bf16 %v8506_v53, %v8502_v59 }
 0xd52   : >> { %8981 = vmatprep.mubr.bf16.mxu1 %v8624_v16 }
 0xd53   : >> { %9142 = vmatprep.mubr.bf16.mxu0 %v8626_v26  ;;  %8982 = vmatmul.mubr.bf16.gmra.mrb[4].mxu1 %v8623_v37 }
 0xd54   : >> { %v7109_v50 = vpop.f32.mrb[200].mxu1  ;;  %v7302_v30 = vpop.f32.mrb[200].mxu0  ;;  %9143 = vmatmul.mubr.bf16.gmra.mrb[4].mxu0 %v8625_v3 }
 0xd55   : >> { %v17631_v55 = vadd.f32 %v17511_v62, %v7109_v50  ;;  %v17634_v0 = vadd.f32 %v17515_v2, %v7302_v30  ;;  %v7111_v19 = vpop.f32.mrb[201].mxu1  ;;  %v7304_v7 = vpop.f32.mrb[201].mxu0 }
 0xd56   : >> { %v17637_v31 = vadd.f32 %v17520_v8, %v7111_v19  ;;  %v17640_v34 = vadd.f32 %v17522_v18, %v7304_v7  ;;  %v7113_v54 = vpop.f32.mrb[202].mxu1  ;;  %v7306_v13 = vpop.f32.mrb[202].mxu0 }
 0xd57   : >> { %v10819_v15 = vmul.f32 -1.702, %v17631_v55  ;;  %v10821_v12 = vmul.f32 -1.702, %v17634_v0  ;;  %v17645_v63 = vadd.f32 %v17511_v62, %v7113_v54  ;;  %v17648_v39 = vadd.f32 %v17515_v2, %v7306_v13  ;;  %v7115_v46 = vpop.f32.mrb[203].mxu1  ;;  %v7308_v24 = vpop.f32.mrb[203].mxu0 }
 0xd58   : >> { %v10820_v42 = vmul.f32 -1.702, %v17637_v31  ;;  %v10822_v47 = vmul.f32 -1.702, %v17640_v34  ;;  %v17653_v23 = vadd.f32 %v17520_v8, %v7115_v46  ;;  %v17656_v43 = vadd.f32 %v17522_v18, %v7308_v24 }
 0xd59   : >> { %v7883_v35 = vmul.f32 1.442695, %v10819_v15  ;;  %v7887_v57 = vmul.f32 1.442695, %v10821_v12  ;;  %v10823_v45 = vmul.f32 -1.702, %v17645_v63 }
 0xd5a   : >> { %v7885_v44 = vmul.f32 1.442695, %v10820_v42  ;;  %v7889_v56 = vmul.f32 1.442695, %v10822_v47  ;;  %v10825_v27 = vmul.f32 -1.702, %v17648_v39 }
 0xd5b   : >> { %12943 = vpow2.f32 %v7883_v35  ;;  %v7891_v60 = vmul.f32 1.442695, %v10823_v45  ;;  %v10824_v22 = vmul.f32 -1.702, %v17653_v23  ;;  %v10826_v6 = vmul.f32 -1.702, %v17656_v43 }
 0xd5c   : >> { %12945 = vpow2.f32 %v7887_v57  ;;  %v7895_v37 = vmul.f32 1.442695, %v10825_v27  ;;  %v7119_v33 = vpop.f32.mrb[204].mxu1  ;;  %v7312_v5 = vpop.f32.mrb[204].mxu0 }
 0xd5d   : >> { %12947 = vpow2.f32 %v7885_v44  ;;  %v7893_v29 = vmul.f32 1.442695, %v10824_v22  ;;  %v7897_v52 = vmul.f32 1.442695, %v10826_v6  ;;  %v17663_v1 = vadd.f32 %v17511_v62, %v7119_v33  ;;  %v7121_v28 = vpop.f32.mrb[205].mxu1  ;;  %v7314_v20 = vpop.f32.mrb[205].mxu0 }
 0xd5e   : >> { %12949 = vpow2.f32 %v7889_v56  ;;  %v17666_v38 = vadd.f32 %v17515_v2, %v7312_v5  ;;  %v17669_v9 = vadd.f32 %v17520_v8, %v7121_v28  ;;  %v17672_v25 = vadd.f32 %v17522_v18, %v7314_v20  ;;  %v7123_v59 = vpop.f32.mrb[206].mxu1  ;;  %v7316_v3 = vpop.f32.mrb[206].mxu0 }
 0xd5f   : >> { %12951 = vpow2.f32 %v7891_v60  ;;  %v10827_v53 = vmul.f32 -1.702, %v17663_v1  ;;  %v17676_v16 = vadd.f32 %v17511_v62, %v7123_v59  ;;  %v7125_v26 = vpop.f32.mrb[207].mxu1  ;;  %v7318_v50 = vpop.f32.mrb[207].mxu0  ;;  %v17683_v42 = vadd.f32 %v17515_v2, %v7316_v3 }
 0xd60   : >> { %12953 = vpow2.f32 %v7895_v37  ;;  %v10829_v30 = vmul.f32 -1.702, %v17666_v38  ;;  %v10828_v19 = vmul.f32 -1.702, %v17669_v9  ;;  %v10830_v7 = vmul.f32 -1.702, %v17672_v25 }
 0xd61   : >> { %12955 = vpow2.f32 %v7893_v29  ;;  %v7899_v54 = vmul.f32 1.442695, %v10827_v53  ;;  %v10831_v13 = vmul.f32 -1.702, %v17676_v16  ;;  %v17686_v60 = vadd.f32 %v17520_v8, %v7125_v26 }
 0xd62   : >> { %12957 = vpow2.f32 %v7897_v52  ;;  %v7903_v15 = vmul.f32 1.442695, %v10829_v30  ;;  %v7901_v12 = vmul.f32 1.442695, %v10828_v19  ;;  %v7905_v46 = vmul.f32 1.442695, %v10830_v7 }
 0xd63   : >> { %12959 = vpow2.f32 %v7899_v54  ;;  %v7907_v24 = vmul.f32 1.442695, %v10831_v13  ;;  %v10833_v28 = vmul.f32 -1.702, %v17683_v42  ;;  %v17690_v53 = vadd.f32 %v17522_v18, %v7318_v50 }
 0xd64   : >> { %12961 = vpow2.f32 %v7903_v15  ;;  %v7129_v47 = vpop.f32.mrb[208].mxu1  ;;  %v7322_v35 = vpop.f32.mrb[208].mxu0  ;;  %v10832_v19 = vmul.f32 -1.702, %v17686_v60 }
 0xd65   : >> { %v12944_v57 = vpop.eup %12943  ;;  %12963 = vpow2.f32 %v7901_v12  ;;  %v7131_v45 = vpop.f32.mrb[209].mxu1  ;;  %v17694_v13 = vadd.f32 %v17511_v62, %v7129_v47  ;;  %v17697_v15 = vadd.f32 %v17515_v2, %v7322_v35 }
 0xd66   : >> { %v7324_v44 = vpop.f32.mrb[209].mxu0  ;;  %v12946_v56 = vpop.eup %12945  ;;  %v8123_v27 = vadd.f32 1.0, %v12944_v57  ;;  %12965 = vpow2.f32 %v7905_v46  ;;  %v17700_v50 = vadd.f32 %v17520_v8, %v7131_v45 }
 0xd67   : >> { %v7133_v22 = vpop.f32.mrb[210].mxu1  ;;  %v7326_v6 = vpop.f32.mrb[210].mxu0  ;;  %v8125_v33 = vadd.f32 1.0, %v12946_v56  ;;  %12967 = vpow2.f32 %v7907_v24  ;;  %v7911_v24 = vmul.f32 1.442695, %v10833_v28  ;;  %v17704_v47 = vadd.f32 %v17522_v18, %v7324_v44 }
 0xd68   : >> { %v12948_v37 = vpop.eup %12947  ;;  %v7135_v5 = vpop.f32.mrb[211].mxu1  ;;  %12969 = vrcp.f32 %v8123_v27  ;;  %19873 = vst [vmem:[#allocation99_spill] sm:$0xff] %v17700_v50  ;;  %v17711_v45 = vadd.f32 %v17511_v62, %v7133_v22  ;;  %v10837_v44 = vmul.f32 -1.702, %v17697_v15 }
 0xd69   : >> { %v12950_v29 = vpop.eup %12949  ;;  %v8124_v52 = vadd.f32 1.0, %v12948_v37  ;;  %v7328_v20 = vpop.f32.mrb[211].mxu0  ;;  %12971 = vrcp.f32 %v8125_v33  ;;  %v10834_v33 = vmul.f32 -1.702, %v17690_v53  ;;  %19874 = vst [vmem:[#allocation109_spill] sm:$0xff] %v17704_v47 }
 0xd6a   : >> { %v12952_v59 = vpop.eup %12951  ;;  %v8126_v3 = vadd.f32 1.0, %v12950_v29 }
 0xd6b   : >> { %v12954_v26 = vpop.eup %12953  ;;  %12973 = vrcp.f32 %v8124_v52  ;;  %v8127_v30 = vadd.f32 1.0, %v12952_v59  ;;  %v7909_v59 = vmul.f32 1.442695, %v10832_v19  ;;  %v7913_v41 = vmul.f32 1.442695, %v10834_v33 }
 0xd6c   : >> { %v12956_v7 = vpop.eup %12955  ;;  %12975 = vrcp.f32 %v8126_v3  ;;  %v8129_v54 = vadd.f32 1.0, %v12954_v26  ;;  %v7139_v57 = vpop.f32.mrb[212].mxu1 }
 0xd6d   : >> { %v12958_v12 = vpop.eup %12957  ;;  %12977 = vrcp.f32 %v8127_v30  ;;  %v8128_v46 = vadd.f32 1.0, %v12956_v7  ;;  %v7332_v56 = vpop.f32.mrb[212].mxu0  ;;  %v10835_v7 = vmul.f32 -1.702, %v17694_v13 }
 0xd6e   : >> { %v12960_v27 = vpop.eup %12959  ;;  %12979 = vrcp.f32 %v8129_v54  ;;  %v8130_v37 = vadd.f32 1.0, %v12958_v12  ;;  %v17706_v29 = vpop.f32.mrb[213].mxu1 }
 0xd6f   : >> { %v17708_v35 = vpop.f32.mrb[213].mxu0  ;;  %v12962_v52 = vpop.eup %12961  ;;  %12981 = vrcp.f32 %v8128_v46  ;;  %v8131_v28 = vadd.f32 1.0, %v12960_v27  ;;  %v10836_v46 = vmul.f32 -1.702, %v17700_v50  ;;  %v7915_v17 = vmul.f32 1.442695, %v10835_v7 }
 0xd70   : >> { %v17713_v3 = vpop.f32.mrb[214].mxu1  ;;  %v12964_v26 = vpop.eup %12963  ;;  %12983 = vrcp.f32 %v8130_v37  ;;  %v8133_v30 = vadd.f32 1.0, %v12962_v52  ;;  %v10838_v37 = vmul.f32 -1.702, %v17704_v47  ;;  %v17726_v52 = vadd.f32 %v17515_v2, %v7326_v6 }
 0xd71   : >> { %v17717_v54 = vpop.f32.mrb[214].mxu0  ;;  %v12966_v12 = vpop.eup %12965  ;;  %12985 = vrcp.f32 %v8131_v28  ;;  %v8132_v40 = vadd.f32 1.0, %v12964_v26  ;;  %v10839_v28 = vmul.f32 -1.702, %v17711_v45  ;;  %v17730_v26 = vadd.f32 %v17520_v8, %v7135_v5 }
 0xd72   : >> { %v17720_v19 = vpop.f32.mrb[215].mxu1  ;;  %v17722_v22 = vpop.f32.mrb[215].mxu0  ;;  %12987 = vrcp.f32 %v8133_v30  ;;  %v8134_v61 = vadd.f32 1.0, %v12966_v12  ;;  %v17733_v30 = vadd.f32 %v17522_v18, %v7328_v20  ;;  %v7919_v6 = vmul.f32 1.442695, %v10837_v44 }
 0xd73   : >> { %v12968_v27 = vpop.eup %12967  ;;  %12989 = vrcp.f32 %v8132_v40  ;;  %v7917_v58 = vmul.f32 1.442695, %v10836_v46  ;;  %v17738_v40 = vadd.f32 %v17511_v62, %v7139_v57  ;;  %v10841_v33 = vmul.f32 -1.702, %v17726_v52 }
 0xd74   : >> { %v12970_v49 = vpop.eup %12969  ;;  %v8135_v48 = vadd.f32 1.0, %v12968_v27  ;;  %12991 = vrcp.f32 %v8134_v61  ;;  %v17740_v27 = vpop.f32.mrb[216].mxu1  ;;  %v7921_v61 = vmul.f32 1.442695, %v10838_v37  ;;  %v17748_v20 = vadd.f32 %v17515_v2, %v7332_v56 }
 0xd75   : >> { %v12972_v10 = vpop.eup %12971  ;;  %19875 = vst [vmem:[#allocation108_spill] sm:$0xff] %v17738_v40  ;;  %v17742_v51 = vpop.f32.mrb[216].mxu0  ;;  %v7923_v57 = vmul.f32 1.442695, %v10839_v28  ;;  %v10840_v46 = vmul.f32 -1.702, %v17730_v26  ;;  %v17760_v37 = vmul.f32 %v12970_v49, %v17631_v55 }
 0xd76   : >> { %v17735_v12 = vpop.eup %12973  ;;  %12993 = vrcp.f32 %v8135_v48  ;;  %19876 = vst [vmem:[#allocation77_spill] sm:$0xff] %v17748_v20  ;;  %v17750_v7 = vpop.f32.mrb[217].mxu1  ;;  %v10842_v21 = vmul.f32 -1.702, %v17733_v30  ;;  %v17771_v4 = vmul.f32 %v12972_v10, %v17634_v0  ;;  %v10843_v49 = vmul.f32 -1.702, %v17738_v40 }
 0xd77   : >> { %v17744_v5 = vpop.eup %12975  ;;  %12995 = vpow2.f32 %v7911_v24  ;;  %v17752_v48 = vpop.f32.mrb[217].mxu0  ;;  %v7925_v10 = vmul.f32 1.442695, %v10840_v46  ;;  %v17784_v0 = vadd.f32 %v17520_v8, %v17706_v29  ;;  %v17796_v46 = vadd.f32 %v17522_v18, %v17708_v35 }
 0xd78   : >> { %v12978_v44 = vpop.eup %12977  ;;  %12997 = vpow2.f32 %v7909_v59  ;;  %v17755_v11 = vpop.f32.mrb[218].mxu1 }
 0xd79   : >> { %v17757_v32 = vpop.f32.mrb[218].mxu0  ;;  %v12980_v24 = vpop.eup %12979  ;;  %v17763_v56 = vmul.f32 %v12978_v44, %v17645_v63  ;;  %12999 = vpow2.f32 %v7913_v41  ;;  %v7927_v63 = vmul.f32 1.442695, %v10841_v33  ;;  %v10845_v44 = vmul.f32 -1.702, %v17748_v20  ;;  %19877 = vst [vmem:[#allocation75_spill] sm:$0xff] %v17784_v0 }
 0xd7a   : >> { %v17766_v14 = vpop.f32.mrb[219].mxu1  ;;  %v17768_v59 = vpop.f32.mrb[219].mxu0  ;;  %v17774_v36 = vmul.f32 %v12980_v24, %v17648_v39  ;;  %13001 = vpow2.f32 %v7915_v17  ;;  %v7929_v39 = vmul.f32 1.442695, %v10842_v21  ;;  %19878 = vst [vmem:[#allocation76_spill] sm:$0xff] %v17796_v46 }
 0xd7b   : >> { %v12982_v28 = vpop.eup %12981  ;;  %13003 = vpow2.f32 %v7919_v6  ;;  %v7931_v6 = vmul.f32 1.442695, %v10843_v49  ;;  %v17805_v49 = vadd.f32 %v17511_v62, %v17713_v3 }
 0xd7c   : >> { %v12984_v55 = vpop.eup %12983  ;;  %13005 = vpow2.f32 %v7917_v58  ;;  %v17788_v33 = vpop.f32.mrb[220].mxu1  ;;  %v7935_v58 = vmul.f32 1.442695, %v10845_v44 }
 0xd7d   : >> { %v12986_v47 = vpop.eup %12985  ;;  %13007 = vpow2.f32 %v7921_v61  ;;  %v17790_v41 = vpop.f32.mrb[220].mxu0 }
 0xd7e   : >> { %v12988_v17 = vpop.eup %12987  ;;  %13009 = vpow2.f32 %v7923_v57  ;;  %v17798_v29 = vpop.f32.mrb[221].mxu1  ;;  %v10844_v57 = vmul.f32 -1.702, %v17784_v0  ;;  %v17812_v35 = vmul.f32 %v12986_v47, %v17663_v1 }
 0xd7f   : >> { %v17786_v24 = vpop.eup %12989  ;;  %13011 = vpow2.f32 %v7927_v63  ;;  %19879 = vst [vmem:[#allocation74_spill] sm:$0xff] %v17798_v29  ;;  %v17800_v61 = vpop.f32.mrb[221].mxu0 }
 0xd80   : >> { %v17792_v20 = vpop.eup %12991  ;;  %19880 = vst [vmem:[#allocation73_spill] sm:$0xff] %v17800_v61  ;;  %13013 = vpow2.f32 %v7925_v10  ;;  %v17807_v50 = vpop.f32.mrb[222].mxu1  ;;  %v17819_v10 = vadd.f32 %v17515_v2, %v17717_v54 }
 0xd81   : >> { %v12994_v21 = vpop.eup %12993  ;;  %19881 = vst [vmem:[#allocation71_spill] sm:$0xff] %v17807_v50  ;;  %v17809_v63 = vpop.f32.mrb[222].mxu0  ;;  %13015 = vpow2.f32 %v7929_v39  ;;  %v10846_v39 = vmul.f32 -1.702, %v17796_v46 }
 0xd82   : >> { %19882 = vst [vmem:[#allocation72_spill] sm:$0xff] %v17809_v63  ;;  %v12996_v44 = vpop.eup %12995  ;;  %v17815_v40 = vmul.f32 %v12994_v21, %v17676_v16  ;;  %v17821_v0 = vpop.f32.mrb[223].mxu1  ;;  %v8508_v63 = vmul.f32 %v17735_v12, %v17637_v31  ;;  %13017 = vpow2.f32 %v7931_v6  ;;  %v8510_v21 = vmul.f32 %v17744_v5, %v17640_v34 }
 0xd83   : >> { %19883 = vst [vmem:[#allocation70_spill] sm:$0xff] %v17821_v0  ;;  %v17823_v3 = vpop.f32.mrb[223].mxu0  ;;  %v12998_v61 = vpop.eup %12997  ;;  %v8137_v50 = vadd.f32 1.0, %v12996_v44  ;;  %13019 = vpow2.f32 %v7935_v58  ;;  %v10847_v0 = vmul.f32 -1.702, %v17805_v49  ;;  %v8512_v58 = vmul.f32 %v12982_v28, %v17653_v23 }
 0xd84   : >> { %19884 = vst [vmem:[#allocation69_spill] sm:$0xff] %v17823_v3  ;;  %v13000_v1 = vpop.eup %12999  ;;  %v8136_v47 = vadd.f32 1.0, %v12998_v61  ;;  %v17833_v12 = vmul.f32 1.442695, %v10844_v57  ;;  %v10849_v6 = vmul.f32 -1.702, %v17819_v10  ;;  %v17839_v16 = vadd.f32 %v17520_v8, %v17720_v19 }
 0xd85   : >> { %v13002_v54 = vpop.eup %13001  ;;  %13021 = vrcp.f32 %v8137_v50  ;;  %v8138_v3 = vadd.f32 1.0, %v13000_v1  ;;  %v8514_v50 = vmul.f32 %v12984_v55, %v17656_v43  ;;  %v7937_v1 = vmul.f32 1.442695, %v10846_v39 }
 0xd86   : >> { %v13004_v29 = vpop.eup %13003  ;;  %13023 = vrcp.f32 %v8136_v47  ;;  %v8139_v31 = vadd.f32 1.0, %v13002_v54  ;;  %v17843_v57 = vmul.f32 %v12988_v17, %v17666_v38  ;;  %v7939_v46 = vmul.f32 1.442695, %v10847_v0 }
 0xd87   : >> { %v13006_v44 = vpop.eup %13005  ;;  %13025 = vrcp.f32 %v8138_v3  ;;  %v8141_v61 = vadd.f32 1.0, %v13004_v29  ;;  %v7943_v29 = vmul.f32 1.442695, %v10849_v6  ;;  %v17847_v19 = vadd.f32 %v17522_v18, %v17722_v22 }
 0xd88   : >> { %v13008_v34 = vpop.eup %13007  ;;  %13027 = vrcp.f32 %v8139_v31  ;;  %v8140_v5 = vadd.f32 1.0, %v13006_v44  ;;  %v10848_v55 = vmul.f32 -1.702, %v17839_v16  ;;  %v17852_v38 = vadd.f32 %v17511_v62, %v17740_v27 }
 0xd89   : >> { %v13010_v47 = vpop.eup %13009  ;;  %13029 = vrcp.f32 %v8141_v61  ;;  %v8142_v54 = vadd.f32 1.0, %v13008_v34  ;;  %v17856_v39 = vadd.f32 %v17515_v2, %v17742_v51  ;;  %v8628_v31 = vpack.c.bf16 %v8512_v58, %v8508_v63 }
 0xd8a   : >> { %v13012_v23 = vpop.eup %13011  ;;  %13031 = vrcp.f32 %v8140_v5  ;;  %v8143_v28 = vadd.f32 1.0, %v13010_v47  ;;  %v17860_v44 = vadd.f32 %v17520_v8, %v17750_v7  ;;  %v17864_v61 = vadd.f32 %v17522_v18, %v17752_v48 }
 0xd8b   : >> { %v13014_v3 = vpop.eup %13013  ;;  %13033 = vrcp.f32 %v8142_v54  ;;  %v8145_v43 = vadd.f32 1.0, %v13012_v23  ;;  %v17868_v5 = vadd.f32 %v17511_v62, %v17755_v11  ;;  %8989 = vmatprep.mubr.bf16.mxu1 %v8628_v31  ;;  %v8630_v51 = vpack.c.bf16 %v8514_v50, %v8510_v21 }
 0xd8c   : >> { %v13016_v17 = vpop.eup %13015  ;;  %13035 = vrcp.f32 %v8143_v28  ;;  %v8144_v0 = vadd.f32 1.0, %v13014_v3  ;;  %v10850_v47 = vmul.f32 -1.702, %v17847_v19  ;;  %v10851_v7 = vmul.f32 -1.702, %v17852_v38 }
 0xd8d   : >> { %v13018_v6 = vpop.eup %13017  ;;  %13037 = vrcp.f32 %v8145_v43  ;;  %v8146_v22 = vadd.f32 1.0, %v13016_v17  ;;  %v19885_v48 = vpack.c.bf16 %v17763_v56, %v17760_v37  ;;  %v7941_v11 = vmul.f32 1.442695, %v10848_v55  ;;  %9150 = vmatprep.mubr.bf16.mxu0 %v8630_v51 }
 0xd8e   : >> { %v13020_v27 = vpop.eup %13019  ;;  %13039 = vrcp.f32 %v8144_v0  ;;  %v8147_v34 = vadd.f32 1.0, %v13018_v6  ;;  %v10853_v28 = vmul.f32 -1.702, %v17856_v39  ;;  %v10852_v50 = vmul.f32 -1.702, %v17860_v44 }
 0xd8f   : >> { %v13022_v63 = vpop.eup %13021  ;;  %13041 = vrcp.f32 %v8146_v22  ;;  %v8149_v58 = vadd.f32 1.0, %v13020_v27  ;;  %8990 = vmatmul.mubr.bf16.gmra.mrb[8].mxu1 %v19885_v48  ;;  %v17882_v3 = vadd.f32 %v17515_v2, %v17757_v32  ;;  %v17886_v37 = vadd.f32 %v17520_v8, %v17766_v14 }
 0xd90   : >> { %v13024_v54 = vpop.eup %13023  ;;  %v17876_v23 = vmul.f32 %v13022_v63, %v17683_v42  ;;  %13043 = vrcp.f32 %v8147_v34  ;;  %v19886_v42 = vpack.c.bf16 %v17774_v36, %v17771_v4  ;;  %v10854_v55 = vmul.f32 -1.702, %v17864_v61 }
 0xd91   : >> { %v13026_v21 = vpop.eup %13025  ;;  %13045 = vrcp.f32 %v8149_v58  ;;  %v10855_v17 = vmul.f32 -1.702, %v17868_v5  ;;  %v8516_v0 = vmul.f32 %v17786_v24, %v17669_v9  ;;  %v7945_v14 = vmul.f32 1.442695, %v10850_v47 }
 0xd92   : >> { %9151 = vmatmul.mubr.bf16.gmra.mrb[8].mxu0 %v19886_v42  ;;  %v13028_v56 = vpop.eup %13027  ;;  %v8633_v43 = vpack.c.bf16 %v17876_v23, %v17843_v57  ;;  %13047 = vpow2.f32 %v17833_v12  ;;  %v8518_v36 = vmul.f32 %v17792_v20, %v17672_v25  ;;  %v7947_v4 = vmul.f32 1.442695, %v10851_v7 }
 0xd93   : >> { %v13030_v32 = vpop.eup %13029  ;;  %13049 = vpow2.f32 %v7937_v1  ;;  %v7951_v6 = vmul.f32 1.442695, %v10853_v28  ;;  %v7949_v12 = vmul.f32 1.442695, %v10852_v50  ;;  %v10857_v27 = vmul.f32 -1.702, %v17882_v3 }
 0xd94   : >> { %v13032_v31 = vpop.eup %13031  ;;  %13051 = vpow2.f32 %v7939_v46  ;;  %v10856_v34 = vmul.f32 -1.702, %v17886_v37  ;;  %v7953_v63 = vmul.f32 1.442695, %v10854_v55  ;;  %v7955_v9 = vmul.f32 1.442695, %v10855_v17 }
 0xd95   : >> { %v13034_v22 = vpop.eup %13033  ;;  %13053 = vpow2.f32 %v7943_v29  ;;  %v17904_v24 = vadd.f32 %v17522_v18, %v17768_v59  ;;  %v8520_v25 = vmul.f32 %v13024_v54, %v17686_v60  ;;  %v17908_v20 = vmul.f32 %v13028_v56, %v17694_v13  ;;  %v19888_v56 = vld [vmem:[#allocation109_spill] sm:$0xff] }
 0xd96   : >> { %v13036_v51 = vpop.eup %13035  ;;  %13055 = vpow2.f32 %v7941_v11  ;;  %v8522_v58 = vmul.f32 %v13026_v21, %v17690_v53  ;;  %v17915_v47 = vmul.f32 %v13030_v32, %v17697_v15  ;;  %v7959_v13 = vmul.f32 1.442695, %v10857_v27  ;;  %v19887_v11 = vld [vmem:[#allocation99_spill] sm:$0xff] }
 0xd97   : >> { %v13038_v1 = vpop.eup %13037  ;;  %v17911_v46 = vmul.f32 %v13036_v51, %v17711_v45  ;;  %13057 = vpow2.f32 %v7945_v14  ;;  %v7957_v48 = vmul.f32 1.442695, %v10856_v34  ;;  %v8524_v28 = vmul.f32 %v13032_v31, %v19887_v11  ;;  %v19889_v14 = vld [vmem:[#allocation74_spill] sm:$0xff] }
 0xd98   : >> { %v13040_v29 = vpop.eup %13039  ;;  %v17918_v7 = vmul.f32 %v13038_v1, %v17726_v52  ;;  %13059 = vpow2.f32 %v7947_v4  ;;  %v17933_v21 = vadd.f32 %v17511_v62, %v17788_v33  ;;  %v17937_v50 = vadd.f32 %v17515_v2, %v17790_v41  ;;  %v19891_v4 = vld [vmem:[#allocation73_spill] sm:$0xff] }
 0xd99   : >> { %v13042_v59 = vpop.eup %13041  ;;  %v8635_v60 = vpack.c.bf16 %v17911_v46, %v17908_v20  ;;  %13061 = vpow2.f32 %v7951_v6  ;;  %v8528_v53 = vmul.f32 %v13040_v29, %v17730_v26  ;;  %v8526_v55 = vmul.f32 %v13034_v22, %v19888_v56 }
 0xd9a   : >> { %v17922_v45 = vpop.eup %13043  ;;  %v8637_v54 = vpack.c.bf16 %v17918_v7, %v17915_v47  ;;  %v8530_v15 = vmul.f32 %v13042_v59, %v17733_v30  ;;  %13063 = vpow2.f32 %v7949_v12  ;;  %v8632_v26 = vpack.c.bf16 %v8520_v25, %v8516_v0 }
 0xd9b   : >> { %v17928_v52 = vpop.eup %13045  ;;  %13065 = vpow2.f32 %v7953_v63  ;;  %v8634_v30 = vpack.c.bf16 %v8522_v58, %v8518_v36  ;;  %v17942_v31 = vadd.f32 %v17520_v8, %v19889_v14  ;;  %v17946_v33 = vadd.f32 %v17522_v18, %v19891_v4 }
 0xd9c   : >> { %v13048_v42 = vpop.eup %13047  ;;  %13067 = vpow2.f32 %v7955_v9  ;;  %8997 = vmatprep.mubr.bf16.mxu1 %v8632_v26  ;;  %v8636_v22 = vpack.c.bf16 %v8528_v53, %v8524_v28  ;;  %v8638_v12 = vpack.c.bf16 %v8530_v15, %v8526_v55  ;;  %v10858_v27 = vmul.f32 -1.702, %v17904_v24  ;;  %v19895_v15 = vld [vmem:[#allocation72_spill] sm:$0xff] }
 0xd9d   : >> { %v13050_v17 = vpop.eup %13049  ;;  %v8148_v32 = vadd.f32 1.0, %v13048_v42  ;;  %13069 = vpow2.f32 %v7959_v13  ;;  %19890 = vst [vmem:[#allocation67_spill] sm:$0xff] %v17942_v31  ;;  %19892 = vst [vmem:[#allocation68_spill] sm:$0xff] %v17946_v33  ;;  %9158 = vmatprep.mubr.bf16.mxu0 %v8634_v30  ;;  %v10859_v34 = vmul.f32 -1.702, %v17933_v21  ;;  %v19893_v51 = vpack.c.bf16 %v17815_v40, %v17812_v35  ;;  %v7169_v25 = vpop.f32.mrb[224].mxu1 }
 0xd9e   : >> { %v13052_v6 = vpop.eup %13051  ;;  %v8150_v41 = vadd.f32 1.0, %v13050_v17  ;;  %13071 = vpow2.f32 %v7957_v48  ;;  %9159 = vmatmul.mubr.bf16.gmra.mrb[12].mxu0 %v8633_v43  ;;  %v10861_v1 = vmul.f32 -1.702, %v17937_v50  ;;  %v7362_v29 = vpop.f32.mrb[224].mxu0  ;;  %v10860_v13 = vmul.f32 -1.702, %v17942_v31 }
 0xd9f   : >> { %v13054_v0 = vpop.eup %13053  ;;  %13073 = vrcp.f32 %v8148_v32  ;;  %v8151_v36 = vadd.f32 1.0, %v13052_v6  ;;  %8998 = vmatmul.mubr.bf16.gmra.mrb[12].mxu1 %v19893_v51  ;;  %9166 = vmatprep.mubr.bf16.mxu0 %v8638_v12  ;;  %v19894_v40 = vld [vmem:[#allocation71_spill] sm:$0xff]  ;;  %v7171_v57 = vpop.f32.mrb[225].mxu1  ;;  %v10862_v53 = vmul.f32 -1.702, %v17946_v33  ;;  %v17965_v11 = vadd.f32 %v17515_v2, %v19895_v15  ;;  %v19896_v30 = vld [vmem:[#allocation70_spill] sm:$0xff] }
 0xda0   : >> { %v13056_v63 = vpop.eup %13055  ;;  %13075 = vrcp.f32 %v8150_v41  ;;  %v8153_v9 = vadd.f32 1.0, %v13054_v0  ;;  %9005 = vmatprep.mubr.bf16.mxu1 %v8636_v22  ;;  %v17960_v35 = vadd.f32 %v17511_v62, %v19894_v40  ;;  %v7364_v23 = vpop.f32.mrb[225].mxu0  ;;  %v7961_v26 = vmul.f32 1.442695, %v10858_v27 }
 0xda1   : >> { %v13058_v58 = vpop.eup %13057  ;;  %13077 = vrcp.f32 %v8151_v36  ;;  %v8152_v59 = vadd.f32 1.0, %v13056_v63  ;;  %v17967_v28 = vpop.f32.mrb[226].mxu1  ;;  %v17973_v17 = vadd.f32 %v17520_v8, %v19896_v30  ;;  %v7963_v6 = vmul.f32 1.442695, %v10859_v34 }
 0xda2   : >> { %v13060_v43 = vpop.eup %13059  ;;  %13079 = vrcp.f32 %v8153_v9  ;;  %v8154_v48 = vadd.f32 1.0, %v13058_v58  ;;  %v17969_v42 = vpop.f32.mrb[226].mxu0  ;;  %v7967_v41 = vmul.f32 1.442695, %v10861_v1  ;;  %v7965_v36 = vmul.f32 1.442695, %v10860_v13 }
 0xda3   : >> { %v13062_v56 = vpop.eup %13061  ;;  %13081 = vrcp.f32 %v8152_v59  ;;  %v8155_v55 = vadd.f32 1.0, %v13060_v43  ;;  %19897 = vst [vmem:[#allocation66_spill] sm:$0xff] %v17973_v17  ;;  %v17975_v32 = vpop.f32.mrb[227].mxu1  ;;  %v10863_v51 = vmul.f32 -1.702, %v17960_v35  ;;  %v19898_v1 = vld [vmem:[#allocation69_spill] sm:$0xff]  ;;  %v17996_v15 = vadd.f32 %v17515_v2, %v7362_v29 }
 0xda4   : >> { %v13064_v14 = vpop.eup %13063  ;;  %13083 = vrcp.f32 %v8154_v48  ;;  %v8157_v4 = vadd.f32 1.0, %v13062_v56  ;;  %v17977_v22 = vpop.f32.mrb[227].mxu0  ;;  %v7969_v9 = vmul.f32 1.442695, %v10862_v53  ;;  %v10865_v58 = vmul.f32 -1.702, %v17965_v11 }
 0xda5   : >> { %v13066_v12 = vpop.eup %13065  ;;  %13085 = vrcp.f32 %v8155_v55  ;;  %v8156_v0 = vadd.f32 1.0, %v13064_v14  ;;  %v10864_v34 = vmul.f32 -1.702, %v17973_v17  ;;  %v17984_v43 = vadd.f32 %v17522_v18, %v19898_v1  ;;  %19901 = vst [vmem:[#allocation64_spill] sm:$0xff] %v17996_v15  ;;  %v17998_v56 = vpop.f32.mrb[228].mxu1 }
 0xda6   : >> { %v13068_v27 = vpop.eup %13067  ;;  %13087 = vrcp.f32 %v8157_v4  ;;  %v8158_v63 = vadd.f32 1.0, %v13066_v12  ;;  %9167 = vmatmul.mubr.bf16.gmra.mrb[16].mxu0 %v8637_v54  ;;  %v17993_v53 = vadd.f32 %v17511_v62, %v7169_v25  ;;  %v18000_v55 = vpop.f32.mrb[228].mxu0  ;;  %v18003_v46 = vadd.f32 %v17520_v8, %v7171_v57  ;;  %v19904_v54 = vld [vmem:[#allocation108_spill] sm:$0xff] }
 0xda7   : >> { %v13070_v59 = vpop.eup %13069  ;;  %13089 = vrcp.f32 %v8156_v0  ;;  %v8159_v40 = vadd.f32 1.0, %v13068_v27  ;;  %19899 = vst [vmem:[#allocation65_spill] sm:$0xff] %v17984_v43  ;;  %9006 = vmatmul.mubr.bf16.gmra.mrb[16].mxu1 %v8635_v60  ;;  %v18006_v47 = vadd.f32 %v17522_v18, %v7364_v23  ;;  %v18008_v7 = vpop.f32.mrb[229].mxu1  ;;  %v8531_v25 = vmul.f32 %v17922_v45, %v19904_v54  ;;  %v19905_v27 = vld [vmem:[#allocation77_spill] sm:$0xff] }
 0xda8   : >> { %v13072_v13 = vpop.eup %13071  ;;  %13091 = vrcp.f32 %v8158_v63  ;;  %v8161_v48 = vadd.f32 1.0, %v13070_v59  ;;  %19900 = vst [vmem:[#allocation63_spill] sm:$0xff] %v17993_v53  ;;  %19902 = vst [vmem:[#allocation62_spill] sm:$0xff] %v18003_v46  ;;  %v7971_v29 = vmul.f32 1.442695, %v10863_v51  ;;  %v18012_v4 = vpop.f32.mrb[229].mxu0  ;;  %v8533_v57 = vmul.f32 %v17928_v52, %v19905_v27 }
 0xda9   : >> { %v13074_v30 = vpop.eup %13073  ;;  %13093 = vrcp.f32 %v8159_v40  ;;  %v8160_v20 = vadd.f32 1.0, %v13072_v13  ;;  %19903 = vst [vmem:[#allocation61_spill] sm:$0xff] %v18006_v47  ;;  %v7975_v14 = vmul.f32 1.442695, %v10865_v58  ;;  %v18014_v12 = vpop.f32.mrb[230].mxu1  ;;  %v19906_v27 = vld [vmem:[#allocation75_spill] sm:$0xff] }
 0xdaa   : >> { %v13076_v60 = vpop.eup %13075  ;;  %13095 = vrcp.f32 %v8161_v48  ;;  %v7973_v23 = vmul.f32 1.442695, %v10864_v34  ;;  %v10866_v63 = vmul.f32 -1.702, %v17984_v43  ;;  %v18019_v59 = vpop.f32.mrb[230].mxu0  ;;  %v8532_v43 = vmul.f32 %v13074_v30, %v19906_v27 }
 0xdab   : >> { %v13078_v0 = vpop.eup %13077  ;;  %13097 = vrcp.f32 %v8160_v20  ;;  %v18021_v40 = vpop.f32.mrb[231].mxu1  ;;  %v10867_v58 = vmul.f32 -1.702, %v17993_v53  ;;  %v10869_v1 = vmul.f32 -1.702, %v17996_v15 }
 0xdac   : >> { %v13080_v45 = vpop.eup %13079  ;;  %v8535_v51 = vmul.f32 %v13078_v0, %v17805_v49  ;;  %13099 = vpow2.f32 %v7961_v26  ;;  %v18026_v13 = vpop.f32.mrb[231].mxu0  ;;  %v10868_v34 = vmul.f32 -1.702, %v18003_v46  ;;  %v10870_v20 = vmul.f32 -1.702, %v18006_v47  ;;  %v19907_v0 = vld [vmem:[#allocation76_spill] sm:$0xff] }
 0xdad   : >> { %v13082_v48 = vpop.eup %13081  ;;  %v8537_v52 = vmul.f32 %v13080_v45, %v17819_v10  ;;  %13101 = vpow2.f32 %v7963_v6  ;;  %v8534_v15 = vmul.f32 %v13076_v60, %v19907_v0  ;;  %v7977_v6 = vmul.f32 1.442695, %v10866_v63 }
 0xdae   : >> { %v13084_v54 = vpop.eup %13083  ;;  %v8639_v33 = vpack.c.bf16 %v8535_v51, %v8531_v25  ;;  %v8536_v49 = vmul.f32 %v13082_v48, %v17839_v16  ;;  %13103 = vpow2.f32 %v7967_v41  ;;  %v7979_v31 = vmul.f32 1.442695, %v10867_v58 }
 0xdaf   : >> { %v13086_v26 = vpop.eup %13085  ;;  %v8641_v53 = vpack.c.bf16 %v8537_v52, %v8533_v57  ;;  %v8538_v17 = vmul.f32 %v13084_v54, %v17847_v19  ;;  %13105 = vpow2.f32 %v7965_v36  ;;  %v18035_v30 = vpop.f32.mrb[232].mxu1  ;;  %v7983_v41 = vmul.f32 1.442695, %v10869_v1 }
 0xdb0   : >> { %v13088_v10 = vpop.eup %13087  ;;  %13107 = vpow2.f32 %v7969_v9  ;;  %v8640_v45 = vpack.c.bf16 %v8536_v49, %v8532_v43  ;;  %v18037_v25 = vpop.f32.mrb[232].mxu0  ;;  %v7981_v9 = vmul.f32 1.442695, %v10868_v34  ;;  %v18047_v43 = vadd.f32 %v17511_v62, %v17967_v28 }
 0xdb1   : >> { %v13090_v46 = vpop.eup %13089  ;;  %13109 = vpow2.f32 %v7971_v29  ;;  %v8642_v47 = vpack.c.bf16 %v8538_v17, %v8534_v15  ;;  %v18041_v60 = vpop.f32.mrb[233].mxu1  ;;  %v7985_v17 = vmul.f32 1.442695, %v10870_v20  ;;  %v8539_v57 = vmul.f32 %v13086_v26, %v17852_v38 }
 0xdb2   : >> { %v18039_v16 = vpop.eup %13091  ;;  %13111 = vpow2.f32 %v7975_v14  ;;  %9013 = vmatprep.mubr.bf16.mxu1 %v8640_v45  ;;  %v18043_v19 = vpop.f32.mrb[233].mxu0  ;;  %v18064_v51 = vmul.f32 %v13088_v10, %v17856_v39  ;;  %v18071_v38 = vadd.f32 %v17520_v8, %v17975_v32 }
 0xdb3   : >> { %v13094_v36 = vpop.eup %13093  ;;  %13113 = vpow2.f32 %v7973_v23  ;;  %9174 = vmatprep.mubr.bf16.mxu0 %v8642_v47  ;;  %9014 = vmatmul.mubr.bf16.gmra.mrb[20].mxu1 %v8639_v33  ;;  %v18049_v15 = vpop.f32.mrb[234].mxu1  ;;  %v18057_v33 = vadd.f32 %v17515_v2, %v17969_v42  ;;  %v8540_v42 = vmul.f32 %v13090_v46, %v17860_v44  ;;  %v10871_v44 = vmul.f32 -1.702, %v18047_v43 }
 0xdb4   : >> { %v18051_v29 = vpop.f32.mrb[234].mxu0  ;;  %v13096_v14 = vpop.eup %13095  ;;  %v8543_v63 = vmul.f32 %v13094_v36, %v17868_v5  ;;  %13115 = vpow2.f32 %v7977_v6  ;;  %9175 = vmatmul.mubr.bf16.gmra.mrb[20].mxu0 %v8641_v53 }
 0xdb5   : >> { %v18059_v47 = vpop.f32.mrb[235].mxu1  ;;  %v18061_v23 = vpop.f32.mrb[235].mxu0  ;;  %v18067_v58 = vmul.f32 %v13096_v14, %v17882_v3  ;;  %13117 = vpow2.f32 %v7979_v31  ;;  %v18079_v3 = vadd.f32 %v17522_v18, %v17977_v22  ;;  %v10873_v20 = vmul.f32 -1.702, %v18057_v33 }
 0xdb6   : >> { %v13098_v28 = vpop.eup %13097  ;;  %v8643_v53 = vpack.c.bf16 %v8543_v63, %v8539_v57  ;;  %13119 = vpow2.f32 %v7983_v41  ;;  %v10872_v22 = vmul.f32 -1.702, %v18071_v38  ;;  %v7987_v57 = vmul.f32 1.442695, %v10871_v44 }
 0xdb7   : >> { %v13100_v5 = vpop.eup %13099  ;;  %v8544_v1 = vmul.f32 %v13098_v28, %v17886_v37  ;;  %13121 = vpow2.f32 %v7981_v9  ;;  %v18083_v54 = vpop.f32.mrb[236].mxu1  ;;  %v10874_v41 = vmul.f32 -1.702, %v18079_v3  ;;  %v18099_v63 = vadd.f32 %v17511_v62, %v17998_v56 }
 0xdb8   : >> { %v13102_v48 = vpop.eup %13101  ;;  %v8162_v52 = vadd.f32 1.0, %v13100_v5  ;;  %13123 = vpow2.f32 %v7985_v17  ;;  %v18085_v27 = vpop.f32.mrb[236].mxu0  ;;  %v7991_v56 = vmul.f32 1.442695, %v10873_v20  ;;  %v18124_v20 = vadd.f32 %v17515_v2, %v18019_v59 }
 0xdb9   : >> { %v13104_v31 = vpop.eup %13103  ;;  %v8163_v32 = vadd.f32 1.0, %v13102_v48  ;;  %v8644_v34 = vpack.c.bf16 %v8544_v1, %v8540_v42  ;;  %v18088_v0 = vpop.f32.mrb[237].mxu1  ;;  %v18109_v1 = vadd.f32 %v17520_v8, %v18008_v7 }
 0xdba   : >> { %v13106_v46 = vpop.eup %13105  ;;  %13125 = vrcp.f32 %v8162_v52  ;;  %v8165_v37 = vadd.f32 1.0, %v13104_v31  ;;  %v18090_v10 = vpop.f32.mrb[237].mxu0 }
 0xdbb   : >> { %v13108_v49 = vpop.eup %13107  ;;  %13127 = vrcp.f32 %v8163_v32  ;;  %v8164_v26 = vadd.f32 1.0, %v13106_v46  ;;  %9021 = vmatprep.mubr.bf16.mxu1 %v8644_v34  ;;  %v18093_v36 = vpop.f32.mrb[238].mxu1  ;;  %v7989_v32 = vmul.f32 1.442695, %v10872_v22  ;;  %v18115_v46 = vadd.f32 %v17522_v18, %v18012_v4 }
 0xdbc   : >> { %v13110_v6 = vpop.eup %13109  ;;  %13129 = vrcp.f32 %v8165_v37  ;;  %v8166_v45 = vadd.f32 1.0, %v13108_v49  ;;  %9022 = vmatmul.mubr.bf16.gmra.mrb[24].mxu1 %v8643_v53  ;;  %v18095_v9 = vpop.f32.mrb[238].mxu0  ;;  %v18105_v53 = vadd.f32 %v17515_v2, %v18000_v55  ;;  %v18119_v55 = vadd.f32 %v17511_v62, %v18014_v12 }
 0xdbd   : >> { %v13112_v17 = vpop.eup %13111  ;;  %13131 = vrcp.f32 %v8164_v26  ;;  %v8167_v14 = vadd.f32 1.0, %v13110_v6  ;;  %v18101_v28 = vpop.f32.mrb[239].mxu1  ;;  %v10875_v49 = vmul.f32 -1.702, %v18099_v63  ;;  %v10876_v4 = vmul.f32 -1.702, %v18109_v1 }
 0xdbe   : >> { %v13114_v5 = vpop.eup %13113  ;;  %13133 = vrcp.f32 %v8166_v45  ;;  %v8169_v42 = vadd.f32 1.0, %v13112_v17  ;;  %v18111_v48 = vpop.f32.mrb[239].mxu0  ;;  %v10877_v6 = vmul.f32 -1.702, %v18105_v53  ;;  %v8542_v12 = vmul.f32 %v18039_v16, %v17864_v61 }
 0xdbf   : >> { %19908 = vst [vmem:[#allocation59_spill] sm:$0xff] %v18111_v48  ;;  %v13116_v52 = vpop.eup %13115  ;;  %13135 = vrcp.f32 %v8167_v14  ;;  %v8168_v31 = vadd.f32 1.0, %v13114_v5  ;;  %v18132_v14 = vadd.f32 %v17520_v8, %v18021_v40  ;;  %v18140_v61 = vadd.f32 %v17522_v18, %v18026_v13 }
 0xdc0   : >> { %v13118_v34 = vpop.eup %13117  ;;  %13137 = vrcp.f32 %v8169_v42  ;;  %v8170_v44 = vadd.f32 1.0, %v13116_v52  ;;  %v10878_v42 = vmul.f32 -1.702, %v18115_v46  ;;  %v10879_v52 = vmul.f32 -1.702, %v18119_v55 }
 0xdc1   : >> { %v13120_v7 = vpop.eup %13119  ;;  %13139 = vrcp.f32 %v8168_v31  ;;  %v8171_v37 = vadd.f32 1.0, %v13118_v34  ;;  %v7993_v40 = vmul.f32 1.442695, %v10874_v41 }
 0xdc2   : >> { %v13122_v26 = vpop.eup %13121  ;;  %13141 = vrcp.f32 %v8170_v44  ;;  %v8173_v22 = vadd.f32 1.0, %v13120_v7  ;;  %v10881_v44 = vmul.f32 -1.702, %v18124_v20  ;;  %v7995_v7 = vmul.f32 1.442695, %v10875_v49 }
 0xdc3   : >> { %v13124_v45 = vpop.eup %13123  ;;  %13143 = vrcp.f32 %v8171_v37  ;;  %v8172_v17 = vadd.f32 1.0, %v13122_v26  ;;  %v18144_v37 = vadd.f32 %v17511_v62, %v18035_v30  ;;  %v8001_v39 = vmul.f32 1.442695, %v10878_v42 }
 0xdc4   : >> { %v13126_v5 = vpop.eup %13125  ;;  %13145 = vrcp.f32 %v8173_v22  ;;  %v8174_v59 = vadd.f32 1.0, %v13124_v45  ;;  %v7999_v45 = vmul.f32 1.442695, %v10877_v6  ;;  %v8003_v13 = vmul.f32 1.442695, %v10879_v52 }
 0xdc5   : >> { %v13128_v31 = vpop.eup %13127  ;;  %v8546_v34 = vmul.f32 %v13126_v5, %v17904_v24  ;;  %13147 = vrcp.f32 %v8172_v17  ;;  %v10880_v24 = vmul.f32 -1.702, %v18132_v14  ;;  %v7997_v5 = vmul.f32 1.442695, %v10876_v4 }
 0xdc6   : >> { %v13130_v16 = vpop.eup %13129  ;;  %13149 = vrcp.f32 %v8174_v59  ;;  %v8007_v41 = vmul.f32 1.442695, %v10881_v44  ;;  %v10882_v49 = vmul.f32 -1.702, %v18140_v61  ;;  %v18150_v30 = vadd.f32 %v17515_v2, %v18037_v25 }
 0xdc7   : >> { %v13132_v26 = vpop.eup %13131  ;;  %v8646_v22 = vpack.c.bf16 %v8546_v34, %v8542_v12  ;;  %13151 = vpow2.f32 %v7987_v57  ;;  %v8547_v57 = vmul.f32 %v13128_v31, %v17933_v21  ;;  %v10883_v4 = vmul.f32 -1.702, %v18144_v37  ;;  %v19910_v34 = vld [vmem:[#allocation67_spill] sm:$0xff]  ;;  %v19911_v31 = vld [vmem:[#allocation66_spill] sm:$0xff] }
 0xdc8   : >> { %v13134_v17 = vpop.eup %13133  ;;  %13153 = vpow2.f32 %v7991_v56  ;;  %v19909_v56 = vpack.c.bf16 %v18067_v58, %v18064_v51  ;;  %v8549_v59 = vmul.f32 %v13130_v16, %v17937_v50  ;;  %v8005_v25 = vmul.f32 1.442695, %v10880_v24  ;;  %v19912_v51 = vld [vmem:[#allocation68_spill] sm:$0xff] }
 0xdc9   : >> { %v13136_v48 = vpop.eup %13135  ;;  %9182 = vmatprep.mubr.bf16.mxu0 %v8646_v22  ;;  %13155 = vpow2.f32 %v7989_v32  ;;  %v8548_v44 = vmul.f32 %v13132_v26, %v19910_v34  ;;  %v8550_v58 = vmul.f32 %v13134_v17, %v19912_v51  ;;  %v19913_v22 = vld [vmem:[#allocation65_spill] sm:$0xff]  ;;  %v8009_v16 = vmul.f32 1.442695, %v10882_v49 }
 0xdca   : >> { %v13138_v12 = vpop.eup %13137  ;;  %v8551_v6 = vmul.f32 %v13136_v48, %v17960_v35  ;;  %9183 = vmatmul.mubr.bf16.gmra.mrb[24].mxu0 %v19909_v56  ;;  %13157 = vpow2.f32 %v7993_v40  ;;  %v8011_v24 = vmul.f32 1.442695, %v10883_v4  ;;  %v18191_v4 = vadd.f32 %v17520_v8, %v18059_v47 }
 0xdcb   : >> { %v13140_v32 = vpop.eup %13139  ;;  %v8553_v42 = vmul.f32 %v13138_v12, %v17965_v11  ;;  %13159 = vpow2.f32 %v7995_v7  ;;  %v18200_v51 = vadd.f32 %v17522_v18, %v18061_v23 }
 0xdcc   : >> { %v13142_v52 = vpop.eup %13141  ;;  %v8647_v21 = vpack.c.bf16 %v8551_v6, %v8547_v57  ;;  %v8552_v35 = vmul.f32 %v13140_v32, %v19911_v31  ;;  %13161 = vpow2.f32 %v7999_v45  ;;  %v18174_v45 = vadd.f32 %v17520_v8, %v18041_v60 }
 0xdcd   : >> { %v18162_v48 = vpop.eup %13143  ;;  %v8649_v40 = vpack.c.bf16 %v8553_v42, %v8549_v59  ;;  %v8554_v56 = vmul.f32 %v13142_v52, %v19913_v22  ;;  %13163 = vpow2.f32 %v7997_v5  ;;  %v18179_v5 = vadd.f32 %v17522_v18, %v18043_v19 }
 0xdce   : >> { %v18166_v50 = vpop.eup %13145  ;;  %v8648_v11 = vpack.c.bf16 %v8552_v35, %v8548_v44  ;;  %13165 = vpow2.f32 %v8001_v39  ;;  %v10885_v39 = vmul.f32 -1.702, %v18150_v30  ;;  %v18187_v60 = vadd.f32 %v17515_v2, %v18051_v29 }
 0xdcf   : >> { %v18168_v7 = vpop.eup %13147  ;;  %v8650_v26 = vpack.c.bf16 %v8554_v56, %v8550_v58  ;;  %13167 = vpow2.f32 %v8003_v13  ;;  %v10884_v59 = vmul.f32 -1.702, %v18174_v45  ;;  %v10886_v52 = vmul.f32 -1.702, %v18179_v5 }
 0xdd0   : >> { %v18170_v12 = vpop.eup %13149  ;;  %9029 = vmatprep.mubr.bf16.mxu1 %v8648_v11  ;;  %13169 = vpow2.f32 %v8007_v41  ;;  %v18183_v41 = vadd.f32 %v17511_v62, %v18049_v15  ;;  %v10888_v35 = vmul.f32 -1.702, %v18191_v4  ;;  %v18204_v56 = vadd.f32 %v17511_v62, %v18083_v54 }
 0xdd1   : >> { %v13152_v17 = vpop.eup %13151  ;;  %9190 = vmatprep.mubr.bf16.mxu0 %v8650_v26  ;;  %9030 = vmatmul.mubr.bf16.gmra.mrb[28].mxu1 %v8647_v21  ;;  %13171 = vpow2.f32 %v8005_v25  ;;  %v8015_v25 = vmul.f32 1.442695, %v10885_v39  ;;  %v10889_v21 = vmul.f32 -1.702, %v18187_v60  ;;  %v8013_v22 = vmul.f32 1.442695, %v10884_v59 }
 0xdd2   : >> { %v13154_v13 = vpop.eup %13153  ;;  %v8175_v49 = vadd.f32 1.0, %v13152_v17  ;;  %9191 = vmatmul.mubr.bf16.gmra.mrb[28].mxu0 %v8649_v40  ;;  %13173 = vpow2.f32 %v8009_v16  ;;  %v10887_v44 = vmul.f32 -1.702, %v18183_v41  ;;  %v8017_v26 = vmul.f32 1.442695, %v10886_v52 }
 0xdd3   : >> { %v13156_v57 = vpop.eup %13155  ;;  %v8177_v6 = vadd.f32 1.0, %v13154_v13  ;;  %13175 = vpow2.f32 %v8011_v24  ;;  %v18208_v24 = vadd.f32 %v17515_v2, %v18085_v27  ;;  %v8023_v13 = vmul.f32 1.442695, %v10889_v21  ;;  %v19915_v21 = vld [vmem:[#allocation64_spill] sm:$0xff] }
 0xdd4   : >> { %v13158_v19 = vpop.eup %13157  ;;  %13177 = vrcp.f32 %v8175_v49  ;;  %v8176_v32 = vadd.f32 1.0, %v13156_v57  ;;  %v8019_v39 = vmul.f32 1.442695, %v10887_v44  ;;  %v10890_v54 = vmul.f32 -1.702, %v18200_v51 }
 0xdd5   : >> { %v13160_v42 = vpop.eup %13159  ;;  %13179 = vrcp.f32 %v8177_v6  ;;  %v8178_v15 = vadd.f32 1.0, %v13158_v19  ;;  %v8021_v6 = vmul.f32 1.442695, %v10888_v35  ;;  %v10891_v59 = vmul.f32 -1.702, %v18204_v56 }
 0xdd6   : >> { %v13162_v29 = vpop.eup %13161  ;;  %13181 = vrcp.f32 %v8176_v32  ;;  %v8179_v34 = vadd.f32 1.0, %v13160_v42  ;;  %v18214_v27 = vadd.f32 %v17520_v8, %v18088_v0  ;;  %v18223_v35 = vadd.f32 %v17522_v18, %v18090_v10 }
 0xdd7   : >> { %v13164_v47 = vpop.eup %13163  ;;  %13183 = vrcp.f32 %v8178_v15  ;;  %v8181_v31 = vadd.f32 1.0, %v13162_v29  ;;  %v19914_v15 = vld [vmem:[#allocation63_spill] sm:$0xff]  ;;  %v18236_v10 = vadd.f32 %v17515_v2, %v18095_v9 }
 0xdd8   : >> { %v13166_v58 = vpop.eup %13165  ;;  %13185 = vrcp.f32 %v8179_v34  ;;  %v8180_v40 = vadd.f32 1.0, %v13164_v47  ;;  %v8555_v52 = vmul.f32 %v18162_v48, %v19914_v15  ;;  %v10893_v34 = vmul.f32 -1.702, %v18208_v24 }
 0xdd9   : >> { %v13168_v11 = vpop.eup %13167  ;;  %13187 = vrcp.f32 %v8181_v31  ;;  %v8182_v16 = vadd.f32 1.0, %v13166_v58  ;;  %v8557_v47 = vmul.f32 %v18166_v50, %v19915_v21  ;;  %v19916_v58 = vld [vmem:[#allocation62_spill] sm:$0xff]  ;;  %v8025_v15 = vmul.f32 1.442695, %v10890_v54 }
 0xdda   : >> { %v13170_v17 = vpop.eup %13169  ;;  %13189 = vrcp.f32 %v8180_v40  ;;  %v8183_v23 = vadd.f32 1.0, %v13168_v11  ;;  %v8556_v40 = vmul.f32 %v18168_v7, %v19916_v58  ;;  %v18230_v11 = vadd.f32 %v17511_v62, %v18093_v36 }
 0xddb   : >> { %v13172_v49 = vpop.eup %13171  ;;  %13191 = vrcp.f32 %v8182_v16  ;;  %v8185_v57 = vadd.f32 1.0, %v13170_v17  ;;  %v10892_v17 = vmul.f32 -1.702, %v18214_v27  ;;  %v8031_v21 = vmul.f32 1.442695, %v10893_v34 }
 0xddc   : >> { %v13174_v19 = vpop.eup %13173  ;;  %13193 = vrcp.f32 %v8183_v23  ;;  %v8184_v32 = vadd.f32 1.0, %v13172_v49  ;;  %v19917_v49 = vld [vmem:[#allocation61_spill] sm:$0xff]  ;;  %v10895_v9 = vmul.f32 -1.702, %v18230_v11 }
 0xddd   : >> { %v13176_v42 = vpop.eup %13175  ;;  %13195 = vrcp.f32 %v8185_v57  ;;  %v8186_v29 = vadd.f32 1.0, %v13174_v19  ;;  %v8558_v7 = vmul.f32 %v18170_v12, %v19917_v49  ;;  %v8027_v12 = vmul.f32 1.442695, %v10891_v59 }
 0xdde   : >> { %v13178_v44 = vpop.eup %13177  ;;  %13197 = vrcp.f32 %v8184_v32  ;;  %v8187_v31 = vadd.f32 1.0, %v13176_v42 }
 0xddf   : >> { %v13180_v0 = vpop.eup %13179  ;;  %v8559_v48 = vmul.f32 %v13178_v44, %v18047_v43  ;;  %13199 = vrcp.f32 %v8186_v29 }
 0xde0   : >> { %v13182_v16 = vpop.eup %13181  ;;  %v8561_v50 = vmul.f32 %v13180_v0, %v18057_v33  ;;  %13201 = vrcp.f32 %v8187_v31  ;;  %v10894_v33 = vmul.f32 -1.702, %v18223_v35 }
 0xde1   : >> { %v13184_v23 = vpop.eup %13183  ;;  %v8651_v43 = vpack.c.bf16 %v8559_v48, %v8555_v52  ;;  %v8560_v57 = vmul.f32 %v13182_v16, %v18071_v38  ;;  %13203 = vpow2.f32 %v8015_v25  ;;  %v10897_v52 = vmul.f32 -1.702, %v18236_v10 }
 0xde2   : >> { %v13186_v36 = vpop.eup %13185  ;;  %v8653_v19 = vpack.c.bf16 %v8561_v50, %v8557_v47  ;;  %v8562_v32 = vmul.f32 %v13184_v23, %v18079_v3  ;;  %13205 = vpow2.f32 %v8013_v22  ;;  %v8029_v22 = vmul.f32 1.442695, %v10892_v17 }
 0xde3   : >> { %v13188_v42 = vpop.eup %13187  ;;  %13207 = vpow2.f32 %v8017_v26  ;;  %v8652_v29 = vpack.c.bf16 %v8560_v57, %v8556_v40  ;;  %v8033_v47 = vmul.f32 1.442695, %v10894_v33  ;;  %v8563_v54 = vmul.f32 %v13186_v36, %v18099_v63 }
 0xde4   : >> { %v13190_v44 = vpop.eup %13189  ;;  %13209 = vpow2.f32 %v8019_v39  ;;  %v8654_v38 = vpack.c.bf16 %v8562_v32, %v8558_v7  ;;  %v8035_v39 = vmul.f32 1.442695, %v10895_v9  ;;  %v8565_v0 = vmul.f32 %v13188_v42, %v18105_v53 }
 0xde5   : >> { %v13192_v25 = vpop.eup %13191  ;;  %13211 = vpow2.f32 %v8023_v13  ;;  %9037 = vmatprep.mubr.bf16.mxu1 %v8652_v29  ;;  %v8039_v34 = vmul.f32 1.442695, %v10897_v52  ;;  %v8564_v58 = vmul.f32 %v13190_v44, %v18109_v1 }
 0xde6   : >> { %v13194_v3 = vpop.eup %13193  ;;  %13213 = vpow2.f32 %v8021_v6  ;;  %9198 = vmatprep.mubr.bf16.mxu0 %v8654_v38  ;;  %9038 = vmatmul.mubr.bf16.gmra.mrb[32].mxu1 %v8651_v43 }
 0xde7   : >> { %v13196_v26 = vpop.eup %13195  ;;  %v8567_v31 = vmul.f32 %v13194_v3, %v18119_v55  ;;  %13215 = vpow2.f32 %v8025_v15  ;;  %9199 = vmatmul.mubr.bf16.gmra.mrb[32].mxu0 %v8653_v19  ;;  %v8566_v55 = vmul.f32 %v13192_v25, %v18115_v46 }
 0xde8   : >> { %v13198_v59 = vpop.eup %13197  ;;  %v8569_v13 = vmul.f32 %v13196_v26, %v18124_v20  ;;  %13217 = vpow2.f32 %v8027_v12  ;;  %v18257_v20 = vadd.f32 %v17520_v8, %v18101_v28 }
 0xde9   : >> { %v13200_v6 = vpop.eup %13199  ;;  %v8655_v40 = vpack.c.bf16 %v8567_v31, %v8563_v54  ;;  %v8568_v48 = vmul.f32 %v13198_v59, %v18132_v14  ;;  %13219 = vpow2.f32 %v8031_v21  ;;  %v19918_v14 = vld [vmem:[#allocation59_spill] sm:$0xff] }
 0xdea   : >> { %v18251_v63 = vpop.eup %13201  ;;  %v8657_v16 = vpack.c.bf16 %v8569_v13, %v8565_v0  ;;  %v8570_v50 = vmul.f32 %v13200_v6, %v18140_v61  ;;  %13221 = vpow2.f32 %v8029_v22  ;;  %v18261_v49 = vadd.f32 %v17522_v18, %v19918_v14 }
 0xdeb   : >> { %v13204_v53 = vpop.eup %13203  ;;  %13223 = vpow2.f32 %v8033_v47  ;;  %v8656_v17 = vpack.c.bf16 %v8568_v48, %v8564_v58  ;;  %v10896_v19 = vmul.f32 -1.702, %v18257_v20 }
 0xdec   : >> { %v13206_v1 = vpop.eup %13205  ;;  %v8189_v23 = vadd.f32 1.0, %v13204_v53  ;;  %13225 = vpow2.f32 %v8035_v39  ;;  %v8658_v7 = vpack.c.bf16 %v8570_v50, %v8566_v55  ;;  %v10898_v42 = vmul.f32 -1.702, %v18261_v49  ;;  %v7209_v15 = vpop.f32.mrb[240].mxu1 }
 0xded   : >> { %v13208_v46 = vpop.eup %13207  ;;  %v8188_v43 = vadd.f32 1.0, %v13206_v1  ;;  %13227 = vpow2.f32 %v8039_v34  ;;  %9045 = vmatprep.mubr.bf16.mxu1 %v8656_v17  ;;  %v7402_v9 = vpop.f32.mrb[240].mxu0  ;;  %v18266_v12 = vadd.f32 %v17511_v62, %v7209_v15  ;;  %v8037_v34 = vmul.f32 1.442695, %v10896_v19 }
 0xdee   : >> { %v13210_v61 = vpop.eup %13209  ;;  %13229 = vrcp.f32 %v8189_v23  ;;  %v8190_v57 = vadd.f32 1.0, %v13208_v46  ;;  %9206 = vmatprep.mubr.bf16.mxu0 %v8658_v7  ;;  %9046 = vmatmul.mubr.bf16.gmra.mrb[36].mxu1 %v8655_v40  ;;  %v18269_v52 = vadd.f32 %v17515_v2, %v7402_v9  ;;  %v7211_v38 = vpop.f32.mrb[241].mxu1  ;;  %v8041_v6 = vmul.f32 1.442695, %v10898_v42 }
 0xdef   : >> { %v13212_v28 = vpop.eup %13211  ;;  %13231 = vrcp.f32 %v8188_v43  ;;  %v8191_v36 = vadd.f32 1.0, %v13210_v61  ;;  %9207 = vmatmul.mubr.bf16.gmra.mrb[36].mxu0 %v8657_v16  ;;  %v7404_v25 = vpop.f32.mrb[241].mxu0  ;;  %v18272_v22 = vadd.f32 %v17520_v8, %v7211_v38  ;;  %v10899_v55 = vmul.f32 -1.702, %v18266_v12 }
 0xdf0   : >> { %v13214_v32 = vpop.eup %13213  ;;  %13233 = vrcp.f32 %v8190_v57  ;;  %v8193_v33 = vadd.f32 1.0, %v13212_v28  ;;  %v18275_v47 = vadd.f32 %v17522_v18, %v7404_v25  ;;  %v7213_v26 = vpop.f32.mrb[242].mxu1  ;;  %v10901_v16 = vmul.f32 -1.702, %v18269_v52 }
 0xdf1   : >> { %v13216_v29 = vpop.eup %13215  ;;  %13235 = vrcp.f32 %v8191_v36  ;;  %v8192_v44 = vadd.f32 1.0, %v13214_v32  ;;  %v7406_v54 = vpop.f32.mrb[242].mxu0  ;;  %v10900_v17 = vmul.f32 -1.702, %v18272_v22  ;;  %v18282_v7 = vadd.f32 %v17511_v62, %v7213_v26 }
 0xdf2   : >> { %v13218_v21 = vpop.eup %13217  ;;  %13237 = vrcp.f32 %v8193_v33  ;;  %v8194_v3 = vadd.f32 1.0, %v13216_v29  ;;  %v7215_v59 = vpop.f32.mrb[243].mxu1  ;;  %v10902_v1 = vmul.f32 -1.702, %v18275_v47  ;;  %v18285_v46 = vadd.f32 %v17515_v2, %v7406_v54 }
 0xdf3   : >> { %v13220_v31 = vpop.eup %13219  ;;  %13239 = vrcp.f32 %v8192_v44  ;;  %v8195_v39 = vadd.f32 1.0, %v13218_v21  ;;  %v7408_v58 = vpop.f32.mrb[243].mxu0  ;;  %v18288_v57 = vadd.f32 %v17520_v8, %v7215_v59  ;;  %v8571_v19 = vmul.f32 %v18251_v63, %v18144_v37 }
 0xdf4   : >> { %v13222_v0 = vpop.eup %13221  ;;  %13241 = vrcp.f32 %v8194_v3  ;;  %v8197_v13 = vadd.f32 1.0, %v13220_v31  ;;  %v18291_v28 = vadd.f32 %v17522_v18, %v7408_v58  ;;  %v8043_v32 = vmul.f32 1.442695, %v10899_v55 }
 0xdf5   : >> { %v13224_v40 = vpop.eup %13223  ;;  %13243 = vrcp.f32 %v8195_v39  ;;  %v8196_v48 = vadd.f32 1.0, %v13222_v0  ;;  %v10903_v33 = vmul.f32 -1.702, %v18282_v7  ;;  %v8047_v15 = vmul.f32 1.442695, %v10901_v16 }
 0xdf6   : >> { %v13226_v50 = vpop.eup %13225  ;;  %13245 = vrcp.f32 %v8197_v13  ;;  %v8198_v53 = vadd.f32 1.0, %v13224_v40  ;;  %v8045_v9 = vmul.f32 1.442695, %v10900_v17  ;;  %v10905_v29 = vmul.f32 -1.702, %v18285_v46 }
 0xdf7   : >> { %v13228_v23 = vpop.eup %13227  ;;  %13247 = vrcp.f32 %v8196_v48  ;;  %v8199_v14 = vadd.f32 1.0, %v13226_v50  ;;  %v8049_v25 = vmul.f32 1.442695, %v10902_v1  ;;  %v10904_v21 = vmul.f32 -1.702, %v18288_v57 }
 0xdf8   : >> { %v13230_v43 = vpop.eup %13229  ;;  %13249 = vrcp.f32 %v8198_v53  ;;  %v8201_v61 = vadd.f32 1.0, %v13228_v23  ;;  %v10906_v26 = vmul.f32 -1.702, %v18291_v28  ;;  %v8051_v59 = vmul.f32 1.442695, %v10903_v33 }
 0xdf9   : >> { %v13232_v36 = vpop.eup %13231  ;;  %13251 = vrcp.f32 %v8199_v14  ;;  %v8573_v38 = vmul.f32 %v13230_v43, %v18150_v30 }
 0xdfa   : >> { %v13234_v42 = vpop.eup %13233  ;;  %13253 = vrcp.f32 %v8201_v61  ;;  %v8572_v37 = vmul.f32 %v13232_v36, %v18174_v45 }
 0xdfb   : >> { %v13236_v44 = vpop.eup %13235  ;;  %13255 = vpow2.f32 %v8037_v34  ;;  %v8574_v31 = vmul.f32 %v13234_v42, %v18179_v5  ;;  %v8055_v34 = vmul.f32 1.442695, %v10905_v29  ;;  %v8057_v5 = vmul.f32 1.442695, %v10906_v26 }
 0xdfc   : >> { %v13238_v3 = vpop.eup %13237  ;;  %v8575_v63 = vmul.f32 %v13236_v44, %v18183_v41  ;;  %13257 = vpow2.f32 %v8041_v6  ;;  %v8053_v6 = vmul.f32 1.442695, %v10904_v21 }
 0xdfd   : >> { %v13240_v54 = vpop.eup %13239  ;;  %v8577_v39 = vmul.f32 %v13238_v3, %v18187_v60  ;;  %13259 = vpow2.f32 %v8043_v32  ;;  %v7219_v50 = vpop.f32.mrb[244].mxu1 }
 0xdfe   : >> { %v13242_v30 = vpop.eup %13241  ;;  %v8659_v0 = vpack.c.bf16 %v8575_v63, %v8571_v19  ;;  %v8576_v13 = vmul.f32 %v13240_v54, %v18191_v4  ;;  %13261 = vpow2.f32 %v8047_v15  ;;  %v7412_v4 = vpop.f32.mrb[244].mxu0 }
 0xdff   : >> { %v13244_v58 = vpop.eup %13243  ;;  %v8661_v45 = vpack.c.bf16 %v8577_v39, %v8573_v38  ;;  %v8578_v41 = vmul.f32 %v13242_v30, %v18200_v51  ;;  %13263 = vpow2.f32 %v8045_v9  ;;  %v18307_v51 = vadd.f32 %v17511_v62, %v7219_v50  ;;  %v7221_v1 = vpop.f32.mrb[245].mxu1 }
 0xe00   : >> { %v13246_v40 = vpop.eup %13245  ;;  %v8660_v48 = vpack.c.bf16 %v8576_v13, %v8572_v37  ;;  %13265 = vpow2.f32 %v8049_v25  ;;  %v18310_v17 = vadd.f32 %v17515_v2, %v7412_v4  ;;  %v7414_v23 = vpop.f32.mrb[245].mxu0  ;;  %v18313_v43 = vmul.f32 %v13244_v58, %v18204_v56 }
 0xe01   : >> { %v13248_v55 = vpop.eup %13247  ;;  %v8662_v60 = vpack.c.bf16 %v8578_v41, %v8574_v31  ;;  %13267 = vpow2.f32 %v8051_v59  ;;  %v18319_v36 = vadd.f32 %v17520_v8, %v7221_v1  ;;  %v7223_v19 = vpop.f32.mrb[246].mxu1  ;;  %v18322_v42 = vmul.f32 %v13246_v40, %v18208_v24 }
 0xe02   : >> { %v13250_v16 = vpop.eup %13249  ;;  %9053 = vmatprep.mubr.bf16.mxu1 %v8660_v48  ;;  %13269 = vpow2.f32 %v8055_v34  ;;  %v7416_v32 = vpop.f32.mrb[246].mxu0  ;;  %v18330_v38 = vadd.f32 %v17522_v18, %v7414_v23  ;;  %v10907_v24 = vmul.f32 -1.702, %v18307_v51  ;;  %v18337_v63 = vmul.f32 %v13248_v55, %v18214_v27 }
 0xe03   : >> { %v13252_v53 = vpop.eup %13251  ;;  %9214 = vmatprep.mubr.bf16.mxu0 %v8662_v60  ;;  %9054 = vmatmul.mubr.bf16.gmra.mrb[40].mxu1 %v8659_v0  ;;  %13271 = vpow2.f32 %v8053_v6  ;;  %v7225_v9 = vpop.f32.mrb[247].mxu1  ;;  %v10908_v54 = vmul.f32 -1.702, %v18319_v36  ;;  %v18341_v39 = vmul.f32 %v13250_v16, %v18223_v35  ;;  %v18344_v30 = vadd.f32 %v17511_v62, %v7223_v19 }
 0xe04   : >> { %v13254_v14 = vpop.eup %13253  ;;  %v18316_v61 = vmul.f32 %v13252_v53, %v18230_v11  ;;  %9215 = vmatmul.mubr.bf16.gmra.mrb[40].mxu0 %v8661_v45  ;;  %13273 = vpow2.f32 %v8057_v5  ;;  %v7418_v56 = vpop.f32.mrb[247].mxu0  ;;  %v10910_v34 = vmul.f32 -1.702, %v18330_v38  ;;  %v18348_v27 = vadd.f32 %v17515_v2, %v7416_v32 }
 0xe05   : >> { %v13256_v33 = vpop.eup %13255  ;;  %v18325_v15 = vmul.f32 %v13254_v14, %v18236_v10  ;;  %v10909_v10 = vmul.f32 -1.702, %v18310_v17  ;;  %v7229_v58 = vpop.f32.mrb[248].mxu1  ;;  %v8059_v35 = vmul.f32 1.442695, %v10907_v24  ;;  %v18351_v16 = vadd.f32 %v17520_v8, %v7225_v9 }
 0xe06   : >> { %v13258_v29 = vpop.eup %13257  ;;  %v8663_v11 = vpack.c.bf16 %v18316_v61, %v18313_v43  ;;  %v8200_v44 = vadd.f32 1.0, %v13256_v33  ;;  %v7422_v45 = vpop.f32.mrb[248].mxu0  ;;  %v8061_v60 = vmul.f32 1.442695, %v10908_v54  ;;  %v10911_v1 = vmul.f32 -1.702, %v18344_v30 }
 0xe07   : >> { %v13260_v25 = vpop.eup %13259  ;;  %v8665_v21 = vpack.c.bf16 %v18325_v15, %v18322_v42  ;;  %v8202_v3 = vadd.f32 1.0, %v13258_v29  ;;  %v8063_v40 = vmul.f32 1.442695, %v10909_v10  ;;  %v7231_v48 = vpop.f32.mrb[249].mxu1  ;;  %v18355_v23 = vadd.f32 %v17522_v18, %v7418_v56 }
 0xe08   : >> { %v13262_v37 = vpop.eup %13261  ;;  %13275 = vrcp.f32 %v8200_v44  ;;  %v8203_v26 = vadd.f32 1.0, %v13260_v25  ;;  %v7424_v50 = vpop.f32.mrb[249].mxu0  ;;  %v10913_v29 = vmul.f32 -1.702, %v18348_v27  ;;  %v18359_v44 = vadd.f32 %v17511_v62, %v7229_v58 }
 0xe09   : >> { %v13264_v31 = vpop.eup %13263  ;;  %13277 = vrcp.f32 %v8202_v3  ;;  %v8205_v59 = vadd.f32 1.0, %v13262_v37  ;;  %v7233_v14 = vpop.f32.mrb[250].mxu1  ;;  %v8065_v3 = vmul.f32 1.442695, %v10910_v34  ;;  %v18362_v24 = vadd.f32 %v17515_v2, %v7422_v45 }
 0xe0a   : >> { %v13266_v0 = vpop.eup %13265  ;;  %13279 = vrcp.f32 %v8203_v26  ;;  %v8204_v13 = vadd.f32 1.0, %v13264_v31  ;;  %v7426_v19 = vpop.f32.mrb[250].mxu0  ;;  %v10912_v56 = vmul.f32 -1.702, %v18351_v16  ;;  %v18366_v37 = vadd.f32 %v17520_v8, %v7231_v48 }
 0xe0b   : >> { %v13268_v41 = vpop.eup %13267  ;;  %13281 = vrcp.f32 %v8205_v59  ;;  %v8206_v6 = vadd.f32 1.0, %v13266_v0  ;;  %v7235_v9 = vpop.f32.mrb[251].mxu1  ;;  %v18369_v26 = vadd.f32 %v17522_v18, %v7424_v50  ;;  %v8067_v54 = vmul.f32 1.442695, %v10911_v1 }
 0xe0c   : >> { %v13270_v5 = vpop.eup %13269  ;;  %13283 = vrcp.f32 %v8204_v13  ;;  %v8207_v55 = vadd.f32 1.0, %v13268_v41  ;;  %v7428_v10 = vpop.f32.mrb[251].mxu0  ;;  %v10914_v31 = vmul.f32 -1.702, %v18355_v23  ;;  %v18373_v59 = vadd.f32 %v17511_v62, %v7233_v14 }
 0xe0d   : >> { %v13272_v4 = vpop.eup %13271  ;;  %13285 = vrcp.f32 %v8206_v6  ;;  %v8209_v53 = vadd.f32 1.0, %v13270_v5  ;;  %v8071_v13 = vmul.f32 1.442695, %v10913_v29  ;;  %v10915_v34 = vmul.f32 -1.702, %v18359_v44  ;;  %v7239_v5 = vpop.f32.mrb[252].mxu1 }
 0xe0e   : >> { %v13274_v32 = vpop.eup %13273  ;;  %13287 = vrcp.f32 %v8207_v55  ;;  %v8208_v33 = vadd.f32 1.0, %v13272_v4  ;;  %v10917_v58 = vmul.f32 -1.702, %v18362_v24  ;;  %v10916_v6 = vmul.f32 -1.702, %v18366_v37  ;;  %v7432_v55 = vpop.f32.mrb[252].mxu0 }
 0xe0f   : >> { %13289 = vrcp.f32 %v8209_v53  ;;  %v8210_v25 = vadd.f32 1.0, %v13274_v32  ;;  %v18380_v48 = vadd.f32 %v17515_v2, %v7426_v19  ;;  %v10918_v53 = vmul.f32 -1.702, %v18369_v26  ;;  %v18384_v1 = vpop.f32.mrb[253].mxu1  ;;  %v18386_v14 = vpop.f32.mrb[253].mxu0 }
 0xe10   : >> { %13291 = vrcp.f32 %v8208_v33  ;;  %v8073_v32 = vmul.f32 1.442695, %v10914_v31  ;;  %v10919_v19 = vmul.f32 -1.702, %v18373_v59  ;;  %v18390_v33 = vpop.f32.mrb[254].mxu1  ;;  %v18392_v29 = vpop.f32.mrb[254].mxu0  ;;  %v18416_v43 = vadd.f32 %v17522_v18, %v7428_v10 }
 0xe11   : >> { %13293 = vrcp.f32 %v8210_v25  ;;  %v8075_v25 = vmul.f32 1.442695, %v10915_v34  ;;  %v10921_v31 = vmul.f32 -1.702, %v18380_v48  ;;  %v18407_v34 = vadd.f32 %v17520_v8, %v7235_v9 }
 0xe12   : >> { %v13276_v0 = vpop.eup %13275  ;;  %13295 = vpow2.f32 %v8059_v35  ;;  %v8069_v35 = vmul.f32 1.442695, %v10912_v56  ;;  %v18395_v56 = vpop.f32.mrb[255].mxu1  ;;  %v18425_v9 = vadd.f32 %v17511_v62, %v7239_v5  ;;  %v18432_v10 = vadd.f32 %v17515_v2, %v7432_v55 }
 0xe13   : >> { %v13278_v45 = vpop.eup %13277  ;;  %v8584_v41 = vmul.f32 %v13276_v0, %v18257_v20  ;;  %13297 = vpow2.f32 %v8063_v40  ;;  %v18397_v0 = vpop.f32.mrb[255].mxu0  ;;  %v18438_v5 = vmul.f32 1.442695, %v10921_v31 }
 0xe14   : >> { %v13280_v50 = vpop.eup %13279  ;;  %v8586_v4 = vmul.f32 %v13278_v45, %v18261_v49  ;;  %13299 = vpow2.f32 %v8061_v60  ;;  %19919 = vst [vmem:[#allocation60_spill] sm:$0xff] %v18425_v9  ;;  %v10923_v31 = vmul.f32 -1.702, %v18425_v9 }
 0xe15   : >> { %v13282_v20 = vpop.eup %13281  ;;  %v8664_v40 = vpack.c.bf16 %v8584_v41, %v18337_v63  ;;  %13301 = vpow2.f32 %v8065_v3  ;;  %v8079_v63 = vmul.f32 1.442695, %v10917_v58  ;;  %v8077_v3 = vmul.f32 1.442695, %v10916_v6  ;;  %v11180_v42 = vpop.f32.mrb[0].mxu1 }
 0xe16   : >> { %v13284_v49 = vpop.eup %13283  ;;  %v8666_v60 = vpack.c.bf16 %v8586_v4, %v18341_v39  ;;  %13303 = vpow2.f32 %v8067_v54  ;;  %v18404_v39 = vmul.f32 %v13280_v50, %v18266_v12  ;;  %v8081_v54 = vmul.f32 1.442695, %v10918_v53  ;;  %v18427_v15 = vpop.f32.mrb[0].mxu0 }
 0xe17   : >> { %v13286_v45 = vpop.eup %13285  ;;  %9061 = vmatprep.mubr.bf16.mxu1 %v8664_v40  ;;  %13305 = vpow2.f32 %v8071_v13  ;;  %v8083_v58 = vmul.f32 1.442695, %v10919_v19  ;;  %v18419_v61 = vmul.f32 %v13282_v20, %v18269_v52  ;;  %v11181_v52 = vpop.f32.mrb[1].mxu1  ;;  %v8588_v55 = vmul.f32 %v13284_v49, %v18272_v22 }
 0xe18   : >> { %v13288_v41 = vpop.eup %13287  ;;  %9222 = vmatprep.mubr.bf16.mxu0 %v8666_v60  ;;  %9062 = vmatmul.mubr.bf16.gmra.mrb[44].mxu1 %v8663_v11  ;;  %13307 = vpow2.f32 %v8069_v35  ;;  %v18434_v6 = vpop.f32.mrb[1].mxu0  ;;  %v10920_v35 = vmul.f32 -1.702, %v18407_v34  ;;  %v10922_v19 = vmul.f32 -1.702, %v18416_v43 }
 0xe19   : >> { %v13290_v4 = vpop.eup %13289  ;;  %9223 = vmatmul.mubr.bf16.gmra.mrb[44].mxu0 %v8665_v21  ;;  %v18413_v13 = vmul.f32 %v13288_v41, %v18282_v7  ;;  %13309 = vpow2.f32 %v8073_v32  ;;  %v18441_v53 = vpop.f32.mrb[2].mxu1  ;;  %v10925_v49 = vmul.f32 -1.702, %v18432_v10 }
 0xe1a   : >> { %v13292_v12 = vpop.eup %13291  ;;  %v18422_v11 = vmul.f32 %v13290_v4, %v18285_v46  ;;  %13311 = vpow2.f32 %v8075_v25  ;;  %v18443_v20 = vpop.f32.mrb[2].mxu0  ;;  %v18455_v21 = vmul.f32 1.442695, %v10920_v35  ;;  %v18462_v9 = vmul.f32 1.442695, %v10922_v19 }
 0xe1b   : >> { %v13294_v7 = vpop.eup %13293  ;;  %13313 = vpow2.f32 %v8079_v63  ;;  %v18447_v60 = vpop.f32.mrb[3].mxu1  ;;  %v8590_v63 = vmul.f32 %v13286_v45, %v18275_v47  ;;  %v8592_v50 = vmul.f32 %v13292_v12, %v18288_v57  ;;  %v18459_v47 = vadd.f32 %v17520_v8, %v18384_v1 }
 0xe1c   : >> { %v13296_v46 = vpop.eup %13295  ;;  %13315 = vpow2.f32 %v8077_v3  ;;  %v18451_v41 = vpop.f32.mrb[3].mxu0  ;;  %v18470_v35 = vadd.f32 %v17511_v62, %v18390_v33 }
 0xe1d   : >> { %v13298_v40 = vpop.eup %13297  ;;  %v8211_v32 = vadd.f32 1.0, %v13296_v46  ;;  %13317 = vpow2.f32 %v8081_v54 }
 0xe1e   : >> { %v13300_v25 = vpop.eup %13299  ;;  %v8213_v3 = vadd.f32 1.0, %v13298_v40  ;;  %13319 = vpow2.f32 %v8083_v58  ;;  %v8594_v58 = vmul.f32 %v13294_v7, %v18291_v28  ;;  %v18476_v28 = vadd.f32 %v17515_v2, %v18392_v29 }
 0xe1f   : >> { %v13302_v4 = vpop.eup %13301  ;;  %13321 = vrcp.f32 %v8211_v32  ;;  %v8212_v22 = vadd.f32 1.0, %v13300_v25  ;;  %v18466_v32 = vadd.f32 %v17522_v18, %v18386_v14  ;;  %v18481_v14 = vadd.f32 %v17520_v8, %v18395_v56 }
 0xe20   : >> { %v13304_v54 = vpop.eup %13303  ;;  %13323 = vrcp.f32 %v8213_v3  ;;  %v8214_v46 = vadd.f32 1.0, %v13302_v4  ;;  %v18472_v3 = vmul.f32 1.442695, %v10923_v31  ;;  %v10924_v4 = vmul.f32 -1.702, %v18459_v47 }
 0xe21   : >> { %v13306_v45 = vpop.eup %13305  ;;  %13325 = vrcp.f32 %v8212_v22  ;;  %v8215_v40 = vadd.f32 1.0, %v13304_v54  ;;  %v11182_v22 = vadd.f32 %v11181_v52, %v11180_v42  ;;  %v8668_v54 = vpack.c.bf16 %v8592_v50, %v8588_v55 }
 0xe22   : >> { %v13308_v57 = vpop.eup %13307  ;;  %13327 = vrcp.f32 %v8214_v46  ;;  %v8217_v12 = vadd.f32 1.0, %v13306_v45  ;;  %v10926_v2 = vmul.f32 -1.702, %v18466_v32  ;;  %v10927_v29 = vmul.f32 -1.702, %v18470_v35 }
 0xe23   : >> { %v13310_v1 = vpop.eup %13309  ;;  %13329 = vrcp.f32 %v8215_v40  ;;  %v8216_v25 = vadd.f32 1.0, %v13308_v57  ;;  %v10929_v40 = vmul.f32 -1.702, %v18476_v28  ;;  %v18492_v8 = vadd.f32 %v17522_v18, %v18397_v0  ;;  %9069 = vmatprep.mubr.bf16.mxu1 %v8668_v54 }
 0xe24   : >> { %v13312_v7 = vpop.eup %13311  ;;  %13331 = vrcp.f32 %v8217_v12  ;;  %v8218_v19 = vadd.f32 1.0, %v13310_v1  ;;  %v11294_v56 = vadd.f32 %v18434_v6, %v18427_v15  ;;  %v8670_v42 = vpack.c.bf16 %v8594_v58, %v8590_v63 }
 0xe25   : >> { %v13314_v62 = vpop.eup %13313  ;;  %13333 = vrcp.f32 %v8216_v25  ;;  %v8219_v33 = vadd.f32 1.0, %v13312_v7  ;;  %v8095_v50 = vmul.f32 1.442695, %v10925_v49  ;;  %v8093_v55 = vmul.f32 1.442695, %v10924_v4 }
 0xe26   : >> { %v18483_v31 = vpop.eup %13315  ;;  %13335 = vrcp.f32 %v8218_v19  ;;  %v8221_v46 = vadd.f32 1.0, %v13314_v62  ;;  %v10928_v57 = vmul.f32 -1.702, %v18481_v14  ;;  %v19920_v12 = vpack.c.bf16 %v18413_v13, %v18404_v39  ;;  %9230 = vmatprep.mubr.bf16.mxu0 %v8670_v42  ;;  %v18503_v49 = vld [vmem:[%s9295_s7] ss:$0 sm:$0xff]  ;;  %v11186_v54 = vpop.f32.mrb[4].mxu1 }
 0xe27   : >> { %v18487_v45 = vpop.eup %13317  ;;  %13337 = vrcp.f32 %v8219_v33  ;;  %v9137_v18 = vadd.f32 %v11294_v56, %v11182_v22  ;;  %v11185_v0 = vadd.f32 %v18447_v60, %v18441_v53  ;;  %v8097_v6 = vmul.f32 1.442695, %v10926_v2  ;;  %v19922_v53 = vld [vmem:[#allocation111_spill] sm:$0xff]  ;;  %v11187_v2 = vpop.f32.mrb[5].mxu1 }
 0xe28   : >> { %v13320_v52 = vpop.eup %13319  ;;  %9070 = vmatmul.mubr.bf16.gmra.mrb[48].mxu1 %v19920_v12  ;;  %13339 = vrcp.f32 %v8221_v46  ;;  %v8099_v63 = vmul.f32 1.442695, %v10927_v29  ;;  %v19921_v58 = vpack.c.bf16 %v18422_v11, %v18419_v61  ;;  %v11297_v39 = vadd.f32 %v18451_v41, %v18443_v20  ;;  %v11298_v46 = vpop.f32.mrb[4].mxu0 }
 0xe29   : >> { %v13322_v1 = vpop.eup %13321  ;;  %v8223_v25 = vadd.f32 1.0, %v13320_v52  ;;  %v8103_v7 = vmul.f32 1.442695, %v10929_v40  ;;  %v10930_v19 = vmul.f32 -1.702, %v18492_v8  ;;  %v9263_v60 = vadd.f32 %v9137_v18, %v19922_v53  ;;  %v11299_v52 = vpop.f32.mrb[5].mxu0 }
 0xe2a   : >> { %v13324_v15 = vpop.eup %13323  ;;  %9231 = vmatmul.mubr.bf16.gmra.mrb[48].mxu0 %v19921_v58  ;;  %v8595_v62 = vmul.f32 %v13322_v1, %v18307_v51  ;;  %v8101_v33 = vmul.f32 1.442695, %v10928_v57  ;;  %v9140_v22 = vadd.f32 %v11297_v39, %v11185_v0  ;;  %v11188_v42 = vadd.f32 %v11187_v2, %v11186_v54  ;;  %v11189_v57 = vpop.f32.mrb[6].mxu1 }
 0xe2b   : >> { %v13326_v13 = vpop.eup %13325  ;;  %13341 = vrcp.f32 %v8223_v25  ;;  %v8597_v11 = vmul.f32 %v13324_v15, %v18310_v17  ;;  %v18518_v29 = vadd.f32 %v18503_v49, %v9263_v60   ;;  %v11301_v12 = vpop.f32.mrb[6].mxu0  ;;  %v8220_v60 = vadd.f32 1.0, %v18483_v31 }
 0xe2c   : >> { %v13328_v4 = vpop.eup %13327  ;;  %13343 = vpow2.f32 %v18438_v5  ;;  %v8596_v20 = vmul.f32 %v13326_v13, %v18319_v36  ;;  %v19924_v5 = vld [vmem:[#allocation110_spill] sm:$0xff]  ;;  %v11190_v1 = vpop.f32.mrb[7].mxu1 }
 0xe2d   : >> { %v13330_v61 = vpop.eup %13329  ;;  %13345 = vpow2.f32 %v18455_v21  ;;  %19923 = vst [vmem:[#allocation113_spill] sm:$0xff] %v18518_v29  ;;  %v9264_v56 = vadd.f32 %v9140_v22, %v19924_v5  ;;  %v8598_v36 = vmul.f32 %v13328_v4, %v18330_v38  ;;  %v11300_v29 = vadd.f32 %v11299_v52, %v11298_v46  ;;  %v11302_v0 = vpop.f32.mrb[7].mxu0  ;;  %v19926_v4 = vld [vmem:[#allocation112_spill] sm:$0xff] }
 0xe2e   : >> { %v13332_v40 = vpop.eup %13331  ;;  %v8599_v51 = vmul.f32 %v13330_v61, %v18344_v30  ;;  %13347 = vpow2.f32 %v18462_v9  ;;  %v11191_v13 = vadd.f32 %v11190_v1, %v11189_v57  ;;  %v8222_v22 = vadd.f32 1.0, %v18487_v45 }
 0xe2f   : >> { %v13334_v17 = vpop.eup %13333  ;;  %v8601_v21 = vmul.f32 %v13332_v40, %v18348_v27  ;;  %13349 = vpow2.f32 %v18472_v3  ;;  %v18528_v9 = vadd.f32 %v18503_v49, %v9264_v56   ;;  %v9145_v38 = vadd.f32 %v11300_v29, %v11188_v42 }
 0xe30   : >> { %v13336_v25 = vpop.eup %13335  ;;  %v8671_v18 = vpack.c.bf16 %v8599_v51, %v8595_v62  ;;  %v8600_v30 = vmul.f32 %v13334_v17, %v18351_v16  ;;  %13351 = vpow2.f32 %v8095_v50  ;;  %v8105_v27 = vmul.f32 1.442695, %v10930_v19 }
 0xe31   : >> { %v19925_v15 = vmov %v18528_v9  ;;  %v8673_v58 = vpack.c.bf16 %v8601_v21, %v8597_v11  ;;  %v8602_v39 = vmul.f32 %v13336_v25, %v18355_v23  ;;  %13353 = vpow2.f32 %v8093_v55  ;;  %v13338_v53 = vpop.eup %13337 }
 0xe32   : >> { %13355 = vpow2.f32 %v8097_v6  ;;  %v8672_v3 = vpack.c.bf16 %v8600_v30, %v8596_v20  ;;  %v9265_v16 = vadd.f32 %v9145_v38, %v19926_v4  ;;  %v13340_v62 = vpop.eup %13339  ;;  %v11303_v54 = vadd.f32 %v11302_v0, %v11301_v12  ;;  %v19928_v20 = vld [vmem:[#allocation78_spill] sm:$0xff] }
 0xe33   : >> { %13357 = vpow2.f32 %v8099_v63  ;;  %v8674_v50 = vpack.c.bf16 %v8602_v39, %v8598_v36  ;;  %v18538_v31 = vmul.f32 %v13338_v53, %v18359_v44  ;;  %v8605_v38 = vmul.f32 %v13340_v62, %v18362_v24  ;;  %v19930_v62 = vld [vmem:[#allocation60_spill] sm:$0xff] }
 0xe34   : >> { %13359 = vpow2.f32 %v8103_v7  ;;  %9077 = vmatprep.mubr.bf16.mxu1 %v8672_v3  ;;  %v18535_v30 = vadd.f32 %v18503_v49, %v9265_v16   ;;  %v9148_v19 = vadd.f32 %v11303_v54, %v11191_v13 }
 0xe35   : >> { %v13342_v23 = vpop.eup %13341  ;;  %13361 = vpow2.f32 %v8101_v33  ;;  %9238 = vmatprep.mubr.bf16.mxu0 %v8674_v50  ;;  %9078 = vmatmul.mubr.bf16.gmra.mrb[52].mxu1 %v8671_v18 }
 0xe36   : >> { %v19927_v55 = vmov %v18535_v30  ;;  %v13344_v6 = vpop.eup %13343  ;;  %v8607_v63 = vmul.f32 %v13342_v23, %v18373_v59  ;;  %13363 = vpow2.f32 %v8105_v27  ;;  %9239 = vmatmul.mubr.bf16.gmra.mrb[52].mxu0 %v8673_v58  ;;  %v9266_v46 = vadd.f32 %v9148_v19, %v19928_v20 }
 0xe37   : >> { %v13346_v45 = vpop.eup %13345  ;;  %13365 = vrcp.f32 %v8220_v60  ;;  %v8225_v7 = vadd.f32 1.0, %v13344_v6  ;;  %9339 = vadd.xlane.f32.xlu1 (%p18675_p5), %v19927_v55 }
 0xe38   : >> { %v13348_v61 = vpop.eup %13347  ;;  %13367 = vrcp.f32 %v8222_v22  ;;  %v8675_v33 = vpack.c.bf16 %v8607_v63, %v18538_v31  ;;  %v8224_v11 = vadd.f32 1.0, %v13346_v45  ;;  %v18544_v59 = vadd.f32 %v18503_v49, %v9266_v46  }
 0xe39   : >> { %v13350_v2 = vpop.eup %13349  ;;  %13369 = vrcp.f32 %v8225_v7  ;;  %v8226_v40 = vadd.f32 1.0, %v13348_v61 }
 0xe3a   : >> { %v13352_v44 = vpop.eup %13351  ;;  %13371 = vrcp.f32 %v8224_v11  ;;  %v8227_v51 = vadd.f32 1.0, %v13350_v2  ;;  %v19929_v5 = vmov %v18544_v59 }
 0xe3b   : >> { %v13354_v56 = vpop.eup %13353  ;;  %13373 = vrcp.f32 %v8226_v40  ;;  %v8229_v42 = vadd.f32 1.0, %v13352_v44  ;;  %9341 = vadd.xlane.f32.xlu1 (%p18675_p5), %v19929_v5 }
 0xe3c   : >> { %v13356_v52 = vpop.eup %13355  ;;  %13375 = vrcp.f32 %v8227_v51  ;;  %v8228_v57 = vadd.f32 1.0, %v13354_v56 }
 0xe3d   : >> { %v13358_v17 = vpop.eup %13357  ;;  %13377 = vrcp.f32 %v8229_v42  ;;  %v8230_v36 = vadd.f32 1.0, %v13356_v52 }
 0xe3e   : >> { %v13360_v21 = vpop.eup %13359  ;;  %13379 = vrcp.f32 %v8228_v57  ;;  %v8231_v29 = vadd.f32 1.0, %v13358_v17 }
 0xe3f   : >> { %v13362_v12 = vpop.eup %13361  ;;  %13381 = vrcp.f32 %v8230_v36  ;;  %v8233_v1 = vadd.f32 1.0, %v13360_v21  ;;  %v19933_v36 = vld [vmem:[#allocation87_spill] sm:$0xff] }
 0xe40   : >> { %v13364_v25 = vpop.eup %13363  ;;  %13383 = vrcp.f32 %v8231_v29  ;;  %v8232_v18 = vadd.f32 1.0, %v13362_v12 }
 0xe41   : >> { %v13366_v30 = vpop.eup %13365  ;;  %13385 = vrcp.f32 %v8233_v1  ;;  %v8234_v9 = vadd.f32 1.0, %v13364_v25 }
 0xe42   : >> { %v13368_v0 = vpop.eup %13367  ;;  %13387 = vrcp.f32 %v8232_v18  ;;  %v8604_v13 = vmul.f32 %v13366_v30, %v18366_v37 }
 0xe43   : >> { %v13370_v58 = vpop.eup %13369  ;;  %13389 = vrcp.f32 %v8234_v9  ;;  %v8606_v4 = vmul.f32 %v13368_v0, %v18369_v26 }
 0xe44   : >> { %v13372_v39 = vpop.eup %13371  ;;  %v8609_v27 = vmul.f32 %v13370_v58, %v18380_v48 }
 0xe45   : >> { %v13374_v3 = vpop.eup %13373  ;;  %v8608_v53 = vmul.f32 %v13372_v39, %v18407_v34 }
 0xe46   : >> { %v13376_v60 = vpop.eup %13375  ;;  %v8677_v16 = vpack.c.bf16 %v8609_v27, %v8605_v38  ;;  %v8610_v50 = vmul.f32 %v13374_v3, %v18416_v43 }
 0xe47   : >> { %v13378_v22 = vpop.eup %13377  ;;  %v8676_v54 = vpack.c.bf16 %v8608_v53, %v8604_v13  ;;  %v8611_v37 = vmul.f32 %v13376_v60, %v19930_v62 }
 0xe48   : >> { %v13380_v23 = vpop.eup %13379  ;;  %v8678_v6 = vpack.c.bf16 %v8610_v50, %v8606_v4  ;;  %v8613_v26 = vmul.f32 %v13378_v22, %v18432_v10  ;;  %v19935_v4 = vld [vmem:[#allocation102_spill] sm:$0xff] }
 0xe49   : >> { %v13382_v31 = vpop.eup %13381  ;;  %9085 = vmatprep.mubr.bf16.mxu1 %v8676_v54  ;;  %v8612_v45 = vmul.f32 %v13380_v23, %v18459_v47 }
 0xe4a   : >> { %v13384_v24 = vpop.eup %13383  ;;  %9246 = vmatprep.mubr.bf16.mxu0 %v8678_v6  ;;  %9086 = vmatmul.mubr.bf16.gmra.mrb[56].mxu1 %v8675_v33  ;;  %v8614_v11 = vmul.f32 %v13382_v31, %v18466_v32 }
 0xe4b   : >> { %v13386_v48 = vpop.eup %13385  ;;  %v8615_v34 = vmul.f32 %v13384_v24, %v18470_v35  ;;  %9247 = vmatmul.mubr.bf16.gmra.mrb[56].mxu0 %v8677_v16 }
 0xe4c   : >> { %v13388_v63 = vpop.eup %13387  ;;  %v8617_v43 = vmul.f32 %v13386_v48, %v18476_v28 }
 0xe4d   : >> { %v13390_v19 = vpop.eup %13389  ;;  %v8679_v7 = vpack.c.bf16 %v8615_v34, %v8611_v37  ;;  %v8616_v61 = vmul.f32 %v13388_v63, %v18481_v14 }
 0xe4e   : >> { %v8681_v33 = vpack.c.bf16 %v8617_v43, %v8613_v26  ;;  %v8618_v20 = vmul.f32 %v13390_v19, %v18492_v8  ;;  %v19931_v8 = vld [vmem:[#allocation90_spill] sm:$0xff] }
 0xe4f   : >> { %v8680_v46 = vpack.c.bf16 %v8616_v61, %v8612_v45  ;;  %v19939_v61 = vld [vmem:[#allocation107_spill] sm:$0xff] }
 0xe50   : >> { %v8682_v2 = vpack.c.bf16 %v8618_v20, %v8614_v11 }
 0xe51   : >> { %9093 = vmatprep.mubr.bf16.mxu1 %v8680_v46  ;;  %v19941_v46 = vld [vmem:[#allocation86_spill] sm:$0xff] }
 0xe52   : >> { %9254 = vmatprep.mubr.bf16.mxu0 %v8682_v2  ;;  %9094 = vmatmul.mubr.bf16.gmra.mrb[60].mxu1 %v8679_v7 }
 0xe53   : >> { %9255 = vmatmul.mubr.bf16.gmra.mrb[60].mxu0 %v8681_v33 }
 0xe62   : >> { %v11192_v10 = vpop.f32.mrb[8].mxu1 }
 0xe63   : >> { %v11193_v35 = vpop.f32.mrb[9].mxu1 }
 0xe64   : >> { %v11194_v40 = vadd.f32 %v11193_v35, %v11192_v10  ;;  %v11195_v44 = vpop.f32.mrb[10].mxu1 }
 0xe65   : >> { %v11304_v28 = vpop.f32.mrb[8].mxu0  ;;  %v11196_v51 = vpop.f32.mrb[11].mxu1 }
 0xe66   : >> { %v11305_v47 = vpop.f32.mrb[9].mxu0  ;;  %v11197_v56 = vadd.f32 %v11196_v51, %v11195_v44 }
 0xe67   : >> { %v11306_v59 = vadd.f32 %v11305_v47, %v11304_v28  ;;  %v11307_v14 = vpop.f32.mrb[10].mxu0 }
 0xe68   : >> { %v11308_v32 = vpop.f32.mrb[11].mxu0 }
 0xe69   : >> { %v9153_v42 = vadd.f32 %v11306_v59, %v11194_v40  ;;  %v11309_v52 = vadd.f32 %v11308_v32, %v11307_v14 }
 0xe6b   : >> { %v9267_v57 = vadd.f32 %v9153_v42, %v19931_v8  ;;  %v9156_v17 = vadd.f32 %v11309_v52, %v11197_v56 }
 0xe6d   : >> { %v18562_v31 = vadd.f32 %v18503_v49, %v9267_v57   ;;  %v9268_v29 = vadd.f32 %v9156_v17, %v19933_v36  ;;  %v19943_v17 = vld [vmem:[#allocation101_spill] sm:$0xff] }
 0xe6f   : >> { %v19932_v21 = vmov %v18562_v31  ;;  %v18566_v38 = vadd.f32 %v18503_v49, %v9268_v29  }
 0xe71   : >> { %v19934_v12 = vmov %v18566_v38  ;;  %v11310_v25 = vpop.f32.mrb[12].mxu0  ;;  %v19937_v38 = vld [vmem:[#allocation79_spill] sm:$0xff] }
 0xe72   : >> { %v11198_v1 = vpop.f32.mrb[12].mxu1  ;;  %v11311_v30 = vpop.f32.mrb[13].mxu0 }
 0xe73   : >> { %v11199_v18 = vpop.f32.mrb[13].mxu1  ;;  %v11312_v0 = vadd.f32 %v11311_v30, %v11310_v25  ;;  %v11313_v39 = vpop.f32.mrb[14].mxu0 }
 0xe74   : >> { %v11200_v9 = vadd.f32 %v11199_v18, %v11198_v1  ;;  %v11201_v58 = vpop.f32.mrb[14].mxu1  ;;  %v11314_v3 = vpop.f32.mrb[15].mxu0 }
 0xe75   : >> { %v11202_v27 = vpop.f32.mrb[15].mxu1  ;;  %v11315_v60 = vadd.f32 %v11314_v3, %v11313_v39 }
 0xe76   : >> { %v9161_v13 = vadd.f32 %v11312_v0, %v11200_v9  ;;  %v11203_v53 = vadd.f32 %v11202_v27, %v11201_v58 }
 0xe78   : >> { %v9269_v16 = vadd.f32 %v9161_v13, %v19935_v4  ;;  %v9164_v50 = vadd.f32 %v11315_v60, %v11203_v53 }
 0xe79   : >> { %v11316_v6 = vpop.f32.mrb[16].mxu0 }
 0xe7a   : >> { %v18570_v32 = vadd.f32 %v18503_v49, %v9269_v16   ;;  %v9270_v54 = vadd.f32 %v9164_v50, %v19937_v38  ;;  %v11204_v23 = vpop.f32.mrb[16].mxu1  ;;  %v11317_v24 = vpop.f32.mrb[17].mxu0  ;;  %v19947_v38 = vld [vmem:[#allocation81_spill] sm:$0xff] }
 0xe7b   : >> { %v11205_v31 = vpop.f32.mrb[17].mxu1  ;;  %v11318_v37 = vadd.f32 %v11317_v24, %v11316_v6  ;;  %v11319_v63 = vpop.f32.mrb[18].mxu0 }
 0xe7c   : >> { %v19936_v22 = vmov %v18570_v32  ;;  %v18574_v39 = vadd.f32 %v18503_v49, %v9270_v54   ;;  %v11206_v62 = vadd.f32 %v11205_v31, %v11204_v23  ;;  %v11207_v34 = vpop.f32.mrb[18].mxu1  ;;  %v11320_v43 = vpop.f32.mrb[19].mxu0  ;;  %v19949_v31 = vld [vmem:[#allocation80_spill] sm:$0xff] }
 0xe7d   : >> { %v11208_v26 = vpop.f32.mrb[19].mxu1  ;;  %v11321_v7 = vadd.f32 %v11320_v43, %v11319_v63 }
 0xe7e   : >> { %v19938_v48 = vmov %v18574_v39  ;;  %v9169_v19 = vadd.f32 %v11318_v37, %v11206_v62  ;;  %v11209_v45 = vadd.f32 %v11208_v26, %v11207_v34 }
 0xe80   : >> { %v9271_v11 = vadd.f32 %v9169_v19, %v19939_v61  ;;  %v9172_v33 = vadd.f32 %v11321_v7, %v11209_v45 }
 0xe82   : >> { %v18578_v43 = vadd.f32 %v18503_v49, %v9271_v11   ;;  %v9272_v2 = vadd.f32 %v9172_v33, %v19941_v46 }
 0xe84   : >> { %v19940_v20 = vmov %v18578_v43  ;;  %v18582_v44 = vadd.f32 %v18503_v49, %v9272_v2  }
 0xe86   : >> { %v19942_v35 = vmov %v18582_v44  ;;  %v11210_v10 = vpop.f32.mrb[20].mxu1  ;;  %v19945_v44 = vld [vmem:[#allocation104_spill] sm:$0xff] }
 0xe87   : >> { %v11322_v28 = vpop.f32.mrb[20].mxu0  ;;  %v11211_v40 = vpop.f32.mrb[21].mxu1 }
 0xe88   : >> { %v11212_v47 = vadd.f32 %v11211_v40, %v11210_v10  ;;  %v11323_v51 = vpop.f32.mrb[21].mxu0  ;;  %v11213_v59 = vpop.f32.mrb[22].mxu1  ;;  %v19951_v10 = vld [vmem:[#allocation96_spill] sm:$0xff] }
 0xe89   : >> { %v11324_v14 = vadd.f32 %v11323_v51, %v11322_v28  ;;  %v11325_v56 = vpop.f32.mrb[22].mxu0  ;;  %v11214_v32 = vpop.f32.mrb[23].mxu1 }
 0xe8a   : >> { %v11215_v42 = vadd.f32 %v11214_v32, %v11213_v59  ;;  %v11326_v52 = vpop.f32.mrb[23].mxu0  ;;  %v19953_v59 = vld [vmem:[#allocation83_spill] sm:$0xff] }
 0xe8b   : >> { %v9177_v8 = vadd.f32 %v11324_v14, %v11212_v47  ;;  %v11327_v57 = vadd.f32 %v11326_v52, %v11325_v56 }
 0xe8d   : >> { %v9273_v36 = vadd.f32 %v9177_v8, %v19943_v17  ;;  %v9180_v29 = vadd.f32 %v11327_v57, %v11215_v42 }
 0xe8f   : >> { %v11216_v1 = vpop.f32.mrb[24].mxu1  ;;  %v18586_v45 = vadd.f32 %v18503_v49, %v9273_v36   ;;  %v9274_v18 = vadd.f32 %v9180_v29, %v19945_v44 }
 0xe90   : >> { %v11217_v30 = vpop.f32.mrb[25].mxu1 }
 0xe91   : >> { %v19944_v25 = vmov %v18586_v45  ;;  %v11218_v9 = vadd.f32 %v11217_v30, %v11216_v1  ;;  %v11219_v0 = vpop.f32.mrb[26].mxu1  ;;  %v18590_v46 = vadd.f32 %v18503_v49, %v9274_v18  }
 0xe92   : >> { %v11220_v58 = vpop.f32.mrb[27].mxu1 }
 0xe93   : >> { %v19946_v27 = vmov %v18590_v46  ;;  %v11221_v39 = vadd.f32 %v11220_v58, %v11219_v0  ;;  %v19955_v0 = vld [vmem:[#allocation95_spill] sm:$0xff] }
 0xe9d   : >> { %v11328_v3 = vpop.f32.mrb[24].mxu0 }
 0xe9e   : >> { %v11329_v13 = vpop.f32.mrb[25].mxu0 }
 0xe9f   : >> { %v11330_v53 = vadd.f32 %v11329_v13, %v11328_v3  ;;  %v11331_v60 = vpop.f32.mrb[26].mxu0  ;;  %v19957_v3 = vld [vmem:[#allocation82_spill] sm:$0xff] }
 0xea0   : >> { %v11332_v4 = vpop.f32.mrb[27].mxu0 }
 0xea1   : >> { %v9185_v16 = vadd.f32 %v11330_v53, %v11218_v9  ;;  %v11333_v50 = vadd.f32 %v11332_v4, %v11331_v60 }
 0xea3   : >> { %v9275_v54 = vadd.f32 %v9185_v16, %v19947_v38  ;;  %v9188_v23 = vadd.f32 %v11333_v50, %v11221_v39 }
 0xea4   : >> { %v11222_v6 = vpop.f32.mrb[28].mxu1 }
 0xea5   : >> { %v18594_v50 = vadd.f32 %v18503_v49, %v9275_v54   ;;  %v9276_v62 = vadd.f32 %v9188_v23, %v19949_v31  ;;  %v11334_v37 = vpop.f32.mrb[28].mxu0  ;;  %v11223_v34 = vpop.f32.mrb[29].mxu1 }
 0xea6   : >> { %v11224_v63 = vadd.f32 %v11223_v34, %v11222_v6  ;;  %v11335_v26 = vpop.f32.mrb[29].mxu0  ;;  %v11225_v43 = vpop.f32.mrb[30].mxu1 }
 0xea7   : >> { %v19948_v24 = vmov %v18594_v50  ;;  %v18598_v51 = vadd.f32 %v18503_v49, %v9276_v62   ;;  %v11336_v45 = vadd.f32 %v11335_v26, %v11334_v37  ;;  %v11337_v7 = vpop.f32.mrb[30].mxu0  ;;  %v11226_v61 = vpop.f32.mrb[31].mxu1  ;;  %v19959_v26 = vld [vmem:[#allocation100_spill] sm:$0xff] }
 0xea8   : >> { %v11227_v11 = vadd.f32 %v11226_v61, %v11225_v43  ;;  %v11338_v33 = vpop.f32.mrb[31].mxu0 }
 0xea9   : >> { %v19950_v19 = vmov %v18598_v51  ;;  %v9193_v46 = vadd.f32 %v11336_v45, %v11224_v63  ;;  %v11339_v2 = vadd.f32 %v11338_v33, %v11337_v7  ;;  %v19961_v7 = vld [vmem:[#allocation84_spill] sm:$0xff] }
 0xeab   : >> { %v9277_v28 = vadd.f32 %v9193_v46, %v19951_v10  ;;  %v9196_v40 = vadd.f32 %v11339_v2, %v11227_v11 }
 0xead   : >> { %v18602_v52 = vadd.f32 %v18503_v49, %v9277_v28   ;;  %v9278_v14 = vadd.f32 %v9196_v40, %v19953_v59 }
 0xeaf   : >> { %v19952_v47 = vmov %v18602_v52  ;;  %v18606_v53 = vadd.f32 %v18503_v49, %v9278_v14  }
 0xeb1   : >> { %v19954_v56 = vmov %v18606_v53 }
 0xeb9   : >> { %v11228_v32 = vpop.f32.mrb[32].mxu1 }
 0xeba   : >> { %v11340_v51 = vpop.f32.mrb[32].mxu0  ;;  %v11229_v42 = vpop.f32.mrb[33].mxu1 }
 0xebb   : >> { %v11230_v8 = vadd.f32 %v11229_v42, %v11228_v32  ;;  %v11341_v57 = vpop.f32.mrb[33].mxu0  ;;  %v11231_v17 = vpop.f32.mrb[34].mxu1 }
 0xebc   : >> { %v11342_v36 = vadd.f32 %v11341_v57, %v11340_v51  ;;  %v11343_v29 = vpop.f32.mrb[34].mxu0  ;;  %v11232_v1 = vpop.f32.mrb[35].mxu1 }
 0xebd   : >> { %v11233_v44 = vadd.f32 %v11232_v1, %v11231_v17  ;;  %v11344_v18 = vpop.f32.mrb[35].mxu0 }
 0xebe   : >> { %v9201_v30 = vadd.f32 %v11342_v36, %v11230_v8  ;;  %v11345_v9 = vadd.f32 %v11344_v18, %v11343_v29  ;;  %v19963_v29 = vld [vmem:[#allocation85_spill] sm:$0xff] }
 0xec0   : >> { %v9279_v52 = vadd.f32 %v9201_v30, %v19955_v0  ;;  %v9204_v58 = vadd.f32 %v11345_v9, %v11233_v44  ;;  %v19965_v44 = vld [vmem:[#allocation88_spill] sm:$0xff] }
 0xec1   : >> { %v11234_v39 = vpop.f32.mrb[36].mxu1 }
 0xec2   : >> { %v18610_v57 = vadd.f32 %v18503_v49, %v9279_v52   ;;  %v9280_v53 = vadd.f32 %v9204_v58, %v19957_v3  ;;  %v11346_v60 = vpop.f32.mrb[36].mxu0  ;;  %v11235_v4 = vpop.f32.mrb[37].mxu1 }
 0xec3   : >> { %v11236_v16 = vadd.f32 %v11235_v4, %v11234_v39  ;;  %v11347_v50 = vpop.f32.mrb[37].mxu0  ;;  %v11237_v38 = vpop.f32.mrb[38].mxu1 }
 0xec4   : >> { %v19956_v13 = vmov %v18610_v57  ;;  %v18614_v58 = vadd.f32 %v18503_v49, %v9280_v53   ;;  %v11348_v23 = vadd.f32 %v11347_v50, %v11346_v60  ;;  %v11349_v6 = vpop.f32.mrb[38].mxu0  ;;  %v11238_v31 = vpop.f32.mrb[39].mxu1 }
 0xec5   : >> { %v11239_v62 = vadd.f32 %v11238_v31, %v11237_v38  ;;  %v11350_v37 = vpop.f32.mrb[39].mxu0  ;;  %v19967_v31 = vld [vmem:[#allocation89_spill] sm:$0xff] }
 0xec6   : >> { %v19958_v54 = vmov %v18614_v58  ;;  %v9209_v34 = vadd.f32 %v11348_v23, %v11236_v16  ;;  %v11351_v63 = vadd.f32 %v11350_v37, %v11349_v6 }
 0xec7   : > { %9369 = vadd.xlane.f32.xlu1 (%p18675_p5), %v19958_v54 }
 0xec8   : >> { %v9281_v43 = vadd.f32 %v9209_v34, %v19959_v26  ;;  %v9212_v45 = vadd.f32 %v11351_v63, %v11239_v62 }
 0xeca   : >> { %v18618_v59 = vadd.f32 %v18503_v49, %v9281_v43   ;;  %v9282_v61 = vadd.f32 %v9212_v45, %v19961_v7 }
 0xecc   : >> { %v19960_v33 = vmov %v18618_v59  ;;  %v18622_v60 = vadd.f32 %v18503_v49, %v9282_v61  }
 0xece   : >> { %v19962_v28 = vmov %v18622_v60 }
 0xecf   : > { %9373 = vadd.xlane.f32.xlu1 (%p18675_p5), %v19962_v28 }
 0xed3   : > { %9345 = vadd.xlane.f32.xlu1 (%p18675_p5), %v19934_v12 }
 0xed6   : >> { %v11240_v11 = vpop.f32.mrb[40].mxu1 }
 0xed7   : >> { %v11352_v46 = vpop.f32.mrb[40].mxu0  ;;  %v11241_v2 = vpop.f32.mrb[41].mxu1 }
 0xed8   : >> { %v11242_v10 = vadd.f32 %v11241_v2, %v11240_v11  ;;  %v11353_v40 = vpop.f32.mrb[41].mxu0  ;;  %v11243_v14 = vpop.f32.mrb[42].mxu1 }
 0xed9   : >> { %v11354_v32 = vadd.f32 %v11353_v40, %v11352_v46  ;;  %v11355_v51 = vpop.f32.mrb[42].mxu0  ;;  %v11244_v42 = vpop.f32.mrb[43].mxu1 }
 0xeda   : >> { %v11245_v8 = vadd.f32 %v11244_v42, %v11243_v14  ;;  %v11356_v57 = vpop.f32.mrb[43].mxu0 }
 0xedb   : >> { %v9217_v17 = vadd.f32 %v11354_v32, %v11242_v10  ;;  %v11357_v36 = vadd.f32 %v11356_v57, %v11355_v51 }
 0xedd   : >> { %v9283_v59 = vadd.f32 %v9217_v17, %v19963_v29  ;;  %v9220_v1 = vadd.f32 %v11357_v36, %v11245_v8  ;;  %v19971_v17 = vld [vmem:[#allocation92_spill] sm:$0xff]  ;;  %v19973_v29 = vld [vmem:[#allocation97_spill] sm:$0xff] }
 0xedf   : >> { %v18626_v61 = vadd.f32 %v18503_v49, %v9283_v59   ;;  %v9284_v30 = vadd.f32 %v9220_v1, %v19965_v44 }
 0xee1   : >> { %v19964_v18 = vmov %v18626_v61  ;;  %v18630_v62 = vadd.f32 %v18503_v49, %v9284_v30  }
 0xee3   : >> { %v19966_v16 = vmov %v18630_v62  ;;  %v19969_v62 = vld [vmem:[#allocation91_spill] sm:$0xff] }
 0xee4   : > { %9377 = vadd.xlane.f32.xlu1 (%p18675_p5), %v19966_v16 }
 0xee8   : > { %9349 = vadd.xlane.f32.xlu1 (%p18675_p5), %v19938_v48 }
 0xeeb   : >> { %v11246_v9 = vpop.f32.mrb[44].mxu1 }
 0xeec   : >> { %v11358_v0 = vpop.f32.mrb[44].mxu0  ;;  %v11247_v52 = vpop.f32.mrb[45].mxu1 }
 0xeed   : >> { %v11248_v58 = vadd.f32 %v11247_v52, %v11246_v9  ;;  %v11359_v39 = vpop.f32.mrb[45].mxu0  ;;  %v11249_v3 = vpop.f32.mrb[46].mxu1 }
 0xeee   : >> { %v11360_v53 = vadd.f32 %v11359_v39, %v11358_v0  ;;  %v11361_v60 = vpop.f32.mrb[46].mxu0  ;;  %v11250_v4 = vpop.f32.mrb[47].mxu1 }
 0xeef   : >> { %v11251_v50 = vadd.f32 %v11250_v4, %v11249_v3  ;;  %v11362_v38 = vpop.f32.mrb[47].mxu0 }
 0xef0   : >> { %v9225_v23 = vadd.f32 %v11360_v53, %v11248_v58  ;;  %v11363_v6 = vadd.f32 %v11362_v38, %v11361_v60 }
 0xef2   : >> { %v9285_v37 = vadd.f32 %v9225_v23, %v19967_v31  ;;  %v9228_v34 = vadd.f32 %v11363_v6, %v11251_v50  ;;  %v19975_v31 = vld [vmem:[#allocation98_spill] sm:$0xff] }
 0xef4   : >> { %v18634_v63 = vadd.f32 %v18503_v49, %v9285_v37   ;;  %v9286_v43 = vadd.f32 %v9228_v34, %v19969_v62 }
 0xef6   : >> { %v19968_v26 = vmov %v18634_v63  ;;  %v18638_v0 = vadd.f32 %v18503_v49, %v9286_v43  }
 0xef8   : >> { %v19970_v40 = vmov %v18638_v0 }
 0xef9   : > { %9381 = vadd.xlane.f32.xlu1 (%p18675_p5), %v19970_v40 }
 0xefb   : >> { %v11252_v45 = vpop.f32.mrb[48].mxu1 }
 0xefc   : >> { %v11253_v7 = vpop.f32.mrb[49].mxu1 }
 0xefd   : >> { %v11364_v61 = vpop.f32.mrb[48].mxu0  ;;  %v11254_v11 = vadd.f32 %v11253_v7, %v11252_v45  ;;  %v11255_v46 = vpop.f32.mrb[50].mxu1  ;;  %9353 = vadd.xlane.f32.xlu1 (%p18675_p5), %v19942_v35 }
 0xefe   : >> { %v11365_v2 = vpop.f32.mrb[49].mxu0  ;;  %v11256_v10 = vpop.f32.mrb[51].mxu1 }
 0xeff   : >> { %v11366_v14 = vadd.f32 %v11365_v2, %v11364_v61  ;;  %v11367_v32 = vpop.f32.mrb[50].mxu0  ;;  %v11257_v51 = vadd.f32 %v11256_v10, %v11255_v46 }
 0xf00   : >> { %v11368_v42 = vpop.f32.mrb[51].mxu0 }
 0xf01   : >> { %v9233_v8 = vadd.f32 %v11366_v14, %v11254_v11  ;;  %v11369_v57 = vadd.f32 %v11368_v42, %v11367_v32 }
 0xf03   : >> { %v9287_v63 = vadd.f32 %v9233_v8, %v19971_v17  ;;  %v9236_v36 = vadd.f32 %v11369_v57, %v11257_v51 }
 0xf05   : >> { %v18642_v2 = vadd.f32 %v18503_v49, %v9287_v63   ;;  %v9288_v59 = vadd.f32 %v9236_v36, %v19973_v29  ;;  %v19979_v36 = vld [vmem:[#allocation94_spill] sm:$0xff] }
 0xf07   : >> { %v19972_v1 = vmov %v18642_v2  ;;  %v18646_v3 = vadd.f32 %v18503_v49, %v9288_v59  }
 0xf08   : >> { %v11258_v44 = vpop.f32.mrb[52].mxu1 }
 0xf09   : >> { %v19974_v23 = vmov %v18646_v3  ;;  %v11370_v30 = vpop.f32.mrb[52].mxu0  ;;  %v11259_v9 = vpop.f32.mrb[53].mxu1  ;;  %v19977_v3 = vld [vmem:[#allocation93_spill] sm:$0xff] }
 0xf0a   : >> { %v11260_v0 = vadd.f32 %v11259_v9, %v11258_v44  ;;  %v11371_v52 = vpop.f32.mrb[53].mxu0  ;;  %v11261_v58 = vpop.f32.mrb[54].mxu1  ;;  %9385 = vadd.xlane.f32.xlu1 (%p18675_p5), %v19974_v23 }
 0xf0b   : >> { %v11372_v39 = vadd.f32 %v11371_v52, %v11370_v30  ;;  %v11373_v53 = vpop.f32.mrb[54].mxu0  ;;  %v11262_v60 = vpop.f32.mrb[55].mxu1 }
 0xf0c   : >> { %v11263_v4 = vadd.f32 %v11262_v60, %v11261_v58  ;;  %v11374_v50 = vpop.f32.mrb[55].mxu0 }
 0xf0d   : >> { %v9241_v38 = vadd.f32 %v11372_v39, %v11260_v0  ;;  %v11375_v6 = vadd.f32 %v11374_v50, %v11373_v53 }
 0xf0e   : > { %9357 = vadd.xlane.f32.xlu1 (%p18675_p5), %v19946_v27 }
 0xf0f   : >> { %v9289_v37 = vadd.f32 %v9241_v38, %v19975_v31  ;;  %v9244_v34 = vadd.f32 %v11375_v6, %v11263_v4 }
 0xf11   : >> { %v18650_v4 = vadd.f32 %v18503_v49, %v9289_v37   ;;  %v9290_v62 = vadd.f32 %v9244_v34, %v19977_v3 }
 0xf13   : >> { %v19976_v14 = vmov %v18650_v4  ;;  %v18654_v7 = vadd.f32 %v18503_v49, %v9290_v62   ;;  %v19983_v62 = vld [vmem:[#allocation106_spill] sm:$0xff] }
 0xf15   : >> { %v19978_v42 = vmov %v18654_v7  ;;  %v19981_v7 = vld [vmem:[#allocation105_spill] sm:$0xff] }
 0xf16   : > { %9389 = vadd.xlane.f32.xlu1 (%p18675_p5), %v19978_v42 }
 0xf1a   : > { %9361 = vadd.xlane.f32.xlu1 (%p18675_p5), %v19950_v19 }
 0xf1d   : >> { %v11264_v43 = vpop.f32.mrb[56].mxu1 }
 0xf1e   : >> { %v11376_v45 = vpop.f32.mrb[56].mxu0  ;;  %v11265_v61 = vpop.f32.mrb[57].mxu1 }
 0xf1f   : >> { %v11266_v11 = vadd.f32 %v11265_v61, %v11264_v43  ;;  %v11377_v46 = vpop.f32.mrb[57].mxu0  ;;  %v11267_v2 = vpop.f32.mrb[58].mxu1  ;;  %v19985_v61 = vld [vmem:[#allocation103_spill] sm:$0xff] }
 0xf20   : >> { %v11378_v10 = vadd.f32 %v11377_v46, %v11376_v45  ;;  %v11379_v32 = vpop.f32.mrb[58].mxu0  ;;  %v11268_v51 = vpop.f32.mrb[59].mxu1  ;;  %v20008_v46 = vmov %v19946_v27 }
 0xf21   : >> { %v11269_v8 = vadd.f32 %v11268_v51, %v11267_v2  ;;  %v11380_v57 = vpop.f32.mrb[59].mxu0  ;;  %v19995_v2 = vmov %v19972_v1  ;;  %v20006_v51 = vmov %v19950_v19  ;;  %v14246_v46 = vmov (%p18675_p5), 0  }
 0xf22   : >> { %v9249_v17 = vadd.f32 %v11378_v10, %v11266_v11  ;;  %v11381_v63 = vadd.f32 %v11380_v57, %v11379_v32  ;;  %v20003_v57 = vmov %v19956_v13  ;;  %v20013_v32 = vmov %v19936_v22  ;;  %13394 = vset.pattern.permute.xlu1 (%p18675_p5), %v14246_v46  ;;  %13393 = vset.pattern.permute.xlu0 (%p18675_p5), %v14246_v46 }
 0xf24   : >> { %v9291_v29 = vadd.f32 %v9249_v17, %v19979_v36  ;;  %v9252_v59 = vadd.f32 %v11381_v63, %v11269_v8  ;;  %v19997_v63 = vmov %v19968_v26  ;;  %v20018_v36 = vmov %v19925_v15 }
 0xf25   : >> { %v11270_v44 = vpop.f32.mrb[60].mxu1 }
 0xf26   : >> { %v18658_v8 = vadd.f32 %v18503_v49, %v9291_v29   ;;  %v9292_v30 = vadd.f32 %v9252_v59, %v19981_v7  ;;  %v11382_v9 = vpop.f32.mrb[60].mxu0  ;;  %v11271_v0 = vpop.f32.mrb[61].mxu1  ;;  %v19992_v7 = vmov %v19978_v42  ;;  %v20001_v59 = vmov %v19960_v33  ;;  %v20019_v29 = vld [vmem:[#allocation113_spill] sm:$0xff] }
 0xf27   : >> { %v11272_v52 = vadd.f32 %v11271_v0, %v11270_v44  ;;  %v11383_v58 = vpop.f32.mrb[61].mxu0  ;;  %v11273_v39 = vpop.f32.mrb[62].mxu1  ;;  %v19996_v0 = vmov %v19970_v40  ;;  %v20010_v44 = vmov %v19942_v35 }
 0xf28   : >> { %v19980_v6 = vmov %v18658_v8  ;;  %v18662_v53 = vadd.f32 %v18503_v49, %v9292_v30   ;;  %v11384_v60 = vadd.f32 %v11383_v58, %v11382_v9  ;;  %v11385_v4 = vpop.f32.mrb[62].mxu0  ;;  %v11274_v50 = vpop.f32.mrb[63].mxu1  ;;  %v20002_v58 = vmov %v19958_v54 }
 0xf29   : >> { %v11275_v38 = vadd.f32 %v11274_v50, %v11273_v39  ;;  %v11386_v31 = vpop.f32.mrb[63].mxu0  ;;  %v19991_v8 = vmov %v19980_v6  ;;  %v20007_v50 = vmov %v19948_v24  ;;  %v20012_v39 = vmov %v19938_v48 }
 0xf2a   : >> { %v19982_v34 = vmov %v18662_v53  ;;  %v9257_v37 = vadd.f32 %v11384_v60, %v11272_v52  ;;  %v11387_v3 = vadd.f32 %v11386_v31, %v11385_v4  ;;  %v19993_v4 = vmov %v19976_v14 }
 0xf2b   : >> { %v19990_v9 = vmov %v19982_v34  ;;  %v20000_v60 = vmov %v19962_v28  ;;  %v20004_v53 = vmov %v19954_v56  ;;  %v20005_v52 = vmov %v19952_v47  ;;  %9393 = vadd.xlane.f32.xlu1 (%p18675_p5), %v19982_v34 }
 0xf2c   : >> { %v9293_v43 = vadd.f32 %v9257_v37, %v19983_v62  ;;  %v9260_v45 = vadd.f32 %v11387_v3, %v11275_v38  ;;  %v19994_v3 = vmov %v19974_v23  ;;  %v19998_v62 = vmov %v19966_v16 }
 0xf2d   : >> { %v20014_v38 = vmov %v19934_v12  ;;  %v20015_v31 = vmov %v19932_v21  ;;  %v20016_v37 = vmov %v19929_v5  ;;  %v20017_v30 = vmov %v19927_v55  ;;  %871 = sbr.rel (!%p18675_p5) target bundleno = 429 (0x1ad), region = 206 }
 0xf2e   : >> { %v18666_v10 = vadd.f32 %v18503_v49, %v9293_v43   ;;  %v9294_v11 = vadd.f32 %v9260_v45, %v19985_v61  ;;  %v19999_v61 = vmov %v19964_v18  ;;  %v20009_v45 = vmov %v19944_v25 }
 0xf2f   : >> { %v20011_v43 = vmov %v19940_v20  ;;  %9365 = vadd.xlane.f32.xlu1 (%p18675_p5), %v19954_v56 }
 0xf30   : >> { %v19984_v17 = vmov %v18666_v10  ;;  %v18670_v11 = vadd.f32 %v18503_v49, %v9294_v11   ;;  %v20021_v49 = vld [vmem:[#allocation113_spill] sm:$0xff] (%p18675_p5) }
 0xf31   : >> { %v19989_v10 = vmov %v19984_v17  ;;  %9335 = vadd.xlane.f32.xlu0 (%p18675_p5), %v20021_v49 }
 0xf32   : >> { %v19986_v41 = vmov %v18670_v11  ;;  %v9340_v10 = vpop.xlane.xlu1 (%p18675_p5), %9339 }
 0xf33   : >> { %v19988_v11 = vmov %v19986_v41  ;;  %9397 = vadd.xlane.f32.xlu1 (%p18675_p5), %v19986_v41  ;;  %v9402_v51 = vmul.f32 (%p18675_p5), 0.0078125, %v9340_v10 }
 0xf35   : > { %9337 = vadd.xlane.f32.xlu0 %v19925_v15  ;;  %v18817_v57 = vsub.f32 %v19927_v55, %v9402_v51 }
 0xf36   : > { %v9342_v36 = vpop.xlane.xlu1 %9341 }
 0xf37   : > { %v9403_v44 = vmul.f32 0.0078125, %v9342_v36  ;;  %v9466_v9 = vmul.f32 %v18817_v57, %v18817_v57 }
 0xf39   : > { %9367 = vadd.xlane.f32.xlu0 %v19956_v13  ;;  %v18825_v30 = vsub.f32 %v19929_v5, %v9403_v44 }
 0xf3b   : > { %v9467_v5 = vmul.f32 %v18825_v30, %v18825_v30 }
 0xf3d   : > { %9371 = vadd.xlane.f32.xlu0 %v19960_v33 }
 0xf41   : > { %9343 = vadd.xlane.f32.xlu0 %v19932_v21 }
 0xf45   : > { %9375 = vadd.xlane.f32.xlu0 %v19964_v18 }
 0xf49   : > { %9347 = vadd.xlane.f32.xlu0 %v19936_v22 }
 0xf4d   : > { %9379 = vadd.xlane.f32.xlu0 %v19968_v26 }
 0xf51   : > { %9351 = vadd.xlane.f32.xlu0 %v19940_v20 }
 0xf54   : > { %v9370_v55 = vpop.xlane.xlu1 %9369 }
 0xf55   : > { %9383 = vadd.xlane.f32.xlu0 %v19972_v1  ;;  %v9417_v39 = vmul.f32 0.0078125, %v9370_v55 }
 0xf59   : > { %9355 = vadd.xlane.f32.xlu0 %v19944_v25 }
 0xf5c   : > { %v9374_v4 = vpop.xlane.xlu1 %9373 }
 0xf5d   : > { %9387 = vadd.xlane.f32.xlu0 %v19976_v14  ;;  %v9419_v31 = vmul.f32 0.0078125, %v9374_v4 }
 0xf60   : > { %v9346_v62 = vpop.xlane.xlu1 %9345 }
 0xf61   : > { %9359 = vadd.xlane.f32.xlu0 %v19948_v24  ;;  %v9405_v61 = vmul.f32 0.0078125, %v9346_v62 }
 0xf65   : > { %9391 = vadd.xlane.f32.xlu0 %v19980_v6 }
 0xf69   : > { %9363 = vadd.xlane.f32.xlu0 %v19952_v47 }
 0xf6d   : > { %9395 = vadd.xlane.f32.xlu0 %v19984_v17 }
 0xf71   : > { %v9378_v46 = vpop.xlane.xlu1 %9377 }
 0xf75   : > { %v9350_v36 = vpop.xlane.xlu1 %9349 }
 0xf76   : > { %v9407_v44 = vmul.f32 0.0078125, %v9350_v36 }
 0xf86   : > { %v9382_v55 = vpop.xlane.xlu1 %9381 }
 0xf8a   : > { %v9354_v4 = vpop.xlane.xlu1 %9353 }
 0xf97   : > { %v9386_v62 = vpop.xlane.xlu1 %9385 }
 0xfbe   : > { %v9336_v2 = vpop.xlane.xlu0 %9335 }
 0xfbf   : > { %v9400_v32 = vmul.f32 0.0078125, %v9336_v2 }
 0xfc1   : > { %v18814_v8 = vsub.f32 %v20021_v49, %v9400_v32  ;;  %v9421_v32 = vmul.f32 0.0078125, %v9378_v46  ;;  %v9358_v46 = vpop.xlane.xlu1 %9357 }
 0xfc2   : > { %v9338_v63 = vpop.xlane.xlu0 %9337 }
 0xfc3   : > { %v9401_v29 = vmul.f32 0.0078125, %v9338_v63  ;;  %v9464_v59 = vmul.f32 %v18814_v8, %v18814_v8 }
 0xfc5   : > { %v18822_v7 = vsub.f32 %v19925_v15, %v9401_v29  ;;  %9496 = vadd.xlane.f32.xlu0 %v9464_v59  ;;  %v18835_v15 = vsub.f32 %v19958_v54, %v9417_v39  ;;  %v9423_v39 = vmul.f32 0.0078125, %v9382_v55  ;;  %v9390_v36 = vpop.xlane.xlu1 %9389 }
 0xfc6   : > { %v9368_v0 = vpop.xlane.xlu0 %9367 }
 0xfc7   : > { %v9416_v52 = vmul.f32 0.0078125, %v9368_v0  ;;  %v9465_v58 = vmul.f32 %v18822_v7, %v18822_v7  ;;  %v9481_v54 = vmul.f32 %v18835_v15, %v18835_v15 }
 0xfc9   : > { %v18832_v53 = vsub.f32 %v19956_v13, %v9416_v52  ;;  %9500 = vadd.xlane.f32.xlu0 %v9466_v9  ;;  %9498 = vadd.xlane.f32.xlu1 %v9465_v58  ;;  %v18845_v13 = vsub.f32 %v19962_v28, %v9419_v31  ;;  %v9409_v31 = vmul.f32 0.0078125, %v9354_v4  ;;  %v9362_v55 = vpop.xlane.xlu1 %9361 }
 0xfca   : > { %v9372_v60 = vpop.xlane.xlu0 %9371 }
 0xfcb   : > { %v9418_v50 = vmul.f32 0.0078125, %v9372_v60  ;;  %v9480_v38 = vmul.f32 %v18832_v53, %v18832_v53  ;;  %v9483_v28 = vmul.f32 %v18845_v13, %v18845_v13 }
 0xfcd   : > { %v18842_v37 = vsub.f32 %v19960_v33, %v9418_v50  ;;  %9502 = vadd.xlane.f32.xlu1 %v9467_v5  ;;  %9528 = vadd.xlane.f32.xlu0 %v9480_v38  ;;  %v18855_v33 = vsub.f32 %v19934_v12, %v9405_v61  ;;  %v9425_v61 = vmul.f32 0.0078125, %v9386_v62  ;;  %v9394_v4 = vpop.xlane.xlu1 %9393 }
 0xfce   : > { %v9344_v3 = vpop.xlane.xlu0 %9343 }
 0xfcf   : > { %v9404_v43 = vmul.f32 0.0078125, %v9344_v3  ;;  %v9482_v45 = vmul.f32 %v18842_v37, %v18842_v37  ;;  %v9469_v12 = vmul.f32 %v18855_v33, %v18855_v33 }
 0xfd1   : > { %v18852_v11 = vsub.f32 %v19932_v21, %v9404_v43  ;;  %9530 = vadd.xlane.f32.xlu1 %v9481_v54  ;;  %9532 = vadd.xlane.f32.xlu0 %v9482_v45  ;;  %v18865_v21 = vsub.f32 %v19966_v16, %v9421_v32  ;;  %v9411_v32 = vmul.f32 0.0078125, %v9358_v46  ;;  %v9366_v62 = vpop.xlane.xlu1 %9365 }
 0xfd2   : > { %v9376_v49 = vpop.xlane.xlu0 %9375 }
 0xfd3   : > { %v9420_v2 = vmul.f32 0.0078125, %v9376_v49  ;;  %v9468_v10 = vmul.f32 %v18852_v11, %v18852_v11  ;;  %v9485_v16 = vmul.f32 %v18865_v21, %v18865_v21 }
 0xfd5   : > { %v18862_v51 = vsub.f32 %v19964_v18, %v9420_v2  ;;  %9534 = vadd.xlane.f32.xlu1 %v9483_v28  ;;  %9504 = vadd.xlane.f32.xlu0 %v9468_v10  ;;  %v18875_v18 = vsub.f32 %v19938_v48, %v9407_v44  ;;  %v9427_v44 = vmul.f32 0.0078125, %v9390_v36  ;;  %v9785_v36 = vld [vmem:[%s14731_s1 + $0xa8] sm:$0xff] }
 0xfd6   : > { %v9348_v63 = vpop.xlane.xlu0 %9347 }
 0xfd7   : > { %v9406_v29 = vmul.f32 0.0078125, %v9348_v63  ;;  %v9484_v59 = vmul.f32 %v18862_v51, %v18862_v51  ;;  %v9471_v48 = vmul.f32 %v18875_v18, %v18875_v18 }
 0xfd9   : > { %v18872_v9 = vsub.f32 %v19936_v22, %v9406_v29  ;;  %9506 = vadd.xlane.f32.xlu1 %v9469_v12  ;;  %9536 = vadd.xlane.f32.xlu0 %v9484_v59  ;;  %v18885_v22 = vsub.f32 %v19970_v40, %v9423_v39  ;;  %v9413_v39 = vmul.f32 0.0078125, %v9362_v55 }
 0xfda   : > { %v9380_v0 = vpop.xlane.xlu0 %9379 }
 0xfdb   : > { %v9422_v52 = vmul.f32 0.0078125, %v9380_v0  ;;  %v9470_v58 = vmul.f32 %v18872_v9, %v18872_v9  ;;  %v9487_v40 = vmul.f32 %v18885_v22, %v18885_v22 }
 0xfdd   : > { %v18882_v5 = vsub.f32 %v19968_v26, %v9422_v52  ;;  %9538 = vadd.xlane.f32.xlu1 %v9485_v16  ;;  %9508 = vadd.xlane.f32.xlu0 %v9470_v58  ;;  %v18895_v26 = vsub.f32 %v19942_v35, %v9409_v31  ;;  %v9429_v31 = vmul.f32 0.0078125, %v9394_v4  ;;  %v9793_v4 = vld [vmem:[%s14731_s1 + $0xe8] sm:$0xff] }
 0xfde   : > { %v9352_v60 = vpop.xlane.xlu0 %9351 }
 0xfdf   : > { %v9408_v50 = vmul.f32 0.0078125, %v9352_v60  ;;  %v9486_v38 = vmul.f32 %v18882_v5, %v18882_v5  ;;  %v9473_v35 = vmul.f32 %v18895_v26, %v18895_v26 }
 0xfe1   : > { %v18892_v54 = vsub.f32 %v19940_v20, %v9408_v50  ;;  %9510 = vadd.xlane.f32.xlu1 %v9471_v48  ;;  %9540 = vadd.xlane.f32.xlu0 %v9486_v38  ;;  %v18905_v20 = vsub.f32 %v19974_v23, %v9425_v61  ;;  %v9415_v61 = vmul.f32 0.0078125, %v9366_v62  ;;  %v9782_v62 = vld [vmem:[%s14731_s1 + $0x90] sm:$0xff] }
 0xfe2   : > { %v9384_v3 = vpop.xlane.xlu0 %9383 }
 0xfe3   : > { %v9424_v43 = vmul.f32 0.0078125, %v9384_v3  ;;  %v9472_v45 = vmul.f32 %v18892_v54, %v18892_v54  ;;  %v9489_v23 = vmul.f32 %v18905_v20, %v18905_v20 }
 0xfe5   : > { %v18902_v28 = vsub.f32 %v19972_v1, %v9424_v43  ;;  %9542 = vadd.xlane.f32.xlu1 %v9487_v40  ;;  %9512 = vadd.xlane.f32.xlu0 %v9472_v45  ;;  %v18915_v1 = vsub.f32 %v19946_v27, %v9411_v32  ;;  %v9765_v32 = vld [vmem:[%s14731_s1 + $0x8] sm:$0xff] }
 0xfe6   : > { %v9356_v49 = vpop.xlane.xlu0 %9355 }
 0xfe7   : > { %v9410_v2 = vmul.f32 0.0078125, %v9356_v49  ;;  %v9488_v10 = vmul.f32 %v18902_v28, %v18902_v28  ;;  %v9475_v27 = vmul.f32 %v18915_v1, %v18915_v1 }
 0xfe9   : > { %v18912_v12 = vsub.f32 %v19944_v25, %v9410_v2  ;;  %9514 = vadd.xlane.f32.xlu1 %v9473_v35  ;;  %9544 = vadd.xlane.f32.xlu0 %v9488_v10  ;;  %v18925_v25 = vsub.f32 %v19978_v42, %v9427_v44  ;;  %v9773_v44 = vld [vmem:[%s14731_s1 + $0x48] sm:$0xff] }
 0xfea   : > { %v9388_v63 = vpop.xlane.xlu0 %9387 }
 0xfeb   : > { %v9426_v29 = vmul.f32 0.0078125, %v9388_v63  ;;  %v9474_v59 = vmul.f32 %v18912_v12, %v18912_v12  ;;  %20023 = vst [vmem:[#allocation44_spill] sm:$0xff] %v18925_v25  ;;  %v9491_v42 = vmul.f32 %v18925_v25, %v18925_v25  ;;  %v9764_v63 = vld [vmem:[%s14731_s1] sm:$0xff] }
 0xfed   : > { %v18922_v16 = vsub.f32 %v19976_v14, %v9426_v29  ;;  %9546 = vadd.xlane.f32.xlu1 %v9489_v23  ;;  %9516 = vadd.xlane.f32.xlu0 %v9474_v59  ;;  %v18935_v14 = vsub.f32 %v19950_v19, %v9413_v39  ;;  %v9766_v23 = vld [vmem:[%s14731_s1 + $0x10] sm:$0xff]  ;;  %v9771_v29 = vld [vmem:[%s14731_s1 + $0x38] sm:$0xff] }
 0xfee   : > { %v9360_v0 = vpop.xlane.xlu0 %9359  ;;  %v9787_v59 = vld [vmem:[%s14731_s1 + $0xb8] sm:$0xff] }
 0xfef   : > { %20022 = vst [vmem:[#allocation43_spill] sm:$0xff] %v18922_v16  ;;  %v9412_v52 = vmul.f32 0.0078125, %v9360_v0  ;;  %v9490_v58 = vmul.f32 %v18922_v16, %v18922_v16  ;;  %20025 = vst [vmem:[#allocation113_spill] sm:$0xff] %v18935_v14  ;;  %v9477_v19 = vmul.f32 %v18935_v14, %v18935_v14  ;;  %v9789_v0 = vld [vmem:[%s14731_s1 + $0xc8] sm:$0xff]  ;;  %v9791_v39 = vld [vmem:[%s14731_s1 + $0xd8] sm:$0xff] }
 0xff1   : > { %v18932_v48 = vsub.f32 %v19948_v24, %v9412_v52  ;;  %9518 = vadd.xlane.f32.xlu1 %v9475_v27  ;;  %9548 = vadd.xlane.f32.xlu0 %v9490_v58  ;;  %v18945_v24 = vsub.f32 %v19982_v34, %v9429_v31  ;;  %v9398_v27 = vpop.xlane.xlu1 %9397  ;;  %v9775_v52 = vld [vmem:[%s14731_s1 + $0x58] sm:$0xff]  ;;  %v9780_v31 = vld [vmem:[%s14731_s1 + $0x80] sm:$0xff] }
 0xff2   : > { %v9392_v60 = vpop.xlane.xlu0 %9391  ;;  %v9431_v55 = vmul.f32 0.0078125, %v9398_v27  ;;  %v9772_v27 = vld [vmem:[%s14731_s1 + $0x40] sm:$0xff] }
 0xff3   : > { %20024 = vst [vmem:[#allocation45_spill] sm:$0xff] %v18932_v48  ;;  %v9428_v50 = vmul.f32 0.0078125, %v9392_v60  ;;  %v9476_v38 = vmul.f32 %v18932_v48, %v18932_v48  ;;  %20027 = vst [vmem:[#allocation115_spill] sm:$0xff] %v18945_v24  ;;  %v9493_v34 = vmul.f32 %v18945_v24, %v18945_v24  ;;  %v9777_v60 = vld [vmem:[%s14731_s1 + $0x68] sm:$0xff] }
 0xff4   : > { %v18979_v58 = vsub.f32 %v19986_v41, %v9431_v55  ;;  %v9767_v41 = vld [vmem:[%s14731_s1 + $0x18] sm:$0xff] }
 0xff5   : > { %v18942_v40 = vsub.f32 %v19980_v6, %v9428_v50  ;;  %9550 = vadd.xlane.f32.xlu1 %v9491_v42  ;;  %9520 = vadd.xlane.f32.xlu0 %v9476_v38  ;;  %v18955_v6 = vsub.f32 %v19954_v56, %v9415_v61  ;;  %v9779_v50 = vld [vmem:[%s14731_s1 + $0x78] sm:$0xff] }
 0xff6   : > { %v9364_v3 = vpop.xlane.xlu0 %9363  ;;  %20031 = vst [vmem:[#allocation119_spill] sm:$0xff] %v18979_v58  ;;  %v9495_v42 = vmul.f32 %v18979_v58, %v18979_v58  ;;  %v9795_v38 = vld [vmem:[%s14731_s1 + $0xf8] sm:$0xff] }
 0xff7   : > { %20026 = vst [vmem:[#allocation114_spill] sm:$0xff] %v18942_v40  ;;  %v9414_v43 = vmul.f32 0.0078125, %v9364_v3  ;;  %v9492_v45 = vmul.f32 %v18942_v40, %v18942_v40  ;;  %20029 = vst [vmem:[#allocation117_spill] sm:$0xff] %v18955_v6  ;;  %v9479_v56 = vmul.f32 %v18955_v6, %v18955_v6  ;;  %v9783_v61 = vld [vmem:[%s14731_s1 + $0x98] sm:$0xff] }
 0xff9   : > { %v18952_v35 = vsub.f32 %v19952_v47, %v9414_v43  ;;  %9522 = vadd.xlane.f32.xlu1 %v9477_v19  ;;  %9552 = vadd.xlane.f32.xlu0 %v9492_v45  ;;  %v9781_v19 = vld [vmem:[%s14731_s1 + $0x88] sm:$0xff] }
 0xffa   : > { %v9396_v49 = vpop.xlane.xlu0 %9395 }
 0xffb   : > { %20028 = vst [vmem:[#allocation116_spill] sm:$0xff] %v18952_v35  ;;  %v9430_v46 = vmul.f32 0.0078125, %v9396_v49  ;;  %v9478_v2 = vmul.f32 %v18952_v35, %v18952_v35  ;;  %v19064_v35 = vld [vmem:[#allocation22] ss:$0 sm:$0xff] }
 0xffd   : > { %v18962_v47 = vsub.f32 %v19984_v17, %v9430_v46  ;;  %9554 = vadd.xlane.f32.xlu1 %v9493_v34  ;;  %9524 = vadd.xlane.f32.xlu0 %v9478_v2  ;;  %v9769_v17 = vld [vmem:[%s14731_s1 + $0x28] sm:$0xff]  ;;  %v9768_v46 = vld [vmem:[%s14731_s1 + $0x20] sm:$0xff] }
 0xfff   : > { %20030 = vst [vmem:[#allocation118_spill] sm:$0xff] %v18962_v47  ;;  %v9494_v10 = vmul.f32 %v18962_v47, %v18962_v47 }
0x1001   : > { %9526 = vadd.xlane.f32.xlu1 %v9479_v56  ;;  %9556 = vadd.xlane.f32.xlu0 %v9494_v10  ;;  %v9784_v10 = vld [vmem:[%s14731_s1 + $0xa0] sm:$0xff] }
0x1012   : > { %9803 = vperm.xlu1 %13394, %v9765_v32  }
0x1016   : > { %9808 = vperm.xlu1 %13394, %v9766_v23  }
0x1017   : > { %9798 = vperm.xlu0 %13393, %v9764_v63   ;;  %v9770_v63 = vld [vmem:[%s14731_s1 + $0x30] sm:$0xff] }
0x101b   : > { %9823 = vperm.xlu0 %13393, %v9769_v17  }
0x101f   : > { %9903 = vperm.xlu0 %13393, %v9785_v36  }
0x1023   : > { %9833 = vperm.xlu0 %13393, %v9771_v29   ;;  %v9786_v29 = vld [vmem:[%s14731_s1 + $0xb0] sm:$0xff] }
0x1027   : > { %9913 = vperm.xlu0 %13393, %v9787_v59  }
0x102b   : > { %9843 = vperm.xlu0 %13393, %v9773_v44  }
0x102f   : > { %9923 = vperm.xlu0 %13393, %v9789_v0  }
0x1033   : > { %9853 = vperm.xlu0 %13393, %v9775_v52   ;;  %v9788_v52 = vld [vmem:[%s14731_s1 + $0xc0] sm:$0xff] }
0x1037   : > { %9933 = vperm.xlu0 %13393, %v9791_v39  }
0x103a   : > { %9558 = vadd.xlane.f32.xlu1 %v9495_v42 }
0x103b   : > { %9863 = vperm.xlu0 %13393, %v9777_v60  }
0x103f   : > { %9943 = vperm.xlu0 %13393, %v9793_v4   ;;  %v9774_v4 = vld [vmem:[%s14731_s1 + $0x50] sm:$0xff] }
0x1043   : > { %9873 = vperm.xlu0 %13393, %v9779_v50  }
0x1047   : > { %9953 = vperm.xlu0 %13393, %v9795_v38  }
0x104b   : > { %9813 = vperm.xlu1 %13394, %v9767_v41  }
0x104f   : > { %9878 = vperm.xlu1 %13394, %v9780_v31  }
0x1052   : > { %v9497_v3 = vpop.xlane.xlu0 %9496 }
0x1053   : > { %9883 = vperm.xlu1 %13394, %v9781_v19   ;;  %v9560_v41 = vmul.f32 0.0078125, %v9497_v3  ;;  %v9792_v3 = vld [vmem:[%s14731_s1 + $0xe0] sm:$0xff] }
0x1056   : > { %v9499_v43 = vpop.xlane.xlu1 %9498  ;;  %v9501_v45 = vpop.xlane.xlu0 %9500 }
0x1057   : > { %9888 = vperm.xlu1 %13394, %v9782_v62   ;;  %v9561_v60 = vmul.f32 0.0078125, %v9499_v43  ;;  %v9562_v19 = vmul.f32 0.0078125, %v9501_v45  ;;  %v9790_v62 = vld [vmem:[%s14731_s1 + $0xd0] sm:$0xff] }
0x1059   : > { %v9593_v31 = vadd.f32 1e-05, %v9561_v60  ;;  %v9594_v43 = vadd.f32 1e-05, %v9562_v19  ;;  %v9778_v60 = vld [vmem:[%s14731_s1 + $0x70] sm:$0xff] }
0x105a   : > { %v18993_v34 = vpop.xlane.xlu1 %9502  ;;  %v18995_v49 = vpop.xlane.xlu0 %9528 }
0x105b   : > { %9893 = vperm.xlu1 %13394, %v9783_v61   ;;  %13403 = vrsqrt.f32 %v9593_v31 }
0x105e   : > { %v18998_v2 = vpop.xlane.xlu1 %9530  ;;  %v19000_v56 = vpop.xlane.xlu0 %9532 }
0x105f   : > { %9818 = vperm.xlu1 %13394, %v9768_v46  }
0x1062   : > { %v19003_v32 = vpop.xlane.xlu1 %9534  ;;  %v19005_v23 = vpop.xlane.xlu0 %9504 }
0x1063   : > { %9898 = vperm.xlu1 %13394, %v9784_v10   ;;  %v9592_v10 = vadd.f32 1e-05, %v9560_v41  ;;  %v14247_v41 = vmov 0.0  }
0x1064   : > { %11877 = vmatprep.subr.bf16.mxu0 %v14247_v41  ;;  %11893 = vmatprep.mubr.msk.bf16.mxu0 %vm14248_vm5, %v14247_v41 }
0x1065   : > { %13405 = vrsqrt.f32 %v9592_v10  ;;  %v13404_v31 = vpop.eup %13403  ;;  %v9794_v10 = vld [vmem:[%s14731_s1 + $0xf0] sm:$0xff] }
0x1066   : > { %v19008_v17 = vpop.xlane.xlu1 %9506  ;;  %v19010_v36 = vpop.xlane.xlu0 %9536  ;;  %13407 = vrsqrt.f32 %v9594_v43  ;;  %v13396_v43 = vld [vmem:[%s20033_s22 + $0x8] sm:$0xff]  }
0x1067   : > { %9828 = vperm.xlu1 %13394, %v9770_v63   ;;  %v9776_v63 = vld [vmem:[%s14731_s1 + $0x60] sm:$0xff]  ;;  %s20046_s1 = sld [smem:[#allocation128_spill]] }
0x106a   : > { %v19013_v59 = vpop.xlane.xlu1 %9538  ;;  %v19015_v44 = vpop.xlane.xlu0 %9508 }
0x106b   : > { %9908 = vperm.xlu1 %13394, %v9786_v29  }
0x106d   : > { %s19312_s24 = scalar_lea.hbm %s20046_s1, %s10987_s30 }
0x106e   : > { %v19018_v0 = vpop.xlane.xlu1 %9510  ;;  %v19020_v55 = vpop.xlane.xlu0 %9540 }
0x106f   : > { %9838 = vperm.xlu1 %13394, %v9772_v27  }
0x1072   : > { %v19023_v39 = vpop.xlane.xlu1 %9542  ;;  %v19025_v42 = vpop.xlane.xlu0 %9512 }
0x1073   : > { %9918 = vperm.xlu1 %13394, %v9788_v52  }
0x1076   : > { %v19028_v50 = vpop.xlane.xlu1 %9514  ;;  %v19030_v38 = vpop.xlane.xlu0 %9544 }
0x1077   : > { %9848 = vperm.xlu1 %13394, %v9774_v4   ;;  %v13395_v4 = vld [vmem:[%s20032_s29] sm:$0xff]   ;;  %s20045_s29 = sld [smem:[#allocation41_spill]] }
0x1078   : > { %11878 = vmatpush3.bf16.msra.mxu0 %v13395_v4 }
0x1079   : > { %11879 = vmatprep.subr.bf16.mxu0 %v14247_v41 }
0x107a   : > { %v19033_v61 = vpop.xlane.xlu1 %9546  ;;  %v19035_v46 = vpop.xlane.xlu0 %9516 }
0x107b   : > { %9928 = vperm.xlu1 %13394, %v9790_v62  }
0x107c   : > { %11880 = vmatpush3.bf16.msra.mxu0 %v13396_v43  ;;  %v13398_v43 = vld [vmem:[%s20033_s22 + $0x18] sm:$0xff]  }
0x107d   : > { %11881 = vmatprep.subr.bf16.mxu0 %v14247_v41  ;;  %p20047_p12 = scmp.ne.s32.totalorder %s20045_s29, 0 }
0x107e   : > { %v19038_v29 = vpop.xlane.xlu1 %9518  ;;  %v19040_v27 = vpop.xlane.xlu0 %9548 }
0x107f   : > { %9858 = vperm.xlu1 %13394, %v9776_v63   ;;  %v13406_v63 = vpop.eup %13405  ;;  %p13861_p10 = pnand %p13860_p9, %p20047_p12 }
0x1080   : > { %v13408_v58 = vpop.eup %13407 }
0x1081   : > { %v9658_v24 = vmul.f32 %v13408_v58, %v18817_v57  ;;  %v13399_v58 = vld [vmem:[%s20033_s22 + $0x20] sm:$0xff]   ;;  %p13862_p2 = pneg %p13861_p10 }
0x1082   : > { %v19043_v45 = vpop.xlane.xlu1 %9550  ;;  %v19045_v52 = vpop.xlane.xlu0 %9520 }
0x1083   : > { %9938 = vperm.xlu1 %13394, %v9792_v3   ;;  %v9657_v3 = vmul.f32 %v13404_v31, %v18822_v7  ;;  %v9656_v7 = vmul.f32 %v13406_v63, %v18814_v8  ;;  %v9696_v14 = vmul.f32 %v19064_v35, %v9658_v24  ;;  %p13869_p8 = pnand %p13868_p7, %p13862_p2 }
0x1085   : > { %v9695_v4 = vmul.f32 %v19064_v35, %v9657_v3  ;;  %v9694_v3 = vmul.f32 %v19064_v35, %v9656_v7 }
0x1086   : > { %v19051_v19 = vpop.xlane.xlu1 %9522  ;;  %v19053_v62 = vpop.xlane.xlu0 %9552 }
0x1087   : > { %9868 = vperm.xlu1 %13394, %v9778_v60   ;;  %v13397_v60 = vld [vmem:[%s20033_s22 + $0x10] sm:$0xff]  }
0x1088   : > { %11882 = vmatpush3.bf16.msra.mxu0 %v13397_v60 }
0x1089   : > { %11883 = vmatprep.subr.bf16.mxu0 %v14247_v41 }
0x108a   : > { %v19060_v47 = vpop.xlane.xlu1 %9554  ;;  %v19062_v6 = vpop.xlane.xlu0 %9524 }
0x108b   : > { %9948 = vperm.xlu1 %13394, %v9794_v10   ;;  %v19074_v10 = vld [vmem:[#allocation23] ss:$0 sm:$0xff] }
0x108c   : > { %v9733_v40 = vadd.f32 %v19074_v10, %v9695_v4  ;;  %11884 = vmatpush3.bf16.msra.mxu0 %v13398_v43  ;;  %v9734_v63 = vadd.f32 %v19074_v10, %v9696_v14  ;;  %v9732_v60 = vadd.f32 %v19074_v10, %v9694_v3  ;;  %v13401_v14 = vld [vmem:[%s20033_s22 + $0x30] sm:$0xff]   ;;  %v9563_v3 = vmul.f32 0.0078125, %v18993_v34 }
0x108d   : > { %11885 = vmatprep.subr.bf16.mxu0 %v14247_v41 }
0x108e   : > { %v19072_v31 = vpop.xlane.xlu1 %9526  ;;  %v19082_v48 = vpop.xlane.xlu0 %9556 }
0x1090   : > { %11886 = vmatpush3.bf16.msra.mxu0 %v13399_v58  ;;  %v9578_v58 = vmul.f32 0.0078125, %v19000_v56 }
0x1091   : > { %11887 = vmatprep.subr.bf16.mxu0 %v14247_v41 }
0x1092   : > { %v9804_v57 = vpop.permute.xlu1 %9803  ;;  %v9610_v16 = vadd.f32 1e-05, %v9578_v58 }
0x1093   : > { %v9957_v8 = vmul.f32 %v9804_v57, %v9733_v40  ;;  %v13400_v40 = vld [vmem:[%s20033_s22 + $0x28] sm:$0xff]   ;;  %v9576_v57 = vmul.f32 0.0078125, %v18995_v49  ;;  %v9581_v49 = vmul.f32 0.0078125, %v19013_v59  ;;  %v9583_v59 = vmul.f32 0.0078125, %v19023_v39 }
0x1094   : > { %11888 = vmatpush3.bf16.msra.mxu0 %v13400_v40  ;;  %v9584_v39 = vmul.f32 0.0078125, %v19030_v38 }
0x1095   : > { %11889 = vmatprep.subr.bf16.mxu0 %v14247_v41 }
0x1096   : > { %v9809_v25 = vpop.permute.xlu1 %9808  ;;  %v9799_v4 = vpop.permute.xlu0 %9798  ;;  %v9616_v38 = vadd.f32 1e-05, %v9584_v39  ;;  %v9586_v39 = vmul.f32 0.0078125, %v19040_v27 }
0x1097   : > { %v19089_v24 = vmul.f32 %v9809_v25, %v9734_v63  ;;  %v9956_v7 = vmul.f32 %v9799_v4, %v9732_v60  ;;  %v13402_v25 = vld [vmem:[%s20033_s22 + $0x38] sm:$0xff]   ;;  %v9595_v63 = vadd.f32 1e-05, %v9563_v3  ;;  %v9579_v60 = vmul.f32 0.0078125, %v19003_v32 }
0x1098   : > { %11890 = vmatpush3.bf16.msra.mxu0 %v13401_v14  ;;  %v9608_v4 = vadd.f32 1e-05, %v9576_v57  ;;  %v9565_v14 = vmul.f32 0.0078125, %v19008_v17  ;;  %v9613_v32 = vadd.f32 1e-05, %v9581_v49  ;;  %v9567_v17 = vmul.f32 0.0078125, %v19018_v0 }
0x1099   : > { %v19094_v43 = vadd.f32 %v9957_v8, %v9956_v7  ;;  %11891 = vmatprep.subr.bf16.mxu0 %v14247_v41  ;;  %v9577_v8 = vmul.f32 0.0078125, %v18998_v2  ;;  %v9564_v7 = vmul.f32 0.0078125, %v19005_v23  ;;  %v9580_v41 = vmul.f32 0.0078125, %v19010_v36 }
0x109a   : > { %13409 = vrsqrt.f32 %v9595_v63  ;;  %v9611_v34 = vadd.f32 1e-05, %v9579_v60  ;;  %v9597_v56 = vadd.f32 1e-05, %v9565_v14  ;;  %v9566_v23 = vmul.f32 0.0078125, %v19015_v44 }
0x109b   : > { %v9609_v40 = vadd.f32 1e-05, %v9577_v8  ;;  %13411 = vrsqrt.f32 %v9608_v4  ;;  %v9596_v2 = vadd.f32 1e-05, %v9564_v7  ;;  %v9582_v36 = vmul.f32 0.0078125, %v19020_v55 }
0x109c   : > { %11892 = vmatpush3.bf16.msra.mxu0 %v13402_v25  ;;  %v9612_v25 = vadd.f32 1e-05, %v9580_v41  ;;  %v9598_v3 = vadd.f32 1e-05, %v9566_v23  ;;  %v9599_v57 = vadd.f32 1e-05, %v9567_v17 }
0x109d   : > { %13413 = vrsqrt.f32 %v9609_v40  ;;  %v9614_v58 = vadd.f32 1e-05, %v9582_v36  ;;  %v9615_v44 = vadd.f32 1e-05, %v9583_v59  ;;  %v9569_v4 = vmul.f32 0.0078125, %v19028_v50  ;;  %v19133_v59 = vpop.permute.xlu0 %9823 }
0x109e   : > { %13415 = vrsqrt.f32 %v9610_v16  ;;  %v9568_v16 = vmul.f32 0.0078125, %v19025_v42  ;;  %v9989_v14 = vrot.slane %v19094_v43, 4  ;;  %v9585_v23 = vmul.f32 0.0078125, %v19033_v61 }
0x109f   : > { %13417 = vrsqrt.f32 %v9611_v34 }
0x10a0   : > { %13419 = vrsqrt.f32 %v9596_v2  ;;  %v9600_v40 = vadd.f32 1e-05, %v9568_v16  ;;  %v9601_v2 = vadd.f32 1e-05, %v9569_v4  ;;  %v9990_v17 = vadd.f32 %v9989_v14, %v19094_v43 }
0x10a1   : > { %13421 = vrsqrt.f32 %v9597_v56  ;;  %v9617_v16 = vadd.f32 1e-05, %v9585_v23 }
0x10a2   : > { %13423 = vrsqrt.f32 %v9612_v25 }
0x10a3   : > { %13425 = vrsqrt.f32 %v9613_v32 }
0x10a4   : > { %v13410_v8 = vpop.eup %13409  ;;  %13427 = vrsqrt.f32 %v9598_v3 }
0x10a5   : > { %v13412_v63 = vpop.eup %13411  ;;  %13429 = vrsqrt.f32 %v9599_v57  ;;  %v9659_v55 = vmul.f32 %v13410_v8, %v18825_v30 }
0x10a6   : > { %13431 = vrsqrt.f32 %v9614_v58  ;;  %v9672_v42 = vmul.f32 %v13412_v63, %v18832_v53  ;;  %v9991_v63 = vrot.slane %v9990_v17, 2 }
0x10a7   : > { %v13414_v60 = vpop.eup %13413  ;;  %13433 = vrsqrt.f32 %v9615_v44  ;;  %v9697_v56 = vmul.f32 %v19064_v35, %v9659_v55 }
0x10a8   : > { %v13416_v0 = vpop.eup %13415  ;;  %v9673_v34 = vmul.f32 %v13414_v60, %v18835_v15  ;;  %13435 = vrsqrt.f32 %v9600_v40  ;;  %v9710_v15 = vmul.f32 %v19064_v35, %v9672_v42 }
0x10a9   : > { %v13418_v7 = vpop.eup %13417  ;;  %v9674_v30 = vmul.f32 %v13416_v0, %v18842_v37  ;;  %13437 = vrsqrt.f32 %v9601_v2  ;;  %v9735_v61 = vadd.f32 %v19074_v10, %v9697_v56  ;;  %v9571_v0 = vmul.f32 0.0078125, %v19038_v29  ;;  %v19155_v29 = vpop.permute.xlu0 %9903 }
0x10aa   : > { %v13420_v41 = vpop.eup %13419  ;;  %v9675_v25 = vmul.f32 %v13418_v7, %v18845_v13  ;;  %v9711_v36 = vmul.f32 %v19064_v35, %v9673_v34  ;;  %13439 = vrsqrt.f32 %v9616_v38  ;;  %v9748_v44 = vadd.f32 %v19074_v10, %v9710_v15 }
0x10ab   : > { %v13422_v49 = vpop.eup %13421  ;;  %v9660_v3 = vmul.f32 %v13420_v41, %v18852_v11  ;;  %v9712_v43 = vmul.f32 %v19064_v35, %v9674_v30  ;;  %v9570_v11 = vmul.f32 0.0078125, %v19035_v46  ;;  %13441 = vrsqrt.f32 %v9617_v16 }
0x10ac   : > { %v13424_v50 = vpop.eup %13423  ;;  %v9661_v37 = vmul.f32 %v13422_v49, %v18855_v33  ;;  %v9713_v8 = vmul.f32 %v19064_v35, %v9675_v25  ;;  %v9992_v49 = vadd.f32 %v9991_v63, %v9990_v17  ;;  %v9603_v38 = vadd.f32 1e-05, %v9571_v0 }
0x10ad   : > { %v13426_v32 = vpop.eup %13425  ;;  %v9676_v13 = vmul.f32 %v13424_v50, %v18862_v51  ;;  %v9749_v51 = vadd.f32 %v19074_v10, %v9711_v36  ;;  %v19150_v14 = vadd.f32 %v19074_v10, %v9712_v43  ;;  %v9602_v34 = vadd.f32 1e-05, %v9570_v11  ;;  %v19180_v16 = vpop.permute.xlu0 %9833 }
0x10ae   : > { %v9677_v57 = vmul.f32 %v13426_v32, %v18865_v21  ;;  %v13428_v58 = vpop.eup %13427  ;;  %v9698_v21 = vmul.f32 %v19064_v35, %v9660_v3  ;;  %v9699_v55 = vmul.f32 %v19064_v35, %v9661_v37  ;;  %v19153_v41 = vadd.f32 %v19074_v10, %v9713_v8 }
0x10af   : > { %v13430_v60 = vpop.eup %13429  ;;  %v9714_v40 = vmul.f32 %v19064_v35, %v9676_v13  ;;  %v9662_v30 = vmul.f32 %v13428_v58, %v18872_v9  ;;  %13443 = vrsqrt.f32 %v9602_v34  ;;  %v9993_v37 = vrot.slane %v9992_v49, 1 }
0x10b0   : > { %v13432_v4 = vpop.eup %13431  ;;  %v9715_v46 = vmul.f32 %v19064_v35, %v9677_v57  ;;  %v9663_v50 = vmul.f32 %v13430_v60, %v18875_v18  ;;  %v19160_v27 = vadd.f32 %v19074_v10, %v9698_v21  ;;  %v19165_v23 = vadd.f32 %v19074_v10, %v9699_v55 }
0x10b1   : > { %v13434_v42 = vpop.eup %13433  ;;  %v9678_v25 = vmul.f32 %v13432_v4, %v18882_v5  ;;  %v19168_v15 = vadd.f32 %v19074_v10, %v9714_v40  ;;  %v9587_v18 = vmul.f32 0.0078125, %v19043_v45  ;;  %v9572_v5 = vmul.f32 0.0078125, %v19045_v52 }
0x10b2   : > { %v13436_v32 = vpop.eup %13435  ;;  %v19172_v36 = vadd.f32 %v19074_v10, %v9715_v46  ;;  %v9679_v3 = vmul.f32 %v13434_v42, %v18885_v22  ;;  %v9701_v57 = vmul.f32 %v19064_v35, %v9663_v50  ;;  %v9700_v43 = vmul.f32 %v19064_v35, %v9662_v30 }
0x10b3   : > { %v13438_v9 = vpop.eup %13437  ;;  %v9716_v8 = vmul.f32 %v19064_v35, %v9678_v25  ;;  %v9664_v45 = vmul.f32 %v13436_v32, %v18892_v54  ;;  %13445 = vrsqrt.f32 %v9603_v38  ;;  %v9619_v52 = vadd.f32 1e-05, %v9587_v18 }
0x10b4   : > { %v13440_v58 = vpop.eup %13439  ;;  %v9717_v60 = vmul.f32 %v19064_v35, %v9679_v3  ;;  %v9604_v21 = vadd.f32 1e-05, %v9572_v5  ;;  %v9994_v4 = vadd.f32 %v9993_v37, %v9992_v49  ;;  %v9573_v54 = vmul.f32 0.0078125, %v19051_v19 }
0x10b5   : > { %v19186_v40 = vadd.f32 %v19074_v10, %v9700_v43  ;;  %v19191_v46 = vadd.f32 %v19074_v10, %v9701_v57  ;;  %v19194_v34 = vadd.f32 %v19074_v10, %v9716_v8  ;;  %v9588_v19 = vmul.f32 0.0078125, %v19053_v62 }
0x10b6   : > { %v19198_v49 = vadd.f32 %v19074_v10, %v9717_v60  ;;  %v10100_v50 = vpack.c.bf16 %v9994_v4, %v9994_v4  ;;  %v9605_v25 = vadd.f32 1e-05, %v9573_v54  ;;  %v9574_v57 = vmul.f32 0.0078125, %v19062_v6 }
0x10b7   : > { %v9620_v37 = vadd.f32 1e-05, %v9588_v19  ;;  %v9961_v6 = vmul.f32 %v19133_v59, %v19165_v23  ;;  %v9575_v4 = vmul.f32 0.0078125, %v19072_v31  ;;  %v9590_v59 = vmul.f32 0.0078125, %v19082_v48 }
0x10b8   : > { %v10148_v43 = vunpack.c.l.b16 %v10100_v50  ;;  %v9606_v54 = vadd.f32 1e-05, %v9574_v57 }
0x10b9   : > { %v9607_v50 = vadd.f32 1e-05, %v9575_v4 }
0x10c7   : > { %v19127_v53 = vpop.xlane.xlu1 %9558 }
0x10c8   : > { %v9591_v57 = vmul.f32 0.0078125, %v19127_v53 }
0x10cb   : > { %v9814_v33 = vpop.permute.xlu1 %9813 }
0x10cc   : > { %v9959_v7 = vmul.f32 %v9814_v33, %v9735_v61  ;;  %v9665_v33 = vmul.f32 %v13438_v9, %v18895_v26 }
0x10ce   : > { %v9995_v2 = vadd.f32 %v9959_v7, %v19089_v24  ;;  %v9618_v24 = vadd.f32 1e-05, %v9586_v39  ;;  %v13442_v39 = vpop.eup %13441 }
0x10cf   : > { %v9879_v56 = vpop.permute.xlu1 %9878  ;;  %v9681_v32 = vmul.f32 %v13442_v39, %v18905_v20 }
0x10d0   : > { %v9996_v17 = vrot.slane %v9995_v2, 4  ;;  %v9972_v11 = vmul.f32 %v9879_v56, %v9748_v44  ;;  %13447 = vrsqrt.f32 %v9618_v24  ;;  %v9702_v44 = vmul.f32 %v19064_v35, %v9664_v45  ;;  %v13444_v24 = vpop.eup %13443 }
0x10d1   : > { %13449 = vrsqrt.f32 %v9619_v52 }
0x10d2   : > { %v9997_v13 = vadd.f32 %v9996_v17, %v9995_v2  ;;  %v9703_v2 = vmul.f32 %v19064_v35, %v9665_v33  ;;  %13451 = vrsqrt.f32 %v9604_v21  ;;  %v19205_v17 = vadd.f32 %v19074_v10, %v9702_v44 }
0x10d3   : > { %v9884_v61 = vpop.permute.xlu1 %9883  ;;  %13453 = vrsqrt.f32 %v9605_v25 }
0x10d4   : > { %v9998_v22 = vrot.slane %v9997_v13, 2  ;;  %v9973_v63 = vmul.f32 %v9884_v61, %v9749_v51  ;;  %v9680_v51 = vmul.f32 %v13440_v58, %v18902_v28  ;;  %v19201_v28 = vpop.permute.xlu0 %9913  ;;  %v19213_v20 = vadd.f32 %v19074_v10, %v9703_v2  ;;  %v13446_v61 = vpop.eup %13445 }
0x10d5   : > { %13455 = vrsqrt.f32 %v9620_v37  ;;  %v9979_v4 = vmul.f32 %v19201_v28, %v19198_v49 }
0x10d6   : > { %v9999_v0 = vadd.f32 %v9998_v22, %v9997_v13  ;;  %v10044_v55 = vadd.f32 %v9973_v63, %v9972_v11  ;;  %v9718_v62 = vmul.f32 %v19064_v35, %v9680_v51  ;;  %v9589_v13 = vmul.f32 0.0078125, %v19060_v47 }
0x10d7   : > { %v9889_v7 = vpop.permute.xlu1 %9888  ;;  %v9719_v11 = vmul.f32 %v19064_v35, %v9681_v32  ;;  %v9666_v47 = vmul.f32 %v13444_v24, %v18912_v12  ;;  %v9963_v24 = vmul.f32 %v19180_v16, %v19191_v46 }
0x10d8   : > { %v10000_v26 = vrot.slane %v9999_v0, 1  ;;  %v10045_v42 = vrot.slane %v10044_v55, 4  ;;  %v9974_v9 = vmul.f32 %v9889_v7, %v19150_v14  ;;  %v19222_v63 = vpop.permute.xlu0 %9843  ;;  %v9621_v21 = vadd.f32 1e-05, %v9589_v13 }
0x10d9   : > { %v19232_v23 = vadd.f32 %v19074_v10, %v9719_v11  ;;  %v9704_v39 = vmul.f32 %v19064_v35, %v9666_v47 }
0x10da   : > { %v10001_v56 = vadd.f32 %v10000_v26, %v9999_v0  ;;  %v10046_v30 = vadd.f32 %v10045_v42, %v10044_v55  ;;  %v13448_v22 = vpop.eup %13447  ;;  %v9667_v0 = vmul.f32 %v13446_v61, %v18915_v1  ;;  %v9977_v1 = vmul.f32 %v19155_v29, %v19172_v36 }
0x10db   : > { %v9894_v38 = vpop.permute.xlu1 %9893  ;;  %v13450_v44 = vpop.eup %13449  ;;  %13457 = vrsqrt.f32 %v9621_v21  ;;  %v19245_v36 = vadd.f32 %v19074_v10, %v9704_v39 }
0x10dc   : > { %v10101_v18 = vpack.c.bf16 %v10001_v56, %v10001_v56  ;;  %v10047_v3 = vrot.slane %v10046_v30, 2  ;;  %v9975_v5 = vmul.f32 %v9894_v38, %v19153_v41  ;;  %v19217_v41 = vadd.f32 %v19074_v10, %v9718_v62  ;;  %v13452_v42 = vpop.eup %13451 }
0x10dd   : > { %v9705_v48 = vmul.f32 %v19064_v35, %v9667_v0  ;;  %13459 = vrsqrt.f32 %v9606_v54  ;;  %v9622_v62 = vadd.f32 1e-05, %v9590_v59  ;;  %v13454_v37 = vpop.eup %13453  ;;  %v9623_v0 = vadd.f32 1e-05, %v9591_v57 }
0x10de   : > { %v10149_v8 = vunpack.c.l.b16 %v10101_v18  ;;  %v10048_v45 = vadd.f32 %v10047_v3, %v10046_v30  ;;  %v10051_v58 = vadd.f32 %v9975_v5, %v9974_v9  ;;  %v19240_v30 = vpop.permute.xlu0 %9923  ;;  %13461 = vrsqrt.f32 %v9607_v50 }
0x10df   : > { %v9819_v14 = vpop.permute.xlu1 %9818  ;;  %v19250_v13 = vadd.f32 %v19074_v10, %v9705_v48  ;;  %13463 = vrsqrt.f32 %v9622_v62  ;;  %v13456_v47 = vpop.eup %13455 }
0x10e0   : > { %v19225_v52 = vsel %vm10164_vm6, %v10149_v8, %v10148_v43  ;;  %v10052_v60 = vrot.slane %v10051_v58, 4  ;;  %v9960_v33 = vmul.f32 %v9819_v14, %v19160_v27  ;;  %v10049_v55 = vrot.slane %v10048_v45, 1  ;;  %v20034_v27 = vld [vmem:[#allocation43_spill] sm:$0xff] }
0x10e1   : > { %v9682_v26 = vmul.f32 %v13448_v22, %v20034_v27  ;;  %v20037_v27 = vld [vmem:[#allocation113_spill] sm:$0xff]  ;;  %13465 = vrsqrt.f32 %v9623_v0 }
0x10e2   : > { %v10053_v12 = vadd.f32 %v10052_v60, %v10051_v58  ;;  %v10002_v7 = vadd.f32 %v9961_v6, %v9960_v33  ;;  %v10050_v56 = vadd.f32 %v10049_v55, %v10048_v45  ;;  %v20035_v45 = vld [vmem:[#allocation44_spill] sm:$0xff]  ;;  %v9854_v6 = vpop.permute.xlu0 %9853 }
0x10e3   : > { %v9899_v51 = vpop.permute.xlu1 %9898  ;;  %v9683_v58 = vmul.f32 %v13450_v44, %v20035_v45 }
0x10e4   : > { %v10054_v31 = vrot.slane %v10053_v12, 2  ;;  %v10003_v19 = vrot.slane %v10002_v7, 4  ;;  %v9976_v2 = vmul.f32 %v9899_v51, %v19168_v15  ;;  %v9720_v15 = vmul.f32 %v19064_v35, %v9682_v26 }
0x10e5   : > { %v10108_v61 = vpack.c.bf16 %v10050_v56, %v10050_v56  ;;  %v13458_v51 = vpop.eup %13457  ;;  %v9721_v39 = vmul.f32 %v19064_v35, %v9683_v58  ;;  %v9669_v26 = vmul.f32 %v13454_v37, %v20037_v27 }
0x10e6   : > { %v10055_v25 = vadd.f32 %v10054_v31, %v10053_v12  ;;  %v10004_v32 = vadd.f32 %v10003_v19, %v10002_v7  ;;  %v10058_v38 = vadd.f32 %v9977_v1, %v9976_v2  ;;  %v19255_v11 = vadd.f32 %v19074_v10, %v9720_v15 }
0x10e7   : > { %v9829_v29 = vpop.permute.xlu1 %9828  ;;  %v10156_v55 = vunpack.c.l.b16 %v10108_v61  ;;  %v13460_v19 = vpop.eup %13459 }
0x10e8   : > { %v10056_v18 = vrot.slane %v10055_v25, 1  ;;  %v10005_v3 = vrot.slane %v10004_v32, 2  ;;  %v10059_v9 = vrot.slane %v10058_v38, 4  ;;  %v9962_v5 = vmul.f32 %v9829_v29, %v19186_v40  ;;  %v20036_v40 = vld [vmem:[#allocation45_spill] sm:$0xff]  ;;  %v13462_v15 = vpop.eup %13461 }
0x10e9   : > { %v9668_v14 = vmul.f32 %v13452_v42, %v20036_v40  ;;  %v13464_v61 = vpop.eup %13463  ;;  %v20039_v40 = vld [vmem:[#allocation115_spill] sm:$0xff] }
0x10ea   : > { %v10057_v16 = vadd.f32 %v10056_v18, %v10055_v25  ;;  %v10006_v46 = vadd.f32 %v10005_v3, %v10004_v32  ;;  %v10060_v43 = vadd.f32 %v10059_v9, %v10058_v38  ;;  %v10009_v8 = vadd.f32 %v9963_v24, %v9962_v5  ;;  %v20038_v25 = vld [vmem:[#allocation114_spill] sm:$0xff]  ;;  %v9934_v38 = vpop.permute.xlu0 %9933 }
0x10eb   : > { %v9909_v22 = vpop.permute.xlu1 %9908  ;;  %v9706_v31 = vmul.f32 %v19064_v35, %v9668_v14  ;;  %v9684_v32 = vmul.f32 %v13456_v47, %v20038_v25  ;;  %v9981_v18 = vmul.f32 %v19240_v30, %v19232_v23  ;;  %v9759_v3 = vadd.f32 %v19074_v10, %v9721_v39 }
0x10ec   : > { %v10109_v60 = vpack.c.bf16 %v10057_v16, %v10057_v16  ;;  %v10007_v33 = vrot.slane %v10006_v46, 1  ;;  %v10061_v53 = vrot.slane %v10060_v43, 2  ;;  %v10010_v21 = vrot.slane %v10009_v8, 4 }
0x10ed   : > { %v9978_v54 = vmul.f32 %v9909_v22, %v19194_v34  ;;  %v9965_v34 = vmul.f32 %v19222_v63, %v19213_v20  ;;  %v9707_v16 = vmul.f32 %v19064_v35, %v9669_v26  ;;  %v9722_v58 = vmul.f32 %v19064_v35, %v9684_v32 }
0x10ee   : > { %v10157_v12 = vunpack.c.l.b16 %v10109_v60  ;;  %v10008_v7 = vadd.f32 %v10007_v33, %v10006_v46  ;;  %v10062_v44 = vadd.f32 %v10061_v53, %v10060_v43  ;;  %v10011_v59 = vadd.f32 %v10010_v21, %v10009_v8 }
0x10ef   : > { %v10065_v42 = vadd.f32 %v9979_v4, %v9978_v54  ;;  %v9839_v1 = vpop.permute.xlu1 %9838  ;;  %v9744_v8 = vadd.f32 %v19074_v10, %v9706_v31  ;;  %v9967_v22 = vmul.f32 %v9854_v6, %v19250_v13  ;;  %v9745_v0 = vadd.f32 %v19074_v10, %v9707_v16 }
0x10f0   : > { %v10178_v49 = vsel %vm10164_vm6, %v10157_v12, %v10156_v55  ;;  %v10102_v28 = vpack.c.bf16 %v10008_v7, %v10008_v7  ;;  %v10063_v2 = vrot.slane %v10062_v44, 1  ;;  %v10012_v50 = vrot.slane %v10011_v59, 2  ;;  %v20040_v12 = vld [vmem:[#allocation116_spill] sm:$0xff] }
0x10f1   : > { %v10066_v48 = vrot.slane %v10065_v42, 4  ;;  %v9964_v56 = vmul.f32 %v9839_v1, %v19205_v17  ;;  %v9670_v7 = vmul.f32 %v13460_v19, %v20040_v12  ;;  %v13466_v1 = vpop.eup %13465  ;;  %v20041_v19 = vld [vmem:[#allocation117_spill] sm:$0xff] }
0x10f2   : > { %v10150_v62 = vunpack.c.l.b16 %v10102_v28  ;;  %v10064_v24 = vadd.f32 %v10063_v2, %v10062_v44  ;;  %v10013_v29 = vadd.f32 %v10012_v50, %v10011_v59  ;;  %v9760_v59 = vadd.f32 %v19074_v10, %v9722_v58 }
0x10f3   : > { %v10067_v9 = vadd.f32 %v10066_v48, %v10065_v42  ;;  %v10016_v5 = vadd.f32 %v9965_v34, %v9964_v56  ;;  %v9919_v20 = vpop.permute.xlu1 %9918  ;;  %v9671_v2 = vmul.f32 %v13462_v15, %v20041_v19  ;;  %v9708_v48 = vmul.f32 %v19064_v35, %v9670_v7 }
0x10f4   : > { %v10167_v17 = vsel %vm10166_vm7, %v10150_v62, %v19225_v52  ;;  %v10110_v63 = vpack.c.bf16 %v10064_v24, %v10064_v24  ;;  %v10014_v37 = vrot.slane %v10013_v29, 1  ;;  %v9980_v57 = vmul.f32 %v9919_v20, %v19217_v41  ;;  %v9864_v41 = vpop.permute.xlu0 %9863  ;;  %v20042_v62 = vld [vmem:[#allocation118_spill] sm:$0xff] }
0x10f5   : > { %v10068_v46 = vrot.slane %v10067_v9, 2  ;;  %v10017_v43 = vrot.slane %v10016_v5, 4  ;;  %v9685_v52 = vmul.f32 %v13458_v51, %v20039_v40  ;;  %v9983_v51 = vmul.f32 %v9934_v38, %v9759_v3 }
0x10f6   : > { %v10158_v23 = vunpack.c.l.b16 %v10110_v63  ;;  %v10015_v30 = vadd.f32 %v10014_v37, %v10013_v29  ;;  %v10072_v45 = vadd.f32 %v9981_v18, %v9980_v57  ;;  %v9686_v24 = vmul.f32 %v13464_v61, %v20042_v62  ;;  %v20043_v18 = vld [vmem:[#allocation119_spill] sm:$0xff] }
0x10f7   : > { %v10069_v14 = vadd.f32 %v10068_v46, %v10067_v9  ;;  %v10018_v47 = vadd.f32 %v10017_v43, %v10016_v5  ;;  %v9849_v60 = vpop.permute.xlu1 %9848  ;;  %v9723_v39 = vmul.f32 %v19064_v35, %v9685_v52  ;;  %v9969_v29 = vmul.f32 %v9864_v41, %v9745_v0 }
0x10f8   : > { %v10179_v33 = vsel %vm10166_vm7, %v10158_v23, %v10178_v49  ;;  %v10103_v53 = vpack.c.bf16 %v10015_v30, %v10015_v30  ;;  %v10073_v21 = vrot.slane %v10072_v45, 4  ;;  %v9966_v4 = vmul.f32 %v9849_v60, %v19245_v36  ;;  %v9944_v56 = vpop.permute.xlu0 %9943 }
0x10f9   : > { %v10070_v55 = vrot.slane %v10069_v14, 1  ;;  %v10019_v54 = vrot.slane %v10018_v47, 2  ;;  %v9687_v3 = vmul.f32 %v13466_v1, %v20043_v18  ;;  %v9761_v37 = vadd.f32 %v19074_v10, %v9723_v39 }
0x10fa   : > { %v10151_v44 = vunpack.c.l.b16 %v10103_v53  ;;  %v10074_v13 = vadd.f32 %v10073_v21, %v10072_v45  ;;  %v10023_v6 = vadd.f32 %v9967_v22, %v9966_v4  ;;  %v9709_v57 = vmul.f32 %v19064_v35, %v9671_v2 }
0x10fb   : > { %v10071_v27 = vadd.f32 %v10070_v55, %v10069_v14  ;;  %v10020_v26 = vadd.f32 %v10019_v54, %v10018_v47  ;;  %v9929_v42 = vpop.permute.xlu1 %9928  ;;  %v9725_v45 = vmul.f32 %v19064_v35, %v9687_v3  ;;  %v9746_v40 = vadd.f32 %v19074_v10, %v9708_v48 }
0x10fc   : > { %v10075_v36 = vrot.slane %v10074_v13, 2  ;;  %v10024_v31 = vrot.slane %v10023_v6, 4  ;;  %v9982_v49 = vmul.f32 %v9929_v42, %v19255_v11  ;;  %v10169_v28 = vsel %vm10168_vm8, %v10151_v44, %v10167_v17 }
0x10fd   : > { %v10111_v50 = vpack.c.bf16 %v10071_v27, %v10071_v27  ;;  %v10021_v34 = vrot.slane %v10020_v26, 1  ;;  %v9724_v52 = vmul.f32 %v19064_v35, %v9686_v24  ;;  %v9985_v53 = vmul.f32 %v9944_v56, %v9761_v37 }
0x10fe   : > { %v10076_v25 = vadd.f32 %v10075_v36, %v10074_v13  ;;  %v10025_v32 = vadd.f32 %v10024_v31, %v10023_v6  ;;  %v10079_v38 = vadd.f32 %v9983_v51, %v9982_v49  ;;  %v9763_v44 = vadd.f32 %v19074_v10, %v9725_v45 }
0x10ff   : > { %v10159_v9 = vunpack.c.l.b16 %v10111_v50  ;;  %v10022_v5 = vadd.f32 %v10021_v34, %v10020_v26  ;;  %v9859_v11 = vpop.permute.xlu1 %9858  ;;  %v9762_v1 = vadd.f32 %v19074_v10, %v9724_v52 }
0x1100   : > { %v10077_v20 = vrot.slane %v10076_v25, 1  ;;  %v10026_v17 = vrot.slane %v10025_v32, 2  ;;  %v10080_v63 = vrot.slane %v10079_v38, 4  ;;  %v9968_v15 = vmul.f32 %v9859_v11, %v9744_v8  ;;  %v9874_v8 = vpop.permute.xlu0 %9873 }
0x1101   : > { %v10104_v16 = vpack.c.bf16 %v10022_v5, %v10022_v5  ;;  %v10180_v46 = vsel %vm10168_vm8, %v10159_v9, %v10179_v33  ;;  %v9747_v33 = vadd.f32 %v19074_v10, %v9709_v57 }
0x1102   : > { %v10078_v43 = vadd.f32 %v10077_v20, %v10076_v25  ;;  %v10027_v23 = vadd.f32 %v10026_v17, %v10025_v32  ;;  %v10081_v61 = vadd.f32 %v10080_v63, %v10079_v38  ;;  %v10030_v30 = vadd.f32 %v9969_v29, %v9968_v15 }
0x1103   : > { %v10152_v58 = vunpack.c.l.b16 %v10104_v16  ;;  %v9939_v22 = vpop.permute.xlu1 %9938  ;;  %v9971_v7 = vmul.f32 %v9874_v8, %v9747_v33 }
0x1104   : > { %v10112_v14 = vpack.c.bf16 %v10078_v43, %v10078_v43  ;;  %v10028_v47 = vrot.slane %v10027_v23, 1  ;;  %v10082_v60 = vrot.slane %v10081_v61, 2  ;;  %v10031_v41 = vrot.slane %v10030_v30, 4  ;;  %v9954_v6 = vpop.permute.xlu0 %9953 }
0x1105   : > { %v9984_v21 = vmul.f32 %v9939_v22, %v9760_v59  ;;  %v10171_v4 = vsel %vm10170_vm9, %v10152_v58, %v10169_v28  ;;  %v9987_v19 = vmul.f32 %v9954_v6, %v9763_v44 }
0x1106   : > { %v10160_v0 = vunpack.c.l.b16 %v10112_v14  ;;  %v10029_v55 = vadd.f32 %v10028_v47, %v10027_v23  ;;  %v10083_v54 = vadd.f32 %v10082_v60, %v10081_v61  ;;  %v10032_v12 = vadd.f32 %v10031_v41, %v10030_v30 }
0x1107   : > { %v10086_v13 = vadd.f32 %v9985_v53, %v9984_v21  ;;  %v9869_v35 = vpop.permute.xlu1 %9868 }
0x1108   : > { %v10105_v51 = vpack.c.bf16 %v10029_v55, %v10029_v55  ;;  %v10084_v39 = vrot.slane %v10083_v54, 1  ;;  %v10033_v27 = vrot.slane %v10032_v12, 2  ;;  %v9970_v26 = vmul.f32 %v9869_v35, %v9746_v40 }
0x1109   : > { %v10087_v42 = vrot.slane %v10086_v13, 4  ;;  %v10181_v59 = vsel %vm10170_vm9, %v10160_v0, %v10180_v46 }
0x110a   : > { %v10153_v36 = vunpack.c.l.b16 %v10105_v51  ;;  %v10085_v31 = vadd.f32 %v10084_v39, %v10083_v54  ;;  %v10034_v49 = vadd.f32 %v10033_v27, %v10032_v12  ;;  %v10037_v28 = vadd.f32 %v9971_v7, %v9970_v26 }
0x110b   : > { %v10088_v2 = vadd.f32 %v10087_v42, %v10086_v13  ;;  %v9949_v50 = vpop.permute.xlu1 %9948 }
0x110c   : > { %v10113_v34 = vpack.c.bf16 %v10085_v31, %v10085_v31  ;;  %v10035_v48 = vrot.slane %v10034_v49, 1  ;;  %v10038_v56 = vrot.slane %v10037_v28, 4  ;;  %v9986_v25 = vmul.f32 %v9949_v50, %v9762_v1 }
0x110d   : > { %v10089_v32 = vrot.slane %v10088_v2, 2  ;;  %v10173_v38 = vsel %vm10172_vm10, %v10153_v36, %v10171_v4 }
0x110e   : > { %v10161_v62 = vunpack.c.l.b16 %v10113_v34  ;;  %v10036_v24 = vadd.f32 %v10035_v48, %v10034_v49  ;;  %v10039_v10 = vadd.f32 %v10038_v56, %v10037_v28  ;;  %v10093_v29 = vadd.f32 %v9987_v19, %v9986_v25 }
0x110f   : > { %v10090_v18 = vadd.f32 %v10089_v32, %v10088_v2 }
0x1110   : > { %v10106_v3 = vpack.c.bf16 %v10036_v24, %v10036_v24  ;;  %v10040_v9 = vrot.slane %v10039_v10, 2  ;;  %v10094_v5 = vrot.slane %v10093_v29, 4  ;;  %v10182_v11 = vsel %vm10172_vm10, %v10161_v62, %v10181_v59 }
0x1111   : > { %v10091_v20 = vrot.slane %v10090_v18, 1 }
0x1112   : > { %v10154_v17 = vunpack.c.l.b16 %v10106_v3  ;;  %v10041_v63 = vadd.f32 %v10040_v9, %v10039_v10  ;;  %v10095_v15 = vadd.f32 %v10094_v5, %v10093_v29 }
0x1113   : > { %v10092_v37 = vadd.f32 %v10091_v20, %v10090_v18 }
0x1114   : > { %v10042_v57 = vrot.slane %v10041_v63, 1  ;;  %v10096_v16 = vrot.slane %v10095_v15, 2  ;;  %v10175_v46 = vsel %vm10174_vm11, %v10154_v17, %v10173_v38 }
0x1115   : > { %v10114_v61 = vpack.c.bf16 %v10092_v37, %v10092_v37 }
0x1116   : > { %v10043_v43 = vadd.f32 %v10042_v57, %v10041_v63  ;;  %v10097_v23 = vadd.f32 %v10096_v16, %v10095_v15 }
0x1117   : > { %v10162_v22 = vunpack.c.l.b16 %v10114_v61 }
0x1118   : > { %v10107_v30 = vpack.c.bf16 %v10043_v43, %v10043_v43  ;;  %v10098_v45 = vrot.slane %v10097_v23, 1 }
0x1119   : > { %v10183_v14 = vsel %vm10174_vm11, %v10162_v22, %v10182_v11 }
0x111a   : > { %v10099_v58 = vadd.f32 %v10098_v45, %v10097_v23  ;;  %v10155_v52 = vunpack.c.l.b16 %v10107_v30 }
0x111c   : > { %v10115_v40 = vpack.c.bf16 %v10099_v58, %v10099_v58  ;;  %v10177_v47 = vsel %vm10176_vm12, %v10155_v52, %v10175_v46 }
0x111e   : > { %v10163_v8 = vunpack.c.l.b16 %v10115_v40 }
0x1120   : > { %v10184_v60 = vsel %vm10176_vm12, %v10163_v8, %v10183_v14 }
0x1121   : > { %v10185_v41 = vpack.c.b16 %v10184_v60, %v10177_v47 }
0x1123   : > { %11894 = vmatmul.mubr.bf16.vlgmr.msra.gmra.mrb[0].mxu0 %v10185_v41 }
0x11f6   : > { %v10269_v53 = vpop.f32.mrb[0].mxu0 }
0x11f7   : > { %10276 = vst [vmem:[%s14785_s20] sm:$0xff] %v10269_v53  ;;  %v11895_v33 = vpop.f32.mrb[1].mxu0 }
0x11f8   : > { %v10272_v21 = vpop.f32.mrb[2].mxu0 }
0x11f9   : > { %10277 = vst [vmem:[%s14785_s20 + $0x8] sm:$0xff] %v10272_v21  ;;  %v11896_v4 = vpop.f32.mrb[3].mxu0 }
0x11fa   : > { %13872 = shalt.err (!%p13869_p8)
}
0x11fb   : > { %s13873_s21 = scalar_lea.hbm %s19312_s24, 256  ;;  %s13877_s18 = scalar_lea.hbm %s20046_s1, 1024 }
0x11fc   : > { %p13874_p11 = scmp.ne.s32.totalorder %s19312_s24, %s13873_s21  ;;  %p13878_p0 = scmp.lt.u32.totalorder %s19312_s24, %s20046_s1 }
0x11fd   : > { %p13879_p6 = scmp.lt.u32.totalorder %s13877_s18, %s13873_s21  ;;  %p13881_p9 = scmp.lt.u32.totalorder %s13873_s21, %s19312_s24 }
0x11fe   : > { %p13875_p13 = pnand %p13874_p11, %p20047_p12 }
0x11ff   : > { %p13880_p5 = por %p13879_p6, %p13878_p0 }
0x1200   : > { %p13876_p1 = pneg %p13875_p13 }
0x1201   : > { %p13882_p10 = por %p13881_p9, %p13880_p5 }
0x1203   : > { %p13883_p2 = pnand %p13882_p10, %p13876_p1 }
0x1205   : > { %13886 = shalt.err (!%p13883_p2)
}
0x1206   : > { %s14250_s2 = smov 128   ;;  %s14251_s30 = smov 8  }
0x1207   : > { %11969 = dma.vmem_to_hbm [thread:$0]  (%p20047_p12), %s19314_s28, 256, %s19312_s24, %s19320_s19, %s14250_s2, %s14250_s2, %s14251_s30  }
0x1208 PF: > { %s20048_s17 = sld [smem:[#allocation38_spill]]  ;;  %s20049_s26 = sld [smem:[#allocation35_spill]] }
0x1209   : > { %s20050_s0 = sld [smem:[#allocation42_spill]] }
0x120e   : > { %p12046_p3 = scmp.ge.s32.totalorder %s20048_s17, 2  ;;  %s10307_s3 = sand.u32 1, %s20049_s26  }
0x120f   : > { %p20051_p4 = scmp.ne.s32.totalorder %s20050_s0, 0  ;;  %s10308_s12 = scalar_lea.sflag [#allocation4], %s10307_s3 }
0x1211   : > { %p12015_p7 = pnand %p12046_p3, %p20051_p4 }
0x1213   : > { %14068 = dma.done.wait (!%p12015_p7), %s10308_s12, 256  }
0x1214   : > { %14070 = vsyncadd (!%p12015_p7), %s10308_s12, 4294967040  ;;  %s20052_s30 = sld [smem:[#allocation39_spill]]  ;;  %s20053_s27 = sld [smem:[#allocation36_spill]] }
0x1215   : > { %s20054_s28 = sld [smem:[#allocation37_spill]]  ;;  %s20055_s29 = sld [smem:[#allocation40_spill]] }
0x121a   : > { %p36_p8 = scmp.ge.s32.totalorder %s20052_s30, 6  }
0x121c   :  { %38 = sbr.rel (!%p36_p8) target bundleno = 21 (0x15), region = 217 }
0x1223   :  { %10313 = vsyncpa [#allocation3], 1 }
0x1224   :  { %10315 = vsyncpa [#allocation3 + $0x1], 1 }
0x1225   :  { %10316 = vsyncpa [#allocation6], 1 }
0x1226   :  { %10317 = vsyncpa [#allocation9], 1 }
0x1227   :  { %10318 = vsyncpa [#allocation12], 1 }
0x1228   :  { %10319 = vsyncpa [#allocation15], 1 }
0x1229   :  { %10320 = vsyncpa [#allocation18], 1 }
0x122a   :  { %10321 = vsyncpa [#allocation21], 1 }
0x122b   :  { %10322 = vsyncpa [#allocation24], 1 }
0x122c   :  { %10323 = vsyncpa [#allocation4], 1 }
0x122d   :  { %10325 = vsyncpa [#allocation4 + $0x1], 1 }

</bundles_post_ra>
